<compile_context>
chip_gen: v7x
topology: tpu7x:2x2x1
jax: 0.10.0
libtpu: 0.0.40
codegen_flags: <defaults>
</compile_context>

<pallas_src>
import functools

import jax
import jax.numpy as jnp
from jax.experimental import pallas as pl
from jax.experimental.pallas import tpu as pltpu

LANE = 128


# -----------------------------------------------------------------------------
# Tiling heuristics
# -----------------------------------------------------------------------------
def _choose_tm(m):
    """Single M tile whenever it is small enough; otherwise a large mult-of-256."""
    if m <= 2048:
        return m
    for tm in (2048, 1024, 512, 256):     # MXU-row friendly (256 on v6e/v7x)
        if m % tm == 0:
            return tm
    return m


def _choose_tk(k_total, cout, budget_bytes=2 << 20):
    """Largest K tile whose bf16 weight block fits the VMEM budget (full K if it fits)."""
    if k_total <= 128 or k_total * cout * 2 <= budget_bytes:
        return k_total
    best = None
    t = 128
    while t <= k_total:
        if k_total % t == 0 and t * cout * 2 <= budget_bytes:
            best = t
        t += 128
    if best is not None:
        return best
    return 128 if k_total % 128 == 0 else k_total


# -----------------------------------------------------------------------------
# Pallas kernel: K-accumulated matmul + bias + activation
#   grid = (m_tiles, n_k); at the tested size both are 1 (fully fused step).
# -----------------------------------------------------------------------------
def _conv_step_kernel(x_ref, w_ref, b_ref, o_ref, acc_ref, *, activation):
    k = pl.program_id(1)

    @pl.when(k == 0)
    def _():
        # Bias folded into the accumulator init (saves an epilogue VALU pass).
        acc_ref[...] = jnp.broadcast_to(b_ref[...], acc_ref.shape)

    acc_ref[...] += jnp.dot(x_ref[...], w_ref[...],
                            preferred_element_type=jnp.float32)

    @pl.when(k == pl.num_programs(1) - 1)
    def _():
        acc = acc_ref[...]
        if activation == "leaky_relu":
            acc = jnp.where(acc >= 0, acc, 0.2 * acc)
        elif activation == "sigmoid":
            acc = jax.nn.sigmoid(acc)
        o_ref[...] = acc.astype(o_ref.dtype)


def fused_matmul(x_k, w_k, b_row, activation, out_dtype):
    """x_k: (M, K) bf16, w_k: (K, Cout) bf16, b_row: (1, Cout) f32 -> (M, Cout)."""
    m, k_total = x_k.shape
    cout = w_k.shape[1]
    tm = _choose_tm(m)
    tk = _choose_tk(k_total, cout)
    m_tiles = m // tm
    n_k = k_total // tk

    out_itemsize = jnp.dtype(out_dtype).itemsize

    # Weights: fetched once per M tile (single M tile at the tested sizes).
    # Deepen pipelining only when the K axis actually streams many weight tiles.
    if n_k >= 3:
        w_spec = pl.BlockSpec((tk, cout), lambda i, k: (k, 0),
                              pipeline_mode=pl.Buffered(3))
        w_bufs = 3
    else:
        w_spec = pl.BlockSpec((tk, cout), lambda i, k: (k, 0))
        w_bufs = 2

    # Explicit VMEM budget (double-buffered inputs/outputs + acc), floored at
    # 16 MiB and capped well under v7x's 64 MiB physical VMEM.
    vmem_need = (2 * tm * tk * 2 + w_bufs * tk * cout * 2
                 + 2 * tm * cout * out_itemsize + 2 * cout * 4
                 + tm * cout * 4)
    vmem_limit = int(min(48 << 20, max(16 << 20, 2 * vmem_need)))

    cost = pl.CostEstimate(
        flops=2 * m * k_total * cout,
        transcendentals=(m * cout if activation == "sigmoid" else 0),
        bytes_accessed=(x_k.size * 2                     # LHS once
                        + w_k.size * 2 * m_tiles         # weights per M tile
                        + b_row.size * 4 * m_tiles * n_k
                        + m * cout * out_itemsize),
    )

    return pl.pallas_call(
        functools.partial(_conv_step_kernel, activation=activation),
        out_shape=jax.ShapeDtypeStruct((m, cout), out_dtype),
        grid_spec=pltpu.PrefetchScalarGridSpec(
            num_scalar_prefetch=0,
            grid=(m_tiles, n_k),
            in_specs=[
                pl.BlockSpec((tm, tk), lambda i, k: (i, k)),
                w_spec,
                pl.BlockSpec((1, cout), lambda i, k: (0, 0)),
            ],
            out_specs=pl.BlockSpec((tm, cout), lambda i, k: (i, 0)),
            scratch_shapes=[pltpu.VMEM((tm, cout), jnp.float32)],
        ),
        compiler_params=pltpu.CompilerParams(
            dimension_semantics=("parallel", "arbitrary"),
            vmem_limit_bytes=vmem_limit),
        cost_estimate=cost,
    )(x_k, w_k, b_row)


# -----------------------------------------------------------------------------
# JAX glue: spectral norm (tiny), layer assembly
# -----------------------------------------------------------------------------
def l2_normalize(v):
    return v / (jnp.linalg.norm(v) + 1e-12)


def spectral_normalize(w, u):
    """One power iteration (matches SpectralNorm.update_u_v, power_iterations=1)."""
    cout = w.shape[0]
    w_mat = w.reshape(cout, -1)
    v = l2_normalize(w_mat.T @ u)
    u_new = l2_normalize(w_mat @ v)
    sigma = u_new @ (w_mat @ v)
    return w / sigma


def sn_conv_stride2(x_nhwc, params, activation):
    """SpectralNorm(Conv2d(cin, cout, 4, stride=2, pad=1)) + activation; NHWC in/out."""
    w, b, u = params["w"], params["b"], params["u"]   # w: (Cout, Cin, 4, 4)
    cout, cin, kh, kw = w.shape
    assert kh == 4 and kw == 4
    n, h, wd, _ = x_nhwc.shape
    oh, ow = h // 2, wd // 2
    m = n * oh * ow

    # Weights -> (16*Cin, Cout) in (ii, jj, di, dj, c) order, matching the
    # space-to-depth channel packing below (i = 2*ii + di, j = 2*jj + dj).
    w_sn = spectral_normalize(w, u)
    w_t = jnp.transpose(w_sn, (2, 3, 1, 0))           # (KH, KW, Cin, Cout)
    w_k = (w_t.reshape(2, 2, 2, 2, cin, cout)         # (ii, di, jj, dj, c, out)
              .transpose(0, 2, 1, 3, 4, 5)            # (ii, jj, di, dj, c, out)
              .reshape(16 * cin, cout)
              .astype(jnp.bfloat16))
    b_row = b.reshape(1, cout).astype(jnp.float32)

    # Pad once, space-to-depth once: stride-2 4x4 conv -> stride-1 2x2 conv
    # over 4*Cin channels on a (N, oh+1, ow+1, 4*Cin) grid.
    hs, ws = oh + 1, ow + 1
    xp = jnp.pad(x_nhwc, ((0, 0), (1, 1), (1, 1), (0, 0)))
    xs = (xp.reshape(n, hs, 2, ws, 2, cin)
            .transpose(0, 1, 3, 2, 4, 5)
            .reshape(n, hs, ws, 4 * cin)
            .astype(jnp.bfloat16))

    # 4 unit-stride shifted slabs concatenated along K (real channels only).
    # TODO(synk): move this gather into the kernel via static pl.ds slicing of xs.
    x_k = jnp.concatenate(
        [xs[:, ii:ii + oh, jj:jj + ow, :].reshape(m, 4 * cin)
         for ii in range(2) for jj in range(2)], axis=-1)      # (M, 16*Cin)

    out = fused_matmul(x_k, w_k, b_row, activation, jnp.bfloat16)
    return out.reshape(n, oh, ow, cout)


def sn_conv_head(x_nhwc, params):
    """SpectralNorm(Conv2d(cin, 1, 4, stride=1, pad=0)) on a 4x4 map + sigmoid."""
    w, b, u = params["w"], params["b"], params["u"]   # w: (1, Cin, 4, 4)
    cout, cin, kh, kw = w.shape
    n, h, wd, _ = x_nhwc.shape
    assert h == kh and wd == kw                       # valid 4x4 conv -> 1x1
    cout_p = LANE                                     # lane-dense output / MXU N

    w_sn = spectral_normalize(w, u)
    w_t = jnp.transpose(w_sn, (2, 3, 1, 0)).reshape(kh * kw * cin, cout)  # (i,j,c) order
    w_k = jnp.pad(w_t, ((0, 0), (0, cout_p - cout))).astype(jnp.bfloat16)
    b_row = jnp.pad(b, (0, cout_p - cout)).reshape(1, cout_p).astype(jnp.float32)

    x_k = x_nhwc.reshape(n, h * wd * cin).astype(jnp.bfloat16)
    out = fused_matmul(x_k, w_k, b_row, "sigmoid", jnp.float32)
    # Padded lanes are sigmoid(0)=0.5; they are sliced off right here and
    # never feed another layer, so the zero-pad invariant is irrelevant.
    return out[:, :cout].reshape(n, 1, 1, cout)


def discriminator_forward(x_nchw, params):
    x = jnp.transpose(x_nchw, (0, 2, 3, 1))           # NCHW -> NHWC (once)
    x = sn_conv_stride2(x, params["conv1"], "leaky_relu")
    x = sn_conv_stride2(x, params["conv2"], "leaky_relu")
    x = sn_conv_stride2(x, params["conv3"], "leaky_relu")
    x = sn_conv_stride2(x, params["conv4"], "leaky_relu")
    x = sn_conv_head(x, params["conv5"])
    return jnp.transpose(x, (0, 3, 1, 2))             # NHWC -> NCHW (once)


# -----------------------------------------------------------------------------
# Pure-JAX f32 reference (for the correctness check)
# -----------------------------------------------------------------------------
def _ref_conv(x, w, b, stride, pad):
    out = jax.lax.conv_general_dilated(
        x, w, (stride, stride), [(pad, pad), (pad, pad)],
        dimension_numbers=("NCHW", "OIHW", "NCHW"))
    return out + b[None, :, None, None]


def discriminator_ref(x, params):
    def layer(x, p, stride, pad, act):
        w_sn = spectral_normalize(p["w"], p["u"])
        y = _ref_conv(x, w_sn, p["b"], stride, pad)
        return jnp.where(y >= 0, y, 0.2 * y) if act == "leaky_relu" else jax.nn.sigmoid(y)
    x = layer(x, params["conv1"], 2, 1, "leaky_relu")
    x = layer(x, params["conv2"], 2, 1, "leaky_relu")
    x = layer(x, params["conv3"], 2, 1, "leaky_relu")
    x = layer(x, params["conv4"], 2, 1, "leaky_relu")
    x = layer(x, params["conv5"], 1, 0, "sigmoid")
    return x


# -----------------------------------------------------------------------------
# Deterministic parameter init (synthetic, matches module shapes with d=16)
# -----------------------------------------------------------------------------
def init_params(key, d=16):
    shapes = {
        "conv1": (d,      1,     4, 4),
        "conv2": (2 * d,  d,     4, 4),
        "conv3": (4 * d,  2 * d, 4, 4),
        "conv4": (8 * d,  4 * d, 4, 4),
        "conv5": (1,      8 * d, 4, 4),
    }
    params = {}
    for name, shp in shapes.items():
        key, kw_, ku = jax.random.split(key, 3)
        cout = shp[0]
        params[name] = {
            "w": 0.02 * jax.random.normal(kw_, shp, dtype=jnp.float32),
            "b": jnp.zeros((cout,), dtype=jnp.float32),
            "u": l2_normalize(jax.random.normal(ku, (cout,), dtype=jnp.float32)),
        }
    return params


if __name__ == "__main__":
    d = 16                       # scaled-down width (original uses d=128)
    key = jax.random.PRNGKey(0)
    key, kx = jax.random.split(key)
    params = init_params(key, d=d)

    # 64x64 input (minimum spatial size so conv5's 4x4 valid conv yields 1x1)
    x = jax.random.normal(kx, (2, 1, 64, 64), dtype=jnp.float32)

    fwd = jax.jit(discriminator_forward)
    out = jax.block_until_ready(fwd(x, params))
    assert out.shape == (2, 1, 1, 1), out.shape

    ref = jax.block_until_ready(discriminator_ref(x, params))
    # bf16 matmul inputs (f32 accumulation) vs f32 reference; calibrated at d=16.
    # TODO(synk): re-validate the tolerance at full width d=128 (K up to 8192).
    assert jnp.allclose(out, ref, rtol=2e-2, atol=2e-2), (out.ravel(), ref.ravel())

    print("KERNEL_OK")
</pallas_src>

<mosaic_0001>
module attributes {stable_mosaic.version = 11 : i64} {
  func.func @_conv_step_kernel(%arg0: i32, %arg1: i32, %arg2: memref<2048x16xbf16, #tpu.memory_space<vmem>>, %arg3: memref<16x16xbf16, #tpu.memory_space<vmem>>, %arg4: memref<1x16xf32, #tpu.memory_space<vmem>>, %arg5: memref<2048x16xbf16, #tpu.memory_space<vmem>>, %arg6: memref<2048x16xf32, #tpu.memory_space<vmem>>) attributes {dimension_semantics = [#tpu.dimension_semantics<parallel>, #tpu.dimension_semantics<arbitrary>], iteration_bounds = array<i64: 1, 1>, scalar_prefetch = 0 : i64, scratch_operands = 1 : i64, tpu.core_type = #tpu.core_type<tc>, window_params = [{transform_indices = @transform_0, window_bounds = array<i64: 2048, 16>}, {transform_indices = @transform_1, window_bounds = array<i64: 16, 16>}, {pipeline_mode = #tpu.pipeline_mode<synchronous>, transform_indices = @transform_2, window_bounds = array<i64: 1, 16>}, {transform_indices = @transform_3, window_bounds = array<i64: 2048, 16>}]} {
    %c0_i32 = arith.constant 0 : i32
    %0 = arith.cmpi eq, %arg1, %c0_i32 : i32
    %1 = arith.extui %0 : i1 to i32
    %c0_i32_0 = arith.constant 0 : i32
    %2 = arith.cmpi ne, %1, %c0_i32_0 : i32
    scf.if %2 {
      %c0_10 = arith.constant 0 : index
      %c0_11 = arith.constant 0 : index
      %12 = vector.load %arg4[%c0_10, %c0_11] : memref<1x16xf32, #tpu.memory_space<vmem>>, vector<1x16xf32>
      %13 = vector.shape_cast %12 : vector<1x16xf32> to vector<1x16xf32>
      %14 = vector.broadcast %13 : vector<1x16xf32> to vector<2048x16xf32>
      %c0_12 = arith.constant 0 : index
      %c0_13 = arith.constant 0 : index
      %15 = vector.load %arg6[%c0_12, %c0_13] : memref<2048x16xf32, #tpu.memory_space<vmem>>, vector<2048x16xf32>
      tpu.vector_store %arg6[%c0_12, %c0_13], %14 {strides = array<i32>} : memref<2048x16xf32, #tpu.memory_space<vmem>>, vector<2048x16xf32>,
    } else {
    }
    %c0 = arith.constant 0 : index
    %c0_1 = arith.constant 0 : index
    %3 = vector.load %arg6[%c0, %c0_1] : memref<2048x16xf32, #tpu.memory_space<vmem>>, vector<2048x16xf32>
    %c0_2 = arith.constant 0 : index
    %c0_3 = arith.constant 0 : index
    %4 = vector.load %arg2[%c0_2, %c0_3] : memref<2048x16xbf16, #tpu.memory_space<vmem>>, vector<2048x16xbf16>
    %c0_4 = arith.constant 0 : index
    %c0_5 = arith.constant 0 : index
    %5 = vector.load %arg3[%c0_4, %c0_5] : memref<16x16xbf16, #tpu.memory_space<vmem>>, vector<16x16xbf16>
    %cst = arith.constant dense<0.000000e+00> : vector<2048x16xf32>
    %6 = tpu.matmul %4, %5, %cst {dimension_numbers = #tpu.dot_dimension_numbers<[1], [0], [0], [1], [0, 0, 1, 1], [], []>} : vector<2048x16xbf16>, vector<16x16xbf16>, vector<2048x16xf32> -> vector<2048x16xf32>
    %7 = arith.addf %3, %6 : vector<2048x16xf32>
    %c0_6 = arith.constant 0 : index
    %c0_7 = arith.constant 0 : index
    %8 = vector.load %arg6[%c0_6, %c0_7] : memref<2048x16xf32, #tpu.memory_space<vmem>>, vector<2048x16xf32>
    tpu.vector_store %arg6[%c0_6, %c0_7], %7 {strides = array<i32>} : memref<2048x16xf32, #tpu.memory_space<vmem>>, vector<2048x16xf32>,
    %c0_i32_8 = arith.constant 0 : i32
    %9 = arith.cmpi eq, %arg1, %c0_i32_8 : i32
    %10 = arith.extui %9 : i1 to i32
    %c0_i32_9 = arith.constant 0 : i32
    %11 = arith.cmpi ne, %10, %c0_i32_9 : i32
    scf.if %11 {
      %c0_10 = arith.constant 0 : index
      %c0_11 = arith.constant 0 : index
      %12 = vector.load %arg6[%c0_10, %c0_11] : memref<2048x16xf32, #tpu.memory_space<vmem>>, vector<2048x16xf32>
      %cst_12 = arith.constant 0.000000e+00 : f32
      %13 = vector.broadcast %cst_12 : f32 to vector<2048x16xf32>
      %14 = arith.cmpf oge, %12, %13 : vector<2048x16xf32>
      %cst_13 = arith.constant 2.000000e-01 : f32
      %15 = vector.broadcast %cst_13 : f32 to vector<2048x16xf32>
      %16 = arith.mulf %15, %12 : vector<2048x16xf32>
      %17 = arith.select %14, %12, %16 : vector<2048x16xi1>, vector<2048x16xf32>
      %18 = arith.truncf %17 : vector<2048x16xf32> to vector<2048x16xbf16>
      %c0_14 = arith.constant 0 : index
      %c0_15 = arith.constant 0 : index
      %19 = vector.load %arg5[%c0_14, %c0_15] : memref<2048x16xbf16, #tpu.memory_space<vmem>>, vector<2048x16xbf16>
      tpu.vector_store %arg5[%c0_14, %c0_15], %18 {strides = array<i32>} : memref<2048x16xbf16, #tpu.memory_space<vmem>>, vector<2048x16xbf16>,
    } else {
    }
    return
  }
  func.func @transform_0(%arg0: i32, %arg1: i32) -> (i32, i32) {
    %c0_i32 = arith.constant 0 : i32
    return %arg0, %arg1 : i32, i32
  }
  func.func @transform_1(%arg0: i32, %arg1: i32) -> (i32, i32) {
    %c0_i32 = arith.constant 0 : i32
    %c0_i32_0 = arith.constant 0 : i32
    return %arg1, %c0_i32 : i32, i32
  }
  func.func @transform_2(%arg0: i32, %arg1: i32) -> (i32, i32) {
    %c0_i32 = arith.constant 0 : i32
    %c0_i32_0 = arith.constant 0 : i32
    %c0_i32_1 = arith.constant 0 : i32
    return %c0_i32, %c0_i32_0 : i32, i32
  }
  func.func @transform_3(%arg0: i32, %arg1: i32) -> (i32, i32) {
    %c0_i32 = arith.constant 0 : i32
    %c0_i32_0 = arith.constant 0 : i32
    return %arg0, %c0_i32 : i32, i32
  }
}

module attributes {stable_mosaic.version = 11 : i64} {
  func.func @_conv_step_kernel(%arg0: i32, %arg1: i32, %arg2: memref<512x256xbf16, #tpu.memory_space<vmem>>, %arg3: memref<256x32xbf16, #tpu.memory_space<vmem>>, %arg4: memref<1x32xf32, #tpu.memory_space<vmem>>, %arg5: memref<512x32xbf16, #tpu.memory_space<vmem>>, %arg6: memref<512x32xf32, #tpu.memory_space<vmem>>) attributes {dimension_semantics = [#tpu.dimension_semantics<parallel>, #tpu.dimension_semantics<arbitrary>], iteration_bounds = array<i64: 1, 1>, scalar_prefetch = 0 : i64, scratch_operands = 1 : i64, tpu.core_type = #tpu.core_type<tc>, window_params = [{transform_indices = @transform_0, window_bounds = array<i64: 512, 256>}, {transform_indices = @transform_1, window_bounds = array<i64: 256, 32>}, {pipeline_mode = #tpu.pipeline_mode<synchronous>, transform_indices = @transform_2, window_bounds = array<i64: 1, 32>}, {transform_indices = @transform_3, window_bounds = array<i64: 512, 32>}]} {
    %c0_i32 = arith.constant 0 : i32
    %0 = arith.cmpi eq, %arg1, %c0_i32 : i32
    %1 = arith.extui %0 : i1 to i32
    %c0_i32_0 = arith.constant 0 : i32
    %2 = arith.cmpi ne, %1, %c0_i32_0 : i32
    scf.if %2 {
      %c0_10 = arith.constant 0 : index
      %c0_11 = arith.constant 0 : index
      %12 = vector.load %arg4[%c0_10, %c0_11] : memref<1x32xf32, #tpu.memory_space<vmem>>, vector<1x32xf32>
      %13 = vector.shape_cast %12 : vector<1x32xf32> to vector<1x32xf32>
      %14 = vector.broadcast %13 : vector<1x32xf32> to vector<512x32xf32>
      %c0_12 = arith.constant 0 : index
      %c0_13 = arith.constant 0 : index
      %15 = vector.load %arg6[%c0_12, %c0_13] : memref<512x32xf32, #tpu.memory_space<vmem>>, vector<512x32xf32>
      tpu.vector_store %arg6[%c0_12, %c0_13], %14 {strides = array<i32>} : memref<512x32xf32, #tpu.memory_space<vmem>>, vector<512x32xf32>,
    } else {
    }
    %c0 = arith.constant 0 : index
    %c0_1 = arith.constant 0 : index
    %3 = vector.load %arg6[%c0, %c0_1] : memref<512x32xf32, #tpu.memory_space<vmem>>, vector<512x32xf32>
    %c0_2 = arith.constant 0 : index
    %c0_3 = arith.constant 0 : index
    %4 = vector.load %arg2[%c0_2, %c0_3] : memref<512x256xbf16, #tpu.memory_space<vmem>>, vector<512x256xbf16>
    %c0_4 = arith.constant 0 : index
    %c0_5 = arith.constant 0 : index
    %5 = vector.load %arg3[%c0_4, %c0_5] : memref<256x32xbf16, #tpu.memory_space<vmem>>, vector<256x32xbf16>
    %cst = arith.constant dense<0.000000e+00> : vector<512x32xf32>
    %6 = tpu.matmul %4, %5, %cst {dimension_numbers = #tpu.dot_dimension_numbers<[1], [0], [0], [1], [0, 0, 1, 1], [], []>} : vector<512x256xbf16>, vector<256x32xbf16>, vector<512x32xf32> -> vector<512x32xf32>
    %7 = arith.addf %3, %6 : vector<512x32xf32>
    %c0_6 = arith.constant 0 : index
    %c0_7 = arith.constant 0 : index
    %8 = vector.load %arg6[%c0_6, %c0_7] : memref<512x32xf32, #tpu.memory_space<vmem>>, vector<512x32xf32>
    tpu.vector_store %arg6[%c0_6, %c0_7], %7 {strides = array<i32>} : memref<512x32xf32, #tpu.memory_space<vmem>>, vector<512x32xf32>,
    %c0_i32_8 = arith.constant 0 : i32
    %9 = arith.cmpi eq, %arg1, %c0_i32_8 : i32
    %10 = arith.extui %9 : i1 to i32
    %c0_i32_9 = arith.constant 0 : i32
    %11 = arith.cmpi ne, %10, %c0_i32_9 : i32
    scf.if %11 {
      %c0_10 = arith.constant 0 : index
      %c0_11 = arith.constant 0 : index
      %12 = vector.load %arg6[%c0_10, %c0_11] : memref<512x32xf32, #tpu.memory_space<vmem>>, vector<512x32xf32>
      %cst_12 = arith.constant 0.000000e+00 : f32
      %13 = vector.broadcast %cst_12 : f32 to vector<512x32xf32>
      %14 = arith.cmpf oge, %12, %13 : vector<512x32xf32>
      %cst_13 = arith.constant 2.000000e-01 : f32
      %15 = vector.broadcast %cst_13 : f32 to vector<512x32xf32>
      %16 = arith.mulf %15, %12 : vector<512x32xf32>
      %17 = arith.select %14, %12, %16 : vector<512x32xi1>, vector<512x32xf32>
      %18 = arith.truncf %17 : vector<512x32xf32> to vector<512x32xbf16>
      %c0_14 = arith.constant 0 : index
      %c0_15 = arith.constant 0 : index
      %19 = vector.load %arg5[%c0_14, %c0_15] : memref<512x32xbf16, #tpu.memory_space<vmem>>, vector<512x32xbf16>
      tpu.vector_store %arg5[%c0_14, %c0_15], %18 {strides = array<i32>} : memref<512x32xbf16, #tpu.memory_space<vmem>>, vector<512x32xbf16>,
    } else {
    }
    return
  }
  func.func @transform_0(%arg0: i32, %arg1: i32) -> (i32, i32) {
    %c0_i32 = arith.constant 0 : i32
    return %arg0, %arg1 : i32, i32
  }
  func.func @transform_1(%arg0: i32, %arg1: i32) -> (i32, i32) {
    %c0_i32 = arith.constant 0 : i32
    %c0_i32_0 = arith.constant 0 : i32
    return %arg1, %c0_i32 : i32, i32
  }
  func.func @transform_2(%arg0: i32, %arg1: i32) -> (i32, i32) {
    %c0_i32 = arith.constant 0 : i32
    %c0_i32_0 = arith.constant 0 : i32
    %c0_i32_1 = arith.constant 0 : i32
    return %c0_i32, %c0_i32_0 : i32, i32
  }
  func.func @transform_3(%arg0: i32, %arg1: i32) -> (i32, i32) {
    %c0_i32 = arith.constant 0 : i32
    %c0_i32_0 = arith.constant 0 : i32
    return %arg0, %c0_i32 : i32, i32
  }
}

module attributes {stable_mosaic.version = 11 : i64} {
  func.func @_conv_step_kernel(%arg0: i32, %arg1: i32, %arg2: memref<128x512xbf16, #tpu.memory_space<vmem>>, %arg3: memref<512x64xbf16, #tpu.memory_space<vmem>>, %arg4: memref<1x64xf32, #tpu.memory_space<vmem>>, %arg5: memref<128x64xbf16, #tpu.memory_space<vmem>>, %arg6: memref<128x64xf32, #tpu.memory_space<vmem>>) attributes {dimension_semantics = [#tpu.dimension_semantics<parallel>, #tpu.dimension_semantics<arbitrary>], iteration_bounds = array<i64: 1, 1>, scalar_prefetch = 0 : i64, scratch_operands = 1 : i64, tpu.core_type = #tpu.core_type<tc>, window_params = [{transform_indices = @transform_0, window_bounds = array<i64: 128, 512>}, {transform_indices = @transform_1, window_bounds = array<i64: 512, 64>}, {pipeline_mode = #tpu.pipeline_mode<synchronous>, transform_indices = @transform_2, window_bounds = array<i64: 1, 64>}, {transform_indices = @transform_3, window_bounds = array<i64: 128, 64>}]} {
    %c0_i32 = arith.constant 0 : i32
    %0 = arith.cmpi eq, %arg1, %c0_i32 : i32
    %1 = arith.extui %0 : i1 to i32
    %c0_i32_0 = arith.constant 0 : i32
    %2 = arith.cmpi ne, %1, %c0_i32_0 : i32
    scf.if %2 {
      %c0_10 = arith.constant 0 : index
      %c0_11 = arith.constant 0 : index
      %12 = vector.load %arg4[%c0_10, %c0_11] : memref<1x64xf32, #tpu.memory_space<vmem>>, vector<1x64xf32>
      %13 = vector.shape_cast %12 : vector<1x64xf32> to vector<1x64xf32>
      %14 = vector.broadcast %13 : vector<1x64xf32> to vector<128x64xf32>
      %c0_12 = arith.constant 0 : index
      %c0_13 = arith.constant 0 : index
      %15 = vector.load %arg6[%c0_12, %c0_13] : memref<128x64xf32, #tpu.memory_space<vmem>>, vector<128x64xf32>
      tpu.vector_store %arg6[%c0_12, %c0_13], %14 {strides = array<i32>} : memref<128x64xf32, #tpu.memory_space<vmem>>, vector<128x64xf32>,
    } else {
    }
    %c0 = arith.constant 0 : index
    %c0_1 = arith.constant 0 : index
    %3 = vector.load %arg6[%c0, %c0_1] : memref<128x64xf32, #tpu.memory_space<vmem>>, vector<128x64xf32>
    %c0_2 = arith.constant 0 : index
    %c0_3 = arith.constant 0 : index
    %4 = vector.load %arg2[%c0_2, %c0_3] : memref<128x512xbf16, #tpu.memory_space<vmem>>, vector<128x512xbf16>
    %c0_4 = arith.constant 0 : index
    %c0_5 = arith.constant 0 : index
    %5 = vector.load %arg3[%c0_4, %c0_5] : memref<512x64xbf16, #tpu.memory_space<vmem>>, vector<512x64xbf16>
    %cst = arith.constant dense<0.000000e+00> : vector<128x64xf32>
    %6 = tpu.matmul %4, %5, %cst {dimension_numbers = #tpu.dot_dimension_numbers<[1], [0], [0], [1], [0, 0, 1, 1], [], []>} : vector<128x512xbf16>, vector<512x64xbf16>, vector<128x64xf32> -> vector<128x64xf32>
    %7 = arith.addf %3, %6 : vector<128x64xf32>
    %c0_6 = arith.constant 0 : index
    %c0_7 = arith.constant 0 : index
    %8 = vector.load %arg6[%c0_6, %c0_7] : memref<128x64xf32, #tpu.memory_space<vmem>>, vector<128x64xf32>
    tpu.vector_store %arg6[%c0_6, %c0_7], %7 {strides = array<i32>} : memref<128x64xf32, #tpu.memory_space<vmem>>, vector<128x64xf32>,
    %c0_i32_8 = arith.constant 0 : i32
    %9 = arith.cmpi eq, %arg1, %c0_i32_8 : i32
    %10 = arith.extui %9 : i1 to i32
    %c0_i32_9 = arith.constant 0 : i32
    %11 = arith.cmpi ne, %10, %c0_i32_9 : i32
    scf.if %11 {
      %c0_10 = arith.constant 0 : index
      %c0_11 = arith.constant 0 : index
      %12 = vector.load %arg6[%c0_10, %c0_11] : memref<128x64xf32, #tpu.memory_space<vmem>>, vector<128x64xf32>
      %cst_12 = arith.constant 0.000000e+00 : f32
      %13 = vector.broadcast %cst_12 : f32 to vector<128x64xf32>
      %14 = arith.cmpf oge, %12, %13 : vector<128x64xf32>
      %cst_13 = arith.constant 2.000000e-01 : f32
      %15 = vector.broadcast %cst_13 : f32 to vector<128x64xf32>
      %16 = arith.mulf %15, %12 : vector<128x64xf32>
      %17 = arith.select %14, %12, %16 : vector<128x64xi1>, vector<128x64xf32>
      %18 = arith.truncf %17 : vector<128x64xf32> to vector<128x64xbf16>
      %c0_14 = arith.constant 0 : index
      %c0_15 = arith.constant 0 : index
      %19 = vector.load %arg5[%c0_14, %c0_15] : memref<128x64xbf16, #tpu.memory_space<vmem>>, vector<128x64xbf16>
      tpu.vector_store %arg5[%c0_14, %c0_15], %18 {strides = array<i32>} : memref<128x64xbf16, #tpu.memory_space<vmem>>, vector<128x64xbf16>,
    } else {
    }
    return
  }
  func.func @transform_0(%arg0: i32, %arg1: i32) -> (i32, i32) {
    %c0_i32 = arith.constant 0 : i32
    return %arg0, %arg1 : i32, i32
  }
  func.func @transform_1(%arg0: i32, %arg1: i32) -> (i32, i32) {
    %c0_i32 = arith.constant 0 : i32
    %c0_i32_0 = arith.constant 0 : i32
    return %arg1, %c0_i32 : i32, i32
  }
  func.func @transform_2(%arg0: i32, %arg1: i32) -> (i32, i32) {
    %c0_i32 = arith.constant 0 : i32
    %c0_i32_0 = arith.constant 0 : i32
    %c0_i32_1 = arith.constant 0 : i32
    return %c0_i32, %c0_i32_0 : i32, i32
  }
  func.func @transform_3(%arg0: i32, %arg1: i32) -> (i32, i32) {
    %c0_i32 = arith.constant 0 : i32
    %c0_i32_0 = arith.constant 0 : i32
    return %arg0, %c0_i32 : i32, i32
  }
}

module attributes {stable_mosaic.version = 11 : i64} {
  func.func @_conv_step_kernel(%arg0: i32, %arg1: i32, %arg2: memref<32x1024xbf16, #tpu.memory_space<vmem>>, %arg3: memref<1024x128xbf16, #tpu.memory_space<vmem>>, %arg4: memref<1x128xf32, #tpu.memory_space<vmem>>, %arg5: memref<32x128xbf16, #tpu.memory_space<vmem>>, %arg6: memref<32x128xf32, #tpu.memory_space<vmem>>) attributes {dimension_semantics = [#tpu.dimension_semantics<parallel>, #tpu.dimension_semantics<arbitrary>], iteration_bounds = array<i64: 1, 1>, scalar_prefetch = 0 : i64, scratch_operands = 1 : i64, tpu.core_type = #tpu.core_type<tc>, window_params = [{transform_indices = @transform_0, window_bounds = array<i64: 32, 1024>}, {transform_indices = @transform_1, window_bounds = array<i64: 1024, 128>}, {pipeline_mode = #tpu.pipeline_mode<synchronous>, transform_indices = @transform_2, window_bounds = array<i64: 1, 128>}, {transform_indices = @transform_3, window_bounds = array<i64: 32, 128>}]} {
    %c0_i32 = arith.constant 0 : i32
    %0 = arith.cmpi eq, %arg1, %c0_i32 : i32
    %1 = arith.extui %0 : i1 to i32
    %c0_i32_0 = arith.constant 0 : i32
    %2 = arith.cmpi ne, %1, %c0_i32_0 : i32
    scf.if %2 {
      %c0_10 = arith.constant 0 : index
      %c0_11 = arith.constant 0 : index
      %12 = vector.load %arg4[%c0_10, %c0_11] : memref<1x128xf32, #tpu.memory_space<vmem>>, vector<1x128xf32>
      %13 = vector.shape_cast %12 : vector<1x128xf32> to vector<1x128xf32>
      %14 = vector.broadcast %13 : vector<1x128xf32> to vector<32x128xf32>
      %c0_12 = arith.constant 0 : index
      %c0_13 = arith.constant 0 : index
      %15 = vector.load %arg6[%c0_12, %c0_13] : memref<32x128xf32, #tpu.memory_space<vmem>>, vector<32x128xf32>
      tpu.vector_store %arg6[%c0_12, %c0_13], %14 {strides = array<i32>} : memref<32x128xf32, #tpu.memory_space<vmem>>, vector<32x128xf32>,
    } else {
    }
    %c0 = arith.constant 0 : index
    %c0_1 = arith.constant 0 : index
    %3 = vector.load %arg6[%c0, %c0_1] : memref<32x128xf32, #tpu.memory_space<vmem>>, vector<32x128xf32>
    %c0_2 = arith.constant 0 : index
    %c0_3 = arith.constant 0 : index
    %4 = vector.load %arg2[%c0_2, %c0_3] : memref<32x1024xbf16, #tpu.memory_space<vmem>>, vector<32x1024xbf16>
    %c0_4 = arith.constant 0 : index
    %c0_5 = arith.constant 0 : index
    %5 = vector.load %arg3[%c0_4, %c0_5] : memref<1024x128xbf16, #tpu.memory_space<vmem>>, vector<1024x128xbf16>
    %cst = arith.constant dense<0.000000e+00> : vector<32x128xf32>
    %6 = tpu.matmul %4, %5, %cst {dimension_numbers = #tpu.dot_dimension_numbers<[1], [0], [0], [1], [0, 0, 1, 1], [], []>} : vector<32x1024xbf16>, vector<1024x128xbf16>, vector<32x128xf32> -> vector<32x128xf32>
    %7 = arith.addf %3, %6 : vector<32x128xf32>
    %c0_6 = arith.constant 0 : index
    %c0_7 = arith.constant 0 : index
    %8 = vector.load %arg6[%c0_6, %c0_7] : memref<32x128xf32, #tpu.memory_space<vmem>>, vector<32x128xf32>
    tpu.vector_store %arg6[%c0_6, %c0_7], %7 {strides = array<i32>} : memref<32x128xf32, #tpu.memory_space<vmem>>, vector<32x128xf32>,
    %c0_i32_8 = arith.constant 0 : i32
    %9 = arith.cmpi eq, %arg1, %c0_i32_8 : i32
    %10 = arith.extui %9 : i1 to i32
    %c0_i32_9 = arith.constant 0 : i32
    %11 = arith.cmpi ne, %10, %c0_i32_9 : i32
    scf.if %11 {
      %c0_10 = arith.constant 0 : index
      %c0_11 = arith.constant 0 : index
      %12 = vector.load %arg6[%c0_10, %c0_11] : memref<32x128xf32, #tpu.memory_space<vmem>>, vector<32x128xf32>
      %cst_12 = arith.constant 0.000000e+00 : f32
      %13 = vector.broadcast %cst_12 : f32 to vector<32x128xf32>
      %14 = arith.cmpf oge, %12, %13 : vector<32x128xf32>
      %cst_13 = arith.constant 2.000000e-01 : f32
      %15 = vector.broadcast %cst_13 : f32 to vector<32x128xf32>
      %16 = arith.mulf %15, %12 : vector<32x128xf32>
      %17 = arith.select %14, %12, %16 : vector<32x128xi1>, vector<32x128xf32>
      %18 = arith.truncf %17 : vector<32x128xf32> to vector<32x128xbf16>
      %c0_14 = arith.constant 0 : index
      %c0_15 = arith.constant 0 : index
      %19 = vector.load %arg5[%c0_14, %c0_15] : memref<32x128xbf16, #tpu.memory_space<vmem>>, vector<32x128xbf16>
      tpu.vector_store %arg5[%c0_14, %c0_15], %18 {strides = array<i32>} : memref<32x128xbf16, #tpu.memory_space<vmem>>, vector<32x128xbf16>,
    } else {
    }
    return
  }
  func.func @transform_0(%arg0: i32, %arg1: i32) -> (i32, i32) {
    %c0_i32 = arith.constant 0 : i32
    return %arg0, %arg1 : i32, i32
  }
  func.func @transform_1(%arg0: i32, %arg1: i32) -> (i32, i32) {
    %c0_i32 = arith.constant 0 : i32
    %c0_i32_0 = arith.constant 0 : i32
    return %arg1, %c0_i32 : i32, i32
  }
  func.func @transform_2(%arg0: i32, %arg1: i32) -> (i32, i32) {
    %c0_i32 = arith.constant 0 : i32
    %c0_i32_0 = arith.constant 0 : i32
    %c0_i32_1 = arith.constant 0 : i32
    return %c0_i32, %c0_i32_0 : i32, i32
  }
  func.func @transform_3(%arg0: i32, %arg1: i32) -> (i32, i32) {
    %c0_i32 = arith.constant 0 : i32
    %c0_i32_0 = arith.constant 0 : i32
    return %arg0, %c0_i32 : i32, i32
  }
}

module attributes {stable_mosaic.version = 11 : i64} {
  func.func @_conv_step_kernel(%arg0: i32, %arg1: i32, %arg2: memref<2x2048xbf16, #tpu.memory_space<vmem>>, %arg3: memref<2048x128xbf16, #tpu.memory_space<vmem>>, %arg4: memref<1x128xf32, #tpu.memory_space<vmem>>, %arg5: memref<2x128xf32, #tpu.memory_space<vmem>>, %arg6: memref<2x128xf32, #tpu.memory_space<vmem>>) attributes {dimension_semantics = [#tpu.dimension_semantics<parallel>, #tpu.dimension_semantics<arbitrary>], iteration_bounds = array<i64: 1, 1>, scalar_prefetch = 0 : i64, scratch_operands = 1 : i64, tpu.core_type = #tpu.core_type<tc>, window_params = [{transform_indices = @transform_0, window_bounds = array<i64: 2, 2048>}, {transform_indices = @transform_1, window_bounds = array<i64: 2048, 128>}, {pipeline_mode = #tpu.pipeline_mode<synchronous>, transform_indices = @transform_2, window_bounds = array<i64: 1, 128>}, {transform_indices = @transform_3, window_bounds = array<i64: 2, 128>}]} {
    %c0_i32 = arith.constant 0 : i32
    %0 = arith.cmpi eq, %arg1, %c0_i32 : i32
    %1 = arith.extui %0 : i1 to i32
    %c0_i32_0 = arith.constant 0 : i32
    %2 = arith.cmpi ne, %1, %c0_i32_0 : i32
    scf.if %2 {
      %c0_10 = arith.constant 0 : index
      %c0_11 = arith.constant 0 : index
      %12 = vector.load %arg4[%c0_10, %c0_11] : memref<1x128xf32, #tpu.memory_space<vmem>>, vector<1x128xf32>
      %13 = vector.shape_cast %12 : vector<1x128xf32> to vector<1x128xf32>
      %14 = vector.broadcast %13 : vector<1x128xf32> to vector<2x128xf32>
      %c0_12 = arith.constant 0 : index
      %c0_13 = arith.constant 0 : index
      %15 = vector.load %arg6[%c0_12, %c0_13] : memref<2x128xf32, #tpu.memory_space<vmem>>, vector<2x128xf32>
      tpu.vector_store %arg6[%c0_12, %c0_13], %14 {strides = array<i32>} : memref<2x128xf32, #tpu.memory_space<vmem>>, vector<2x128xf32>,
    } else {
    }
    %c0 = arith.constant 0 : index
    %c0_1 = arith.constant 0 : index
    %3 = vector.load %arg6[%c0, %c0_1] : memref<2x128xf32, #tpu.memory_space<vmem>>, vector<2x128xf32>
    %c0_2 = arith.constant 0 : index
    %c0_3 = arith.constant 0 : index
    %4 = vector.load %arg2[%c0_2, %c0_3] : memref<2x2048xbf16, #tpu.memory_space<vmem>>, vector<2x2048xbf16>
    %c0_4 = arith.constant 0 : index
    %c0_5 = arith.constant 0 : index
    %5 = vector.load %arg3[%c0_4, %c0_5] : memref<2048x128xbf16, #tpu.memory_space<vmem>>, vector<2048x128xbf16>
    %cst = arith.constant dense<0.000000e+00> : vector<2x128xf32>
    %6 = tpu.matmul %4, %5, %cst {dimension_numbers = #tpu.dot_dimension_numbers<[1], [0], [0], [1], [0, 0, 1, 1], [], []>} : vector<2x2048xbf16>, vector<2048x128xbf16>, vector<2x128xf32> -> vector<2x128xf32>
    %7 = arith.addf %3, %6 : vector<2x128xf32>
    %c0_6 = arith.constant 0 : index
    %c0_7 = arith.constant 0 : index
    %8 = vector.load %arg6[%c0_6, %c0_7] : memref<2x128xf32, #tpu.memory_space<vmem>>, vector<2x128xf32>
    tpu.vector_store %arg6[%c0_6, %c0_7], %7 {strides = array<i32>} : memref<2x128xf32, #tpu.memory_space<vmem>>, vector<2x128xf32>,
    %c0_i32_8 = arith.constant 0 : i32
    %9 = arith.cmpi eq, %arg1, %c0_i32_8 : i32
    %10 = arith.extui %9 : i1 to i32
    %c0_i32_9 = arith.constant 0 : i32
    %11 = arith.cmpi ne, %10, %c0_i32_9 : i32
    scf.if %11 {
      %c0_10 = arith.constant 0 : index
      %c0_11 = arith.constant 0 : index
      %12 = vector.load %arg6[%c0_10, %c0_11] : memref<2x128xf32, #tpu.memory_space<vmem>>, vector<2x128xf32>
      %13 = arith.negf %12 : vector<2x128xf32>
      %14 = math.exp %13 : vector<2x128xf32>
      %cst_12 = arith.constant 1.000000e+00 : f32
      %15 = vector.broadcast %cst_12 : f32 to vector<2x128xf32>
      %16 = arith.addf %15, %14 : vector<2x128xf32>
      %17 = arith.divf %15, %16 : vector<2x128xf32>
      %c0_13 = arith.constant 0 : index
      %c0_14 = arith.constant 0 : index
      %18 = vector.load %arg5[%c0_13, %c0_14] : memref<2x128xf32, #tpu.memory_space<vmem>>, vector<2x128xf32>
      tpu.vector_store %arg5[%c0_13, %c0_14], %17 {strides = array<i32>} : memref<2x128xf32, #tpu.memory_space<vmem>>, vector<2x128xf32>,
    } else {
    }
    return
  }
  func.func @transform_0(%arg0: i32, %arg1: i32) -> (i32, i32) {
    %c0_i32 = arith.constant 0 : i32
    return %arg0, %arg1 : i32, i32
  }
  func.func @transform_1(%arg0: i32, %arg1: i32) -> (i32, i32) {
    %c0_i32 = arith.constant 0 : i32
    %c0_i32_0 = arith.constant 0 : i32
    return %arg1, %c0_i32 : i32, i32
  }
  func.func @transform_2(%arg0: i32, %arg1: i32) -> (i32, i32) {
    %c0_i32 = arith.constant 0 : i32
    %c0_i32_0 = arith.constant 0 : i32
    %c0_i32_1 = arith.constant 0 : i32
    return %c0_i32, %c0_i32_0 : i32, i32
  }
  func.func @transform_3(%arg0: i32, %arg1: i32) -> (i32, i32) {
    %c0_i32 = arith.constant 0 : i32
    %c0_i32_0 = arith.constant 0 : i32
    return %arg0, %c0_i32 : i32, i32
  }
}

</mosaic_0001>

<bundles_post_ra>
// kernel: discriminator_forward.5
= control target key start
LH: loop header
LB: loop body
LE: loop exit
PB: predicated region body
PF: predicated region fallthrough
CT: control target
= control target key end

     0   :  { %vm26_vm0 = vcmask 130048   ;;  %vm5448_vm3 = vcmask 125952   ;;  %s10163_s1 = inlined_call_operand.vmem [shape: bf16[16,16], index: 1, kind: input, shape index: {}]   ;;  %s10164_s0 = inlined_call_operand.vmem [shape: bf16[2048,16], index: 0, kind: input, shape index: {}]   ;;  %s10165_s2 = inlined_call_operand.vmem [shape: f32[1,16], index: 2, kind: input, shape index: {}]   ;;  %s10166_s3 = inlined_call_operand.vmem [shape: bf16[2048,16], index: 3, kind: output, shape index: {}]  }
   0x1   :  { %v6868_v0 = vld [vmem:[%s10163_s1] sm:$0xff]   ;;  %v6871_v3 = vld [vmem:[%s10164_s0 + $0x8] sm:$0xff]   ;;  %v6873_v5 = vld [vmem:[%s10164_s0 + $0x10] sm:$0xff]  }
   0x2   :  { %v6869_v1 = vld [vmem:[%s10164_s0] sm:$0xff]   ;;  %6608 = vmatprep.subr.bf16.mxu0 %v6868_v0  ;;  %6866 = vmatprep.subr.bf16.mxu1 %v6868_v0  ;;  %v6872_v4 = vld [vmem:[%s10164_s0 + $0x208] sm:$0xff]   ;;  %v6874_v6 = vld [vmem:[%s10164_s0 + $0x210] sm:$0xff]  }
   0x3   :  { %v6870_v2 = vld [vmem:[%s10164_s0 + $0x200] sm:$0xff]   ;;  %6609 = vmatpush3.bf16.msra.mxu0 %v6868_v0  ;;  %6867 = vmatpush3.bf16.msra.mxu1 %v6868_v0  ;;  %v6875_v7 = vld [vmem:[%s10164_s0 + $0x18] sm:$0xff]   ;;  %v6879_v11 = vld [vmem:[%s10164_s0 + $0x28] sm:$0xff]  }
   0x4   :  { %6610 = vmatprep.mubr.msk.bf16.mxu0 %vm26_vm0, %v6869_v1  ;;  %6738 = vmatprep.mubr.msk.bf16.mxu1 %vm26_vm0, %v6870_v2  ;;  %v6876_v8 = vld [vmem:[%s10164_s0 + $0x218] sm:$0xff]   ;;  %v6877_v9 = vld [vmem:[%s10164_s0 + $0x20] sm:$0xff]   ;;  %v6880_v12 = vld [vmem:[%s10164_s0 + $0x228] sm:$0xff]  }
   0x5   :  { %v6878_v10 = vld [vmem:[%s10164_s0 + $0x220] sm:$0xff]   ;;  %v6881_v13 = vld [vmem:[%s10164_s0 + $0x30] sm:$0xff]   ;;  %v6883_v15 = vld [vmem:[%s10164_s0 + $0x38] sm:$0xff]  }
   0x6   :  { %6611 = vmatmul.mubr.msk.bf16.vlgmr.msra.gmra.mrb[0].mxu0 %vm26_vm0, %v6871_v3  ;;  %6739 = vmatmul.mubr.msk.bf16.vlgmr.msra.gmra.mrb[0].mxu1 %vm26_vm0, %v6872_v4  ;;  %v6882_v14 = vld [vmem:[%s10164_s0 + $0x230] sm:$0xff]   ;;  %v6884_v16 = vld [vmem:[%s10164_s0 + $0x238] sm:$0xff]   ;;  %v6885_v17 = vld [vmem:[%s10164_s0 + $0x40] sm:$0xff]  }
   0x7   :  { %6614 = vmatprep.mubr.msk.bf16.mxu0 %vm26_vm0, %v6873_v5  ;;  %6742 = vmatprep.mubr.msk.bf16.mxu1 %vm26_vm0, %v6874_v6  ;;  %v6886_v18 = vld [vmem:[%s10164_s0 + $0x240] sm:$0xff]   ;;  %v6887_v19 = vld [vmem:[%s10164_s0 + $0x48] sm:$0xff]   ;;  %v6889_v21 = vld [vmem:[%s10164_s0 + $0x50] sm:$0xff]  }
   0x8   :  { %v6888_v20 = vld [vmem:[%s10164_s0 + $0x248] sm:$0xff]   ;;  %v6890_v22 = vld [vmem:[%s10164_s0 + $0x250] sm:$0xff]   ;;  %v6891_v23 = vld [vmem:[%s10164_s0 + $0x58] sm:$0xff]  }
   0x9   :  { %v6892_v24 = vld [vmem:[%s10164_s0 + $0x258] sm:$0xff]   ;;  %v6893_v25 = vld [vmem:[%s10164_s0 + $0x60] sm:$0xff]   ;;  %v6895_v27 = vld [vmem:[%s10164_s0 + $0x68] sm:$0xff]  }
   0xa   :  { %v6894_v26 = vld [vmem:[%s10164_s0 + $0x260] sm:$0xff]   ;;  %v6896_v28 = vld [vmem:[%s10164_s0 + $0x268] sm:$0xff]   ;;  %v6897_v29 = vld [vmem:[%s10164_s0 + $0x70] sm:$0xff]  }
   0xb   :  { %v6898_v30 = vld [vmem:[%s10164_s0 + $0x270] sm:$0xff]   ;;  %v6899_v31 = vld [vmem:[%s10164_s0 + $0x78] sm:$0xff]   ;;  %v6901_v33 = vld [vmem:[%s10164_s0 + $0x80] sm:$0xff]  }
   0xc   :  { %v6900_v32 = vld [vmem:[%s10164_s0 + $0x278] sm:$0xff]   ;;  %v6902_v34 = vld [vmem:[%s10164_s0 + $0x280] sm:$0xff]   ;;  %v6903_v35 = vld [vmem:[%s10164_s0 + $0x88] sm:$0xff]  }
   0xd   :  { %v6904_v36 = vld [vmem:[%s10164_s0 + $0x288] sm:$0xff]   ;;  %v6905_v37 = vld [vmem:[%s10164_s0 + $0x90] sm:$0xff]   ;;  %v6907_v39 = vld [vmem:[%s10164_s0 + $0x98] sm:$0xff]  }
   0xe   :  { %6615 = vmatmul.mubr.msk.bf16.gmra.mrb[4].mxu0 %vm26_vm0, %v6875_v7  ;;  %6743 = vmatmul.mubr.msk.bf16.gmra.mrb[4].mxu1 %vm26_vm0, %v6876_v8  ;;  %v6906_v38 = vld [vmem:[%s10164_s0 + $0x290] sm:$0xff]   ;;  %v6908_v40 = vld [vmem:[%s10164_s0 + $0x298] sm:$0xff]   ;;  %v6909_v41 = vld [vmem:[%s10164_s0 + $0xa0] sm:$0xff]  }
   0xf   :  { %6618 = vmatprep.mubr.msk.bf16.mxu0 %vm26_vm0, %v6877_v9  ;;  %6746 = vmatprep.mubr.msk.bf16.mxu1 %vm26_vm0, %v6878_v10  ;;  %v6910_v42 = vld [vmem:[%s10164_s0 + $0x2a0] sm:$0xff]   ;;  %v6911_v43 = vld [vmem:[%s10164_s0 + $0xa8] sm:$0xff]   ;;  %v6913_v45 = vld [vmem:[%s10164_s0 + $0xb0] sm:$0xff]  }
  0x10   :  { %v6912_v44 = vld [vmem:[%s10164_s0 + $0x2a8] sm:$0xff]   ;;  %v6914_v46 = vld [vmem:[%s10164_s0 + $0x2b0] sm:$0xff]   ;;  %v6915_v47 = vld [vmem:[%s10164_s0 + $0xb8] sm:$0xff]  }
  0x11   :  { %v6916_v48 = vld [vmem:[%s10164_s0 + $0x2b8] sm:$0xff]   ;;  %v6917_v49 = vld [vmem:[%s10164_s0 + $0xc0] sm:$0xff]   ;;  %v6919_v51 = vld [vmem:[%s10164_s0 + $0xc8] sm:$0xff]  }
  0x12   :  { %v6918_v50 = vld [vmem:[%s10164_s0 + $0x2c0] sm:$0xff]   ;;  %v6920_v52 = vld [vmem:[%s10164_s0 + $0x2c8] sm:$0xff]   ;;  %v6921_v53 = vld [vmem:[%s10164_s0 + $0xd0] sm:$0xff]  }
  0x13   :  { %v6922_v54 = vld [vmem:[%s10164_s0 + $0x2d0] sm:$0xff]   ;;  %v6923_v55 = vld [vmem:[%s10164_s0 + $0xd8] sm:$0xff]   ;;  %v7245_v57 = vld [vmem:[%s10164_s0 + $0xe0] sm:$0xff]  }
  0x14   :  { %v6924_v56 = vld [vmem:[%s10164_s0 + $0x2d8] sm:$0xff]   ;;  %v7250_v58 = vld [vmem:[%s10164_s0 + $0x2e0] sm:$0xff]   ;;  %v6927_v60 = vld [vmem:[%s10164_s0 + $0xe8] sm:$0xff]  }
  0x15   :  { %v7255_v59 = vld [vmem:[%s10165_s2] ss:$0 sm:$0xff]  ;;  %v6928_v61 = vld [vmem:[%s10164_s0 + $0x2e8] sm:$0xff]   ;;  %v6929_v62 = vld [vmem:[%s10164_s0 + $0xf0] sm:$0xff]  }
  0x16   :  { %6619 = vmatmul.mubr.msk.bf16.gmra.mrb[8].mxu0 %vm26_vm0, %v6879_v11  ;;  %6747 = vmatmul.mubr.msk.bf16.gmra.mrb[8].mxu1 %vm26_vm0, %v6880_v12  ;;  %29 = vst.msk [vmem:[#allocation2 + $0x10] sm:$0xff] %vm26_vm0, %v7255_v59  ;;  %27 = vst.msk [vmem:[#allocation2] sm:$0xff] %vm26_vm0, %v7255_v59  ;;  %v6930_v63 = vld [vmem:[%s10164_s0 + $0x2f0] sm:$0xff]   ;;  %v6931_v0 = vld [vmem:[%s10164_s0 + $0xf8] sm:$0xff]  }
  0x17   :  { %6622 = vmatprep.mubr.msk.bf16.mxu0 %vm26_vm0, %v6881_v13  ;;  %6750 = vmatprep.mubr.msk.bf16.mxu1 %vm26_vm0, %v6882_v14  ;;  %28 = vst.msk [vmem:[#allocation2 + $0x8] sm:$0xff] %vm26_vm0, %v7255_v59  ;;  %30 = vst.msk [vmem:[#allocation2 + $0x18] sm:$0xff] %vm26_vm0, %v7255_v59  ;;  %v6932_v1 = vld [vmem:[%s10164_s0 + $0x2f8] sm:$0xff]   ;;  %v6933_v2 = vld [vmem:[%s10164_s0 + $0x100] sm:$0xff]  }
  0x18   :  { %31 = vst.msk [vmem:[#allocation2 + $0x20] sm:$0xff] %vm26_vm0, %v7255_v59  ;;  %32 = vst.msk [vmem:[#allocation2 + $0x28] sm:$0xff] %vm26_vm0, %v7255_v59  ;;  %v6934_v3 = vld [vmem:[%s10164_s0 + $0x300] sm:$0xff]   ;;  %v6935_v4 = vld [vmem:[%s10164_s0 + $0x108] sm:$0xff]  }
  0x19   :  { %33 = vst.msk [vmem:[#allocation2 + $0x30] sm:$0xff] %vm26_vm0, %v7255_v59  ;;  %34 = vst.msk [vmem:[#allocation2 + $0x38] sm:$0xff] %vm26_vm0, %v7255_v59  ;;  %v6936_v5 = vld [vmem:[%s10164_s0 + $0x308] sm:$0xff]   ;;  %v6937_v6 = vld [vmem:[%s10164_s0 + $0x110] sm:$0xff]  }
  0x1a   :  { %35 = vst.msk [vmem:[#allocation2 + $0x40] sm:$0xff] %vm26_vm0, %v7255_v59  ;;  %36 = vst.msk [vmem:[#allocation2 + $0x48] sm:$0xff] %vm26_vm0, %v7255_v59  ;;  %v6938_v7 = vld [vmem:[%s10164_s0 + $0x310] sm:$0xff]   ;;  %v6939_v8 = vld [vmem:[%s10164_s0 + $0x118] sm:$0xff]  }
  0x1b   :  { %37 = vst.msk [vmem:[#allocation2 + $0x50] sm:$0xff] %vm26_vm0, %v7255_v59  ;;  %38 = vst.msk [vmem:[#allocation2 + $0x58] sm:$0xff] %vm26_vm0, %v7255_v59  ;;  %v6940_v9 = vld [vmem:[%s10164_s0 + $0x318] sm:$0xff]   ;;  %v6941_v10 = vld [vmem:[%s10164_s0 + $0x120] sm:$0xff]  }
  0x1c   :  { %39 = vst.msk [vmem:[#allocation2 + $0x60] sm:$0xff] %vm26_vm0, %v7255_v59  ;;  %40 = vst.msk [vmem:[#allocation2 + $0x68] sm:$0xff] %vm26_vm0, %v7255_v59  ;;  %v6942_v11 = vld [vmem:[%s10164_s0 + $0x320] sm:$0xff]   ;;  %v6943_v12 = vld [vmem:[%s10164_s0 + $0x128] sm:$0xff]  }
  0x1d   :  { %41 = vst.msk [vmem:[#allocation2 + $0x70] sm:$0xff] %vm26_vm0, %v7255_v59  ;;  %42 = vst.msk [vmem:[#allocation2 + $0x78] sm:$0xff] %vm26_vm0, %v7255_v59  ;;  %v6944_v13 = vld [vmem:[%s10164_s0 + $0x328] sm:$0xff]   ;;  %v6945_v14 = vld [vmem:[%s10164_s0 + $0x130] sm:$0xff]  }
  0x1e   :  { %6623 = vmatmul.mubr.msk.bf16.gmra.mrb[12].mxu0 %vm26_vm0, %v6883_v15  ;;  %6751 = vmatmul.mubr.msk.bf16.gmra.mrb[12].mxu1 %vm26_vm0, %v6884_v16  ;;  %43 = vst.msk [vmem:[#allocation2 + $0x80] sm:$0xff] %vm26_vm0, %v7255_v59  ;;  %44 = vst.msk [vmem:[#allocation2 + $0x88] sm:$0xff] %vm26_vm0, %v7255_v59  ;;  %v6946_v15 = vld [vmem:[%s10164_s0 + $0x330] sm:$0xff]   ;;  %v6947_v16 = vld [vmem:[%s10164_s0 + $0x138] sm:$0xff]  }
  0x1f   :  { %6626 = vmatprep.mubr.msk.bf16.mxu0 %vm26_vm0, %v6885_v17  ;;  %6754 = vmatprep.mubr.msk.bf16.mxu1 %vm26_vm0, %v6886_v18  ;;  %45 = vst.msk [vmem:[#allocation2 + $0x90] sm:$0xff] %vm26_vm0, %v7255_v59  ;;  %46 = vst.msk [vmem:[#allocation2 + $0x98] sm:$0xff] %vm26_vm0, %v7255_v59  ;;  %v6948_v17 = vld [vmem:[%s10164_s0 + $0x338] sm:$0xff]   ;;  %v6949_v18 = vld [vmem:[%s10164_s0 + $0x140] sm:$0xff]  }
  0x20   :  { %47 = vst.msk [vmem:[#allocation2 + $0xa0] sm:$0xff] %vm26_vm0, %v7255_v59  ;;  %48 = vst.msk [vmem:[#allocation2 + $0xa8] sm:$0xff] %vm26_vm0, %v7255_v59 }
  0x21   :  { %49 = vst.msk [vmem:[#allocation2 + $0xb0] sm:$0xff] %vm26_vm0, %v7255_v59  ;;  %50 = vst.msk [vmem:[#allocation2 + $0xb8] sm:$0xff] %vm26_vm0, %v7255_v59 }
  0x22   :  { %51 = vst.msk [vmem:[#allocation2 + $0xc0] sm:$0xff] %vm26_vm0, %v7255_v59  ;;  %52 = vst.msk [vmem:[#allocation2 + $0xc8] sm:$0xff] %vm26_vm0, %v7255_v59 }
  0x23   :  { %53 = vst.msk [vmem:[#allocation2 + $0xd0] sm:$0xff] %vm26_vm0, %v7255_v59  ;;  %54 = vst.msk [vmem:[#allocation2 + $0xd8] sm:$0xff] %vm26_vm0, %v7255_v59 }
  0x24   :  { %55 = vst.msk [vmem:[#allocation2 + $0xe0] sm:$0xff] %vm26_vm0, %v7255_v59  ;;  %56 = vst.msk [vmem:[#allocation2 + $0xe8] sm:$0xff] %vm26_vm0, %v7255_v59 }
  0x25   :  { %57 = vst.msk [vmem:[#allocation2 + $0xf0] sm:$0xff] %vm26_vm0, %v7255_v59  ;;  %58 = vst.msk [vmem:[#allocation2 + $0xf8] sm:$0xff] %vm26_vm0, %v7255_v59 }
  0x26   :  { %6627 = vmatmul.mubr.msk.bf16.gmra.mrb[16].mxu0 %vm26_vm0, %v6887_v19  ;;  %6755 = vmatmul.mubr.msk.bf16.gmra.mrb[16].mxu1 %vm26_vm0, %v6888_v20  ;;  %59 = vst.msk [vmem:[#allocation2 + $0x100] sm:$0xff] %vm26_vm0, %v7255_v59  ;;  %60 = vst.msk [vmem:[#allocation2 + $0x108] sm:$0xff] %vm26_vm0, %v7255_v59  ;;  %v6950_v19 = vld [vmem:[%s10164_s0 + $0x340] sm:$0xff]   ;;  %v6951_v20 = vld [vmem:[%s10164_s0 + $0x148] sm:$0xff]  }
  0x27   :  { %6630 = vmatprep.mubr.msk.bf16.mxu0 %vm26_vm0, %v6889_v21  ;;  %6758 = vmatprep.mubr.msk.bf16.mxu1 %vm26_vm0, %v6890_v22  ;;  %61 = vst.msk [vmem:[#allocation2 + $0x110] sm:$0xff] %vm26_vm0, %v7255_v59  ;;  %62 = vst.msk [vmem:[#allocation2 + $0x118] sm:$0xff] %vm26_vm0, %v7255_v59  ;;  %v6952_v21 = vld [vmem:[%s10164_s0 + $0x348] sm:$0xff]   ;;  %v6953_v22 = vld [vmem:[%s10164_s0 + $0x150] sm:$0xff]  }
  0x28   :  { %63 = vst.msk [vmem:[#allocation2 + $0x120] sm:$0xff] %vm26_vm0, %v7255_v59  ;;  %64 = vst.msk [vmem:[#allocation2 + $0x128] sm:$0xff] %vm26_vm0, %v7255_v59 }
  0x29   :  { %65 = vst.msk [vmem:[#allocation2 + $0x130] sm:$0xff] %vm26_vm0, %v7255_v59  ;;  %66 = vst.msk [vmem:[#allocation2 + $0x138] sm:$0xff] %vm26_vm0, %v7255_v59 }
  0x2a   :  { %67 = vst.msk [vmem:[#allocation2 + $0x140] sm:$0xff] %vm26_vm0, %v7255_v59  ;;  %68 = vst.msk [vmem:[#allocation2 + $0x148] sm:$0xff] %vm26_vm0, %v7255_v59 }
  0x2b   :  { %69 = vst.msk [vmem:[#allocation2 + $0x150] sm:$0xff] %vm26_vm0, %v7255_v59  ;;  %70 = vst.msk [vmem:[#allocation2 + $0x158] sm:$0xff] %vm26_vm0, %v7255_v59 }
  0x2c   :  { %71 = vst.msk [vmem:[#allocation2 + $0x160] sm:$0xff] %vm26_vm0, %v7255_v59  ;;  %72 = vst.msk [vmem:[#allocation2 + $0x168] sm:$0xff] %vm26_vm0, %v7255_v59 }
  0x2d   :  { %73 = vst.msk [vmem:[#allocation2 + $0x170] sm:$0xff] %vm26_vm0, %v7255_v59  ;;  %74 = vst.msk [vmem:[#allocation2 + $0x178] sm:$0xff] %vm26_vm0, %v7255_v59 }
  0x2e   :  { %6631 = vmatmul.mubr.msk.bf16.gmra.mrb[20].mxu0 %vm26_vm0, %v6891_v23  ;;  %6759 = vmatmul.mubr.msk.bf16.gmra.mrb[20].mxu1 %vm26_vm0, %v6892_v24  ;;  %75 = vst.msk [vmem:[#allocation2 + $0x180] sm:$0xff] %vm26_vm0, %v7255_v59  ;;  %76 = vst.msk [vmem:[#allocation2 + $0x188] sm:$0xff] %vm26_vm0, %v7255_v59  ;;  %v6954_v23 = vld [vmem:[%s10164_s0 + $0x350] sm:$0xff]   ;;  %v6955_v24 = vld [vmem:[%s10164_s0 + $0x158] sm:$0xff]  }
  0x2f   :  { %6634 = vmatprep.mubr.msk.bf16.mxu0 %vm26_vm0, %v6893_v25  ;;  %6762 = vmatprep.mubr.msk.bf16.mxu1 %vm26_vm0, %v6894_v26  ;;  %77 = vst.msk [vmem:[#allocation2 + $0x190] sm:$0xff] %vm26_vm0, %v7255_v59  ;;  %78 = vst.msk [vmem:[#allocation2 + $0x198] sm:$0xff] %vm26_vm0, %v7255_v59  ;;  %v6956_v25 = vld [vmem:[%s10164_s0 + $0x358] sm:$0xff]   ;;  %v6957_v26 = vld [vmem:[%s10164_s0 + $0x160] sm:$0xff]  }
  0x30   :  { %79 = vst.msk [vmem:[#allocation2 + $0x1a0] sm:$0xff] %vm26_vm0, %v7255_v59  ;;  %80 = vst.msk [vmem:[#allocation2 + $0x1a8] sm:$0xff] %vm26_vm0, %v7255_v59 }
  0x31   :  { %81 = vst.msk [vmem:[#allocation2 + $0x1b0] sm:$0xff] %vm26_vm0, %v7255_v59  ;;  %82 = vst.msk [vmem:[#allocation2 + $0x1b8] sm:$0xff] %vm26_vm0, %v7255_v59 }
  0x32   :  { %83 = vst.msk [vmem:[#allocation2 + $0x1c0] sm:$0xff] %vm26_vm0, %v7255_v59  ;;  %84 = vst.msk [vmem:[#allocation2 + $0x1c8] sm:$0xff] %vm26_vm0, %v7255_v59 }
  0x33   :  { %85 = vst.msk [vmem:[#allocation2 + $0x1d0] sm:$0xff] %vm26_vm0, %v7255_v59  ;;  %86 = vst.msk [vmem:[#allocation2 + $0x1d8] sm:$0xff] %vm26_vm0, %v7255_v59 }
  0x34   :  { %87 = vst.msk [vmem:[#allocation2 + $0x1e0] sm:$0xff] %vm26_vm0, %v7255_v59  ;;  %88 = vst.msk [vmem:[#allocation2 + $0x1e8] sm:$0xff] %vm26_vm0, %v7255_v59 }
  0x35   :  { %89 = vst.msk [vmem:[#allocation2 + $0x1f0] sm:$0xff] %vm26_vm0, %v7255_v59  ;;  %90 = vst.msk [vmem:[#allocation2 + $0x1f8] sm:$0xff] %vm26_vm0, %v7255_v59 }
  0x36   :  { %6635 = vmatmul.mubr.msk.bf16.gmra.mrb[24].mxu0 %vm26_vm0, %v6895_v27  ;;  %6763 = vmatmul.mubr.msk.bf16.gmra.mrb[24].mxu1 %vm26_vm0, %v6896_v28  ;;  %91 = vst.msk [vmem:[#allocation2 + $0x200] sm:$0xff] %vm26_vm0, %v7255_v59  ;;  %92 = vst.msk [vmem:[#allocation2 + $0x208] sm:$0xff] %vm26_vm0, %v7255_v59  ;;  %v6958_v27 = vld [vmem:[%s10164_s0 + $0x360] sm:$0xff]   ;;  %v6959_v28 = vld [vmem:[%s10164_s0 + $0x168] sm:$0xff]  }
  0x37   :  { %6638 = vmatprep.mubr.msk.bf16.mxu0 %vm26_vm0, %v6897_v29  ;;  %6766 = vmatprep.mubr.msk.bf16.mxu1 %vm26_vm0, %v6898_v30  ;;  %93 = vst.msk [vmem:[#allocation2 + $0x210] sm:$0xff] %vm26_vm0, %v7255_v59  ;;  %94 = vst.msk [vmem:[#allocation2 + $0x218] sm:$0xff] %vm26_vm0, %v7255_v59  ;;  %v6960_v29 = vld [vmem:[%s10164_s0 + $0x368] sm:$0xff]   ;;  %v6961_v30 = vld [vmem:[%s10164_s0 + $0x170] sm:$0xff]  }
  0x38   :  { %95 = vst.msk [vmem:[#allocation2 + $0x220] sm:$0xff] %vm26_vm0, %v7255_v59  ;;  %96 = vst.msk [vmem:[#allocation2 + $0x228] sm:$0xff] %vm26_vm0, %v7255_v59 }
  0x39   :  { %97 = vst.msk [vmem:[#allocation2 + $0x230] sm:$0xff] %vm26_vm0, %v7255_v59  ;;  %98 = vst.msk [vmem:[#allocation2 + $0x238] sm:$0xff] %vm26_vm0, %v7255_v59 }
  0x3a   :  { %99 = vst.msk [vmem:[#allocation2 + $0x240] sm:$0xff] %vm26_vm0, %v7255_v59  ;;  %100 = vst.msk [vmem:[#allocation2 + $0x248] sm:$0xff] %vm26_vm0, %v7255_v59 }
  0x3b   :  { %101 = vst.msk [vmem:[#allocation2 + $0x250] sm:$0xff] %vm26_vm0, %v7255_v59  ;;  %102 = vst.msk [vmem:[#allocation2 + $0x258] sm:$0xff] %vm26_vm0, %v7255_v59 }
  0x3c   :  { %103 = vst.msk [vmem:[#allocation2 + $0x260] sm:$0xff] %vm26_vm0, %v7255_v59  ;;  %104 = vst.msk [vmem:[#allocation2 + $0x268] sm:$0xff] %vm26_vm0, %v7255_v59 }
  0x3d   :  { %105 = vst.msk [vmem:[#allocation2 + $0x270] sm:$0xff] %vm26_vm0, %v7255_v59  ;;  %106 = vst.msk [vmem:[#allocation2 + $0x278] sm:$0xff] %vm26_vm0, %v7255_v59 }
  0x3e   :  { %6639 = vmatmul.mubr.msk.bf16.gmra.mrb[28].mxu0 %vm26_vm0, %v6899_v31  ;;  %6767 = vmatmul.mubr.msk.bf16.gmra.mrb[28].mxu1 %vm26_vm0, %v6900_v32  ;;  %107 = vst.msk [vmem:[#allocation2 + $0x280] sm:$0xff] %vm26_vm0, %v7255_v59  ;;  %108 = vst.msk [vmem:[#allocation2 + $0x288] sm:$0xff] %vm26_vm0, %v7255_v59  ;;  %v6962_v31 = vld [vmem:[%s10164_s0 + $0x370] sm:$0xff]   ;;  %v6963_v32 = vld [vmem:[%s10164_s0 + $0x178] sm:$0xff]  }
  0x3f   :  { %6642 = vmatprep.mubr.msk.bf16.mxu0 %vm26_vm0, %v6901_v33  ;;  %6770 = vmatprep.mubr.msk.bf16.mxu1 %vm26_vm0, %v6902_v34  ;;  %109 = vst.msk [vmem:[#allocation2 + $0x290] sm:$0xff] %vm26_vm0, %v7255_v59  ;;  %110 = vst.msk [vmem:[#allocation2 + $0x298] sm:$0xff] %vm26_vm0, %v7255_v59  ;;  %v6964_v33 = vld [vmem:[%s10164_s0 + $0x378] sm:$0xff]   ;;  %v6965_v34 = vld [vmem:[%s10164_s0 + $0x180] sm:$0xff]  }
  0x40   :  { %111 = vst.msk [vmem:[#allocation2 + $0x2a0] sm:$0xff] %vm26_vm0, %v7255_v59  ;;  %112 = vst.msk [vmem:[#allocation2 + $0x2a8] sm:$0xff] %vm26_vm0, %v7255_v59 }
  0x41   :  { %113 = vst.msk [vmem:[#allocation2 + $0x2b0] sm:$0xff] %vm26_vm0, %v7255_v59  ;;  %114 = vst.msk [vmem:[#allocation2 + $0x2b8] sm:$0xff] %vm26_vm0, %v7255_v59 }
  0x42   :  { %115 = vst.msk [vmem:[#allocation2 + $0x2c0] sm:$0xff] %vm26_vm0, %v7255_v59  ;;  %116 = vst.msk [vmem:[#allocation2 + $0x2c8] sm:$0xff] %vm26_vm0, %v7255_v59 }
  0x43   :  { %117 = vst.msk [vmem:[#allocation2 + $0x2d0] sm:$0xff] %vm26_vm0, %v7255_v59  ;;  %118 = vst.msk [vmem:[#allocation2 + $0x2d8] sm:$0xff] %vm26_vm0, %v7255_v59 }
  0x44   :  { %119 = vst.msk [vmem:[#allocation2 + $0x2e0] sm:$0xff] %vm26_vm0, %v7255_v59  ;;  %120 = vst.msk [vmem:[#allocation2 + $0x2e8] sm:$0xff] %vm26_vm0, %v7255_v59 }
  0x45   :  { %121 = vst.msk [vmem:[#allocation2 + $0x2f0] sm:$0xff] %vm26_vm0, %v7255_v59  ;;  %122 = vst.msk [vmem:[#allocation2 + $0x2f8] sm:$0xff] %vm26_vm0, %v7255_v59 }
  0x46   :  { %6643 = vmatmul.mubr.msk.bf16.gmra.mrb[32].mxu0 %vm26_vm0, %v6903_v35  ;;  %6771 = vmatmul.mubr.msk.bf16.gmra.mrb[32].mxu1 %vm26_vm0, %v6904_v36  ;;  %123 = vst.msk [vmem:[#allocation2 + $0x300] sm:$0xff] %vm26_vm0, %v7255_v59  ;;  %124 = vst.msk [vmem:[#allocation2 + $0x308] sm:$0xff] %vm26_vm0, %v7255_v59  ;;  %v6966_v35 = vld [vmem:[%s10164_s0 + $0x380] sm:$0xff]   ;;  %v6967_v36 = vld [vmem:[%s10164_s0 + $0x188] sm:$0xff]  }
  0x47   :  { %6646 = vmatprep.mubr.msk.bf16.mxu0 %vm26_vm0, %v6905_v37  ;;  %6774 = vmatprep.mubr.msk.bf16.mxu1 %vm26_vm0, %v6906_v38  ;;  %125 = vst.msk [vmem:[#allocation2 + $0x310] sm:$0xff] %vm26_vm0, %v7255_v59  ;;  %126 = vst.msk [vmem:[#allocation2 + $0x318] sm:$0xff] %vm26_vm0, %v7255_v59  ;;  %v6968_v37 = vld [vmem:[%s10164_s0 + $0x388] sm:$0xff]   ;;  %v6969_v38 = vld [vmem:[%s10164_s0 + $0x190] sm:$0xff]  }
  0x48   :  { %127 = vst.msk [vmem:[#allocation2 + $0x320] sm:$0xff] %vm26_vm0, %v7255_v59  ;;  %128 = vst.msk [vmem:[#allocation2 + $0x328] sm:$0xff] %vm26_vm0, %v7255_v59 }
  0x49   :  { %129 = vst.msk [vmem:[#allocation2 + $0x330] sm:$0xff] %vm26_vm0, %v7255_v59  ;;  %130 = vst.msk [vmem:[#allocation2 + $0x338] sm:$0xff] %vm26_vm0, %v7255_v59 }
  0x4a   :  { %131 = vst.msk [vmem:[#allocation2 + $0x340] sm:$0xff] %vm26_vm0, %v7255_v59  ;;  %132 = vst.msk [vmem:[#allocation2 + $0x348] sm:$0xff] %vm26_vm0, %v7255_v59 }
  0x4b   :  { %133 = vst.msk [vmem:[#allocation2 + $0x350] sm:$0xff] %vm26_vm0, %v7255_v59  ;;  %134 = vst.msk [vmem:[#allocation2 + $0x358] sm:$0xff] %vm26_vm0, %v7255_v59 }
  0x4c   :  { %135 = vst.msk [vmem:[#allocation2 + $0x360] sm:$0xff] %vm26_vm0, %v7255_v59  ;;  %136 = vst.msk [vmem:[#allocation2 + $0x368] sm:$0xff] %vm26_vm0, %v7255_v59 }
  0x4d   :  { %137 = vst.msk [vmem:[#allocation2 + $0x370] sm:$0xff] %vm26_vm0, %v7255_v59  ;;  %138 = vst.msk [vmem:[#allocation2 + $0x378] sm:$0xff] %vm26_vm0, %v7255_v59 }
  0x4e   :  { %6647 = vmatmul.mubr.msk.bf16.gmra.mrb[36].mxu0 %vm26_vm0, %v6907_v39  ;;  %6775 = vmatmul.mubr.msk.bf16.gmra.mrb[36].mxu1 %vm26_vm0, %v6908_v40  ;;  %139 = vst.msk [vmem:[#allocation2 + $0x380] sm:$0xff] %vm26_vm0, %v7255_v59  ;;  %140 = vst.msk [vmem:[#allocation2 + $0x388] sm:$0xff] %vm26_vm0, %v7255_v59  ;;  %v6970_v39 = vld [vmem:[%s10164_s0 + $0x390] sm:$0xff]   ;;  %v6971_v40 = vld [vmem:[%s10164_s0 + $0x198] sm:$0xff]  }
  0x4f   :  { %6650 = vmatprep.mubr.msk.bf16.mxu0 %vm26_vm0, %v6909_v41  ;;  %6778 = vmatprep.mubr.msk.bf16.mxu1 %vm26_vm0, %v6910_v42  ;;  %141 = vst.msk [vmem:[#allocation2 + $0x390] sm:$0xff] %vm26_vm0, %v7255_v59  ;;  %142 = vst.msk [vmem:[#allocation2 + $0x398] sm:$0xff] %vm26_vm0, %v7255_v59  ;;  %v6972_v41 = vld [vmem:[%s10164_s0 + $0x398] sm:$0xff]   ;;  %v6973_v42 = vld [vmem:[%s10164_s0 + $0x1a0] sm:$0xff]  }
  0x50   :  { %143 = vst.msk [vmem:[#allocation2 + $0x3a0] sm:$0xff] %vm26_vm0, %v7255_v59  ;;  %144 = vst.msk [vmem:[#allocation2 + $0x3a8] sm:$0xff] %vm26_vm0, %v7255_v59 }
  0x51   :  { %145 = vst.msk [vmem:[#allocation2 + $0x3b0] sm:$0xff] %vm26_vm0, %v7255_v59  ;;  %146 = vst.msk [vmem:[#allocation2 + $0x3b8] sm:$0xff] %vm26_vm0, %v7255_v59 }
  0x52   :  { %147 = vst.msk [vmem:[#allocation2 + $0x3c0] sm:$0xff] %vm26_vm0, %v7255_v59  ;;  %148 = vst.msk [vmem:[#allocation2 + $0x3c8] sm:$0xff] %vm26_vm0, %v7255_v59 }
  0x53   :  { %149 = vst.msk [vmem:[#allocation2 + $0x3d0] sm:$0xff] %vm26_vm0, %v7255_v59  ;;  %150 = vst.msk [vmem:[#allocation2 + $0x3d8] sm:$0xff] %vm26_vm0, %v7255_v59 }
  0x54   :  { %151 = vst.msk [vmem:[#allocation2 + $0x3e0] sm:$0xff] %vm26_vm0, %v7255_v59  ;;  %152 = vst.msk [vmem:[#allocation2 + $0x3e8] sm:$0xff] %vm26_vm0, %v7255_v59 }
  0x55   :  { %153 = vst.msk [vmem:[#allocation2 + $0x3f0] sm:$0xff] %vm26_vm0, %v7255_v59  ;;  %154 = vst.msk [vmem:[#allocation2 + $0x3f8] sm:$0xff] %vm26_vm0, %v7255_v59 }
  0x56   :  { %6651 = vmatmul.mubr.msk.bf16.gmra.mrb[40].mxu0 %vm26_vm0, %v6911_v43  ;;  %6779 = vmatmul.mubr.msk.bf16.gmra.mrb[40].mxu1 %vm26_vm0, %v6912_v44  ;;  %155 = vst.msk [vmem:[#allocation2 + $0x400] sm:$0xff] %vm26_vm0, %v7255_v59  ;;  %156 = vst.msk [vmem:[#allocation2 + $0x408] sm:$0xff] %vm26_vm0, %v7255_v59  ;;  %v6974_v43 = vld [vmem:[%s10164_s0 + $0x3a0] sm:$0xff]   ;;  %v6975_v44 = vld [vmem:[%s10164_s0 + $0x1a8] sm:$0xff]  }
  0x57   :  { %6654 = vmatprep.mubr.msk.bf16.mxu0 %vm26_vm0, %v6913_v45  ;;  %6782 = vmatprep.mubr.msk.bf16.mxu1 %vm26_vm0, %v6914_v46  ;;  %157 = vst.msk [vmem:[#allocation2 + $0x410] sm:$0xff] %vm26_vm0, %v7255_v59  ;;  %158 = vst.msk [vmem:[#allocation2 + $0x418] sm:$0xff] %vm26_vm0, %v7255_v59  ;;  %v6976_v45 = vld [vmem:[%s10164_s0 + $0x3a8] sm:$0xff]   ;;  %v6977_v46 = vld [vmem:[%s10164_s0 + $0x1b0] sm:$0xff]  }
  0x58   :  { %159 = vst.msk [vmem:[#allocation2 + $0x420] sm:$0xff] %vm26_vm0, %v7255_v59  ;;  %160 = vst.msk [vmem:[#allocation2 + $0x428] sm:$0xff] %vm26_vm0, %v7255_v59 }
  0x59   :  { %161 = vst.msk [vmem:[#allocation2 + $0x430] sm:$0xff] %vm26_vm0, %v7255_v59  ;;  %162 = vst.msk [vmem:[#allocation2 + $0x438] sm:$0xff] %vm26_vm0, %v7255_v59 }
  0x5a   :  { %163 = vst.msk [vmem:[#allocation2 + $0x440] sm:$0xff] %vm26_vm0, %v7255_v59  ;;  %164 = vst.msk [vmem:[#allocation2 + $0x448] sm:$0xff] %vm26_vm0, %v7255_v59 }
  0x5b   :  { %165 = vst.msk [vmem:[#allocation2 + $0x450] sm:$0xff] %vm26_vm0, %v7255_v59  ;;  %166 = vst.msk [vmem:[#allocation2 + $0x458] sm:$0xff] %vm26_vm0, %v7255_v59 }
  0x5c   :  { %167 = vst.msk [vmem:[#allocation2 + $0x460] sm:$0xff] %vm26_vm0, %v7255_v59  ;;  %168 = vst.msk [vmem:[#allocation2 + $0x468] sm:$0xff] %vm26_vm0, %v7255_v59 }
  0x5d   :  { %169 = vst.msk [vmem:[#allocation2 + $0x470] sm:$0xff] %vm26_vm0, %v7255_v59  ;;  %170 = vst.msk [vmem:[#allocation2 + $0x478] sm:$0xff] %vm26_vm0, %v7255_v59 }
  0x5e   :  { %6655 = vmatmul.mubr.msk.bf16.gmra.mrb[44].mxu0 %vm26_vm0, %v6915_v47  ;;  %6783 = vmatmul.mubr.msk.bf16.gmra.mrb[44].mxu1 %vm26_vm0, %v6916_v48  ;;  %171 = vst.msk [vmem:[#allocation2 + $0x480] sm:$0xff] %vm26_vm0, %v7255_v59  ;;  %172 = vst.msk [vmem:[#allocation2 + $0x488] sm:$0xff] %vm26_vm0, %v7255_v59  ;;  %v6978_v47 = vld [vmem:[%s10164_s0 + $0x3b0] sm:$0xff]  }
  0x5f   :  { %6658 = vmatprep.mubr.msk.bf16.mxu0 %vm26_vm0, %v6917_v49  ;;  %6786 = vmatprep.mubr.msk.bf16.mxu1 %vm26_vm0, %v6918_v50  ;;  %173 = vst.msk [vmem:[#allocation2 + $0x490] sm:$0xff] %vm26_vm0, %v7255_v59  ;;  %174 = vst.msk [vmem:[#allocation2 + $0x498] sm:$0xff] %vm26_vm0, %v7255_v59  ;;  %v285_v48 = vld [vmem:[#allocation2 + $0x10] sm:$0xff]  ;;  %v283_v50 = vld [vmem:[#allocation2] sm:$0xff] }
  0x60   :  { %175 = vst.msk [vmem:[#allocation2 + $0x4a0] sm:$0xff] %vm26_vm0, %v7255_v59  ;;  %176 = vst.msk [vmem:[#allocation2 + $0x4a8] sm:$0xff] %vm26_vm0, %v7255_v59  ;;  %v413_v49 = vld [vmem:[#allocation2 + $0x410] sm:$0xff] }
  0x61   :  { %177 = vst.msk [vmem:[#allocation2 + $0x4b0] sm:$0xff] %vm26_vm0, %v7255_v59  ;;  %178 = vst.msk [vmem:[#allocation2 + $0x4b8] sm:$0xff] %vm26_vm0, %v7255_v59 }
  0x62   :  { %179 = vst.msk [vmem:[#allocation2 + $0x4c0] sm:$0xff] %vm26_vm0, %v7255_v59  ;;  %180 = vst.msk [vmem:[#allocation2 + $0x4c8] sm:$0xff] %vm26_vm0, %v7255_v59 }
  0x63   :  { %181 = vst.msk [vmem:[#allocation2 + $0x4d0] sm:$0xff] %vm26_vm0, %v7255_v59  ;;  %182 = vst.msk [vmem:[#allocation2 + $0x4d8] sm:$0xff] %vm26_vm0, %v7255_v59 }
  0x64   :  { %183 = vst.msk [vmem:[#allocation2 + $0x4e0] sm:$0xff] %vm26_vm0, %v7255_v59  ;;  %184 = vst.msk [vmem:[#allocation2 + $0x4e8] sm:$0xff] %vm26_vm0, %v7255_v59 }
  0x65   :  { %185 = vst.msk [vmem:[#allocation2 + $0x4f0] sm:$0xff] %vm26_vm0, %v7255_v59  ;;  %186 = vst.msk [vmem:[#allocation2 + $0x4f8] sm:$0xff] %vm26_vm0, %v7255_v59 }
  0x66   :  { %6659 = vmatmul.mubr.msk.bf16.gmra.mrb[48].mxu0 %vm26_vm0, %v6919_v51  ;;  %6787 = vmatmul.mubr.msk.bf16.gmra.mrb[48].mxu1 %vm26_vm0, %v6920_v52  ;;  %187 = vst.msk [vmem:[#allocation2 + $0x500] sm:$0xff] %vm26_vm0, %v7255_v59  ;;  %188 = vst.msk [vmem:[#allocation2 + $0x508] sm:$0xff] %vm26_vm0, %v7255_v59  ;;  %v411_v51 = vld [vmem:[#allocation2 + $0x400] sm:$0xff] }
  0x67   :  { %6662 = vmatprep.mubr.msk.bf16.mxu0 %vm26_vm0, %v6921_v53  ;;  %6790 = vmatprep.mubr.msk.bf16.mxu1 %vm26_vm0, %v6922_v54  ;;  %189 = vst.msk [vmem:[#allocation2 + $0x510] sm:$0xff] %vm26_vm0, %v7255_v59  ;;  %190 = vst.msk [vmem:[#allocation2 + $0x518] sm:$0xff] %vm26_vm0, %v7255_v59  ;;  %v286_v54 = vld [vmem:[#allocation2 + $0x18] sm:$0xff] }
  0x68   :  { %191 = vst.msk [vmem:[#allocation2 + $0x520] sm:$0xff] %vm26_vm0, %v7255_v59  ;;  %192 = vst.msk [vmem:[#allocation2 + $0x528] sm:$0xff] %vm26_vm0, %v7255_v59 }
  0x69   :  { %193 = vst.msk [vmem:[#allocation2 + $0x530] sm:$0xff] %vm26_vm0, %v7255_v59  ;;  %194 = vst.msk [vmem:[#allocation2 + $0x538] sm:$0xff] %vm26_vm0, %v7255_v59 }
  0x6a   :  { %195 = vst.msk [vmem:[#allocation2 + $0x540] sm:$0xff] %vm26_vm0, %v7255_v59  ;;  %196 = vst.msk [vmem:[#allocation2 + $0x548] sm:$0xff] %vm26_vm0, %v7255_v59 }
  0x6b   :  { %197 = vst.msk [vmem:[#allocation2 + $0x550] sm:$0xff] %vm26_vm0, %v7255_v59  ;;  %198 = vst.msk [vmem:[#allocation2 + $0x558] sm:$0xff] %vm26_vm0, %v7255_v59 }
  0x6c   :  { %199 = vst.msk [vmem:[#allocation2 + $0x560] sm:$0xff] %vm26_vm0, %v7255_v59  ;;  %200 = vst.msk [vmem:[#allocation2 + $0x568] sm:$0xff] %vm26_vm0, %v7255_v59 }
  0x6d   :  { %201 = vst.msk [vmem:[#allocation2 + $0x570] sm:$0xff] %vm26_vm0, %v7255_v59  ;;  %202 = vst.msk [vmem:[#allocation2 + $0x578] sm:$0xff] %vm26_vm0, %v7255_v59 }
  0x6e   :  { %6663 = vmatmul.mubr.msk.bf16.gmra.mrb[52].mxu0 %vm26_vm0, %v6923_v55  ;;  %6791 = vmatmul.mubr.msk.bf16.gmra.mrb[52].mxu1 %vm26_vm0, %v6924_v56  ;;  %203 = vst.msk [vmem:[#allocation2 + $0x580] sm:$0xff] %vm26_vm0, %v7255_v59  ;;  %204 = vst.msk [vmem:[#allocation2 + $0x588] sm:$0xff] %vm26_vm0, %v7255_v59  ;;  %v414_v55 = vld [vmem:[#allocation2 + $0x418] sm:$0xff] }
  0x6f   :  { %205 = vst.msk [vmem:[#allocation2 + $0x590] sm:$0xff] %vm26_vm0, %v7255_v59  ;;  %206 = vst.msk [vmem:[#allocation2 + $0x598] sm:$0xff] %vm26_vm0, %v7255_v59  ;;  %6666 = vmatprep.mubr.msk.bf16.mxu0 %vm26_vm0, %v7245_v57  ;;  %6794 = vmatprep.mubr.msk.bf16.mxu1 %vm26_vm0, %v7250_v58  ;;  %v6979_v56 = vld [vmem:[%s10164_s0 + $0x1b8] sm:$0xff]  }
  0x70   :  { %207 = vst.msk [vmem:[#allocation2 + $0x5a0] sm:$0xff] %vm26_vm0, %v7255_v59  ;;  %208 = vst.msk [vmem:[#allocation2 + $0x5a8] sm:$0xff] %vm26_vm0, %v7255_v59 }
  0x71   :  { %209 = vst.msk [vmem:[#allocation2 + $0x5b0] sm:$0xff] %vm26_vm0, %v7255_v59  ;;  %210 = vst.msk [vmem:[#allocation2 + $0x5b8] sm:$0xff] %vm26_vm0, %v7255_v59 }
  0x72   :  { %211 = vst.msk [vmem:[#allocation2 + $0x5c0] sm:$0xff] %vm26_vm0, %v7255_v59  ;;  %212 = vst.msk [vmem:[#allocation2 + $0x5c8] sm:$0xff] %vm26_vm0, %v7255_v59 }
  0x73   :  { %213 = vst.msk [vmem:[#allocation2 + $0x5d0] sm:$0xff] %vm26_vm0, %v7255_v59  ;;  %214 = vst.msk [vmem:[#allocation2 + $0x5d8] sm:$0xff] %vm26_vm0, %v7255_v59 }
  0x74   :  { %215 = vst.msk [vmem:[#allocation2 + $0x5e0] sm:$0xff] %vm26_vm0, %v7255_v59  ;;  %216 = vst.msk [vmem:[#allocation2 + $0x5e8] sm:$0xff] %vm26_vm0, %v7255_v59 }
  0x75   :  { %217 = vst.msk [vmem:[#allocation2 + $0x5f0] sm:$0xff] %vm26_vm0, %v7255_v59  ;;  %218 = vst.msk [vmem:[#allocation2 + $0x5f8] sm:$0xff] %vm26_vm0, %v7255_v59 }
  0x76   :  { %219 = vst.msk [vmem:[#allocation2 + $0x600] sm:$0xff] %vm26_vm0, %v7255_v59  ;;  %220 = vst.msk [vmem:[#allocation2 + $0x608] sm:$0xff] %vm26_vm0, %v7255_v59  ;;  %6667 = vmatmul.mubr.msk.bf16.gmra.mrb[56].mxu0 %vm26_vm0, %v6927_v60  ;;  %6795 = vmatmul.mubr.msk.bf16.gmra.mrb[56].mxu1 %vm26_vm0, %v6928_v61  ;;  %v284_v61 = vld [vmem:[#allocation2 + $0x8] sm:$0xff] }
  0x77   :  { %221 = vst.msk [vmem:[#allocation2 + $0x610] sm:$0xff] %vm26_vm0, %v7255_v59  ;;  %222 = vst.msk [vmem:[#allocation2 + $0x618] sm:$0xff] %vm26_vm0, %v7255_v59  ;;  %6670 = vmatprep.mubr.msk.bf16.mxu0 %vm26_vm0, %v6929_v62  ;;  %6798 = vmatprep.mubr.msk.bf16.mxu1 %vm26_vm0, %v6930_v63  ;;  %v412_v62 = vld [vmem:[#allocation2 + $0x408] sm:$0xff]  ;;  %v6980_v63 = vld [vmem:[%s10164_s0 + $0x3b8] sm:$0xff]  }
  0x78   :  { %223 = vst.msk [vmem:[#allocation2 + $0x620] sm:$0xff] %vm26_vm0, %v7255_v59  ;;  %224 = vst.msk [vmem:[#allocation2 + $0x628] sm:$0xff] %vm26_vm0, %v7255_v59 }
  0x79   :  { %225 = vst.msk [vmem:[#allocation2 + $0x630] sm:$0xff] %vm26_vm0, %v7255_v59  ;;  %226 = vst.msk [vmem:[#allocation2 + $0x638] sm:$0xff] %vm26_vm0, %v7255_v59 }
  0x7a   :  { %227 = vst.msk [vmem:[#allocation2 + $0x640] sm:$0xff] %vm26_vm0, %v7255_v59  ;;  %228 = vst.msk [vmem:[#allocation2 + $0x648] sm:$0xff] %vm26_vm0, %v7255_v59 }
  0x7b   :  { %229 = vst.msk [vmem:[#allocation2 + $0x650] sm:$0xff] %vm26_vm0, %v7255_v59  ;;  %230 = vst.msk [vmem:[#allocation2 + $0x658] sm:$0xff] %vm26_vm0, %v7255_v59 }
  0x7c   :  { %231 = vst.msk [vmem:[#allocation2 + $0x660] sm:$0xff] %vm26_vm0, %v7255_v59  ;;  %232 = vst.msk [vmem:[#allocation2 + $0x668] sm:$0xff] %vm26_vm0, %v7255_v59 }
  0x7d   :  { %233 = vst.msk [vmem:[#allocation2 + $0x670] sm:$0xff] %vm26_vm0, %v7255_v59  ;;  %234 = vst.msk [vmem:[#allocation2 + $0x678] sm:$0xff] %vm26_vm0, %v7255_v59 }
  0x7e   :  { %235 = vst.msk [vmem:[#allocation2 + $0x680] sm:$0xff] %vm26_vm0, %v7255_v59  ;;  %236 = vst.msk [vmem:[#allocation2 + $0x688] sm:$0xff] %vm26_vm0, %v7255_v59  ;;  %6671 = vmatmul.mubr.msk.bf16.gmra.mrb[60].mxu0 %vm26_vm0, %v6931_v0  ;;  %6799 = vmatmul.mubr.msk.bf16.gmra.mrb[60].mxu1 %vm26_vm0, %v6932_v1 }
  0x7f   :  { %237 = vst.msk [vmem:[#allocation2 + $0x690] sm:$0xff] %vm26_vm0, %v7255_v59  ;;  %238 = vst.msk [vmem:[#allocation2 + $0x698] sm:$0xff] %vm26_vm0, %v7255_v59  ;;  %6674 = vmatprep.mubr.msk.bf16.mxu0 %vm26_vm0, %v6933_v2  ;;  %6802 = vmatprep.mubr.msk.bf16.mxu1 %vm26_vm0, %v6934_v3 }
  0x80   :  { %239 = vst.msk [vmem:[#allocation2 + $0x6a0] sm:$0xff] %vm26_vm0, %v7255_v59  ;;  %240 = vst.msk [vmem:[#allocation2 + $0x6a8] sm:$0xff] %vm26_vm0, %v7255_v59 }
  0x81   :  { %241 = vst.msk [vmem:[#allocation2 + $0x6b0] sm:$0xff] %vm26_vm0, %v7255_v59  ;;  %242 = vst.msk [vmem:[#allocation2 + $0x6b8] sm:$0xff] %vm26_vm0, %v7255_v59 }
  0x82   :  { %243 = vst.msk [vmem:[#allocation2 + $0x6c0] sm:$0xff] %vm26_vm0, %v7255_v59  ;;  %244 = vst.msk [vmem:[#allocation2 + $0x6c8] sm:$0xff] %vm26_vm0, %v7255_v59 }
  0x83   :  { %245 = vst.msk [vmem:[#allocation2 + $0x6d0] sm:$0xff] %vm26_vm0, %v7255_v59  ;;  %246 = vst.msk [vmem:[#allocation2 + $0x6d8] sm:$0xff] %vm26_vm0, %v7255_v59 }
  0x84   :  { %247 = vst.msk [vmem:[#allocation2 + $0x6e0] sm:$0xff] %vm26_vm0, %v7255_v59  ;;  %248 = vst.msk [vmem:[#allocation2 + $0x6e8] sm:$0xff] %vm26_vm0, %v7255_v59 }
  0x85   :  { %249 = vst.msk [vmem:[#allocation2 + $0x6f0] sm:$0xff] %vm26_vm0, %v7255_v59  ;;  %250 = vst.msk [vmem:[#allocation2 + $0x6f8] sm:$0xff] %vm26_vm0, %v7255_v59 }
  0x86   :  { %251 = vst.msk [vmem:[#allocation2 + $0x700] sm:$0xff] %vm26_vm0, %v7255_v59  ;;  %252 = vst.msk [vmem:[#allocation2 + $0x708] sm:$0xff] %vm26_vm0, %v7255_v59  ;;  %6675 = vmatmul.mubr.msk.bf16.gmra.mrb[64].mxu0 %vm26_vm0, %v6935_v4  ;;  %6803 = vmatmul.mubr.msk.bf16.gmra.mrb[64].mxu1 %vm26_vm0, %v6936_v5  ;;  %v6981_v4 = vld [vmem:[%s10164_s0 + $0x1c0] sm:$0xff]  }
  0x87   :  { %253 = vst.msk [vmem:[#allocation2 + $0x710] sm:$0xff] %vm26_vm0, %v7255_v59  ;;  %254 = vst.msk [vmem:[#allocation2 + $0x718] sm:$0xff] %vm26_vm0, %v7255_v59  ;;  %6678 = vmatprep.mubr.msk.bf16.mxu0 %vm26_vm0, %v6937_v6  ;;  %6806 = vmatprep.mubr.msk.bf16.mxu1 %vm26_vm0, %v6938_v7  ;;  %v6982_v5 = vld [vmem:[%s10164_s0 + $0x3c0] sm:$0xff]  }
  0x88   :  { %255 = vst.msk [vmem:[#allocation2 + $0x720] sm:$0xff] %vm26_vm0, %v7255_v59  ;;  %256 = vst.msk [vmem:[#allocation2 + $0x728] sm:$0xff] %vm26_vm0, %v7255_v59 }
  0x89   :  { %257 = vst.msk [vmem:[#allocation2 + $0x730] sm:$0xff] %vm26_vm0, %v7255_v59  ;;  %258 = vst.msk [vmem:[#allocation2 + $0x738] sm:$0xff] %vm26_vm0, %v7255_v59 }
  0x8a   :  { %259 = vst.msk [vmem:[#allocation2 + $0x740] sm:$0xff] %vm26_vm0, %v7255_v59  ;;  %260 = vst.msk [vmem:[#allocation2 + $0x748] sm:$0xff] %vm26_vm0, %v7255_v59 }
  0x8b   :  { %261 = vst.msk [vmem:[#allocation2 + $0x750] sm:$0xff] %vm26_vm0, %v7255_v59  ;;  %262 = vst.msk [vmem:[#allocation2 + $0x758] sm:$0xff] %vm26_vm0, %v7255_v59 }
  0x8c   :  { %263 = vst.msk [vmem:[#allocation2 + $0x760] sm:$0xff] %vm26_vm0, %v7255_v59  ;;  %264 = vst.msk [vmem:[#allocation2 + $0x768] sm:$0xff] %vm26_vm0, %v7255_v59 }
  0x8d   :  { %265 = vst.msk [vmem:[#allocation2 + $0x770] sm:$0xff] %vm26_vm0, %v7255_v59  ;;  %266 = vst.msk [vmem:[#allocation2 + $0x778] sm:$0xff] %vm26_vm0, %v7255_v59 }
  0x8e   :  { %267 = vst.msk [vmem:[#allocation2 + $0x780] sm:$0xff] %vm26_vm0, %v7255_v59  ;;  %268 = vst.msk [vmem:[#allocation2 + $0x788] sm:$0xff] %vm26_vm0, %v7255_v59  ;;  %6679 = vmatmul.mubr.msk.bf16.gmra.mrb[68].mxu0 %vm26_vm0, %v6939_v8  ;;  %6807 = vmatmul.mubr.msk.bf16.gmra.mrb[68].mxu1 %vm26_vm0, %v6940_v9 }
  0x8f   :  { %269 = vst.msk [vmem:[#allocation2 + $0x790] sm:$0xff] %vm26_vm0, %v7255_v59  ;;  %270 = vst.msk [vmem:[#allocation2 + $0x798] sm:$0xff] %vm26_vm0, %v7255_v59  ;;  %6682 = vmatprep.mubr.msk.bf16.mxu0 %vm26_vm0, %v6941_v10  ;;  %6810 = vmatprep.mubr.msk.bf16.mxu1 %vm26_vm0, %v6942_v11 }
  0x90   :  { %271 = vst.msk [vmem:[#allocation2 + $0x7a0] sm:$0xff] %vm26_vm0, %v7255_v59  ;;  %272 = vst.msk [vmem:[#allocation2 + $0x7a8] sm:$0xff] %vm26_vm0, %v7255_v59 }
  0x91   :  { %273 = vst.msk [vmem:[#allocation2 + $0x7b0] sm:$0xff] %vm26_vm0, %v7255_v59  ;;  %274 = vst.msk [vmem:[#allocation2 + $0x7b8] sm:$0xff] %vm26_vm0, %v7255_v59 }
  0x92   :  { %275 = vst.msk [vmem:[#allocation2 + $0x7c0] sm:$0xff] %vm26_vm0, %v7255_v59  ;;  %276 = vst.msk [vmem:[#allocation2 + $0x7c8] sm:$0xff] %vm26_vm0, %v7255_v59 }
  0x93   :  { %277 = vst.msk [vmem:[#allocation2 + $0x7d0] sm:$0xff] %vm26_vm0, %v7255_v59  ;;  %278 = vst.msk [vmem:[#allocation2 + $0x7d8] sm:$0xff] %vm26_vm0, %v7255_v59 }
  0x94   :  { %279 = vst.msk [vmem:[#allocation2 + $0x7e0] sm:$0xff] %vm26_vm0, %v7255_v59  ;;  %280 = vst.msk [vmem:[#allocation2 + $0x7e8] sm:$0xff] %vm26_vm0, %v7255_v59 }
  0x95   :  { %281 = vst.msk [vmem:[#allocation2 + $0x7f0] sm:$0xff] %vm26_vm0, %v7255_v59  ;;  %282 = vst.msk [vmem:[#allocation2 + $0x7f8] sm:$0xff] %vm26_vm0, %v7255_v59 }
  0x96   :  { %6683 = vmatmul.mubr.msk.bf16.gmra.mrb[72].mxu0 %vm26_vm0, %v6943_v12  ;;  %6811 = vmatmul.mubr.msk.bf16.gmra.mrb[72].mxu1 %vm26_vm0, %v6944_v13  ;;  %v289_v12 = vld [vmem:[#allocation2 + $0x30] sm:$0xff] }
  0x97   :  { %6686 = vmatprep.mubr.msk.bf16.mxu0 %vm26_vm0, %v6945_v14  ;;  %6814 = vmatprep.mubr.msk.bf16.mxu1 %vm26_vm0, %v6946_v15  ;;  %v417_v13 = vld [vmem:[#allocation2 + $0x430] sm:$0xff]  ;;  %v287_v14 = vld [vmem:[#allocation2 + $0x20] sm:$0xff] }
  0x98   :  { %v415_v15 = vld [vmem:[#allocation2 + $0x420] sm:$0xff] }
  0x9e   :  { %6687 = vmatmul.mubr.msk.bf16.gmra.mrb[76].mxu0 %vm26_vm0, %v6947_v16  ;;  %6815 = vmatmul.mubr.msk.bf16.gmra.mrb[76].mxu1 %vm26_vm0, %v6948_v17 }
  0x9f   :  { %6690 = vmatprep.mubr.msk.bf16.mxu0 %vm26_vm0, %v6949_v18  ;;  %6818 = vmatprep.mubr.msk.bf16.mxu1 %vm26_vm0, %v6950_v19  ;;  %v290_v18 = vld [vmem:[#allocation2 + $0x38] sm:$0xff]  ;;  %v6983_v19 = vld [vmem:[%s10164_s0 + $0x1c8] sm:$0xff]  }
  0xa6   :  { %6691 = vmatmul.mubr.msk.bf16.gmra.mrb[80].mxu0 %vm26_vm0, %v6951_v20  ;;  %6819 = vmatmul.mubr.msk.bf16.gmra.mrb[80].mxu1 %vm26_vm0, %v6952_v21 }
  0xa7   :  { %6694 = vmatprep.mubr.msk.bf16.mxu0 %vm26_vm0, %v6953_v22  ;;  %6822 = vmatprep.mubr.msk.bf16.mxu1 %vm26_vm0, %v6954_v23 }
  0xae   :  { %6695 = vmatmul.mubr.msk.bf16.gmra.mrb[84].mxu0 %vm26_vm0, %v6955_v24  ;;  %6823 = vmatmul.mubr.msk.bf16.gmra.mrb[84].mxu1 %vm26_vm0, %v6956_v25  ;;  %v418_v24 = vld [vmem:[#allocation2 + $0x438] sm:$0xff]  ;;  %v6984_v25 = vld [vmem:[%s10164_s0 + $0x3c8] sm:$0xff]  }
  0xaf   :  { %6698 = vmatprep.mubr.msk.bf16.mxu0 %vm26_vm0, %v6957_v26  ;;  %6826 = vmatprep.mubr.msk.bf16.mxu1 %vm26_vm0, %v6958_v27  ;;  %v6985_v26 = vld [vmem:[%s10164_s0 + $0x1d0] sm:$0xff]  }
  0xb6   :  { %6699 = vmatmul.mubr.msk.bf16.gmra.mrb[88].mxu0 %vm26_vm0, %v6959_v28  ;;  %6827 = vmatmul.mubr.msk.bf16.gmra.mrb[88].mxu1 %vm26_vm0, %v6960_v29 }
  0xb7   :  { %6702 = vmatprep.mubr.msk.bf16.mxu0 %vm26_vm0, %v6961_v30  ;;  %6830 = vmatprep.mubr.msk.bf16.mxu1 %vm26_vm0, %v6962_v31 }
  0xbe   :  { %6703 = vmatmul.mubr.msk.bf16.gmra.mrb[92].mxu0 %vm26_vm0, %v6963_v32  ;;  %6831 = vmatmul.mubr.msk.bf16.gmra.mrb[92].mxu1 %vm26_vm0, %v6964_v33  ;;  %v6986_v33 = vld [vmem:[%s10164_s0 + $0x3d0] sm:$0xff]  }
  0xbf   :  { %6706 = vmatprep.mubr.msk.bf16.mxu0 %vm26_vm0, %v6965_v34  ;;  %6834 = vmatprep.mubr.msk.bf16.mxu1 %vm26_vm0, %v6966_v35 }
  0xc6   :  { %6707 = vmatmul.mubr.msk.bf16.gmra.mrb[96].mxu0 %vm26_vm0, %v6967_v36  ;;  %6835 = vmatmul.mubr.msk.bf16.gmra.mrb[96].mxu1 %vm26_vm0, %v6968_v37 }
  0xc7   :  { %6710 = vmatprep.mubr.msk.bf16.mxu0 %vm26_vm0, %v6969_v38  ;;  %6838 = vmatprep.mubr.msk.bf16.mxu1 %vm26_vm0, %v6970_v39 }
  0xce   :  { %6711 = vmatmul.mubr.msk.bf16.gmra.mrb[100].mxu0 %vm26_vm0, %v6971_v40  ;;  %6839 = vmatmul.mubr.msk.bf16.gmra.mrb[100].mxu1 %vm26_vm0, %v6972_v41 }
  0xcf   :  { %6714 = vmatprep.mubr.msk.bf16.mxu0 %vm26_vm0, %v6973_v42  ;;  %6842 = vmatprep.mubr.msk.bf16.mxu1 %vm26_vm0, %v6974_v43 }
  0xd6   :  { %6715 = vmatmul.mubr.msk.bf16.gmra.mrb[104].mxu0 %vm26_vm0, %v6975_v44  ;;  %6843 = vmatmul.mubr.msk.bf16.gmra.mrb[104].mxu1 %vm26_vm0, %v6976_v45 }
  0xd7   :  { %6718 = vmatprep.mubr.msk.bf16.mxu0 %vm26_vm0, %v6977_v46  ;;  %6846 = vmatprep.mubr.msk.bf16.mxu1 %vm26_vm0, %v6978_v47 }
  0xd9   :  { %v6612_v52 = vpop.f32.mrb[0].mxu0  ;;  %v6740_v53 = vpop.f32.mrb[0].mxu1 }
  0xda   :  { %v2887_v57 = vadd.f32 %v6612_v52, %v285_v48  ;;  %v3015_v58 = vadd.f32 %v6740_v53, %v413_v49  ;;  %v1862_v59 = vpop.f32.mrb[1].mxu0  ;;  %v2374_v60 = vpop.f32.mrb[1].mxu1  ;;  %v288_v52 = vld [vmem:[#allocation2 + $0x28] sm:$0xff] }
  0xdb   :  { %v2885_v0 = vadd.f32 %v1862_v59, %v283_v50  ;;  %v3013_v1 = vadd.f32 %v2374_v60, %v411_v51  ;;  %v6613_v2 = vpop.f32.mrb[2].mxu0  ;;  %v6741_v3 = vpop.f32.mrb[2].mxu1 }
  0xdc   :  { %3143 = vst.msk [vmem:[#allocation2 + $0x10] sm:$0xff] %vm26_vm0, %v2887_v57  ;;  %3271 = vst.msk [vmem:[#allocation2 + $0x410] sm:$0xff] %vm26_vm0, %v3015_v58  ;;  %v2888_v6 = vadd.f32 %v6613_v2, %v286_v54  ;;  %v3016_v7 = vadd.f32 %v6741_v3, %v414_v55  ;;  %v1865_v8 = vpop.f32.mrb[3].mxu0  ;;  %v2377_v9 = vpop.f32.mrb[3].mxu1  ;;  %v6987_v55 = vld [vmem:[%s10164_s0 + $0x1d8] sm:$0xff]  }
  0xdd   :  { %3141 = vst.msk [vmem:[#allocation2] sm:$0xff] %vm26_vm0, %v2885_v0  ;;  %3269 = vst.msk [vmem:[#allocation2 + $0x400] sm:$0xff] %vm26_vm0, %v3013_v1  ;;  %v2886_v10 = vadd.f32 %v1865_v8, %v284_v61  ;;  %v3014_v11 = vadd.f32 %v2377_v9, %v412_v62  ;;  %v6989_v62 = vld [vmem:[%s10164_s0 + $0x1e0] sm:$0xff]  }
  0xde   :  { %3144 = vst.msk [vmem:[#allocation2 + $0x18] sm:$0xff] %vm26_vm0, %v2888_v6  ;;  %3272 = vst.msk [vmem:[#allocation2 + $0x418] sm:$0xff] %vm26_vm0, %v3016_v7  ;;  %6719 = vmatmul.mubr.msk.bf16.gmra.mrb[108].mxu0 %vm26_vm0, %v6979_v56  ;;  %6847 = vmatmul.mubr.msk.bf16.gmra.mrb[108].mxu1 %vm26_vm0, %v6980_v63  ;;  %v6988_v56 = vld [vmem:[%s10164_s0 + $0x3d8] sm:$0xff]  }
  0xdf   :  { %3142 = vst.msk [vmem:[#allocation2 + $0x8] sm:$0xff] %vm26_vm0, %v2886_v10  ;;  %3270 = vst.msk [vmem:[#allocation2 + $0x408] sm:$0xff] %vm26_vm0, %v3014_v11  ;;  %6722 = vmatprep.mubr.msk.bf16.mxu0 %vm26_vm0, %v6981_v4  ;;  %6850 = vmatprep.mubr.msk.bf16.mxu1 %vm26_vm0, %v6982_v5  ;;  %v6990_v4 = vld [vmem:[%s10164_s0 + $0x3e0] sm:$0xff]  }
  0xe1   :  { %v6616_v16 = vpop.f32.mrb[4].mxu0  ;;  %v6744_v17 = vpop.f32.mrb[4].mxu1 }
  0xe2   :  { %v2891_v20 = vadd.f32 %v6616_v16, %v289_v12  ;;  %v3019_v21 = vadd.f32 %v6744_v17, %v417_v13  ;;  %v1878_v22 = vpop.f32.mrb[5].mxu0  ;;  %v2390_v23 = vpop.f32.mrb[5].mxu1 }
  0xe3   :  { %v3402_v27 = vld [vmem:[#allocation2 + $0x10] sm:$0xff]  ;;  %v2889_v29 = vadd.f32 %v1878_v22, %v287_v14  ;;  %v3017_v30 = vadd.f32 %v2390_v23, %v415_v15  ;;  %v6617_v31 = vpop.f32.mrb[6].mxu0  ;;  %v6745_v32 = vpop.f32.mrb[6].mxu1  ;;  %v416_v22 = vld [vmem:[#allocation2 + $0x428] sm:$0xff] }
  0xe4   :  { %v3530_v28 = vld [vmem:[#allocation2 + $0x410] sm:$0xff]  ;;  %vm3658_vm1 = vcmp.ge.f32.partialorder %v3402_v27, 0.0  ;;  %v3914_v34 = vmul.f32 0.2, %v3402_v27  ;;  %3147 = vst.msk [vmem:[#allocation2 + $0x30] sm:$0xff] %vm26_vm0, %v2891_v20  ;;  %3275 = vst.msk [vmem:[#allocation2 + $0x430] sm:$0xff] %vm26_vm0, %v3019_v21  ;;  %v2892_v39 = vadd.f32 %v6617_v31, %v290_v18  ;;  %v3020_v40 = vadd.f32 %v6745_v32, %v418_v24 }
  0xe5   :  { %vm3786_vm2 = vcmp.ge.f32.partialorder %v3530_v28, 0.0  ;;  %v4042_v35 = vmul.f32 0.2, %v3530_v28  ;;  %v3400_v36 = vld [vmem:[#allocation2] sm:$0xff]  ;;  %v3403_v38 = vld [vmem:[#allocation2 + $0x18] sm:$0xff]  ;;  %3145 = vst.msk [vmem:[#allocation2 + $0x20] sm:$0xff] %vm26_vm0, %v2889_v29 }
  0xe6   :  { %v3528_v37 = vld [vmem:[#allocation2 + $0x400] sm:$0xff]  ;;  %3273 = vst.msk [vmem:[#allocation2 + $0x420] sm:$0xff] %vm26_vm0, %v3017_v30  ;;  %v1881_v41 = vpop.f32.mrb[7].mxu0  ;;  %v8023_v42 = vpop.f32.mrb[7].mxu1  ;;  %v4170_v43 = vsel %vm3658_vm1, %v3402_v27, %v3914_v34  ;;  %vm3656_vm4 = vcmp.ge.f32.partialorder %v3400_v36, 0.0  ;;  %v3531_v46 = vld [vmem:[#allocation2 + $0x418] sm:$0xff]  ;;  %6723 = vmatmul.mubr.msk.bf16.gmra.mrb[112].mxu0 %vm26_vm0, %v6983_v19  ;;  %6851 = vmatmul.mubr.msk.bf16.gmra.mrb[112].mxu1 %vm26_vm0, %v6984_v25 }
  0xe7   :  { %v4298_v44 = vsel %vm3786_vm2, %v3530_v28, %v4042_v35  ;;  %v3912_v45 = vmul.f32 0.2, %v3400_v36  ;;  %v3401_v47 = vld [vmem:[#allocation2 + $0x8] sm:$0xff]  ;;  %v6225_v48 = vpack.c.bf16 %v4170_v43, %v4170_v43  ;;  %vm3784_vm5 = vcmp.ge.f32.partialorder %v3528_v37, 0.0  ;;  %3148 = vst.msk [vmem:[#allocation2 + $0x38] sm:$0xff] %vm26_vm0, %v2892_v39  ;;  %3276 = vst.msk [vmem:[#allocation2 + $0x438] sm:$0xff] %vm26_vm0, %v3020_v40  ;;  %6726 = vmatprep.mubr.msk.bf16.mxu0 %vm26_vm0, %v6985_v26 }
  0xe8   :  { %v6353_v49 = vpack.c.bf16 %v4298_v44, %v4298_v44  ;;  %v4040_v50 = vmul.f32 0.2, %v3528_v37  ;;  %v3529_v51 = vld [vmem:[#allocation2 + $0x408] sm:$0xff]  ;;  %6854 = vmatprep.mubr.msk.bf16.mxu1 %vm26_vm0, %v6986_v33  ;;  %vm3659_vm6 = vcmp.ge.f32.partialorder %v3403_v38, 0.0  ;;  %v3915_v54 = vmul.f32 0.2, %v3403_v38 }
  0xe9   :  { %v4168_v53 = vsel %vm3656_vm4, %v3400_v36, %v3912_v45  ;;  %vm3787_vm7 = vcmp.ge.f32.partialorder %v3531_v46, 0.0  ;;  %5451 = vst.msk [vmem:[%s10166_s3 + $0x8] sm:$0xf] %vm5448_vm3, %v6225_v48  ;;  %v4043_v59 = vmul.f32 0.2, %v3531_v46  ;;  %vm3657_vm8 = vcmp.ge.f32.partialorder %v3401_v47, 0.0 }
  0xea   :  { %5579 = vst.msk [vmem:[%s10166_s3 + $0x208] sm:$0xf] %vm5448_vm3, %v6353_v49  ;;  %v6223_v57 = vpack.c.bf16 %v4168_v53, %v4168_v53  ;;  %v4296_v58 = vsel %vm3784_vm5, %v3528_v37, %v4040_v50  ;;  %v8049_v60 = vpop.f32.mrb[8].mxu0  ;;  %v8051_v61 = vpop.f32.mrb[8].mxu1  ;;  %v4171_v0 = vsel %vm3659_vm6, %v3403_v38, %v3915_v54  ;;  %v3913_v1 = vmul.f32 0.2, %v3401_v47 }
  0xeb   :  { %v6351_v63 = vpack.c.bf16 %v4296_v58, %v4296_v58  ;;  %vm3785_vm9 = vcmp.ge.f32.partialorder %v3529_v51, 0.0  ;;  %v8056_v2 = vpop.f32.mrb[9].mxu0  ;;  %v8058_v3 = vpop.f32.mrb[9].mxu1  ;;  %v6226_v5 = vpack.c.bf16 %v4171_v0, %v4171_v0  ;;  %v4299_v6 = vsel %vm3787_vm7, %v3531_v46, %v4043_v59  ;;  %v3406_v8 = vld [vmem:[#allocation2 + $0x30] sm:$0xff]  ;;  %v291_v34 = vld [vmem:[#allocation2 + $0x40] sm:$0xff]  ;;  %v294_v36 = vld [vmem:[#allocation2 + $0x58] sm:$0xff] }
  0xec   :  { %5449 = vst.msk [vmem:[%s10166_s3] sm:$0xf] %vm5448_vm3, %v6223_v57  ;;  %v4041_v7 = vmul.f32 0.2, %v3529_v51  ;;  %v3534_v9 = vld [vmem:[#allocation2 + $0x430] sm:$0xff]  ;;  %v2890_v10 = vadd.f32 %v1881_v41, %v288_v52  ;;  %v8068_v11 = vpop.f32.mrb[10].mxu0  ;;  %v6354_v13 = vpack.c.bf16 %v4299_v6, %v4299_v6  ;;  %v4169_v14 = vsel %vm3657_vm8, %v3401_v47, %v3913_v1 }
  0xed   :  { %v8070_v12 = vpop.f32.mrb[10].mxu1  ;;  %5577 = vst.msk [vmem:[%s10166_s3 + $0x200] sm:$0xf] %vm5448_vm3, %v6351_v63  ;;  %vm3662_vm10 = vcmp.ge.f32.partialorder %v3406_v8, 0.0  ;;  %v3918_v15 = vmul.f32 0.2, %v3406_v8  ;;  %v6224_v19 = vpack.c.bf16 %v4169_v14, %v4169_v14  ;;  %v3018_v54 = vadd.f32 %v8023_v42, %v416_v22 }
  0xee   :  { %v3404_v16 = vld [vmem:[#allocation2 + $0x20] sm:$0xff]  ;;  %v8077_v18 = vpop.f32.mrb[11].mxu0  ;;  %5452 = vst.msk [vmem:[%s10166_s3 + $0xc] sm:$0xf] %vm5448_vm3, %v6226_v5  ;;  %v4297_v20 = vsel %vm3785_vm9, %v3529_v51, %v4041_v7  ;;  %vm3790_vm11 = vcmp.ge.f32.partialorder %v3534_v9, 0.0  ;;  %v293_v23 = vld [vmem:[#allocation2 + $0x50] sm:$0xff]  ;;  %6727 = vmatmul.mubr.msk.bf16.gmra.mrb[116].mxu0 %vm26_vm0, %v6987_v55  ;;  %6855 = vmatmul.mubr.msk.bf16.gmra.mrb[116].mxu1 %vm26_vm0, %v6988_v56 }
  0xef   :  { %v3532_v17 = vld [vmem:[#allocation2 + $0x420] sm:$0xff]  ;;  %v4046_v21 = vmul.f32 0.2, %v3534_v9  ;;  %3146 = vst.msk [vmem:[#allocation2 + $0x28] sm:$0xff] %vm26_vm0, %v2890_v10  ;;  %v8085_v24 = vpop.f32.mrb[11].mxu1  ;;  %v6352_v25 = vpack.c.bf16 %v4297_v20, %v4297_v20  ;;  %v4174_v26 = vsel %vm3662_vm10, %v3406_v8, %v3918_v15  ;;  %vm3660_vm12 = vcmp.ge.f32.partialorder %v3404_v16, 0.0  ;;  %6730 = vmatprep.mubr.msk.bf16.mxu0 %vm26_vm0, %v6989_v62  ;;  %6858 = vmatprep.mubr.msk.bf16.mxu1 %vm26_vm0, %v6990_v4 }
  0xf0   :  { %5580 = vst.msk [vmem:[%s10166_s3 + $0x20c] sm:$0xf] %vm5448_vm3, %v6354_v13  ;;  %v3916_v27 = vmul.f32 0.2, %v3404_v16  ;;  %v3407_v28 = vld [vmem:[#allocation2 + $0x38] sm:$0xff]  ;;  %v421_v30 = vld [vmem:[#allocation2 + $0x450] sm:$0xff]  ;;  %v6229_v31 = vpack.c.bf16 %v4174_v26, %v4174_v26  ;;  %v2895_v55 = vadd.f32 %v8049_v60, %v293_v23  ;;  %v2893_v60 = vadd.f32 %v8056_v2, %v291_v34 }
  0xf1   :  { %v3535_v29 = vld [vmem:[#allocation2 + $0x438] sm:$0xff]  ;;  %5450 = vst.msk [vmem:[%s10166_s3 + $0x4] sm:$0xf] %vm5448_vm3, %v6224_v19  ;;  %v4302_v32 = vsel %vm3790_vm11, %v3534_v9, %v4046_v21  ;;  %vm3788_vm13 = vcmp.ge.f32.partialorder %v3532_v17, 0.0  ;;  %v4044_v33 = vmul.f32 0.2, %v3532_v17  ;;  %v3023_v42 = vadd.f32 %v8051_v61, %v421_v30 }
  0xf2   :  { %v419_v35 = vld [vmem:[#allocation2 + $0x440] sm:$0xff]  ;;  %5578 = vst.msk [vmem:[%s10166_s3 + $0x204] sm:$0xf] %vm5448_vm3, %v6352_v25  ;;  %v6357_v37 = vpack.c.bf16 %v4302_v32, %v4302_v32  ;;  %v4172_v38 = vsel %vm3660_vm12, %v3404_v16, %v3916_v27  ;;  %vm3663_vm14 = vcmp.ge.f32.partialorder %v3407_v28, 0.0  ;;  %v3919_v39 = vmul.f32 0.2, %v3407_v28 }
  0xf3   :  { %v422_v40 = vld [vmem:[#allocation2 + $0x458] sm:$0xff]  ;;  %v292_v41 = vld [vmem:[#allocation2 + $0x48] sm:$0xff]  ;;  %5455 = vst.msk [vmem:[%s10166_s3 + $0x18] sm:$0xf] %vm5448_vm3, %v6229_v31  ;;  %v6227_v44 = vpack.c.bf16 %v4172_v38, %v4172_v38  ;;  %v4300_v45 = vsel %vm3788_vm13, %v3532_v17, %v4044_v33  ;;  %vm3791_vm15 = vcmp.ge.f32.partialorder %v3535_v29, 0.0  ;;  %v297_v47 = vld [vmem:[#allocation2 + $0x70] sm:$0xff]  ;;  %v3021_v61 = vadd.f32 %v8058_v3, %v419_v35 }
  0xf4   :  { %v420_v43 = vld [vmem:[#allocation2 + $0x448] sm:$0xff]  ;;  %v4047_v46 = vmul.f32 0.2, %v3535_v29  ;;  %v6624_v48 = vpop.f32.mrb[12].mxu0  ;;  %v425_v49 = vld [vmem:[#allocation2 + $0x470] sm:$0xff]  ;;  %v6752_v50 = vpop.f32.mrb[12].mxu1  ;;  %v6355_v52 = vpack.c.bf16 %v4300_v45, %v4300_v45  ;;  %v4175_v53 = vsel %vm3663_vm14, %v3407_v28, %v3919_v39  ;;  %v2896_v2 = vadd.f32 %v8068_v11, %v294_v36 }
  0xf5   :  { %v295_v51 = vld [vmem:[#allocation2 + $0x60] sm:$0xff]  ;;  %5583 = vst.msk [vmem:[%s10166_s3 + $0x218] sm:$0xf] %vm5448_vm3, %v6357_v37  ;;  %v1910_v56 = vpop.f32.mrb[13].mxu0  ;;  %v2422_v58 = vpop.f32.mrb[13].mxu1  ;;  %v298_v59 = vld [vmem:[#allocation2 + $0x78] sm:$0xff]  ;;  %v6230_v63 = vpack.c.bf16 %v4175_v53, %v4175_v53  ;;  %v3024_v10 = vadd.f32 %v8070_v12, %v422_v40  ;;  %v2894_v11 = vadd.f32 %v8077_v18, %v292_v41  ;;  %v3022_v12 = vadd.f32 %v8085_v24, %v420_v43 }
  0xf6   :  { %v423_v57 = vld [vmem:[#allocation2 + $0x460] sm:$0xff]  ;;  %v6991_v62 = vld [vmem:[%s10164_s0 + $0x1e8] sm:$0xff]   ;;  %5453 = vst.msk [vmem:[%s10166_s3 + $0x10] sm:$0xf] %vm5448_vm3, %v6227_v44  ;;  %v4303_v0 = vsel %vm3791_vm15, %v3535_v29, %v4047_v46  ;;  %v6625_v1 = vpop.f32.mrb[14].mxu0  ;;  %v426_v4 = vld [vmem:[#allocation2 + $0x478] sm:$0xff]  ;;  %v2899_v19 = vadd.f32 %v6624_v48, %v297_v47  ;;  %v3027_v20 = vadd.f32 %v6752_v50, %v425_v49  ;;  %v2897_v21 = vadd.f32 %v1910_v56, %v295_v51 }
  0xf7   :  { %v6753_v5 = vpop.f32.mrb[14].mxu1  ;;  %v296_v6 = vld [vmem:[#allocation2 + $0x68] sm:$0xff]  ;;  %5581 = vst.msk [vmem:[%s10166_s3 + $0x210] sm:$0xf] %vm5448_vm3, %v6355_v52  ;;  %v6358_v8 = vpack.c.bf16 %v4303_v0, %v4303_v0  ;;  %v1913_v13 = vpop.f32.mrb[15].mxu0  ;;  %v6993_v15 = vld [vmem:[%s10164_s0 + $0x1f0] sm:$0xff]   ;;  %v3025_v22 = vadd.f32 %v2422_v58, %v423_v57  ;;  %6731 = vmatmul.mubr.msk.bf16.gmra.mrb[120].mxu0 %vm26_vm0, %v6991_v62  ;;  %v2900_v23 = vadd.f32 %v6625_v1, %v298_v59 }
  0xf8   :  { %v6992_v7 = vld [vmem:[%s10164_s0 + $0x3e8] sm:$0xff]   ;;  %3274 = vst.msk [vmem:[#allocation2 + $0x428] sm:$0xff] %vm26_vm0, %v3018_v54  ;;  %3151 = vst.msk [vmem:[#allocation2 + $0x50] sm:$0xff] %vm26_vm0, %v2895_v55  ;;  %v2425_v14 = vpop.f32.mrb[15].mxu1  ;;  %v6994_v16 = vld [vmem:[%s10164_s0 + $0x3f0] sm:$0xff]   ;;  %v3028_v24 = vadd.f32 %v6753_v5, %v426_v4  ;;  %v2898_v25 = vadd.f32 %v1913_v13, %v296_v6  ;;  %6734 = vmatprep.mubr.msk.bf16.mxu0 %vm26_vm0, %v6993_v15 }
  0xf9   :  { %v3405_v9 = vld [vmem:[#allocation2 + $0x28] sm:$0xff]  ;;  %5456 = vst.msk [vmem:[%s10166_s3 + $0x1c] sm:$0xf] %vm5448_vm3, %v6230_v63  ;;  %5584 = vst.msk [vmem:[%s10166_s3 + $0x21c] sm:$0xf] %vm5448_vm3, %v6358_v8  ;;  %6859 = vmatmul.mubr.msk.bf16.gmra.mrb[120].mxu1 %vm26_vm0, %v6992_v7  ;;  %v301_v26 = vld [vmem:[#allocation2 + $0x90] sm:$0xff] }
  0xfa   :  { %vm3661_vm1 = vcmp.ge.f32.partialorder %v3405_v9, 0.0  ;;  %v3917_v3 = vmul.f32 0.2, %v3405_v9  ;;  %3279 = vst.msk [vmem:[#allocation2 + $0x450] sm:$0xff] %vm26_vm0, %v3023_v42  ;;  %3149 = vst.msk [vmem:[#allocation2 + $0x40] sm:$0xff] %vm26_vm0, %v2893_v60  ;;  %v424_v17 = vld [vmem:[#allocation2 + $0x468] sm:$0xff]  ;;  %6862 = vmatprep.mubr.msk.bf16.mxu1 %vm26_vm0, %v6994_v16 }
  0xfb   :  { %3277 = vst.msk [vmem:[#allocation2 + $0x440] sm:$0xff] %vm26_vm0, %v3021_v61  ;;  %3152 = vst.msk [vmem:[#allocation2 + $0x58] sm:$0xff] %vm26_vm0, %v2896_v2  ;;  %v429_v27 = vld [vmem:[#allocation2 + $0x490] sm:$0xff]  ;;  %v3026_v29 = vadd.f32 %v2425_v14, %v424_v17  ;;  %v299_v30 = vld [vmem:[#allocation2 + $0x80] sm:$0xff]  ;;  %v6628_v32 = vpop.f32.mrb[16].mxu0  ;;  %v6756_v33 = vpop.f32.mrb[16].mxu1 }
  0xfc   :  { %3280 = vst.msk [vmem:[#allocation2 + $0x458] sm:$0xff] %vm26_vm0, %v3024_v10  ;;  %v4173_v18 = vsel %vm3661_vm1, %v3405_v9, %v3917_v3  ;;  %3150 = vst.msk [vmem:[#allocation2 + $0x48] sm:$0xff] %vm26_vm0, %v2894_v11  ;;  %v427_v31 = vld [vmem:[#allocation2 + $0x480] sm:$0xff]  ;;  %v2903_v34 = vadd.f32 %v6628_v32, %v301_v26  ;;  %v3031_v35 = vadd.f32 %v6756_v33, %v429_v27  ;;  %v1926_v36 = vpop.f32.mrb[17].mxu0  ;;  %v2438_v37 = vpop.f32.mrb[17].mxu1  ;;  %v302_v38 = vld [vmem:[#allocation2 + $0x98] sm:$0xff] }
  0xfd   :  { %3278 = vst.msk [vmem:[#allocation2 + $0x448] sm:$0xff] %vm26_vm0, %v3022_v12  ;;  %v6228_v28 = vpack.c.bf16 %v4173_v18, %v4173_v18  ;;  %3155 = vst.msk [vmem:[#allocation2 + $0x70] sm:$0xff] %vm26_vm0, %v2899_v19  ;;  %v430_v39 = vld [vmem:[#allocation2 + $0x498] sm:$0xff]  ;;  %v2901_v44 = vadd.f32 %v1926_v36, %v299_v30  ;;  %v3029_v45 = vadd.f32 %v2438_v37, %v427_v31  ;;  %v6629_v46 = vpop.f32.mrb[18].mxu0  ;;  %v6757_v47 = vpop.f32.mrb[18].mxu1 }
  0xfe   :  { %3283 = vst.msk [vmem:[#allocation2 + $0x470] sm:$0xff] %vm26_vm0, %v3027_v20  ;;  %3153 = vst.msk [vmem:[#allocation2 + $0x60] sm:$0xff] %vm26_vm0, %v2897_v21  ;;  %v6995_v40 = vld [vmem:[%s10164_s0 + $0x1f8] sm:$0xff]   ;;  %v2904_v54 = vadd.f32 %v6629_v46, %v302_v38  ;;  %v3032_v55 = vadd.f32 %v6757_v47, %v430_v39  ;;  %v8190_v56 = vpop.f32.mrb[19].mxu0  ;;  %v8192_v57 = vpop.f32.mrb[19].mxu1 }
  0xff   :  { %3281 = vst.msk [vmem:[#allocation2 + $0x460] sm:$0xff] %vm26_vm0, %v3025_v22  ;;  %3156 = vst.msk [vmem:[#allocation2 + $0x78] sm:$0xff] %vm26_vm0, %v2900_v23  ;;  %v3533_v41 = vld [vmem:[#allocation2 + $0x428] sm:$0xff]  ;;  %v3410_v43 = vld [vmem:[#allocation2 + $0x50] sm:$0xff]  ;;  %6735 = vmatmul.mubr.msk.bf16.gmra.mrb[124].mxu0 %vm26_vm0, %v6995_v40 }
 0x100   :  { %3284 = vst.msk [vmem:[#allocation2 + $0x478] sm:$0xff] %vm26_vm0, %v3028_v24  ;;  %3154 = vst.msk [vmem:[#allocation2 + $0x68] sm:$0xff] %vm26_vm0, %v2898_v25  ;;  %v6996_v48 = vld [vmem:[%s10164_s0 + $0x3f8] sm:$0xff]   ;;  %vm3789_vm2 = vcmp.ge.f32.partialorder %v3533_v41, 0.0  ;;  %v4045_v49 = vmul.f32 0.2, %v3533_v41 }
 0x101   :  { %5454 = vst.msk [vmem:[%s10166_s3 + $0x14] sm:$0xf] %vm5448_vm3, %v6228_v28  ;;  %vm3666_vm4 = vcmp.ge.f32.partialorder %v3410_v43, 0.0  ;;  %v3922_v50 = vmul.f32 0.2, %v3410_v43  ;;  %v3538_v51 = vld [vmem:[#allocation2 + $0x450] sm:$0xff]  ;;  %6863 = vmatmul.mubr.msk.bf16.gmra.mrb[124].mxu1 %vm26_vm0, %v6996_v48 }
 0x102   :  { %3282 = vst.msk [vmem:[#allocation2 + $0x468] sm:$0xff] %vm26_vm0, %v3026_v29  ;;  %3159 = vst.msk [vmem:[#allocation2 + $0x90] sm:$0xff] %vm26_vm0, %v2903_v34  ;;  %v3408_v52 = vld [vmem:[#allocation2 + $0x40] sm:$0xff]  ;;  %v4301_v58 = vsel %vm3789_vm2, %v3533_v41, %v4045_v49  ;;  %vm3794_vm5 = vcmp.ge.f32.partialorder %v3538_v51, 0.0  ;;  %v4050_v62 = vmul.f32 0.2, %v3538_v51 }
 0x103   :  { %3287 = vst.msk [vmem:[#allocation2 + $0x490] sm:$0xff] %vm26_vm0, %v3031_v35  ;;  %v3536_v53 = vld [vmem:[#allocation2 + $0x440] sm:$0xff]  ;;  %3157 = vst.msk [vmem:[#allocation2 + $0x80] sm:$0xff] %vm26_vm0, %v2901_v44  ;;  %v4178_v59 = vsel %vm3666_vm4, %v3410_v43, %v3922_v50  ;;  %v3411_v63 = vld [vmem:[#allocation2 + $0x58] sm:$0xff]  ;;  %v6356_v42 = vpack.c.bf16 %v4301_v58, %v4301_v58  ;;  %vm3664_vm6 = vcmp.ge.f32.partialorder %v3408_v52, 0.0  ;;  %v8206_v16 = vpop.f32.mrb[20].mxu0 }
 0x104   :  { %3285 = vst.msk [vmem:[#allocation2 + $0x480] sm:$0xff] %vm26_vm0, %v3029_v45  ;;  %v3539_v0 = vld [vmem:[#allocation2 + $0x458] sm:$0xff]  ;;  %v6233_v60 = vpack.c.bf16 %v4178_v59, %v4178_v59  ;;  %v3920_v1 = vmul.f32 0.2, %v3408_v52  ;;  %v3409_v4 = vld [vmem:[#allocation2 + $0x48] sm:$0xff]  ;;  %3160 = vst.msk [vmem:[#allocation2 + $0x98] sm:$0xff] %vm26_vm0, %v2904_v54  ;;  %v4306_v5 = vsel %vm3794_vm5, %v3538_v51, %v4050_v62 }
 0x105   :  { %3288 = vst.msk [vmem:[#allocation2 + $0x498] sm:$0xff] %vm26_vm0, %v3032_v55  ;;  %vm3792_vm7 = vcmp.ge.f32.partialorder %v3536_v53, 0.0  ;;  %v4048_v6 = vmul.f32 0.2, %v3536_v53  ;;  %vm3667_vm8 = vcmp.ge.f32.partialorder %v3411_v63, 0.0  ;;  %v3537_v7 = vld [vmem:[#allocation2 + $0x448] sm:$0xff]  ;;  %v6361_v8 = vpack.c.bf16 %v4306_v5, %v4306_v5 }
 0x106   :  { %5582 = vst.msk [vmem:[%s10166_s3 + $0x214] sm:$0xf] %vm5448_vm3, %v6356_v42  ;;  %5459 = vst.msk [vmem:[%s10166_s3 + $0x28] sm:$0xf] %vm5448_vm3, %v6233_v60  ;;  %v4176_v9 = vsel %vm3664_vm6, %v3408_v52, %v3920_v1  ;;  %v3923_v61 = vmul.f32 0.2, %v3411_v63 }
 0x107   :  { %vm3795_vm9 = vcmp.ge.f32.partialorder %v3539_v0, 0.0  ;;  %v3414_v2 = vld [vmem:[#allocation2 + $0x70] sm:$0xff]  ;;  %v6231_v10 = vpack.c.bf16 %v4176_v9, %v4176_v9  ;;  %v4304_v13 = vsel %vm3792_vm7, %v3536_v53, %v4048_v6  ;;  %v4051_v14 = vmul.f32 0.2, %v3539_v0  ;;  %v8208_v3 = vpop.f32.mrb[20].mxu1  ;;  %v3412_v19 = vld [vmem:[#allocation2 + $0x60] sm:$0xff] }
 0x108   :  { %vm3665_vm10 = vcmp.ge.f32.partialorder %v3409_v4, 0.0  ;;  %v3542_v15 = vld [vmem:[#allocation2 + $0x470] sm:$0xff]  ;;  %5587 = vst.msk [vmem:[%s10166_s3 + $0x228] sm:$0xf] %vm5448_vm3, %v6361_v8  ;;  %v6359_v11 = vpack.c.bf16 %v4304_v13, %v4304_v13  ;;  %v4179_v12 = vsel %vm3667_vm8, %v3411_v63, %v3923_v61  ;;  %v3921_v17 = vmul.f32 0.2, %v3409_v4 }
 0x109   :  { %vm3793_vm11 = vcmp.ge.f32.partialorder %v3537_v7, 0.0  ;;  %v8215_v20 = vpop.f32.mrb[21].mxu0  ;;  %5457 = vst.msk [vmem:[%s10166_s3 + $0x20] sm:$0xf] %vm5448_vm3, %v6231_v10  ;;  %v6234_v21 = vpack.c.bf16 %v4179_v12, %v4179_v12  ;;  %v4307_v22 = vsel %vm3795_vm9, %v3539_v0, %v4051_v14  ;;  %v4049_v18 = vmul.f32 0.2, %v3537_v7 }
 0x10a   :  { %vm3670_vm12 = vcmp.ge.f32.partialorder %v3414_v2, 0.0  ;;  %v3540_v23 = vld [vmem:[#allocation2 + $0x460] sm:$0xff]  ;;  %v8222_v24 = vpop.f32.mrb[21].mxu1  ;;  %5585 = vst.msk [vmem:[%s10166_s3 + $0x220] sm:$0xf] %vm5448_vm3, %v6359_v11  ;;  %v6362_v25 = vpack.c.bf16 %v4307_v22, %v4307_v22  ;;  %v4177_v26 = vsel %vm3665_vm10, %v3409_v4, %v3921_v17  ;;  %vm3798_vm13 = vcmp.ge.f32.partialorder %v3542_v15, 0.0 }
 0x10b   :  { %v3926_v27 = vmul.f32 0.2, %v3414_v2  ;;  %v3415_v28 = vld [vmem:[#allocation2 + $0x78] sm:$0xff]  ;;  %v8229_v29 = vpop.f32.mrb[22].mxu0  ;;  %v8231_v30 = vpop.f32.mrb[22].mxu1  ;;  %v6232_v31 = vpack.c.bf16 %v4177_v26, %v4177_v26  ;;  %v4305_v32 = vsel %vm3793_vm11, %v3537_v7, %v4049_v18  ;;  %vm3668_vm14 = vcmp.ge.f32.partialorder %v3412_v19, 0.0 }
 0x10c   :  { %5460 = vst.msk [vmem:[%s10166_s3 + $0x2c] sm:$0xf] %vm5448_vm3, %v6234_v21  ;;  %v4054_v33 = vmul.f32 0.2, %v3542_v15  ;;  %v3543_v34 = vld [vmem:[#allocation2 + $0x478] sm:$0xff]  ;;  %v8238_v35 = vpop.f32.mrb[23].mxu0  ;;  %v6360_v36 = vpack.c.bf16 %v4305_v32, %v4305_v32 }
 0x10d   :  { %5588 = vst.msk [vmem:[%s10166_s3 + $0x22c] sm:$0xf] %vm5448_vm3, %v6362_v25  ;;  %v4182_v37 = vsel %vm3670_vm12, %v3414_v2, %v3926_v27  ;;  %v3924_v38 = vmul.f32 0.2, %v3412_v19  ;;  %vm3796_vm15 = vcmp.ge.f32.partialorder %v3540_v23, 0.0  ;;  %v3413_v39 = vld [vmem:[#allocation2 + $0x68] sm:$0xff] }
 0x10e   :  { %v8245_v40 = vpop.f32.mrb[23].mxu1  ;;  %5458 = vst.msk [vmem:[%s10166_s3 + $0x24] sm:$0xf] %vm5448_vm3, %v6232_v31  ;;  %v6237_v41 = vpack.c.bf16 %v4182_v37, %v4182_v37  ;;  %v4310_v43 = vsel %vm3798_vm13, %v3542_v15, %v4054_v33  ;;  %v4052_v44 = vmul.f32 0.2, %v3540_v23  ;;  %vm3671_vm1 = vcmp.ge.f32.partialorder %v3415_v28, 0.0 }
 0x10f   :  { %v3541_v45 = vld [vmem:[#allocation2 + $0x468] sm:$0xff]  ;;  %5586 = vst.msk [vmem:[%s10166_s3 + $0x224] sm:$0xf] %vm5448_vm3, %v6360_v36  ;;  %v6365_v46 = vpack.c.bf16 %v4310_v43, %v4310_v43  ;;  %v4180_v47 = vsel %vm3668_vm14, %v3412_v19, %v3924_v38  ;;  %v3927_v48 = vmul.f32 0.2, %v3415_v28  ;;  %vm3799_vm2 = vcmp.ge.f32.partialorder %v3543_v34, 0.0 }
 0x110   :  { %v3418_v49 = vld [vmem:[#allocation2 + $0x90] sm:$0xff]  ;;  %v8257_v50 = vpop.f32.mrb[24].mxu0  ;;  %v8259_v51 = vpop.f32.mrb[24].mxu1  ;;  %5463 = vst.msk [vmem:[%s10166_s3 + $0x38] sm:$0xf] %vm5448_vm3, %v6237_v41  ;;  %v6235_v52 = vpack.c.bf16 %v4180_v47, %v4180_v47  ;;  %v4308_v53 = vsel %vm3796_vm15, %v3540_v23, %v4052_v44  ;;  %vm3669_vm4 = vcmp.ge.f32.partialorder %v3413_v39, 0.0 }
 0x111   :  { %v4055_v54 = vmul.f32 0.2, %v3543_v34  ;;  %v3546_v55 = vld [vmem:[#allocation2 + $0x490] sm:$0xff]  ;;  %v8266_v58 = vpop.f32.mrb[25].mxu0  ;;  %v8268_v59 = vpop.f32.mrb[25].mxu1  ;;  %v6363_v62 = vpack.c.bf16 %v4308_v53, %v4308_v53  ;;  %v4183_v63 = vsel %vm3671_vm1, %v3415_v28, %v3927_v48  ;;  %vm3797_vm5 = vcmp.ge.f32.partialorder %v3541_v45, 0.0 }
 0x112   :  { %5591 = vst.msk [vmem:[%s10166_s3 + $0x238] sm:$0xf] %vm5448_vm3, %v6365_v46  ;;  %v3925_v0 = vmul.f32 0.2, %v3413_v39  ;;  %v3416_v42 = vld [vmem:[#allocation2 + $0x80] sm:$0xff]  ;;  %v8275_v60 = vpop.f32.mrb[26].mxu0  ;;  %v6238_v4 = vpack.c.bf16 %v4183_v63, %v4183_v63 }
 0x113   :  { %v8277_v1 = vpop.f32.mrb[26].mxu1  ;;  %5461 = vst.msk [vmem:[%s10166_s3 + $0x30] sm:$0xf] %vm5448_vm3, %v6235_v52  ;;  %v4311_v5 = vsel %vm3799_vm2, %v3543_v34, %v4055_v54  ;;  %v4053_v6 = vmul.f32 0.2, %v3541_v45  ;;  %vm3674_vm6 = vcmp.ge.f32.partialorder %v3418_v49, 0.0 }
 0x114   :  { %v3544_v7 = vld [vmem:[#allocation2 + $0x480] sm:$0xff]  ;;  %v8284_v8 = vpop.f32.mrb[27].mxu0  ;;  %v8286_v9 = vpop.f32.mrb[27].mxu1  ;;  %5589 = vst.msk [vmem:[%s10166_s3 + $0x230] sm:$0xf] %vm5448_vm3, %v6363_v62  ;;  %v6366_v61 = vpack.c.bf16 %v4311_v5, %v4311_v5  ;;  %v4181_v2 = vsel %vm3669_vm4, %v3413_v39, %v3925_v0  ;;  %vm3802_vm7 = vcmp.ge.f32.partialorder %v3546_v55, 0.0 }
 0x115   :  { %v3930_v10 = vmul.f32 0.2, %v3418_v49  ;;  %v3419_v13 = vld [vmem:[#allocation2 + $0x98] sm:$0xff]  ;;  %5464 = vst.msk [vmem:[%s10166_s3 + $0x3c] sm:$0xf] %vm5448_vm3, %v6238_v4  ;;  %v6236_v14 = vpack.c.bf16 %v4181_v2, %v4181_v2  ;;  %v4309_v15 = vsel %vm3797_vm5, %v3541_v45, %v4053_v6  ;;  %vm3672_vm8 = vcmp.ge.f32.partialorder %v3416_v42, 0.0 }
 0x116   :  { %v4058_v11 = vmul.f32 0.2, %v3546_v55  ;;  %v3547_v12 = vld [vmem:[#allocation2 + $0x498] sm:$0xff]  ;;  %v300_v17 = vld [vmem:[#allocation2 + $0x88] sm:$0xff]  ;;  %5592 = vst.msk [vmem:[%s10166_s3 + $0x23c] sm:$0xf] %vm5448_vm3, %v6366_v61  ;;  %v6364_v21 = vpack.c.bf16 %v4309_v15, %v4309_v15 }
 0x117   :  { %v428_v19 = vld [vmem:[#allocation2 + $0x488] sm:$0xff]  ;;  %v4186_v22 = vsel %vm3674_vm6, %v3418_v49, %v3930_v10  ;;  %v3928_v18 = vmul.f32 0.2, %v3416_v42  ;;  %vm3800_vm9 = vcmp.ge.f32.partialorder %v3544_v7, 0.0  ;;  %v305_v23 = vld [vmem:[#allocation2 + $0xb0] sm:$0xff]  ;;  %v303_v26 = vld [vmem:[#allocation2 + $0xa0] sm:$0xff]  ;;  %v2902_v49 = vadd.f32 %v8190_v56, %v300_v17 }
 0x118   :  { %v433_v25 = vld [vmem:[#allocation2 + $0x4b0] sm:$0xff]  ;;  %5462 = vst.msk [vmem:[%s10166_s3 + $0x34] sm:$0xf] %vm5448_vm3, %v6236_v14  ;;  %v6241_v27 = vpack.c.bf16 %v4186_v22, %v4186_v22  ;;  %v4314_v28 = vsel %vm3802_vm7, %v3546_v55, %v4058_v11  ;;  %v4056_v31 = vmul.f32 0.2, %v3544_v7  ;;  %vm3675_vm10 = vcmp.ge.f32.partialorder %v3419_v13, 0.0 }
 0x119   :  { %v431_v32 = vld [vmem:[#allocation2 + $0x4a0] sm:$0xff]  ;;  %v306_v33 = vld [vmem:[#allocation2 + $0xb8] sm:$0xff]  ;;  %5590 = vst.msk [vmem:[%s10166_s3 + $0x234] sm:$0xf] %vm5448_vm3, %v6364_v21  ;;  %v6369_v36 = vpack.c.bf16 %v4314_v28, %v4314_v28  ;;  %v4184_v37 = vsel %vm3672_vm8, %v3416_v42, %v3928_v18  ;;  %v3931_v38 = vmul.f32 0.2, %v3419_v13  ;;  %v3030_v0 = vadd.f32 %v8192_v57, %v428_v19 }
 0x11a   :  { %v434_v34 = vld [vmem:[#allocation2 + $0x4b8] sm:$0xff]  ;;  %vm3803_vm11 = vcmp.ge.f32.partialorder %v3547_v12, 0.0  ;;  %v304_v39 = vld [vmem:[#allocation2 + $0xa8] sm:$0xff]  ;;  %v309_v43 = vld [vmem:[#allocation2 + $0xd0] sm:$0xff]  ;;  %v8313_v44 = vpop.f32.mrb[28].mxu0  ;;  %v8315_v45 = vpop.f32.mrb[28].mxu1  ;;  %v6239_v46 = vpack.c.bf16 %v4184_v37, %v4184_v37  ;;  %v4312_v47 = vsel %vm3800_vm9, %v3544_v7, %v4056_v31  ;;  %v2907_v42 = vadd.f32 %v8206_v16, %v305_v23 }
 0x11b   :  { %v432_v41 = vld [vmem:[#allocation2 + $0x4a8] sm:$0xff]  ;;  %5467 = vst.msk [vmem:[%s10166_s3 + $0x48] sm:$0xf] %vm5448_vm3, %v6241_v27  ;;  %v4059_v48 = vmul.f32 0.2, %v3547_v12  ;;  %v437_v52 = vld [vmem:[#allocation2 + $0x4d0] sm:$0xff]  ;;  %v6367_v62 = vpack.c.bf16 %v4312_v47, %v4312_v47  ;;  %v4187_v63 = vsel %vm3675_vm10, %v3419_v13, %v3931_v38  ;;  %v3035_v10 = vadd.f32 %v8208_v3, %v433_v25 }
 0x11c   :  { %v307_v53 = vld [vmem:[#allocation2 + $0xc0] sm:$0xff]  ;;  %v8323_v54 = vpop.f32.mrb[29].mxu0  ;;  %v8325_v55 = vpop.f32.mrb[29].mxu1  ;;  %5595 = vst.msk [vmem:[%s10166_s3 + $0x248] sm:$0xf] %vm5448_vm3, %v6369_v36  ;;  %v310_v56 = vld [vmem:[#allocation2 + $0xd8] sm:$0xff]  ;;  %v6242_v61 = vpack.c.bf16 %v4187_v63, %v4187_v63  ;;  %v2905_v57 = vadd.f32 %v8215_v20, %v303_v26  ;;  %v2908_v3 = vadd.f32 %v8229_v29, %v306_v33  ;;  %v3036_v20 = vadd.f32 %v8231_v30, %v434_v34 }
 0x11d   :  { %v435_v4 = vld [vmem:[#allocation2 + $0x4c0] sm:$0xff]  ;;  %v438_v5 = vld [vmem:[#allocation2 + $0x4d8] sm:$0xff]  ;;  %v6641_v6 = vpop.f32.mrb[30].mxu0  ;;  %v6769_v7 = vpop.f32.mrb[30].mxu1  ;;  %5465 = vst.msk [vmem:[%s10166_s3 + $0x40] sm:$0xf] %vm5448_vm3, %v6239_v46  ;;  %v4315_v2 = vsel %vm3803_vm11, %v3547_v12, %v4059_v48  ;;  %v3033_v12 = vadd.f32 %v8222_v24, %v431_v32  ;;  %v2906_v18 = vadd.f32 %v8238_v35, %v304_v39  ;;  %v3034_v24 = vadd.f32 %v8245_v40, %v432_v41 }
 0x11e   :  { %3158 = vst.msk [vmem:[#allocation2 + $0x88] sm:$0xff] %vm26_vm0, %v2902_v49  ;;  %v308_v16 = vld [vmem:[#allocation2 + $0xc8] sm:$0xff]  ;;  %v313_v14 = vld [vmem:[#allocation2 + $0xf0] sm:$0xff]  ;;  %v1977_v15 = vpop.f32.mrb[31].mxu0  ;;  %v2489_v11 = vpop.f32.mrb[31].mxu1  ;;  %v6370_v17 = vpack.c.bf16 %v4315_v2, %v4315_v2  ;;  %3286 = vst.msk [vmem:[#allocation2 + $0x488] sm:$0xff] %vm26_vm0, %v3030_v0  ;;  %v2911_v29 = vadd.f32 %v8257_v50, %v309_v43  ;;  %v3039_v30 = vadd.f32 %v8259_v51, %v437_v52 }
 0x11f   :  { %v436_v13 = vld [vmem:[#allocation2 + $0x4c8] sm:$0xff]  ;;  %5593 = vst.msk [vmem:[%s10166_s3 + $0x240] sm:$0xf] %vm5448_vm3, %v6367_v62  ;;  %v441_v19 = vld [vmem:[#allocation2 + $0x4f0] sm:$0xff]  ;;  %v311_v21 = vld [vmem:[#allocation2 + $0xe0] sm:$0xff]  ;;  %v2909_v35 = vadd.f32 %v8266_v58, %v307_v53  ;;  %v3037_v40 = vadd.f32 %v8268_v59, %v435_v4  ;;  %v2912_v50 = vadd.f32 %v8275_v60, %v310_v56  ;;  %v3040_v51 = vadd.f32 %v8277_v1, %v438_v5  ;;  %v6644_v37 = vpop.f32.mrb[32].mxu0 }
 0x120   :  { %3163 = vst.msk [vmem:[#allocation2 + $0xb0] sm:$0xff] %vm26_vm0, %v2907_v42  ;;  %v439_v22 = vld [vmem:[#allocation2 + $0x4e0] sm:$0xff]  ;;  %3291 = vst.msk [vmem:[#allocation2 + $0x4b0] sm:$0xff] %vm26_vm0, %v3035_v10  ;;  %v314_v23 = vld [vmem:[#allocation2 + $0xf8] sm:$0xff]  ;;  %v2910_v32 = vadd.f32 %v8284_v8, %v308_v16  ;;  %v3038_v58 = vadd.f32 %v8286_v9, %v436_v13  ;;  %v2915_v59 = vadd.f32 %v8313_v44, %v313_v14  ;;  %v6772_v38 = vpop.f32.mrb[32].mxu1  ;;  %v1990_v47 = vpop.f32.mrb[33].mxu0 }
 0x121   :  { %5468 = vst.msk [vmem:[%s10166_s3 + $0x4c] sm:$0xf] %vm5448_vm3, %v6242_v61  ;;  %v442_v25 = vld [vmem:[#allocation2 + $0x4f8] sm:$0xff]  ;;  %v312_v26 = vld [vmem:[#allocation2 + $0xe8] sm:$0xff]  ;;  %5596 = vst.msk [vmem:[%s10166_s3 + $0x24c] sm:$0xf] %vm5448_vm3, %v6370_v17  ;;  %v3043_v60 = vadd.f32 %v8315_v45, %v441_v19  ;;  %v2913_v34 = vadd.f32 %v8323_v54, %v311_v21  ;;  %v3041_v8 = vadd.f32 %v8325_v55, %v439_v22 }
 0x122   :  { %3161 = vst.msk [vmem:[#allocation2 + $0xa0] sm:$0xff] %vm26_vm0, %v2905_v57  ;;  %3289 = vst.msk [vmem:[#allocation2 + $0x4a0] sm:$0xff] %vm26_vm0, %v3033_v12  ;;  %v440_v27 = vld [vmem:[#allocation2 + $0x4e8] sm:$0xff]  ;;  %v317_v28 = vld [vmem:[#allocation2 + $0x110] sm:$0xff]  ;;  %v2916_v36 = vadd.f32 %v6641_v6, %v314_v23  ;;  %v3044_v9 = vadd.f32 %v6769_v7, %v442_v25  ;;  %v2914_v43 = vadd.f32 %v1977_v15, %v312_v26  ;;  %v2502_v48 = vpop.f32.mrb[33].mxu1  ;;  %v6645_v54 = vpop.f32.mrb[34].mxu0 }
 0x123   :  { %3164 = vst.msk [vmem:[#allocation2 + $0xb8] sm:$0xff] %vm26_vm0, %v2908_v3  ;;  %3292 = vst.msk [vmem:[#allocation2 + $0x4b8] sm:$0xff] %vm26_vm0, %v3036_v20  ;;  %v445_v31 = vld [vmem:[#allocation2 + $0x510] sm:$0xff]  ;;  %v315_v1 = vld [vmem:[#allocation2 + $0x100] sm:$0xff]  ;;  %v3042_v44 = vadd.f32 %v2489_v11, %v440_v27  ;;  %v2919_v45 = vadd.f32 %v6644_v37, %v317_v28  ;;  %v6773_v55 = vpop.f32.mrb[34].mxu1  ;;  %v1993_v5 = vpop.f32.mrb[35].mxu0 }
 0x124   :  { %3162 = vst.msk [vmem:[#allocation2 + $0xa8] sm:$0xff] %vm26_vm0, %v2906_v18  ;;  %3290 = vst.msk [vmem:[#allocation2 + $0x4a8] sm:$0xff] %vm26_vm0, %v3034_v24  ;;  %v443_v33 = vld [vmem:[#allocation2 + $0x500] sm:$0xff]  ;;  %v318_v39 = vld [vmem:[#allocation2 + $0x118] sm:$0xff]  ;;  %v3047_v46 = vadd.f32 %v6772_v38, %v445_v31  ;;  %v2917_v52 = vadd.f32 %v1990_v47, %v315_v1  ;;  %v8403_v13 = vpop.f32.mrb[35].mxu1 }
 0x125   :  { %3167 = vst.msk [vmem:[#allocation2 + $0xd0] sm:$0xff] %vm26_vm0, %v2911_v29  ;;  %3295 = vst.msk [vmem:[#allocation2 + $0x4d0] sm:$0xff] %vm26_vm0, %v3039_v30  ;;  %v446_v41 = vld [vmem:[#allocation2 + $0x518] sm:$0xff]  ;;  %v3417_v49 = vld [vmem:[#allocation2 + $0x88] sm:$0xff]  ;;  %v3045_v53 = vadd.f32 %v2502_v48, %v443_v33  ;;  %v2920_v4 = vadd.f32 %v6645_v54, %v318_v39  ;;  %v8422_v27 = vpop.f32.mrb[36].mxu1 }
 0x126   :  { %3165 = vst.msk [vmem:[#allocation2 + $0xc0] sm:$0xff] %vm26_vm0, %v2909_v35  ;;  %3293 = vst.msk [vmem:[#allocation2 + $0x4c0] sm:$0xff] %vm26_vm0, %v3037_v40  ;;  %v316_v62 = vld [vmem:[#allocation2 + $0x108] sm:$0xff]  ;;  %vm3673_vm12 = vcmp.ge.f32.partialorder %v3417_v49, 0.0  ;;  %v3929_v63 = vmul.f32 0.2, %v3417_v49  ;;  %v3048_v56 = vadd.f32 %v6773_v55, %v446_v41 }
 0x127   :  { %3168 = vst.msk [vmem:[#allocation2 + $0xd8] sm:$0xff] %vm26_vm0, %v2912_v50  ;;  %3296 = vst.msk [vmem:[#allocation2 + $0x4d8] sm:$0xff] %vm26_vm0, %v3040_v51  ;;  %v3545_v0 = vld [vmem:[#allocation2 + $0x488] sm:$0xff]  ;;  %v3422_v42 = vld [vmem:[#allocation2 + $0xb0] sm:$0xff]  ;;  %v2918_v16 = vadd.f32 %v1993_v5, %v316_v62  ;;  %v8420_v51 = vpop.f32.mrb[36].mxu0  ;;  %v8427_v1 = vpop.f32.mrb[37].mxu1 }
 0x128   :  { %3166 = vst.msk [vmem:[#allocation2 + $0xc8] sm:$0xff] %vm26_vm0, %v2910_v32  ;;  %3294 = vst.msk [vmem:[#allocation2 + $0x4c8] sm:$0xff] %vm26_vm0, %v3038_v58  ;;  %vm3801_vm13 = vcmp.ge.f32.partialorder %v3545_v0, 0.0  ;;  %v4057_v6 = vmul.f32 0.2, %v3545_v0  ;;  %vm3678_vm14 = vcmp.ge.f32.partialorder %v3422_v42, 0.0  ;;  %v4185_v61 = vsel %vm3673_vm12, %v3417_v49, %v3929_v63 }
 0x129   :  { %3171 = vst.msk [vmem:[#allocation2 + $0xf0] sm:$0xff] %vm26_vm0, %v2915_v59  ;;  %3299 = vst.msk [vmem:[#allocation2 + $0x4f0] sm:$0xff] %vm26_vm0, %v3043_v60  ;;  %v3934_v7 = vmul.f32 0.2, %v3422_v42  ;;  %v3550_v2 = vld [vmem:[#allocation2 + $0x4b0] sm:$0xff]  ;;  %v3420_v10 = vld [vmem:[#allocation2 + $0xa0] sm:$0xff]  ;;  %v6240_v14 = vpack.c.bf16 %v4185_v61, %v4185_v61 }
 0x12a   :  { %3169 = vst.msk [vmem:[#allocation2 + $0xe0] sm:$0xff] %vm26_vm0, %v2913_v34  ;;  %3297 = vst.msk [vmem:[#allocation2 + $0x4e0] sm:$0xff] %vm26_vm0, %v3041_v8  ;;  %v3548_v57 = vld [vmem:[#allocation2 + $0x4a0] sm:$0xff]  ;;  %v4313_v15 = vsel %vm3801_vm13, %v3545_v0, %v4057_v6  ;;  %vm3806_vm15 = vcmp.ge.f32.partialorder %v3550_v2, 0.0  ;;  %v3423_v17 = vld [vmem:[#allocation2 + $0xb8] sm:$0xff]  ;;  %vm3676_vm1 = vcmp.ge.f32.partialorder %v3420_v10, 0.0 }
 0x12b   :  { %3172 = vst.msk [vmem:[#allocation2 + $0xf8] sm:$0xff] %vm26_vm0, %v2916_v36  ;;  %3300 = vst.msk [vmem:[#allocation2 + $0x4f8] sm:$0xff] %vm26_vm0, %v3044_v9  ;;  %v4190_v11 = vsel %vm3678_vm14, %v3422_v42, %v3934_v7  ;;  %v3551_v12 = vld [vmem:[#allocation2 + $0x4b8] sm:$0xff]  ;;  %v6368_v3 = vpack.c.bf16 %v4313_v15, %v4313_v15  ;;  %v4062_v19 = vmul.f32 0.2, %v3550_v2  ;;  %v3421_v21 = vld [vmem:[#allocation2 + $0xa8] sm:$0xff] }
 0x12c   :  { %3170 = vst.msk [vmem:[#allocation2 + $0xe8] sm:$0xff] %vm26_vm0, %v2914_v43  ;;  %3298 = vst.msk [vmem:[#allocation2 + $0x4e8] sm:$0xff] %vm26_vm0, %v3042_v44  ;;  %v6245_v20 = vpack.c.bf16 %v4190_v11, %v4190_v11  ;;  %v3932_v22 = vmul.f32 0.2, %v3420_v10  ;;  %vm3804_vm2 = vcmp.ge.f32.partialorder %v3548_v57, 0.0  ;;  %vm3679_vm4 = vcmp.ge.f32.partialorder %v3423_v17, 0.0 }
 0x12d   :  { %3175 = vst.msk [vmem:[#allocation2 + $0x110] sm:$0xff] %vm26_vm0, %v2919_v45  ;;  %3303 = vst.msk [vmem:[#allocation2 + $0x510] sm:$0xff] %vm26_vm0, %v3047_v46  ;;  %v4060_v18 = vmul.f32 0.2, %v3548_v57  ;;  %v4318_v24 = vsel %vm3806_vm15, %v3550_v2, %v4062_v19  ;;  %v3935_v29 = vmul.f32 0.2, %v3423_v17 }
 0x12e   :  { %3173 = vst.msk [vmem:[#allocation2 + $0x100] sm:$0xff] %vm26_vm0, %v2917_v52  ;;  %3301 = vst.msk [vmem:[#allocation2 + $0x500] sm:$0xff] %vm26_vm0, %v3045_v53  ;;  %vm3807_vm5 = vcmp.ge.f32.partialorder %v3551_v12, 0.0  ;;  %v4063_v30 = vmul.f32 0.2, %v3551_v12  ;;  %v3549_v23 = vld [vmem:[#allocation2 + $0x4a8] sm:$0xff]  ;;  %v6373_v25 = vpack.c.bf16 %v4318_v24, %v4318_v24  ;;  %v4188_v26 = vsel %vm3676_vm1, %v3420_v10, %v3932_v22 }
 0x12f   :  { %3176 = vst.msk [vmem:[#allocation2 + $0x118] sm:$0xff] %vm26_vm0, %v2920_v4  ;;  %3304 = vst.msk [vmem:[#allocation2 + $0x518] sm:$0xff] %vm26_vm0, %v3048_v56  ;;  %v4316_v35 = vsel %vm3804_vm2, %v3548_v57, %v4060_v18  ;;  %vm3677_vm6 = vcmp.ge.f32.partialorder %v3421_v21, 0.0  ;;  %v3426_v40 = vld [vmem:[#allocation2 + $0xd0] sm:$0xff]  ;;  %v6243_v28 = vpack.c.bf16 %v4188_v26, %v4188_v26  ;;  %v4191_v32 = vsel %vm3679_vm4, %v3423_v17, %v3935_v29  ;;  %v3424_v59 = vld [vmem:[#allocation2 + $0xc0] sm:$0xff]  ;;  %v8425_v60 = vpop.f32.mrb[37].mxu0 }
 0x130   :  { %3174 = vst.msk [vmem:[#allocation2 + $0x108] sm:$0xff] %vm26_vm0, %v2918_v16  ;;  %v3554_v50 = vld [vmem:[#allocation2 + $0x4d0] sm:$0xff]  ;;  %v6371_v31 = vpack.c.bf16 %v4316_v35, %v4316_v35  ;;  %v4319_v58 = vsel %vm3807_vm5, %v3551_v12, %v4063_v30  ;;  %v6246_v33 = vpack.c.bf16 %v4191_v32, %v4191_v32  ;;  %v3933_v8 = vmul.f32 0.2, %v3421_v21  ;;  %v3552_v36 = vld [vmem:[#allocation2 + $0x4c0] sm:$0xff]  ;;  %v3427_v43 = vld [vmem:[#allocation2 + $0xd8] sm:$0xff] }
 0x131   :  { %5466 = vst.msk [vmem:[%s10166_s3 + $0x44] sm:$0xf] %vm5448_vm3, %v6240_v14  ;;  %5594 = vst.msk [vmem:[%s10166_s3 + $0x244] sm:$0xf] %vm5448_vm3, %v6368_v3  ;;  %v6374_v34 = vpack.c.bf16 %v4319_v58, %v4319_v58  ;;  %vm3805_vm7 = vcmp.ge.f32.partialorder %v3549_v23, 0.0  ;;  %vm3682_vm8 = vcmp.ge.f32.partialorder %v3426_v40, 0.0 }
 0x132   :  { %5471 = vst.msk [vmem:[%s10166_s3 + $0x58] sm:$0xf] %vm5448_vm3, %v6245_v20  ;;  %5599 = vst.msk [vmem:[%s10166_s3 + $0x258] sm:$0xf] %vm5448_vm3, %v6373_v25  ;;  %v4061_v9 = vmul.f32 0.2, %v3549_v23  ;;  %v4189_v38 = vsel %vm3677_vm6, %v3421_v21, %v3933_v8 }
 0x133   :  { %5469 = vst.msk [vmem:[%s10166_s3 + $0x50] sm:$0xf] %vm5448_vm3, %v6243_v28  ;;  %5597 = vst.msk [vmem:[%s10166_s3 + $0x250] sm:$0xf] %vm5448_vm3, %v6371_v31  ;;  %v3938_v37 = vmul.f32 0.2, %v3426_v40  ;;  %v6244_v44 = vpack.c.bf16 %v4189_v38, %v4189_v38 }
 0x134   :  { %vm3810_vm9 = vcmp.ge.f32.partialorder %v3554_v50, 0.0  ;;  %5472 = vst.msk [vmem:[%s10166_s3 + $0x5c] sm:$0xf] %vm5448_vm3, %v6246_v33  ;;  %5600 = vst.msk [vmem:[%s10166_s3 + $0x25c] sm:$0xf] %vm5448_vm3, %v6374_v34  ;;  %vm3680_vm10 = vcmp.ge.f32.partialorder %v3424_v59, 0.0  ;;  %v4317_v45 = vsel %vm3805_vm7, %v3549_v23, %v4061_v9 }
 0x135   :  { %v4066_v39 = vmul.f32 0.2, %v3554_v50  ;;  %v3936_v41 = vmul.f32 0.2, %v3424_v59  ;;  %v4194_v46 = vsel %vm3682_vm8, %v3426_v40, %v3938_v37  ;;  %vm3808_vm11 = vcmp.ge.f32.partialorder %v3552_v36, 0.0  ;;  %v3555_v47 = vld [vmem:[#allocation2 + $0x4d8] sm:$0xff] }
 0x136   :  { %v3425_v48 = vld [vmem:[#allocation2 + $0xc8] sm:$0xff]  ;;  %v8451_v49 = vpop.f32.mrb[38].mxu0  ;;  %v8453_v52 = vpop.f32.mrb[38].mxu1  ;;  %v6372_v53 = vpack.c.bf16 %v4317_v45, %v4317_v45  ;;  %v6249_v54 = vpack.c.bf16 %v4194_v46, %v4194_v46  ;;  %5470 = vst.msk [vmem:[%s10166_s3 + $0x54] sm:$0xf] %vm5448_vm3, %v6244_v44  ;;  %vm3683_vm12 = vcmp.ge.f32.partialorder %v3427_v43, 0.0 }
 0x137   :  { %v4322_v55 = vsel %vm3810_vm9, %v3554_v50, %v4066_v39  ;;  %v4192_v62 = vsel %vm3680_vm10, %v3424_v59, %v3936_v41  ;;  %v3553_v63 = vld [vmem:[#allocation2 + $0x4c8] sm:$0xff]  ;;  %v8456_v0 = vpop.f32.mrb[39].mxu0  ;;  %v8458_v42 = vpop.f32.mrb[39].mxu1  ;;  %v4064_v5 = vmul.f32 0.2, %v3552_v36  ;;  %v3430_v6 = vld [vmem:[#allocation2 + $0xf0] sm:$0xff] }
 0x138   :  { %v6377_v4 = vpack.c.bf16 %v4322_v55, %v4322_v55  ;;  %v6247_v56 = vpack.c.bf16 %v4192_v62, %v4192_v62  ;;  %5598 = vst.msk [vmem:[%s10166_s3 + $0x254] sm:$0xf] %vm5448_vm3, %v6372_v53  ;;  %5475 = vst.msk [vmem:[%s10166_s3 + $0x68] sm:$0xf] %vm5448_vm3, %v6249_v54  ;;  %v3939_v7 = vmul.f32 0.2, %v3427_v43 }
 0x139   :  { %vm3811_vm13 = vcmp.ge.f32.partialorder %v3555_v47, 0.0  ;;  %v4067_v61 = vmul.f32 0.2, %v3555_v47  ;;  %vm3681_vm14 = vcmp.ge.f32.partialorder %v3425_v48, 0.0  ;;  %v4320_v2 = vsel %vm3808_vm11, %v3552_v36, %v4064_v5  ;;  %v3558_v16 = vld [vmem:[#allocation2 + $0x4f0] sm:$0xff]  ;;  %v3428_v17 = vld [vmem:[#allocation2 + $0xe0] sm:$0xff] }
 0x13a   :  { %5603 = vst.msk [vmem:[%s10166_s3 + $0x268] sm:$0xf] %vm5448_vm3, %v6377_v4  ;;  %5473 = vst.msk [vmem:[%s10166_s3 + $0x60] sm:$0xf] %vm5448_vm3, %v6247_v56  ;;  %v3937_v10 = vmul.f32 0.2, %v3425_v48  ;;  %v6375_v14 = vpack.c.bf16 %v4320_v2, %v4320_v2  ;;  %v4195_v15 = vsel %vm3683_vm12, %v3427_v43, %v3939_v7 }
 0x13b   :  { %vm3809_vm15 = vcmp.ge.f32.partialorder %v3553_v63, 0.0  ;;  %v4065_v57 = vmul.f32 0.2, %v3553_v63  ;;  %v4323_v11 = vsel %vm3811_vm13, %v3555_v47, %v4067_v61  ;;  %vm3686_vm1 = vcmp.ge.f32.partialorder %v3430_v6, 0.0  ;;  %v3556_v12 = vld [vmem:[#allocation2 + $0x4e0] sm:$0xff]  ;;  %v8482_v3 = vpop.f32.mrb[40].mxu0 }
 0x13c   :  { %v8484_v20 = vpop.f32.mrb[40].mxu1  ;;  %v6250_v19 = vpack.c.bf16 %v4195_v15, %v4195_v15  ;;  %v6378_v21 = vpack.c.bf16 %v4323_v11, %v4323_v11  ;;  %v4193_v22 = vsel %vm3681_vm14, %v3425_v48, %v3937_v10  ;;  %v3431_v24 = vld [vmem:[#allocation2 + $0xf8] sm:$0xff]  ;;  %v8487_v30 = vpop.f32.mrb[41].mxu0  ;;  %5601 = vst.msk [vmem:[%s10166_s3 + $0x260] sm:$0xf] %vm5448_vm3, %v6375_v14  ;;  %vm3814_vm2 = vcmp.ge.f32.partialorder %v3558_v16, 0.0 }
 0x13d   :  { %v4321_v18 = vsel %vm3809_vm15, %v3553_v63, %v4065_v57  ;;  %v3559_v29 = vld [vmem:[#allocation2 + $0x4f8] sm:$0xff]  ;;  %v8489_v23 = vpop.f32.mrb[41].mxu1  ;;  %v6248_v25 = vpack.c.bf16 %v4193_v22, %v4193_v22  ;;  %v3942_v35 = vmul.f32 0.2, %v3430_v6  ;;  %v3429_v40 = vld [vmem:[#allocation2 + $0xe8] sm:$0xff]  ;;  %v8495_v50 = vpop.f32.mrb[42].mxu0 }
 0x13e   :  { %v6376_v26 = vpack.c.bf16 %v4321_v18, %v4321_v18  ;;  %v8497_v28 = vpop.f32.mrb[42].mxu1  ;;  %5476 = vst.msk [vmem:[%s10166_s3 + $0x6c] sm:$0xf] %vm5448_vm3, %v6250_v19  ;;  %5604 = vst.msk [vmem:[%s10166_s3 + $0x26c] sm:$0xf] %vm5448_vm3, %v6378_v21  ;;  %vm3684_vm4 = vcmp.ge.f32.partialorder %v3428_v17, 0.0 }
 0x13f   :  { %v4070_v31 = vmul.f32 0.2, %v3558_v16  ;;  %v3940_v32 = vmul.f32 0.2, %v3428_v17  ;;  %vm3812_vm5 = vcmp.ge.f32.partialorder %v3556_v12, 0.0  ;;  %v4198_v58 = vsel %vm3686_vm1, %v3430_v6, %v3942_v35  ;;  %v8516_v34 = vpop.f32.mrb[43].mxu0 }
 0x140   :  { %5474 = vst.msk [vmem:[%s10166_s3 + $0x64] sm:$0xf] %vm5448_vm3, %v6248_v25  ;;  %5602 = vst.msk [vmem:[%s10166_s3 + $0x264] sm:$0xf] %vm5448_vm3, %v6376_v26  ;;  %v4068_v59 = vmul.f32 0.2, %v3556_v12  ;;  %v6253_v8 = vpack.c.bf16 %v4198_v58, %v4198_v58 }
 0x141   :  { %vm3687_vm6 = vcmp.ge.f32.partialorder %v3431_v24, 0.0  ;;  %v3943_v33 = vmul.f32 0.2, %v3431_v24  ;;  %v4326_v36 = vsel %vm3814_vm2, %v3558_v16, %v4070_v31  ;;  %v4196_v9 = vsel %vm3684_vm4, %v3428_v17, %v3940_v32  ;;  %v3557_v37 = vld [vmem:[#allocation2 + $0x4e8] sm:$0xff]  ;;  %v3434_v38 = vld [vmem:[#allocation2 + $0x110] sm:$0xff]  ;;  %v8519_v39 = vpop.f32.mrb[43].mxu1 }
 0x142   :  { %vm3815_vm7 = vcmp.ge.f32.partialorder %v3559_v29, 0.0  ;;  %v8521_v41 = vpop.f32.mrb[44].mxu0  ;;  %v6381_v43 = vpack.c.bf16 %v4326_v36, %v4326_v36  ;;  %v6251_v44 = vpack.c.bf16 %v4196_v9, %v4196_v9  ;;  %v4324_v45 = vsel %vm3812_vm5, %v3556_v12, %v4068_v59  ;;  %v3562_v47 = vld [vmem:[#allocation2 + $0x510] sm:$0xff]  ;;  %v3432_v48 = vld [vmem:[#allocation2 + $0x100] sm:$0xff]  ;;  %v8524_v53 = vpop.f32.mrb[44].mxu1  ;;  %v3435_v11 = vld [vmem:[#allocation2 + $0x118] sm:$0xff] }
 0x143   :  { %v4199_v46 = vsel %vm3687_vm6, %v3431_v24, %v3943_v33  ;;  %v8526_v54 = vpop.f32.mrb[45].mxu0  ;;  %5479 = vst.msk [vmem:[%s10166_s3 + $0x78] sm:$0xf] %vm5448_vm3, %v6253_v8  ;;  %v6379_v55 = vpack.c.bf16 %v4324_v45, %v4324_v45  ;;  %v4071_v63 = vmul.f32 0.2, %v3559_v29  ;;  %vm3685_vm8 = vcmp.ge.f32.partialorder %v3429_v40, 0.0 }
 0x144   :  { %v6254_v62 = vpack.c.bf16 %v4199_v46, %v4199_v46  ;;  %v3560_v4 = vld [vmem:[#allocation2 + $0x500] sm:$0xff]  ;;  %v8532_v56 = vpop.f32.mrb[45].mxu1  ;;  %v8534_v5 = vpop.f32.mrb[46].mxu0  ;;  %5607 = vst.msk [vmem:[%s10166_s3 + $0x278] sm:$0xf] %vm5448_vm3, %v6381_v43  ;;  %vm3813_vm9 = vcmp.ge.f32.partialorder %v3557_v37, 0.0 }
 0x145   :  { %5477 = vst.msk [vmem:[%s10166_s3 + $0x70] sm:$0xf] %vm5448_vm3, %v6251_v44  ;;  %v3941_v6 = vmul.f32 0.2, %v3429_v40  ;;  %v4069_v7 = vmul.f32 0.2, %v3557_v37  ;;  %v4327_v61 = vsel %vm3815_vm7, %v3559_v29, %v4071_v63 }
 0x146   :  { %vm3690_vm10 = vcmp.ge.f32.partialorder %v3434_v38, 0.0  ;;  %5605 = vst.msk [vmem:[%s10166_s3 + $0x270] sm:$0xf] %vm5448_vm3, %v6379_v55  ;;  %5480 = vst.msk [vmem:[%s10166_s3 + $0x7c] sm:$0xf] %vm5448_vm3, %v6254_v62  ;;  %vm3818_vm11 = vcmp.ge.f32.partialorder %v3562_v47, 0.0  ;;  %v6382_v16 = vpack.c.bf16 %v4327_v61, %v4327_v61 }
 0x147   :  { %v3946_v2 = vmul.f32 0.2, %v3434_v38  ;;  %v4074_v10 = vmul.f32 0.2, %v3562_v47  ;;  %v8553_v57 = vpop.f32.mrb[46].mxu1  ;;  %v4197_v14 = vsel %vm3685_vm8, %v3429_v40, %v3941_v6  ;;  %v4325_v15 = vsel %vm3813_vm9, %v3557_v37, %v4069_v7  ;;  %v3563_v17 = vld [vmem:[#allocation2 + $0x518] sm:$0xff] }
 0x148   :  { %vm3688_vm12 = vcmp.ge.f32.partialorder %v3432_v48, 0.0  ;;  %v8556_v12 = vpop.f32.mrb[47].mxu0  ;;  %v8558_v19 = vpop.f32.mrb[47].mxu1  ;;  %v6252_v21 = vpack.c.bf16 %v4197_v14, %v4197_v14  ;;  %v6380_v22 = vpack.c.bf16 %v4325_v15, %v4325_v15  ;;  %v3433_v29 = vld [vmem:[#allocation2 + $0x108] sm:$0xff]  ;;  %5608 = vst.msk [vmem:[%s10166_s3 + $0x27c] sm:$0xf] %vm5448_vm3, %v6382_v16 }
 0x149   :  { %v4202_v18 = vsel %vm3690_vm10, %v3434_v38, %v3946_v2  ;;  %v4330_v24 = vsel %vm3818_vm11, %v3562_v47, %v4074_v10  ;;  %v444_v25 = vld [vmem:[#allocation2 + $0x508] sm:$0xff]  ;;  %v3944_v40 = vmul.f32 0.2, %v3432_v48  ;;  %vm3816_vm13 = vcmp.ge.f32.partialorder %v3560_v4, 0.0  ;;  %v321_v31 = vld [vmem:[#allocation2 + $0x130] sm:$0xff]  ;;  %v8565_v58 = vpop.f32.mrb[48].mxu0 }
 0x14a   :  { %v6257_v26 = vpack.c.bf16 %v4202_v18, %v4202_v18  ;;  %v6385_v35 = vpack.c.bf16 %v4330_v24, %v4330_v24  ;;  %v449_v32 = vld [vmem:[#allocation2 + $0x530] sm:$0xff]  ;;  %v8567_v59 = vpop.f32.mrb[48].mxu1  ;;  %5478 = vst.msk [vmem:[%s10166_s3 + $0x74] sm:$0xf] %vm5448_vm3, %v6252_v21  ;;  %5606 = vst.msk [vmem:[%s10166_s3 + $0x274] sm:$0xf] %vm5448_vm3, %v6380_v22  ;;  %v3046_v61 = vadd.f32 %v8403_v13, %v444_v25 }
 0x14b   :  { %v4072_v33 = vmul.f32 0.2, %v3560_v4  ;;  %vm3691_vm14 = vcmp.ge.f32.partialorder %v3435_v11, 0.0  ;;  %v3947_v8 = vmul.f32 0.2, %v3435_v11  ;;  %vm3819_vm15 = vcmp.ge.f32.partialorder %v3563_v17, 0.0 }
 0x14c   :  { %v319_v36 = vld [vmem:[#allocation2 + $0x120] sm:$0xff]  ;;  %v322_v37 = vld [vmem:[#allocation2 + $0x138] sm:$0xff]  ;;  %5483 = vst.msk [vmem:[%s10166_s3 + $0x88] sm:$0xf] %vm5448_vm3, %v6257_v26  ;;  %5611 = vst.msk [vmem:[%s10166_s3 + $0x288] sm:$0xf] %vm5448_vm3, %v6385_v35  ;;  %v4200_v43 = vsel %vm3688_vm12, %v3432_v48, %v3944_v40 }
 0x14d   :  { %v447_v9 = vld [vmem:[#allocation2 + $0x520] sm:$0xff]  ;;  %v450_v38 = vld [vmem:[#allocation2 + $0x538] sm:$0xff]  ;;  %v4075_v44 = vmul.f32 0.2, %v3563_v17  ;;  %vm3689_vm1 = vcmp.ge.f32.partialorder %v3433_v29, 0.0  ;;  %v320_v46 = vld [vmem:[#allocation2 + $0x128] sm:$0xff]  ;;  %v6255_v63 = vpack.c.bf16 %v4200_v43, %v4200_v43  ;;  %v4328_v6 = vsel %vm3816_vm13, %v3560_v4, %v4072_v33 }
 0x14e   :  { %v3945_v45 = vmul.f32 0.2, %v3433_v29  ;;  %v448_v47 = vld [vmem:[#allocation2 + $0x528] sm:$0xff]  ;;  %v325_v55 = vld [vmem:[#allocation2 + $0x150] sm:$0xff]  ;;  %v8586_v62 = vpop.f32.mrb[49].mxu0  ;;  %v4203_v7 = vsel %vm3691_vm14, %v3435_v11, %v3947_v8  ;;  %v323_v10 = vld [vmem:[#allocation2 + $0x140] sm:$0xff]  ;;  %v6383_v15 = vpack.c.bf16 %v4328_v6, %v4328_v6 }
 0x14f   :  { %v453_v2 = vld [vmem:[#allocation2 + $0x550] sm:$0xff]  ;;  %v451_v16 = vld [vmem:[#allocation2 + $0x540] sm:$0xff]  ;;  %v8591_v14 = vpop.f32.mrb[49].mxu1  ;;  %v8593_v48 = vpop.f32.mrb[50].mxu0  ;;  %v6258_v21 = vpack.c.bf16 %v4203_v7, %v4203_v7  ;;  %v4331_v22 = vsel %vm3819_vm15, %v3563_v17, %v4075_v44  ;;  %v326_v24 = vld [vmem:[#allocation2 + $0x158] sm:$0xff]  ;;  %3302 = vst.msk [vmem:[#allocation2 + $0x508] sm:$0xff] %vm26_vm0, %v3046_v61  ;;  %v2923_v17 = vadd.f32 %v8420_v51, %v321_v31  ;;  %v2921_v44 = vadd.f32 %v8425_v60, %v319_v36 }
 0x150   :  { %v4201_v18 = vsel %vm3689_vm1, %v3433_v29, %v3945_v45  ;;  %v454_v26 = vld [vmem:[#allocation2 + $0x558] sm:$0xff]  ;;  %v324_v4 = vld [vmem:[#allocation2 + $0x148] sm:$0xff]  ;;  %v8597_v35 = vpop.f32.mrb[50].mxu1  ;;  %v8599_v11 = vpop.f32.mrb[51].mxu0  ;;  %5481 = vst.msk [vmem:[%s10166_s3 + $0x80] sm:$0xf] %vm5448_vm3, %v6255_v63  ;;  %v6386_v13 = vpack.c.bf16 %v4331_v22, %v4331_v22  ;;  %v3051_v29 = vadd.f32 %v8422_v27, %v449_v32  ;;  %v3049_v51 = vadd.f32 %v8427_v1, %v447_v9 }
 0x151   :  { %v6256_v25 = vpack.c.bf16 %v4201_v18, %v4201_v18  ;;  %v452_v40 = vld [vmem:[#allocation2 + $0x548] sm:$0xff]  ;;  %v329_v33 = vld [vmem:[#allocation2 + $0x170] sm:$0xff]  ;;  %v8608_v43 = vpop.f32.mrb[51].mxu1  ;;  %5609 = vst.msk [vmem:[%s10166_s3 + $0x280] sm:$0xf] %vm5448_vm3, %v6383_v15  ;;  %v2924_v27 = vadd.f32 %v8451_v49, %v322_v37  ;;  %v3052_v31 = vadd.f32 %v8453_v52, %v450_v38  ;;  %v327_v32 = vld [vmem:[#allocation2 + $0x160] sm:$0xff]  ;;  %v2922_v60 = vadd.f32 %v8456_v0, %v320_v46 }
 0x152   :  { %v457_v8 = vld [vmem:[#allocation2 + $0x570] sm:$0xff]  ;;  %5484 = vst.msk [vmem:[%s10166_s3 + $0x8c] sm:$0xf] %vm5448_vm3, %v6258_v21  ;;  %v455_v45 = vld [vmem:[#allocation2 + $0x560] sm:$0xff]  ;;  %v330_v63 = vld [vmem:[#allocation2 + $0x178] sm:$0xff]  ;;  %v3050_v1 = vadd.f32 %v8458_v42, %v448_v47  ;;  %v2927_v49 = vadd.f32 %v8482_v3, %v325_v55  ;;  %v3055_v52 = vadd.f32 %v8484_v20, %v453_v2  ;;  %v2925_v38 = vadd.f32 %v8487_v30, %v323_v10  ;;  %v8644_v55 = vpop.f32.mrb[52].mxu0 }
 0x153   :  { %5612 = vst.msk [vmem:[%s10166_s3 + $0x28c] sm:$0xf] %vm5448_vm3, %v6386_v13  ;;  %5482 = vst.msk [vmem:[%s10166_s3 + $0x84] sm:$0xf] %vm5448_vm3, %v6256_v25  ;;  %v458_v36 = vld [vmem:[#allocation2 + $0x578] sm:$0xff]  ;;  %v328_v9 = vld [vmem:[#allocation2 + $0x168] sm:$0xff]  ;;  %v3053_v0 = vadd.f32 %v8489_v23, %v451_v16  ;;  %v2928_v42 = vadd.f32 %v8495_v50, %v326_v24  ;;  %v3056_v3 = vadd.f32 %v8497_v28, %v454_v26 }
 0x154   :  { %3179 = vst.msk [vmem:[#allocation2 + $0x130] sm:$0xff] %vm26_vm0, %v2923_v17  ;;  %3307 = vst.msk [vmem:[#allocation2 + $0x530] sm:$0xff] %vm26_vm0, %v3051_v29  ;;  %v456_v37 = vld [vmem:[#allocation2 + $0x568] sm:$0xff]  ;;  %v333_v20 = vld [vmem:[#allocation2 + $0x190] sm:$0xff]  ;;  %v8646_v6 = vpop.f32.mrb[52].mxu1  ;;  %v2926_v30 = vadd.f32 %v8516_v34, %v324_v4  ;;  %v3054_v23 = vadd.f32 %v8519_v39, %v452_v40  ;;  %v2931_v50 = vadd.f32 %v8521_v41, %v329_v33  ;;  %v2070_v10 = vpop.f32.mrb[53].mxu0 }
 0x155   :  { %3177 = vst.msk [vmem:[#allocation2 + $0x120] sm:$0xff] %vm26_vm0, %v2921_v44  ;;  %3305 = vst.msk [vmem:[#allocation2 + $0x520] sm:$0xff] %vm26_vm0, %v3049_v51  ;;  %v461_v46 = vld [vmem:[#allocation2 + $0x590] sm:$0xff]  ;;  %v331_v47 = vld [vmem:[#allocation2 + $0x180] sm:$0xff]  ;;  %v3059_v28 = vadd.f32 %v8524_v53, %v457_v8  ;;  %v2582_v16 = vpop.f32.mrb[53].mxu1  ;;  %v2929_v34 = vadd.f32 %v8526_v54, %v327_v32  ;;  %v3057_v39 = vadd.f32 %v8532_v56, %v455_v45  ;;  %v8664_v18 = vpop.f32.mrb[54].mxu0 }
 0x156   :  { %3180 = vst.msk [vmem:[#allocation2 + $0x138] sm:$0xff] %vm26_vm0, %v2924_v27  ;;  %3308 = vst.msk [vmem:[#allocation2 + $0x538] sm:$0xff] %vm26_vm0, %v3052_v31  ;;  %v459_v7 = vld [vmem:[#allocation2 + $0x580] sm:$0xff]  ;;  %v334_v61 = vld [vmem:[#allocation2 + $0x198] sm:$0xff]  ;;  %v2932_v41 = vadd.f32 %v8534_v5, %v330_v63  ;;  %v3060_v53 = vadd.f32 %v8553_v57, %v458_v36  ;;  %v8666_v24 = vpop.f32.mrb[54].mxu1  ;;  %v2930_v54 = vadd.f32 %v8556_v12, %v328_v9  ;;  %v8676_v25 = vpop.f32.mrb[55].mxu0 }
 0x157   :  { %3178 = vst.msk [vmem:[#allocation2 + $0x128] sm:$0xff] %vm26_vm0, %v2922_v60  ;;  %3306 = vst.msk [vmem:[#allocation2 + $0x528] sm:$0xff] %vm26_vm0, %v3050_v1  ;;  %v462_v2 = vld [vmem:[#allocation2 + $0x598] sm:$0xff]  ;;  %v332_v15 = vld [vmem:[#allocation2 + $0x188] sm:$0xff]  ;;  %v3058_v56 = vadd.f32 %v8558_v19, %v456_v37  ;;  %v2935_v5 = vadd.f32 %v8565_v58, %v333_v20  ;;  %v3063_v57 = vadd.f32 %v8567_v59, %v461_v46  ;;  %v8678_v17 = vpop.f32.mrb[55].mxu1 }
 0x158   :  { %3183 = vst.msk [vmem:[#allocation2 + $0x150] sm:$0xff] %vm26_vm0, %v2927_v49  ;;  %3311 = vst.msk [vmem:[#allocation2 + $0x550] sm:$0xff] %vm26_vm0, %v3055_v52  ;;  %v460_v21 = vld [vmem:[#allocation2 + $0x588] sm:$0xff]  ;;  %v337_v22 = vld [vmem:[#allocation2 + $0x1b0] sm:$0xff]  ;;  %v2933_v12 = vadd.f32 %v8586_v62, %v331_v47  ;;  %v3061_v19 = vadd.f32 %v8591_v14, %v459_v7  ;;  %v2936_v58 = vadd.f32 %v8593_v48, %v334_v61 }
 0x159   :  { %3181 = vst.msk [vmem:[#allocation2 + $0x140] sm:$0xff] %vm26_vm0, %v2925_v38  ;;  %3309 = vst.msk [vmem:[#allocation2 + $0x540] sm:$0xff] %vm26_vm0, %v3053_v0  ;;  %v465_v26 = vld [vmem:[#allocation2 + $0x5b0] sm:$0xff]  ;;  %v335_v4 = vld [vmem:[#allocation2 + $0x1a0] sm:$0xff]  ;;  %v3064_v59 = vadd.f32 %v8597_v35, %v462_v2  ;;  %v2934_v33 = vadd.f32 %v8599_v11, %v332_v15  ;;  %v3062_v62 = vadd.f32 %v8608_v43, %v460_v21 }
 0x15a   :  { %3184 = vst.msk [vmem:[#allocation2 + $0x158] sm:$0xff] %vm26_vm0, %v2928_v42  ;;  %3312 = vst.msk [vmem:[#allocation2 + $0x558] sm:$0xff] %vm26_vm0, %v3056_v3  ;;  %v463_v13 = vld [vmem:[#allocation2 + $0x5a0] sm:$0xff]  ;;  %v3561_v29 = vld [vmem:[#allocation2 + $0x508] sm:$0xff]  ;;  %v2939_v48 = vadd.f32 %v8644_v55, %v337_v22  ;;  %v3067_v35 = vadd.f32 %v8646_v6, %v465_v26  ;;  %v2937_v44 = vadd.f32 %v2070_v10, %v335_v4  ;;  %v8714_v3 = vpop.f32.mrb[56].mxu0 }
 0x15b   :  { %3182 = vst.msk [vmem:[#allocation2 + $0x148] sm:$0xff] %vm26_vm0, %v2926_v30  ;;  %3310 = vst.msk [vmem:[#allocation2 + $0x548] sm:$0xff] %vm26_vm0, %v3054_v23  ;;  %vm3817_vm2 = vcmp.ge.f32.partialorder %v3561_v29, 0.0  ;;  %v4073_v40 = vmul.f32 0.2, %v3561_v29  ;;  %v3438_v8 = vld [vmem:[#allocation2 + $0x130] sm:$0xff]  ;;  %v3065_v51 = vadd.f32 %v2582_v16, %v463_v13 }
 0x15c   :  { %3187 = vst.msk [vmem:[#allocation2 + $0x170] sm:$0xff] %vm26_vm0, %v2931_v50  ;;  %3315 = vst.msk [vmem:[#allocation2 + $0x570] sm:$0xff] %vm26_vm0, %v3059_v28  ;;  %v3566_v14 = vld [vmem:[#allocation2 + $0x530] sm:$0xff]  ;;  %vm3694_vm4 = vcmp.ge.f32.partialorder %v3438_v8, 0.0  ;;  %v3950_v43 = vmul.f32 0.2, %v3438_v8 }
 0x15d   :  { %3185 = vst.msk [vmem:[#allocation2 + $0x160] sm:$0xff] %vm26_vm0, %v2929_v34  ;;  %3313 = vst.msk [vmem:[#allocation2 + $0x560] sm:$0xff] %vm26_vm0, %v3057_v39  ;;  %v4329_v11 = vsel %vm3817_vm2, %v3561_v29, %v4073_v40  ;;  %vm3822_vm5 = vcmp.ge.f32.partialorder %v3566_v14, 0.0  ;;  %v3436_v27 = vld [vmem:[#allocation2 + $0x120] sm:$0xff]  ;;  %v4078_v45 = vmul.f32 0.2, %v3566_v14 }
 0x15e   :  { %3188 = vst.msk [vmem:[#allocation2 + $0x178] sm:$0xff] %vm26_vm0, %v2932_v41  ;;  %3316 = vst.msk [vmem:[#allocation2 + $0x578] sm:$0xff] %vm26_vm0, %v3060_v53  ;;  %v3564_v31 = vld [vmem:[#allocation2 + $0x520] sm:$0xff]  ;;  %v6384_v32 = vpack.c.bf16 %v4329_v11, %v4329_v11  ;;  %vm3692_vm6 = vcmp.ge.f32.partialorder %v3436_v27, 0.0  ;;  %v3948_v63 = vmul.f32 0.2, %v3436_v27  ;;  %v4206_v1 = vsel %vm3694_vm4, %v3438_v8, %v3950_v43 }
 0x15f   :  { %3186 = vst.msk [vmem:[#allocation2 + $0x168] sm:$0xff] %vm26_vm0, %v2930_v54  ;;  %3314 = vst.msk [vmem:[#allocation2 + $0x568] sm:$0xff] %vm26_vm0, %v3058_v56  ;;  %v3439_v60 = vld [vmem:[#allocation2 + $0x138] sm:$0xff]  ;;  %vm3820_vm7 = vcmp.ge.f32.partialorder %v3564_v31, 0.0  ;;  %v4076_v49 = vmul.f32 0.2, %v3564_v31  ;;  %v6261_v9 = vpack.c.bf16 %v4206_v1, %v4206_v1  ;;  %v4334_v37 = vsel %vm3822_vm5, %v3566_v14, %v4078_v45 }
 0x160   :  { %3191 = vst.msk [vmem:[#allocation2 + $0x190] sm:$0xff] %vm26_vm0, %v2935_v5  ;;  %3319 = vst.msk [vmem:[#allocation2 + $0x590] sm:$0xff] %vm26_vm0, %v3063_v57  ;;  %vm3695_vm8 = vcmp.ge.f32.partialorder %v3439_v60, 0.0  ;;  %v3567_v52 = vld [vmem:[#allocation2 + $0x538] sm:$0xff]  ;;  %v3437_v36 = vld [vmem:[#allocation2 + $0x128] sm:$0xff]  ;;  %v4204_v38 = vsel %vm3692_vm6, %v3436_v27, %v3948_v63  ;;  %v6389_v20 = vpack.c.bf16 %v4334_v37, %v4334_v37  ;;  %v8716_v30 = vpop.f32.mrb[56].mxu1 }
 0x161   :  { %3189 = vst.msk [vmem:[#allocation2 + $0x180] sm:$0xff] %vm26_vm0, %v2933_v12  ;;  %3317 = vst.msk [vmem:[#allocation2 + $0x580] sm:$0xff] %vm26_vm0, %v3061_v19  ;;  %v3951_v0 = vmul.f32 0.2, %v3439_v60  ;;  %v3565_v42 = vld [vmem:[#allocation2 + $0x528] sm:$0xff]  ;;  %v6259_v46 = vpack.c.bf16 %v4204_v38, %v4204_v38  ;;  %v4332_v47 = vsel %vm3820_vm7, %v3564_v31, %v4076_v49  ;;  %vm3823_vm9 = vcmp.ge.f32.partialorder %v3567_v52, 0.0 }
 0x162   :  { %3192 = vst.msk [vmem:[#allocation2 + $0x198] sm:$0xff] %vm26_vm0, %v2936_v58  ;;  %3320 = vst.msk [vmem:[#allocation2 + $0x598] sm:$0xff] %vm26_vm0, %v3064_v59  ;;  %v3442_v55 = vld [vmem:[#allocation2 + $0x150] sm:$0xff]  ;;  %v8718_v23 = vpop.f32.mrb[57].mxu0  ;;  %v6387_v50 = vpack.c.bf16 %v4332_v47, %v4332_v47  ;;  %v4079_v7 = vmul.f32 0.2, %v3567_v52 }
 0x163   :  { %3190 = vst.msk [vmem:[#allocation2 + $0x188] sm:$0xff] %vm26_vm0, %v2934_v33  ;;  %3318 = vst.msk [vmem:[#allocation2 + $0x588] sm:$0xff] %vm26_vm0, %v3062_v62  ;;  %v3570_v6 = vld [vmem:[#allocation2 + $0x550] sm:$0xff]  ;;  %v4207_v28 = vsel %vm3695_vm8, %v3439_v60, %v3951_v0  ;;  %vm3693_vm10 = vcmp.ge.f32.partialorder %v3437_v36, 0.0  ;;  %v3949_v2 = vmul.f32 0.2, %v3437_v36 }
 0x164   :  { %3195 = vst.msk [vmem:[#allocation2 + $0x1b0] sm:$0xff] %vm26_vm0, %v2939_v48  ;;  %3323 = vst.msk [vmem:[#allocation2 + $0x5b0] sm:$0xff] %vm26_vm0, %v3067_v35  ;;  %v6262_v61 = vpack.c.bf16 %v4207_v28, %v4207_v28  ;;  %vm3821_vm11 = vcmp.ge.f32.partialorder %v3565_v42, 0.0  ;;  %v4077_v10 = vmul.f32 0.2, %v3565_v42  ;;  %v3440_v16 = vld [vmem:[#allocation2 + $0x140] sm:$0xff]  ;;  %v4335_v34 = vsel %vm3823_vm9, %v3567_v52, %v4079_v7 }
 0x165   :  { %3193 = vst.msk [vmem:[#allocation2 + $0x1a0] sm:$0xff] %vm26_vm0, %v2937_v44  ;;  %3321 = vst.msk [vmem:[#allocation2 + $0x5a0] sm:$0xff] %vm26_vm0, %v3065_v51  ;;  %vm3698_vm12 = vcmp.ge.f32.partialorder %v3442_v55, 0.0  ;;  %v3954_v39 = vmul.f32 0.2, %v3442_v55  ;;  %vm3826_vm13 = vcmp.ge.f32.partialorder %v3570_v6, 0.0  ;;  %v6390_v53 = vpack.c.bf16 %v4335_v34, %v4335_v34 }
 0x166   :  { %5610 = vst.msk [vmem:[%s10166_s3 + $0x284] sm:$0xf] %vm5448_vm3, %v6384_v32  ;;  %5487 = vst.msk [vmem:[%s10166_s3 + $0x98] sm:$0xf] %vm5448_vm3, %v6261_v9  ;;  %v3568_v41 = vld [vmem:[#allocation2 + $0x540] sm:$0xff]  ;;  %v4205_v15 = vsel %vm3693_vm10, %v3437_v36, %v3949_v2  ;;  %v4333_v21 = vsel %vm3821_vm11, %v3565_v42, %v4077_v10  ;;  %v3443_v54 = vld [vmem:[#allocation2 + $0x158] sm:$0xff] }
 0x167   :  { %5615 = vst.msk [vmem:[%s10166_s3 + $0x298] sm:$0xf] %vm5448_vm3, %v6389_v20  ;;  %5485 = vst.msk [vmem:[%s10166_s3 + $0x90] sm:$0xf] %vm5448_vm3, %v6259_v46  ;;  %v4082_v22 = vmul.f32 0.2, %v3570_v6  ;;  %v6260_v5 = vpack.c.bf16 %v4205_v15, %v4205_v15  ;;  %v6388_v57 = vpack.c.bf16 %v4333_v21, %v4333_v21  ;;  %v4210_v26 = vsel %vm3698_vm12, %v3442_v55, %v3954_v39 }
 0x168   :  { %5613 = vst.msk [vmem:[%s10166_s3 + $0x290] sm:$0xf] %vm5448_vm3, %v6387_v50  ;;  %5488 = vst.msk [vmem:[%s10166_s3 + $0x9c] sm:$0xf] %vm5448_vm3, %v6262_v61  ;;  %v8743_v56 = vpop.f32.mrb[57].mxu1  ;;  %vm3696_vm14 = vcmp.ge.f32.partialorder %v3440_v16, 0.0  ;;  %v6265_v19 = vpack.c.bf16 %v4210_v26, %v4210_v26 }
 0x169   :  { %v3571_v4 = vld [vmem:[#allocation2 + $0x558] sm:$0xff]  ;;  %v3441_v13 = vld [vmem:[#allocation2 + $0x148] sm:$0xff]  ;;  %v8745_v29 = vpop.f32.mrb[58].mxu0  ;;  %v8747_v12 = vpop.f32.mrb[58].mxu1  ;;  %5616 = vst.msk [vmem:[%s10166_s3 + $0x29c] sm:$0xf] %vm5448_vm3, %v6390_v53  ;;  %v4338_v58 = vsel %vm3826_vm13, %v3570_v6, %v4082_v22 }
 0x16a   :  { %v3952_v59 = vmul.f32 0.2, %v3440_v16  ;;  %vm3824_vm15 = vcmp.ge.f32.partialorder %v3568_v41, 0.0  ;;  %5486 = vst.msk [vmem:[%s10166_s3 + $0x94] sm:$0xf] %vm5448_vm3, %v6260_v5  ;;  %v6393_v40 = vpack.c.bf16 %v4338_v58, %v4338_v58  ;;  %vm3699_vm1 = vcmp.ge.f32.partialorder %v3443_v54, 0.0 }
 0x16b   :  { %5614 = vst.msk [vmem:[%s10166_s3 + $0x294] sm:$0xf] %vm5448_vm3, %v6388_v57  ;;  %v4080_v33 = vmul.f32 0.2, %v3568_v41  ;;  %v3955_v62 = vmul.f32 0.2, %v3443_v54 }
 0x16c   :  { %v3569_v8 = vld [vmem:[#allocation2 + $0x548] sm:$0xff]  ;;  %5491 = vst.msk [vmem:[%s10166_s3 + $0xa8] sm:$0xf] %vm5448_vm3, %v6265_v19  ;;  %v4208_v14 = vsel %vm3696_vm14, %v3440_v16, %v3952_v59  ;;  %vm3827_vm2 = vcmp.ge.f32.partialorder %v3571_v4, 0.0  ;;  %v4083_v48 = vmul.f32 0.2, %v3571_v4 }
 0x16d   :  { %vm3697_vm4 = vcmp.ge.f32.partialorder %v3441_v13, 0.0  ;;  %v3446_v35 = vld [vmem:[#allocation2 + $0x170] sm:$0xff]  ;;  %5619 = vst.msk [vmem:[%s10166_s3 + $0x2a8] sm:$0xf] %vm5448_vm3, %v6393_v40  ;;  %v6263_v44 = vpack.c.bf16 %v4208_v14, %v4208_v14  ;;  %v4336_v51 = vsel %vm3824_vm15, %v3568_v41, %v4080_v33  ;;  %v4211_v11 = vsel %vm3699_vm1, %v3443_v54, %v3955_v62  ;;  %v8772_v31 = vpop.f32.mrb[59].mxu0  ;;  %v3444_v60 = vld [vmem:[#allocation2 + $0x160] sm:$0xff] }
 0x16e   :  { %v3953_v43 = vmul.f32 0.2, %v3441_v13  ;;  %v3574_v27 = vld [vmem:[#allocation2 + $0x570] sm:$0xff]  ;;  %v6391_v32 = vpack.c.bf16 %v4336_v51, %v4336_v51  ;;  %v6266_v45 = vpack.c.bf16 %v4211_v11, %v4211_v11  ;;  %v4339_v63 = vsel %vm3827_vm2, %v3571_v4, %v4083_v48  ;;  %v3572_v1 = vld [vmem:[#allocation2 + $0x560] sm:$0xff]  ;;  %v3447_v49 = vld [vmem:[#allocation2 + $0x178] sm:$0xff]  ;;  %v8774_v52 = vpop.f32.mrb[59].mxu1 }
 0x16f   :  { %vm3825_vm5 = vcmp.ge.f32.partialorder %v3569_v8, 0.0  ;;  %v8776_v36 = vpop.f32.mrb[60].mxu0  ;;  %5489 = vst.msk [vmem:[%s10166_s3 + $0xa0] sm:$0xf] %vm5448_vm3, %v6263_v44  ;;  %v6394_v9 = vpack.c.bf16 %v4339_v63, %v4339_v63  ;;  %v4081_v38 = vmul.f32 0.2, %v3569_v8 }
 0x170   :  { %v4209_v37 = vsel %vm3697_vm4, %v3441_v13, %v3953_v43  ;;  %vm3702_vm6 = vcmp.ge.f32.partialorder %v3446_v35, 0.0  ;;  %v3575_v0 = vld [vmem:[#allocation2 + $0x578] sm:$0xff]  ;;  %v8783_v42 = vpop.f32.mrb[60].mxu1  ;;  %v8785_v20 = vpop.f32.mrb[61].mxu0  ;;  %5617 = vst.msk [vmem:[%s10166_s3 + $0x2a0] sm:$0xf] %vm5448_vm3, %v6391_v32 }
 0x171   :  { %5492 = vst.msk [vmem:[%s10166_s3 + $0xac] sm:$0xf] %vm5448_vm3, %v6266_v45  ;;  %v6264_v46 = vpack.c.bf16 %v4209_v37, %v4209_v37  ;;  %v3958_v47 = vmul.f32 0.2, %v3446_v35  ;;  %vm3830_vm7 = vcmp.ge.f32.partialorder %v3574_v27, 0.0  ;;  %v8795_v6 = vpop.f32.mrb[61].mxu1  ;;  %v4337_v50 = vsel %vm3825_vm5, %v3569_v8, %v4081_v38 }
 0x172   :  { %v4086_v55 = vmul.f32 0.2, %v3574_v27  ;;  %5620 = vst.msk [vmem:[%s10166_s3 + $0x2ac] sm:$0xf] %vm5448_vm3, %v6394_v9  ;;  %vm3700_vm8 = vcmp.ge.f32.partialorder %v3444_v60, 0.0  ;;  %vm3828_vm9 = vcmp.ge.f32.partialorder %v3572_v1, 0.0  ;;  %v6392_v2 = vpack.c.bf16 %v4337_v50, %v4337_v50 }
 0x173   :  { %v3956_v28 = vmul.f32 0.2, %v3444_v60  ;;  %v8802_v7 = vpop.f32.mrb[62].mxu0  ;;  %v8804_v61 = vpop.f32.mrb[62].mxu1  ;;  %5490 = vst.msk [vmem:[%s10166_s3 + $0xa4] sm:$0xf] %vm5448_vm3, %v6264_v46  ;;  %v4214_v10 = vsel %vm3702_vm6, %v3446_v35, %v3958_v47 }
 0x174   :  { %v4342_v16 = vsel %vm3830_vm7, %v3574_v27, %v4086_v55  ;;  %v4084_v34 = vmul.f32 0.2, %v3572_v1  ;;  %v3445_v39 = vld [vmem:[#allocation2 + $0x168] sm:$0xff]  ;;  %v8811_v41 = vpop.f32.mrb[63].mxu0  ;;  %v8813_v53 = vpop.f32.mrb[63].mxu1  ;;  %v6269_v15 = vpack.c.bf16 %v4214_v10, %v4214_v10  ;;  %vm3703_vm10 = vcmp.ge.f32.partialorder %v3447_v49, 0.0 }
 0x175   :  { %v6397_v21 = vpack.c.bf16 %v4342_v16, %v4342_v16  ;;  %v4212_v22 = vsel %vm3700_vm8, %v3444_v60, %v3956_v28  ;;  %v3573_v54 = vld [vmem:[#allocation2 + $0x568] sm:$0xff]  ;;  %v3450_v5 = vld [vmem:[#allocation2 + $0x190] sm:$0xff]  ;;  %v8815_v26 = vpop.f32.mrb[64].mxu0  ;;  %v8817_v4 = vpop.f32.mrb[64].mxu1  ;;  %5618 = vst.msk [vmem:[%s10166_s3 + $0x2a4] sm:$0xf] %vm5448_vm3, %v6392_v2 }
 0x176   :  { %v3578_v57 = vld [vmem:[#allocation2 + $0x590] sm:$0xff]  ;;  %v6267_v13 = vpack.c.bf16 %v4212_v22, %v4212_v22  ;;  %v4340_v19 = vsel %vm3828_vm9, %v3572_v1, %v4084_v34  ;;  %v3959_v58 = vmul.f32 0.2, %v3447_v49  ;;  %vm3831_vm11 = vcmp.ge.f32.partialorder %v3575_v0, 0.0  ;;  %v3448_v59 = vld [vmem:[#allocation2 + $0x180] sm:$0xff]  ;;  %v8824_v40 = vpop.f32.mrb[65].mxu0 }
 0x177   :  { %v8826_v33 = vpop.f32.mrb[65].mxu1  ;;  %5495 = vst.msk [vmem:[%s10166_s3 + $0xb8] sm:$0xf] %vm5448_vm3, %v6269_v15  ;;  %5623 = vst.msk [vmem:[%s10166_s3 + $0x2b8] sm:$0xf] %vm5448_vm3, %v6397_v21  ;;  %v6395_v62 = vpack.c.bf16 %v4340_v19, %v4340_v19  ;;  %vm3701_vm12 = vcmp.ge.f32.partialorder %v3445_v39, 0.0 }
 0x178   :  { %v4087_v8 = vmul.f32 0.2, %v3575_v0  ;;  %v3957_v14 = vmul.f32 0.2, %v3445_v39  ;;  %v8836_v48 = vpop.f32.mrb[66].mxu0  ;;  %v4215_v35 = vsel %vm3703_vm10, %v3447_v49, %v3959_v58  ;;  %vm3829_vm13 = vcmp.ge.f32.partialorder %v3573_v54, 0.0 }
 0x179   :  { %5493 = vst.msk [vmem:[%s10166_s3 + $0xb0] sm:$0xf] %vm5448_vm3, %v6267_v13  ;;  %v4085_v44 = vmul.f32 0.2, %v3573_v54  ;;  %vm3706_vm14 = vcmp.ge.f32.partialorder %v3450_v5, 0.0  ;;  %v8843_v51 = vpop.f32.mrb[66].mxu1  ;;  %v6270_v43 = vpack.c.bf16 %v4215_v35, %v4215_v35 }
 0x17a   :  { %v8845_v11 = vpop.f32.mrb[67].mxu0  ;;  %5621 = vst.msk [vmem:[%s10166_s3 + $0x2b0] sm:$0xf] %vm5448_vm3, %v6395_v62  ;;  %v4343_v27 = vsel %vm3831_vm11, %v3575_v0, %v4087_v8  ;;  %v4213_v32 = vsel %vm3701_vm12, %v3445_v39, %v3957_v14  ;;  %v3962_v45 = vmul.f32 0.2, %v3450_v5  ;;  %v3576_v63 = vld [vmem:[#allocation2 + $0x580] sm:$0xff] }
 0x17b   :  { %v8852_v60 = vpop.f32.mrb[67].mxu1  ;;  %v6398_v1 = vpack.c.bf16 %v4343_v27, %v4343_v27  ;;  %v6268_v49 = vpack.c.bf16 %v4213_v32, %v4213_v32  ;;  %v4341_v9 = vsel %vm3829_vm13, %v3573_v54, %v4085_v44  ;;  %vm3834_vm15 = vcmp.ge.f32.partialorder %v3578_v57, 0.0  ;;  %v3451_v37 = vld [vmem:[#allocation2 + $0x198] sm:$0xff]  ;;  %v3449_v46 = vld [vmem:[#allocation2 + $0x188] sm:$0xff]  ;;  %5496 = vst.msk [vmem:[%s10166_s3 + $0xbc] sm:$0xf] %vm5448_vm3, %v6270_v43 }
 0x17c   :  { %v3579_v38 = vld [vmem:[#allocation2 + $0x598] sm:$0xff]  ;;  %v6396_v47 = vpack.c.bf16 %v4341_v9, %v4341_v9  ;;  %v4218_v0 = vsel %vm3706_vm14, %v3450_v5, %v3962_v45  ;;  %v4090_v55 = vmul.f32 0.2, %v3578_v57  ;;  %vm3704_vm1 = vcmp.ge.f32.partialorder %v3448_v59, 0.0  ;;  %v3577_v50 = vld [vmem:[#allocation2 + $0x588] sm:$0xff]  ;;  %v8859_v28 = vpop.f32.mrb[68].mxu0 }
 0x17d   :  { %v8861_v2 = vpop.f32.mrb[68].mxu1  ;;  %5624 = vst.msk [vmem:[%s10166_s3 + $0x2bc] sm:$0xf] %vm5448_vm3, %v6398_v1  ;;  %5494 = vst.msk [vmem:[%s10166_s3 + $0xb4] sm:$0xf] %vm5448_vm3, %v6268_v49  ;;  %v6273_v10 = vpack.c.bf16 %v4218_v0, %v4218_v0  ;;  %vm3832_vm2 = vcmp.ge.f32.partialorder %v3576_v63, 0.0 }
 0x17e   :  { %v3960_v16 = vmul.f32 0.2, %v3448_v59  ;;  %v4088_v34 = vmul.f32 0.2, %v3576_v63  ;;  %v8871_v39 = vpop.f32.mrb[69].mxu0  ;;  %v4346_v15 = vsel %vm3834_vm15, %v3578_v57, %v4090_v55  ;;  %vm3707_vm4 = vcmp.ge.f32.partialorder %v3451_v37, 0.0 }
 0x17f   :  { %5622 = vst.msk [vmem:[%s10166_s3 + $0x2b4] sm:$0xf] %vm5448_vm3, %v6396_v47  ;;  %v3963_v21 = vmul.f32 0.2, %v3451_v37  ;;  %vm3835_vm5 = vcmp.ge.f32.partialorder %v3579_v38, 0.0  ;;  %v8878_v22 = vpop.f32.mrb[69].mxu1  ;;  %v6401_v5 = vpack.c.bf16 %v4346_v15, %v4346_v15 }
 0x180   :  { %v8880_v54 = vpop.f32.mrb[70].mxu0  ;;  %5499 = vst.msk [vmem:[%s10166_s3 + $0xc8] sm:$0xf] %vm5448_vm3, %v6273_v10  ;;  %v4216_v13 = vsel %vm3704_vm1, %v3448_v59, %v3960_v16  ;;  %v4344_v19 = vsel %vm3832_vm2, %v3576_v63, %v4088_v34  ;;  %v4091_v58 = vmul.f32 0.2, %v3579_v38  ;;  %v3454_v62 = vld [vmem:[#allocation2 + $0x1b0] sm:$0xff] }
 0x181   :  { %v8887_v8 = vpop.f32.mrb[70].mxu1  ;;  %v8889_v57 = vpop.f32.mrb[71].mxu0  ;;  %v6271_v14 = vpack.c.bf16 %v4216_v13, %v4216_v13  ;;  %v6399_v35 = vpack.c.bf16 %v4344_v19, %v4344_v19  ;;  %v4219_v44 = vsel %vm3707_vm4, %v3451_v37, %v3963_v21  ;;  %vm3705_vm6 = vcmp.ge.f32.partialorder %v3449_v46, 0.0  ;;  %v3582_v43 = vld [vmem:[#allocation2 + $0x5b0] sm:$0xff]  ;;  %v3452_v27 = vld [vmem:[#allocation2 + $0x1a0] sm:$0xff]  ;;  %v338_v1 = vld [vmem:[#allocation2 + $0x1b8] sm:$0xff] }
 0x182   :  { %10167 = vst [vmem:[#allocation3_spill] sm:$0xff] %v8887_v8  ;;  %10168 = vst [vmem:[#allocation4_spill] sm:$0xff] %v8889_v57  ;;  %v8891_v32 = vpop.f32.mrb[71].mxu1  ;;  %v6274_v59 = vpack.c.bf16 %v4219_v44, %v4219_v44  ;;  %v4347_v45 = vsel %vm3835_vm5, %v3579_v38, %v4091_v58  ;;  %v3961_v63 = vmul.f32 0.2, %v3449_v46  ;;  %vm3833_vm7 = vcmp.ge.f32.partialorder %v3577_v50, 0.0 }
 0x183   :  { %10169 = vst [vmem:[#allocation5_spill] sm:$0xff] %v8891_v32  ;;  %5627 = vst.msk [vmem:[%s10166_s3 + $0x2c8] sm:$0xf] %vm5448_vm3, %v6401_v5  ;;  %v6402_v49 = vpack.c.bf16 %v4347_v45, %v4347_v45  ;;  %v4089_v9 = vmul.f32 0.2, %v3577_v50  ;;  %vm3710_vm8 = vcmp.ge.f32.partialorder %v3454_v62, 0.0 }
 0x184   :  { %5497 = vst.msk [vmem:[%s10166_s3 + $0xc0] sm:$0xf] %vm5448_vm3, %v6271_v14  ;;  %5625 = vst.msk [vmem:[%s10166_s3 + $0x2c0] sm:$0xf] %vm5448_vm3, %v6399_v35  ;;  %v3966_v37 = vmul.f32 0.2, %v3454_v62  ;;  %v4217_v10 = vsel %vm3705_vm6, %v3449_v46, %v3961_v63 }
 0x185   :  { %v3580_v47 = vld [vmem:[#allocation2 + $0x5a0] sm:$0xff]  ;;  %v466_v0 = vld [vmem:[#allocation2 + $0x5b8] sm:$0xff]  ;;  %v336_v38 = vld [vmem:[#allocation2 + $0x1a8] sm:$0xff]  ;;  %5500 = vst.msk [vmem:[%s10166_s3 + $0xcc] sm:$0xf] %vm5448_vm3, %v6274_v59  ;;  %vm3838_vm9 = vcmp.ge.f32.partialorder %v3582_v43, 0.0  ;;  %v6272_v5 = vpack.c.bf16 %v4217_v10, %v4217_v10  ;;  %v4345_v13 = vsel %vm3833_vm7, %v3577_v50, %v4089_v9 }
 0x186   :  { %v464_v55 = vld [vmem:[#allocation2 + $0x5a8] sm:$0xff]  ;;  %v4094_v16 = vmul.f32 0.2, %v3582_v43  ;;  %vm3708_vm10 = vcmp.ge.f32.partialorder %v3452_v27, 0.0  ;;  %v341_v34 = vld [vmem:[#allocation2 + $0x1d0] sm:$0xff]  ;;  %v339_v21 = vld [vmem:[#allocation2 + $0x1c0] sm:$0xff]  ;;  %v4222_v19 = vsel %vm3710_vm8, %v3454_v62, %v3966_v37  ;;  %v6400_v45 = vpack.c.bf16 %v4345_v13, %v4345_v13 }
 0x187   :  { %v469_v15 = vld [vmem:[#allocation2 + $0x5d0] sm:$0xff]  ;;  %5628 = vst.msk [vmem:[%s10166_s3 + $0x2cc] sm:$0xf] %vm5448_vm3, %v6402_v49  ;;  %v3964_v58 = vmul.f32 0.2, %v3452_v27  ;;  %v467_v14 = vld [vmem:[#allocation2 + $0x5c0] sm:$0xff]  ;;  %v6277_v63 = vpack.c.bf16 %v4222_v19, %v4222_v19 }
 0x188   :  { %v342_v35 = vld [vmem:[#allocation2 + $0x1d8] sm:$0xff]  ;;  %v8917_v44 = vpop.f32.mrb[72].mxu0  ;;  %v8919_v59 = vpop.f32.mrb[72].mxu1  ;;  %v4350_v32 = vsel %vm3838_vm9, %v3582_v43, %v4094_v16  ;;  %vm3836_vm11 = vcmp.ge.f32.partialorder %v3580_v47, 0.0  ;;  %v340_v57 = vld [vmem:[#allocation2 + $0x1c8] sm:$0xff]  ;;  %v345_v10 = vld [vmem:[#allocation2 + $0x1f0] sm:$0xff]  ;;  %v2940_v43 = vadd.f32 %v8664_v18, %v338_v1  ;;  %v2938_v18 = vadd.f32 %v8676_v25, %v336_v38 }
 0x189   :  { %v470_v46 = vld [vmem:[#allocation2 + $0x5d8] sm:$0xff]  ;;  %10170 = vst [vmem:[#allocation6_spill] sm:$0xff] %v8917_v44  ;;  %10171 = vst [vmem:[#allocation7_spill] sm:$0xff] %v8919_v59  ;;  %v468_v49 = vld [vmem:[#allocation2 + $0x5c8] sm:$0xff]  ;;  %v8922_v50 = vpop.f32.mrb[73].mxu0  ;;  %v8924_v62 = vpop.f32.mrb[73].mxu1  ;;  %v6405_v9 = vpack.c.bf16 %v4350_v32, %v4350_v32  ;;  %v4220_v37 = vsel %vm3708_vm10, %v3452_v27, %v3964_v58  ;;  %v3068_v32 = vadd.f32 %v8666_v24, %v466_v0 }
 0x18a   :  { %v473_v8 = vld [vmem:[#allocation2 + $0x5f0] sm:$0xff]  ;;  %10172 = vst [vmem:[#allocation8_spill] sm:$0xff] %v8924_v62  ;;  %5498 = vst.msk [vmem:[%s10166_s3 + $0xc4] sm:$0xf] %vm5448_vm3, %v6272_v5  ;;  %v4092_v13 = vmul.f32 0.2, %v3580_v47  ;;  %v6275_v27 = vpack.c.bf16 %v4220_v37, %v4220_v37  ;;  %v3066_v1 = vadd.f32 %v8678_v17, %v464_v55  ;;  %v2943_v24 = vadd.f32 %v8714_v3, %v341_v34 }
 0x18b   :  { %v343_v16 = vld [vmem:[#allocation2 + $0x1e0] sm:$0xff]  ;;  %v8932_v59 = vpop.f32.mrb[74].mxu0  ;;  %v8934_v44 = vpop.f32.mrb[74].mxu1  ;;  %5626 = vst.msk [vmem:[%s10166_s3 + $0x2c4] sm:$0xf] %vm5448_vm3, %v6400_v45  ;;  %v346_v5 = vld [vmem:[#allocation2 + $0x1f8] sm:$0xff]  ;;  %v3071_v25 = vadd.f32 %v8716_v30, %v469_v15  ;;  %v2941_v17 = vadd.f32 %v8718_v23, %v339_v21  ;;  %v3069_v3 = vadd.f32 %v8743_v56, %v467_v14  ;;  %v2944_v30 = vadd.f32 %v8745_v29, %v342_v35 }
 0x18c   :  { %v471_v19 = vld [vmem:[#allocation2 + $0x5e0] sm:$0xff]  ;;  %10173 = vst [vmem:[#allocation9_spill] sm:$0xff] %v8932_v59  ;;  %10174 = vst [vmem:[#allocation10_spill] sm:$0xff] %v8934_v44  ;;  %v474_v58 = vld [vmem:[#allocation2 + $0x5f8] sm:$0xff]  ;;  %v8947_v59 = vpop.f32.mrb[75].mxu0  ;;  %v8949_v62 = vpop.f32.mrb[75].mxu1  ;;  %v4348_v45 = vsel %vm3836_vm11, %v3580_v47, %v4092_v13  ;;  %v3072_v23 = vadd.f32 %v8747_v12, %v470_v46  ;;  %v2942_v21 = vadd.f32 %v8772_v31, %v340_v57 }
 0x18d   :  { %5503 = vst.msk [vmem:[%s10166_s3 + $0xd8] sm:$0xf] %vm5448_vm3, %v6277_v63  ;;  %v344_v44 = vld [vmem:[#allocation2 + $0x1e8] sm:$0xff]  ;;  %5631 = vst.msk [vmem:[%s10166_s3 + $0x2d8] sm:$0xf] %vm5448_vm3, %v6405_v9  ;;  %v349_v38 = vld [vmem:[#allocation2 + $0x210] sm:$0xff]  ;;  %v6403_v63 = vpack.c.bf16 %v4348_v45, %v4348_v45  ;;  %v3070_v9 = vadd.f32 %v8774_v52, %v468_v49  ;;  %v2947_v37 = vadd.f32 %v8776_v36, %v345_v10 }
 0x18e   :  { %3196 = vst.msk [vmem:[#allocation2 + $0x1b8] sm:$0xff] %vm26_vm0, %v2940_v43  ;;  %v472_v0 = vld [vmem:[#allocation2 + $0x5e8] sm:$0xff]  ;;  %v477_v55 = vld [vmem:[#allocation2 + $0x610] sm:$0xff]  ;;  %3324 = vst.msk [vmem:[#allocation2 + $0x5b8] sm:$0xff] %vm26_vm0, %v3068_v32  ;;  %v3075_v56 = vadd.f32 %v8783_v42, %v473_v8  ;;  %v2945_v31 = vadd.f32 %v8785_v20, %v343_v16  ;;  %v3073_v52 = vadd.f32 %v8795_v6, %v471_v19  ;;  %v8996_v13 = vpop.f32.mrb[76].mxu0  ;;  %v8998_v43 = vpop.f32.mrb[76].mxu1 }
 0x18f   :  { %5501 = vst.msk [vmem:[%s10166_s3 + $0xd0] sm:$0xf] %vm5448_vm3, %v6275_v27  ;;  %v347_v47 = vld [vmem:[#allocation2 + $0x200] sm:$0xff]  ;;  %v350_v15 = vld [vmem:[#allocation2 + $0x218] sm:$0xff]  ;;  %v348_v14 = vld [vmem:[#allocation2 + $0x208] sm:$0xff]  ;;  %v2948_v36 = vadd.f32 %v8802_v7, %v346_v5  ;;  %v3076_v42 = vadd.f32 %v8804_v61, %v474_v58  ;;  %v2946_v46 = vadd.f32 %v8811_v41, %v344_v44  ;;  %v3074_v20 = vadd.f32 %v8813_v53, %v472_v0  ;;  %v9008_v19 = vpop.f32.mrb[77].mxu0 }
 0x190   :  { %3194 = vst.msk [vmem:[#allocation2 + $0x1a8] sm:$0xff] %vm26_vm0, %v2938_v18  ;;  %3322 = vst.msk [vmem:[#allocation2 + $0x5a8] sm:$0xff] %vm26_vm0, %v3066_v1  ;;  %v475_v34 = vld [vmem:[#allocation2 + $0x600] sm:$0xff]  ;;  %v478_v29 = vld [vmem:[#allocation2 + $0x618] sm:$0xff]  ;;  %v2951_v6 = vadd.f32 %v8815_v26, %v349_v38  ;;  %v3079_v7 = vadd.f32 %v8817_v4, %v477_v55  ;;  %v2949_v41 = vadd.f32 %v8824_v40, %v347_v47  ;;  %v9010_v27 = vpop.f32.mrb[77].mxu1  ;;  %v9020_v32 = vpop.f32.mrb[78].mxu0 }
 0x191   :  { %3199 = vst.msk [vmem:[#allocation2 + $0x1d0] sm:$0xff] %vm26_vm0, %v2943_v24  ;;  %3327 = vst.msk [vmem:[#allocation2 + $0x5d0] sm:$0xff] %vm26_vm0, %v3071_v25  ;;  %v476_v12 = vld [vmem:[#allocation2 + $0x608] sm:$0xff]  ;;  %v353_v8 = vld [vmem:[#allocation2 + $0x230] sm:$0xff]  ;;  %v3077_v53 = vadd.f32 %v8826_v33, %v475_v34  ;;  %v2952_v26 = vadd.f32 %v8836_v48, %v350_v15  ;;  %v3080_v4 = vadd.f32 %v8843_v51, %v478_v29  ;;  %v9022_v18 = vpop.f32.mrb[78].mxu1  ;;  %v9032_v45 = vpop.f32.mrb[79].mxu0 }
 0x192   :  { %3197 = vst.msk [vmem:[#allocation2 + $0x1c0] sm:$0xff] %vm26_vm0, %v2941_v17  ;;  %3325 = vst.msk [vmem:[#allocation2 + $0x5c0] sm:$0xff] %vm26_vm0, %v3069_v3  ;;  %v481_v57 = vld [vmem:[#allocation2 + $0x630] sm:$0xff]  ;;  %v351_v35 = vld [vmem:[#allocation2 + $0x220] sm:$0xff]  ;;  %v2950_v40 = vadd.f32 %v8845_v11, %v348_v14  ;;  %v3078_v33 = vadd.f32 %v8852_v60, %v476_v12  ;;  %v2955_v48 = vadd.f32 %v8859_v28, %v353_v8  ;;  %v9034_v24 = vpop.f32.mrb[79].mxu1  ;;  %v9053_v8 = vpop.f32.mrb[80].mxu0 }
 0x193   :  { %5629 = vst.msk [vmem:[%s10166_s3 + $0x2d0] sm:$0xf] %vm5448_vm3, %v6403_v63  ;;  %v479_v61 = vld [vmem:[#allocation2 + $0x620] sm:$0xff]  ;;  %v354_v49 = vld [vmem:[#allocation2 + $0x238] sm:$0xff]  ;;  %v352_v44 = vld [vmem:[#allocation2 + $0x228] sm:$0xff]  ;;  %v3083_v51 = vadd.f32 %v8861_v2, %v481_v57  ;;  %v2953_v11 = vadd.f32 %v8871_v39, %v351_v35 }
 0x194   :  { %3200 = vst.msk [vmem:[#allocation2 + $0x1d8] sm:$0xff] %vm26_vm0, %v2944_v30  ;;  %3328 = vst.msk [vmem:[#allocation2 + $0x5d8] sm:$0xff] %vm26_vm0, %v3072_v23  ;;  %v482_v10 = vld [vmem:[#allocation2 + $0x638] sm:$0xff]  ;;  %v480_v16 = vld [vmem:[#allocation2 + $0x628] sm:$0xff]  ;;  %v3081_v60 = vadd.f32 %v8878_v22, %v479_v61  ;;  %v2956_v28 = vadd.f32 %v8880_v54, %v354_v49 }
 0x195   :  { %3198 = vst.msk [vmem:[#allocation2 + $0x1c8] sm:$0xff] %vm26_vm0, %v2942_v21  ;;  %3326 = vst.msk [vmem:[#allocation2 + $0x5c8] sm:$0xff] %vm26_vm0, %v3070_v9  ;;  %v3455_v1 = vld [vmem:[#allocation2 + $0x1b8] sm:$0xff]  ;;  %v10175_v2 = vld [vmem:[#allocation3_spill] sm:$0xff] }
 0x196   :  { %3203 = vst.msk [vmem:[#allocation2 + $0x1f0] sm:$0xff] %vm26_vm0, %v2947_v37  ;;  %3331 = vst.msk [vmem:[#allocation2 + $0x5f0] sm:$0xff] %vm26_vm0, %v3075_v56  ;;  %v3084_v5 = vadd.f32 %v10175_v2, %v482_v10  ;;  %v357_v58 = vld [vmem:[#allocation2 + $0x250] sm:$0xff]  ;;  %vm3711_vm12 = vcmp.ge.f32.partialorder %v3455_v1, 0.0  ;;  %v3967_v25 = vmul.f32 0.2, %v3455_v1 }
 0x197   :  { %3201 = vst.msk [vmem:[#allocation2 + $0x1e0] sm:$0xff] %vm26_vm0, %v2945_v31  ;;  %3329 = vst.msk [vmem:[#allocation2 + $0x5e0] sm:$0xff] %vm26_vm0, %v3073_v52  ;;  %v3583_v17 = vld [vmem:[#allocation2 + $0x5b8] sm:$0xff]  ;;  %v3453_v0 = vld [vmem:[#allocation2 + $0x1a8] sm:$0xff] }
 0x198   :  { %3204 = vst.msk [vmem:[#allocation2 + $0x1f8] sm:$0xff] %vm26_vm0, %v2948_v36  ;;  %3332 = vst.msk [vmem:[#allocation2 + $0x5f8] sm:$0xff] %vm26_vm0, %v3076_v42  ;;  %v3581_v38 = vld [vmem:[#allocation2 + $0x5a8] sm:$0xff]  ;;  %v10177_v54 = vld [vmem:[#allocation5_spill] sm:$0xff]  ;;  %vm3839_vm13 = vcmp.ge.f32.partialorder %v3583_v17, 0.0  ;;  %vm3709_vm14 = vcmp.ge.f32.partialorder %v3453_v0, 0.0  ;;  %v4223_v30 = vsel %vm3711_vm12, %v3455_v1, %v3967_v25 }
 0x199   :  { %3202 = vst.msk [vmem:[#allocation2 + $0x1e8] sm:$0xff] %vm26_vm0, %v2946_v46  ;;  %3330 = vst.msk [vmem:[#allocation2 + $0x5e8] sm:$0xff] %vm26_vm0, %v3074_v20  ;;  %v10176_v39 = vld [vmem:[#allocation4_spill] sm:$0xff]  ;;  %v3082_v55 = vadd.f32 %v10177_v54, %v480_v16  ;;  %v4095_v63 = vmul.f32 0.2, %v3583_v17  ;;  %vm3837_vm15 = vcmp.ge.f32.partialorder %v3581_v38, 0.0  ;;  %v6278_v37 = vpack.c.bf16 %v4223_v30, %v4223_v30 }
 0x19a   :  { %3207 = vst.msk [vmem:[#allocation2 + $0x210] sm:$0xff] %vm26_vm0, %v2951_v6  ;;  %3335 = vst.msk [vmem:[#allocation2 + $0x610] sm:$0xff] %vm26_vm0, %v3079_v7  ;;  %v2954_v22 = vadd.f32 %v10176_v39, %v352_v44  ;;  %v3965_v3 = vmul.f32 0.2, %v3453_v0  ;;  %v4093_v23 = vmul.f32 0.2, %v3581_v38 }
 0x19b   :  { %3205 = vst.msk [vmem:[#allocation2 + $0x200] sm:$0xff] %vm26_vm0, %v2949_v41  ;;  %3333 = vst.msk [vmem:[#allocation2 + $0x600] sm:$0xff] %vm26_vm0, %v3077_v53  ;;  %v3458_v47 = vld [vmem:[#allocation2 + $0x1d0] sm:$0xff]  ;;  %v3456_v15 = vld [vmem:[#allocation2 + $0x1c0] sm:$0xff]  ;;  %v4351_v56 = vsel %vm3839_vm13, %v3583_v17, %v4095_v63 }
 0x19c   :  { %3208 = vst.msk [vmem:[#allocation2 + $0x218] sm:$0xff] %vm26_vm0, %v2952_v26  ;;  %3336 = vst.msk [vmem:[#allocation2 + $0x618] sm:$0xff] %vm26_vm0, %v3080_v4  ;;  %v3586_v34 = vld [vmem:[#allocation2 + $0x5d0] sm:$0xff]  ;;  %v10178_v21 = vld [vmem:[#allocation6_spill] sm:$0xff]  ;;  %v4221_v29 = vsel %vm3709_vm14, %v3453_v0, %v3965_v3  ;;  %vm3714_vm1 = vcmp.ge.f32.partialorder %v3458_v47, 0.0  ;;  %v6406_v12 = vpack.c.bf16 %v4351_v56, %v4351_v56  ;;  %v4349_v52 = vsel %vm3837_vm15, %v3581_v38, %v4093_v23 }
 0x19d   :  { %3206 = vst.msk [vmem:[#allocation2 + $0x208] sm:$0xff] %vm26_vm0, %v2950_v40  ;;  %3334 = vst.msk [vmem:[#allocation2 + $0x608] sm:$0xff] %vm26_vm0, %v3078_v33  ;;  %v2959_v9 = vadd.f32 %v10178_v21, %v357_v58  ;;  %v3584_v14 = vld [vmem:[#allocation2 + $0x5c0] sm:$0xff]  ;;  %v6276_v31 = vpack.c.bf16 %v4221_v29, %v4221_v29  ;;  %v3970_v36 = vmul.f32 0.2, %v3458_v47  ;;  %v3459_v42 = vld [vmem:[#allocation2 + $0x1d8] sm:$0xff]  ;;  %v6404_v57 = vpack.c.bf16 %v4349_v52, %v4349_v52 }
 0x19e   :  { %3211 = vst.msk [vmem:[#allocation2 + $0x230] sm:$0xff] %vm26_vm0, %v2955_v48  ;;  %3339 = vst.msk [vmem:[#allocation2 + $0x630] sm:$0xff] %vm26_vm0, %v3083_v51  ;;  %vm3842_vm2 = vcmp.ge.f32.partialorder %v3586_v34, 0.0  ;;  %v4098_v35 = vmul.f32 0.2, %v3586_v34  ;;  %vm3712_vm4 = vcmp.ge.f32.partialorder %v3456_v15, 0.0 }
 0x19f   :  { %3209 = vst.msk [vmem:[#allocation2 + $0x220] sm:$0xff] %vm26_vm0, %v2953_v11  ;;  %3337 = vst.msk [vmem:[#allocation2 + $0x620] sm:$0xff] %vm26_vm0, %v3081_v60  ;;  %v3587_v46 = vld [vmem:[#allocation2 + $0x5d8] sm:$0xff]  ;;  %v4226_v20 = vsel %vm3714_vm1, %v3458_v47, %v3970_v36  ;;  %v3968_v6 = vmul.f32 0.2, %v3456_v15  ;;  %vm3840_vm5 = vcmp.ge.f32.partialorder %v3584_v14, 0.0 }
 0x1a0   :  { %3212 = vst.msk [vmem:[#allocation2 + $0x238] sm:$0xff] %vm26_vm0, %v2956_v28  ;;  %3340 = vst.msk [vmem:[#allocation2 + $0x638] sm:$0xff] %vm26_vm0, %v3084_v5  ;;  %v4096_v7 = vmul.f32 0.2, %v3584_v14  ;;  %v6281_v61 = vpack.c.bf16 %v4226_v20, %v4226_v20  ;;  %v4354_v49 = vsel %vm3842_vm2, %v3586_v34, %v4098_v35  ;;  %vm3715_vm6 = vcmp.ge.f32.partialorder %v3459_v42, 0.0  ;;  %v3457_v41 = vld [vmem:[#allocation2 + $0x1c8] sm:$0xff] }
 0x1a1   :  { %3210 = vst.msk [vmem:[#allocation2 + $0x228] sm:$0xff] %vm26_vm0, %v2954_v22  ;;  %3338 = vst.msk [vmem:[#allocation2 + $0x628] sm:$0xff] %vm26_vm0, %v3082_v55  ;;  %v3971_v10 = vmul.f32 0.2, %v3459_v42  ;;  %v3585_v53 = vld [vmem:[#allocation2 + $0x5c8] sm:$0xff]  ;;  %v6409_v26 = vpack.c.bf16 %v4354_v49, %v4354_v49  ;;  %v4224_v4 = vsel %vm3712_vm4, %v3456_v15, %v3968_v6  ;;  %vm3843_vm7 = vcmp.ge.f32.partialorder %v3587_v46, 0.0 }
 0x1a2   :  { %3215 = vst.msk [vmem:[#allocation2 + $0x250] sm:$0xff] %vm26_vm0, %v2959_v9  ;;  %v4352_v44 = vsel %vm3840_vm5, %v3584_v14, %v4096_v7  ;;  %v3462_v16 = vld [vmem:[#allocation2 + $0x1f0] sm:$0xff]  ;;  %v9073_v40 = vpop.f32.mrb[80].mxu1  ;;  %v9075_v33 = vpop.f32.mrb[81].mxu0  ;;  %v6279_v48 = vpack.c.bf16 %v4224_v4, %v4224_v4  ;;  %v4099_v11 = vmul.f32 0.2, %v3587_v46 }
 0x1a3   :  { %5504 = vst.msk [vmem:[%s10166_s3 + $0xdc] sm:$0xf] %vm5448_vm3, %v6278_v37  ;;  %5632 = vst.msk [vmem:[%s10166_s3 + $0x2dc] sm:$0xf] %vm5448_vm3, %v6406_v12  ;;  %v6407_v51 = vpack.c.bf16 %v4352_v44, %v4352_v44  ;;  %v4227_v1 = vsel %vm3715_vm6, %v3459_v42, %v3971_v10  ;;  %v3590_v60 = vld [vmem:[#allocation2 + $0x5f0] sm:$0xff]  ;;  %v9081_v28 = vpop.f32.mrb[81].mxu1 }
 0x1a4   :  { %5502 = vst.msk [vmem:[%s10166_s3 + $0xd4] sm:$0xf] %vm5448_vm3, %v6276_v31  ;;  %5630 = vst.msk [vmem:[%s10166_s3 + $0x2d4] sm:$0xf] %vm5448_vm3, %v6404_v57  ;;  %v6282_v2 = vpack.c.bf16 %v4227_v1, %v4227_v1  ;;  %vm3713_vm8 = vcmp.ge.f32.partialorder %v3457_v41, 0.0  ;;  %vm3841_vm9 = vcmp.ge.f32.partialorder %v3585_v53, 0.0  ;;  %v4355_v25 = vsel %vm3843_vm7, %v3587_v46, %v4099_v11 }
 0x1a5   :  { %5507 = vst.msk [vmem:[%s10166_s3 + $0xe8] sm:$0xf] %vm5448_vm3, %v6281_v61  ;;  %5635 = vst.msk [vmem:[%s10166_s3 + $0x2e8] sm:$0xf] %vm5448_vm3, %v6409_v26  ;;  %v3969_v5 = vmul.f32 0.2, %v3457_v41  ;;  %v6410_v38 = vpack.c.bf16 %v4355_v25, %v4355_v25 }
 0x1a6   :  { %v3460_v58 = vld [vmem:[#allocation2 + $0x1e0] sm:$0xff]  ;;  %5505 = vst.msk [vmem:[%s10166_s3 + $0xe0] sm:$0xf] %vm5448_vm3, %v6279_v48  ;;  %5633 = vst.msk [vmem:[%s10166_s3 + $0x2e0] sm:$0xf] %vm5448_vm3, %v6407_v51  ;;  %vm3718_vm10 = vcmp.ge.f32.partialorder %v3462_v16, 0.0 }
 0x1a7   :  { %v4097_v17 = vmul.f32 0.2, %v3585_v53  ;;  %v3974_v0 = vmul.f32 0.2, %v3462_v16  ;;  %5508 = vst.msk [vmem:[%s10166_s3 + $0xec] sm:$0xf] %vm5448_vm3, %v6282_v2  ;;  %v4225_v39 = vsel %vm3713_vm8, %v3457_v41, %v3969_v5 }
 0x1a8   :  { %vm3846_vm11 = vcmp.ge.f32.partialorder %v3590_v60, 0.0  ;;  %v4102_v22 = vmul.f32 0.2, %v3590_v60  ;;  %v3588_v54 = vld [vmem:[#allocation2 + $0x5e0] sm:$0xff]  ;;  %v3463_v55 = vld [vmem:[#allocation2 + $0x1f8] sm:$0xff]  ;;  %v6280_v63 = vpack.c.bf16 %v4225_v39, %v4225_v39  ;;  %vm3716_vm12 = vcmp.ge.f32.partialorder %v3460_v58, 0.0 }
 0x1a9   :  { %v4353_v3 = vsel %vm3841_vm9, %v3585_v53, %v4097_v17  ;;  %v4230_v30 = vsel %vm3718_vm10, %v3462_v16, %v3974_v0  ;;  %v3591_v23 = vld [vmem:[#allocation2 + $0x5f8] sm:$0xff]  ;;  %v9101_v47 = vpop.f32.mrb[82].mxu0  ;;  %v9103_v34 = vpop.f32.mrb[82].mxu1  ;;  %5636 = vst.msk [vmem:[%s10166_s3 + $0x2ec] sm:$0xf] %vm5448_vm3, %v6410_v38  ;;  %v3461_v56 = vld [vmem:[#allocation2 + $0x1e8] sm:$0xff] }
 0x1aa   :  { %v6408_v15 = vpack.c.bf16 %v4353_v3, %v4353_v3  ;;  %v6285_v21 = vpack.c.bf16 %v4230_v30, %v4230_v30  ;;  %v4358_v9 = vsel %vm3846_vm11, %v3590_v60, %v4102_v22  ;;  %v3972_v37 = vmul.f32 0.2, %v3460_v58  ;;  %v3589_v29 = vld [vmem:[#allocation2 + $0x5e8] sm:$0xff]  ;;  %v9109_v14 = vpop.f32.mrb[83].mxu0  ;;  %5506 = vst.msk [vmem:[%s10166_s3 + $0xe4] sm:$0xf] %vm5448_vm3, %v6280_v63 }
 0x1ab   :  { %v6413_v12 = vpack.c.bf16 %v4358_v9, %v4358_v9  ;;  %vm3844_vm13 = vcmp.ge.f32.partialorder %v3588_v54, 0.0  ;;  %v4100_v31 = vmul.f32 0.2, %v3588_v54  ;;  %vm3719_vm14 = vcmp.ge.f32.partialorder %v3463_v55, 0.0  ;;  %v3466_v52 = vld [vmem:[#allocation2 + $0x210] sm:$0xff]  ;;  %v9115_v36 = vpop.f32.mrb[83].mxu1 }
 0x1ac   :  { %v9117_v42 = vpop.f32.mrb[84].mxu0  ;;  %5634 = vst.msk [vmem:[%s10166_s3 + $0x2e4] sm:$0xf] %vm5448_vm3, %v6408_v15  ;;  %5511 = vst.msk [vmem:[%s10166_s3 + $0xf8] sm:$0xf] %vm5448_vm3, %v6285_v21  ;;  %v4228_v57 = vsel %vm3716_vm12, %v3460_v58, %v3972_v37  ;;  %vm3847_vm15 = vcmp.ge.f32.partialorder %v3591_v23, 0.0 }
 0x1ad   :  { %v3975_v35 = vmul.f32 0.2, %v3463_v55  ;;  %v4103_v46 = vmul.f32 0.2, %v3591_v23  ;;  %v9128_v20 = vpop.f32.mrb[84].mxu1  ;;  %v6283_v6 = vpack.c.bf16 %v4228_v57, %v4228_v57  ;;  %v4356_v7 = vsel %vm3844_vm13, %v3588_v54, %v4100_v31  ;;  %v3594_v49 = vld [vmem:[#allocation2 + $0x610] sm:$0xff] }
 0x1ae   :  { %5639 = vst.msk [vmem:[%s10166_s3 + $0x2f8] sm:$0xf] %vm5448_vm3, %v6413_v12  ;;  %vm3717_vm1 = vcmp.ge.f32.partialorder %v3461_v56, 0.0  ;;  %v3973_v61 = vmul.f32 0.2, %v3461_v56  ;;  %v9134_v10 = vpop.f32.mrb[85].mxu0  ;;  %v6411_v53 = vpack.c.bf16 %v4356_v7, %v4356_v7 }
 0x1af   :  { %v9136_v41 = vpop.f32.mrb[85].mxu1  ;;  %v4231_v26 = vsel %vm3719_vm14, %v3463_v55, %v3975_v35  ;;  %v4359_v4 = vsel %vm3847_vm15, %v3591_v23, %v4103_v46  ;;  %vm3845_vm2 = vcmp.ge.f32.partialorder %v3589_v29, 0.0  ;;  %v3464_v44 = vld [vmem:[#allocation2 + $0x200] sm:$0xff]  ;;  %v9139_v16 = vpop.f32.mrb[86].mxu0  ;;  %5509 = vst.msk [vmem:[%s10166_s3 + $0xf0] sm:$0xf] %vm5448_vm3, %v6283_v6 }
 0x1b0   :  { %v9141_v48 = vpop.f32.mrb[86].mxu1  ;;  %v6286_v51 = vpack.c.bf16 %v4231_v26, %v4231_v26  ;;  %v6414_v1 = vpack.c.bf16 %v4359_v4, %v4359_v4  ;;  %v4229_v11 = vsel %vm3717_vm1, %v3461_v56, %v3973_v61  ;;  %v4101_v60 = vmul.f32 0.2, %v3589_v29  ;;  %v3592_v2 = vld [vmem:[#allocation2 + $0x600] sm:$0xff]  ;;  %v3467_v5 = vld [vmem:[#allocation2 + $0x218] sm:$0xff]  ;;  %v9147_v58 = vpop.f32.mrb[87].mxu0 }
 0x1b1   :  { %v9149_v25 = vpop.f32.mrb[87].mxu1  ;;  %5637 = vst.msk [vmem:[%s10166_s3 + $0x2f0] sm:$0xf] %vm5448_vm3, %v6411_v53  ;;  %v6284_v17 = vpack.c.bf16 %v4229_v11, %v4229_v11  ;;  %vm3722_vm4 = vcmp.ge.f32.partialorder %v3466_v52, 0.0  ;;  %v3978_v0 = vmul.f32 0.2, %v3466_v52 }
 0x1b2   :  { %vm3850_vm5 = vcmp.ge.f32.partialorder %v3594_v49, 0.0  ;;  %v3595_v38 = vld [vmem:[#allocation2 + $0x618] sm:$0xff]  ;;  %v9155_v39 = vpop.f32.mrb[88].mxu0  ;;  %v9157_v22 = vpop.f32.mrb[88].mxu1  ;;  %5512 = vst.msk [vmem:[%s10166_s3 + $0xfc] sm:$0xf] %vm5448_vm3, %v6286_v51  ;;  %v4357_v54 = vsel %vm3845_vm2, %v3589_v29, %v4101_v60 }
 0x1b3   :  { %5640 = vst.msk [vmem:[%s10166_s3 + $0x2fc] sm:$0xf] %vm5448_vm3, %v6414_v1  ;;  %v4106_v55 = vmul.f32 0.2, %v3594_v49  ;;  %vm3720_vm6 = vcmp.ge.f32.partialorder %v3464_v44, 0.0  ;;  %v9168_v3 = vpop.f32.mrb[89].mxu0  ;;  %v6412_v30 = vpack.c.bf16 %v4357_v54, %v4357_v54  ;;  %v4234_v23 = vsel %vm3722_vm4, %v3466_v52, %v3978_v0 }
 0x1b4   :  { %v3976_v63 = vmul.f32 0.2, %v3464_v44  ;;  %5510 = vst.msk [vmem:[%s10166_s3 + $0xf4] sm:$0xf] %vm5448_vm3, %v6284_v17  ;;  %vm3848_vm7 = vcmp.ge.f32.partialorder %v3592_v2, 0.0  ;;  %v3465_v21 = vld [vmem:[#allocation2 + $0x208] sm:$0xff]  ;;  %v6289_v56 = vpack.c.bf16 %v4234_v23, %v4234_v23 }
 0x1b5   :  { %v4104_v15 = vmul.f32 0.2, %v3592_v2  ;;  %v9174_v9 = vpop.f32.mrb[89].mxu1  ;;  %v9176_v37 = vpop.f32.mrb[90].mxu0  ;;  %v4362_v29 = vsel %vm3850_vm5, %v3594_v49, %v4106_v55  ;;  %vm3723_vm8 = vcmp.ge.f32.partialorder %v3467_v5, 0.0  ;;  %v3593_v31 = vld [vmem:[#allocation2 + $0x608] sm:$0xff] }
 0x1b6   :  { %10179 = vst [vmem:[#allocation3_spill] sm:$0xff] %v9176_v37  ;;  %v4232_v12 = vsel %vm3720_vm6, %v3464_v44, %v3976_v63  ;;  %v9179_v57 = vpop.f32.mrb[90].mxu1  ;;  %v9181_v35 = vpop.f32.mrb[91].mxu0  ;;  %5638 = vst.msk [vmem:[%s10166_s3 + $0x2f4] sm:$0xf] %vm5448_vm3, %v6412_v30  ;;  %v6417_v52 = vpack.c.bf16 %v4362_v29, %v4362_v29  ;;  %v3470_v61 = vld [vmem:[#allocation2 + $0x230] sm:$0xff] }
 0x1b7   :  { %10180 = vst [vmem:[#allocation4_spill] sm:$0xff] %v9179_v57  ;;  %10181 = vst [vmem:[#allocation5_spill] sm:$0xff] %v9181_v35  ;;  %v6287_v46 = vpack.c.bf16 %v4232_v12, %v4232_v12  ;;  %v4360_v6 = vsel %vm3848_vm7, %v3592_v2, %v4104_v15  ;;  %v3979_v7 = vmul.f32 0.2, %v3467_v5  ;;  %v9187_v53 = vpop.f32.mrb[91].mxu1  ;;  %vm3851_vm9 = vcmp.ge.f32.partialorder %v3595_v38, 0.0 }
 0x1b8   :  { %10182 = vst [vmem:[#allocation6_spill] sm:$0xff] %v9187_v53  ;;  %5515 = vst.msk [vmem:[%s10166_s3 + $0x108] sm:$0xf] %vm5448_vm3, %v6289_v56  ;;  %v6415_v49 = vpack.c.bf16 %v4360_v6, %v4360_v6  ;;  %v4107_v26 = vmul.f32 0.2, %v3595_v38  ;;  %vm3721_vm10 = vcmp.ge.f32.partialorder %v3465_v21, 0.0 }
 0x1b9   :  { %v3598_v4 = vld [vmem:[#allocation2 + $0x630] sm:$0xff]  ;;  %5643 = vst.msk [vmem:[%s10166_s3 + $0x308] sm:$0xf] %vm5448_vm3, %v6417_v52  ;;  %5513 = vst.msk [vmem:[%s10166_s3 + $0x100] sm:$0xf] %vm5448_vm3, %v6287_v46  ;;  %v4235_v44 = vsel %vm3723_vm8, %v3467_v5, %v3979_v7  ;;  %vm3849_vm11 = vcmp.ge.f32.partialorder %v3593_v31, 0.0 }
 0x1ba   :  { %v3977_v51 = vmul.f32 0.2, %v3465_v21  ;;  %v4105_v1 = vmul.f32 0.2, %v3593_v31  ;;  %5641 = vst.msk [vmem:[%s10166_s3 + $0x300] sm:$0xf] %vm5448_vm3, %v6415_v49  ;;  %v6290_v11 = vpack.c.bf16 %v4235_v44, %v4235_v44  ;;  %v4363_v60 = vsel %vm3851_vm9, %v3595_v38, %v4107_v26 }
 0x1bb   :  { %vm3726_vm12 = vcmp.ge.f32.partialorder %v3470_v61, 0.0  ;;  %v3982_v2 = vmul.f32 0.2, %v3470_v61  ;;  %v3468_v17 = vld [vmem:[#allocation2 + $0x220] sm:$0xff]  ;;  %v6418_v54 = vpack.c.bf16 %v4363_v60, %v4363_v60  ;;  %vm3854_vm13 = vcmp.ge.f32.partialorder %v3598_v4, 0.0  ;;  %v3471_v5 = vld [vmem:[#allocation2 + $0x238] sm:$0xff] }
 0x1bc   :  { %v3596_v0 = vld [vmem:[#allocation2 + $0x620] sm:$0xff]  ;;  %v4233_v55 = vsel %vm3721_vm10, %v3465_v21, %v3977_v51  ;;  %v4361_v63 = vsel %vm3849_vm11, %v3593_v31, %v4105_v1  ;;  %v9207_v30 = vpop.f32.mrb[92].mxu0  ;;  %v9209_v23 = vpop.f32.mrb[92].mxu1  ;;  %5516 = vst.msk [vmem:[%s10166_s3 + $0x10c] sm:$0xf] %vm5448_vm3, %v6290_v11  ;;  %v3599_v12 = vld [vmem:[#allocation2 + $0x638] sm:$0xff] }
 0x1bd   :  { %10183 = vst [vmem:[#allocation11_spill] sm:$0xff] %v9207_v30  ;;  %10184 = vst [vmem:[#allocation12_spill] sm:$0xff] %v9209_v23  ;;  %v6288_v38 = vpack.c.bf16 %v4233_v55, %v4233_v55  ;;  %v6416_v15 = vpack.c.bf16 %v4361_v63, %v4361_v63  ;;  %v4238_v56 = vsel %vm3726_vm12, %v3470_v61, %v3982_v2  ;;  %v4110_v29 = vmul.f32 0.2, %v3598_v4  ;;  %v3469_v52 = vld [vmem:[#allocation2 + $0x228] sm:$0xff]  ;;  %v9215_v46 = vpop.f32.mrb[93].mxu0 }
 0x1be   :  { %10185 = vst [vmem:[#allocation13_spill] sm:$0xff] %v9215_v46  ;;  %v9217_v21 = vpop.f32.mrb[93].mxu1  ;;  %5644 = vst.msk [vmem:[%s10166_s3 + $0x30c] sm:$0xf] %vm5448_vm3, %v6418_v54  ;;  %v6293_v31 = vpack.c.bf16 %v4238_v56, %v4238_v56  ;;  %vm3724_vm14 = vcmp.ge.f32.partialorder %v3468_v17, 0.0  ;;  %vm3852_vm15 = vcmp.ge.f32.partialorder %v3596_v0, 0.0 }
 0x1bf   :  { %10186 = vst [vmem:[#allocation14_spill] sm:$0xff] %v9217_v21  ;;  %v3980_v6 = vmul.f32 0.2, %v3468_v17  ;;  %v9223_v7 = vpop.f32.mrb[94].mxu0  ;;  %v9225_v49 = vpop.f32.mrb[94].mxu1  ;;  %v4366_v61 = vsel %vm3854_vm13, %v3598_v4, %v4110_v29  ;;  %vm3727_vm1 = vcmp.ge.f32.partialorder %v3471_v5, 0.0 }
 0x1c0   :  { %10187 = vst [vmem:[#allocation15_spill] sm:$0xff] %v9223_v7  ;;  %10188 = vst [vmem:[#allocation16_spill] sm:$0xff] %v9225_v49  ;;  %v4108_v26 = vmul.f32 0.2, %v3596_v0  ;;  %v3983_v44 = vmul.f32 0.2, %v3471_v5  ;;  %v6421_v60 = vpack.c.bf16 %v4366_v61, %v4366_v61 }
 0x1c1   :  { %5514 = vst.msk [vmem:[%s10166_s3 + $0x104] sm:$0xf] %vm5448_vm3, %v6288_v38  ;;  %5642 = vst.msk [vmem:[%s10166_s3 + $0x304] sm:$0xf] %vm5448_vm3, %v6416_v15  ;;  %v485_v51 = vld [vmem:[#allocation2 + $0x650] sm:$0xff]  ;;  %v355_v1 = vld [vmem:[#allocation2 + $0x240] sm:$0xff]  ;;  %v4236_v2 = vsel %vm3724_vm14, %v3468_v17, %v3980_v6 }
 0x1c2   :  { %v9236_v11 = vpop.f32.mrb[95].mxu0  ;;  %5519 = vst.msk [vmem:[%s10166_s3 + $0x118] sm:$0xf] %vm5448_vm3, %v6293_v31  ;;  %vm3855_vm2 = vcmp.ge.f32.partialorder %v3599_v12, 0.0  ;;  %v4111_v54 = vmul.f32 0.2, %v3599_v12  ;;  %v6291_v15 = vpack.c.bf16 %v4236_v2, %v4236_v2  ;;  %v4364_v56 = vsel %vm3852_vm15, %v3596_v0, %v4108_v26 }
 0x1c3   :  { %10189 = vst [vmem:[#allocation17_spill] sm:$0xff] %v9236_v11  ;;  %v3597_v55 = vld [vmem:[#allocation2 + $0x628] sm:$0xff]  ;;  %v3474_v63 = vld [vmem:[#allocation2 + $0x250] sm:$0xff]  ;;  %v483_v4 = vld [vmem:[#allocation2 + $0x640] sm:$0xff]  ;;  %v9243_v38 = vpop.f32.mrb[95].mxu1  ;;  %v4239_v29 = vsel %vm3727_vm1, %v3471_v5, %v3983_v44  ;;  %vm3725_vm4 = vcmp.ge.f32.partialorder %v3469_v52, 0.0  ;;  %v6419_v17 = vpack.c.bf16 %v4364_v56, %v4364_v56 }
 0x1c4   :  { %10190 = vst [vmem:[#allocation18_spill] sm:$0xff] %v9243_v38  ;;  %v358_v11 = vld [vmem:[#allocation2 + $0x258] sm:$0xff]  ;;  %v356_v7 = vld [vmem:[#allocation2 + $0x248] sm:$0xff]  ;;  %5647 = vst.msk [vmem:[%s10166_s3 + $0x318] sm:$0xf] %vm5448_vm3, %v6421_v60  ;;  %v6294_v31 = vpack.c.bf16 %v4239_v29, %v4239_v29  ;;  %v4367_v6 = vsel %vm3855_vm2, %v3599_v12, %v4111_v54  ;;  %vm3853_vm5 = vcmp.ge.f32.partialorder %v3597_v55, 0.0 }
 0x1c5   :  { %v486_v49 = vld [vmem:[#allocation2 + $0x658] sm:$0xff]  ;;  %v3981_v61 = vmul.f32 0.2, %v3469_v52  ;;  %v484_v38 = vld [vmem:[#allocation2 + $0x648] sm:$0xff]  ;;  %v361_v2 = vld [vmem:[#allocation2 + $0x270] sm:$0xff]  ;;  %v6422_v0 = vpack.c.bf16 %v4367_v6, %v4367_v6  ;;  %vm3730_vm6 = vcmp.ge.f32.partialorder %v3474_v63, 0.0  ;;  %v2957_v6 = vadd.f32 %v8922_v50, %v355_v1 }
 0x1c6   :  { %v489_v21 = vld [vmem:[#allocation2 + $0x670] sm:$0xff]  ;;  %5517 = vst.msk [vmem:[%s10166_s3 + $0x110] sm:$0xf] %vm5448_vm3, %v6291_v15  ;;  %v4109_v5 = vmul.f32 0.2, %v3597_v55  ;;  %v359_v26 = vld [vmem:[#allocation2 + $0x260] sm:$0xff] }
 0x1c7   :  { %v487_v44 = vld [vmem:[#allocation2 + $0x660] sm:$0xff]  ;;  %v362_v60 = vld [vmem:[#allocation2 + $0x278] sm:$0xff]  ;;  %5645 = vst.msk [vmem:[%s10166_s3 + $0x310] sm:$0xf] %vm5448_vm3, %v6419_v17  ;;  %5520 = vst.msk [vmem:[%s10166_s3 + $0x11c] sm:$0xf] %vm5448_vm3, %v6294_v31  ;;  %v4237_v12 = vsel %vm3725_vm4, %v3469_v52, %v3981_v61 }
 0x1c8   :  { %v490_v56 = vld [vmem:[#allocation2 + $0x678] sm:$0xff]  ;;  %v3986_v54 = vmul.f32 0.2, %v3474_v63  ;;  %v10191_v15 = vld [vmem:[#allocation7_spill] sm:$0xff]  ;;  %v360_v46 = vld [vmem:[#allocation2 + $0x268] sm:$0xff]  ;;  %v9267_v30 = vpop.f32.mrb[96].mxu0  ;;  %v6292_v17 = vpack.c.bf16 %v4237_v12, %v4237_v12  ;;  %v4365_v31 = vsel %vm3853_vm5, %v3597_v55, %v4109_v5 }
 0x1c9   :  { %v3087_v29 = vadd.f32 %v10191_v15, %v485_v51  ;;  %v488_v23 = vld [vmem:[#allocation2 + $0x668] sm:$0xff]  ;;  %10192 = vst [vmem:[#allocation7_spill] sm:$0xff] %v9267_v30  ;;  %v9269_v53 = vpop.f32.mrb[96].mxu1  ;;  %5648 = vst.msk [vmem:[%s10166_s3 + $0x31c] sm:$0xf] %vm5448_vm3, %v6422_v0  ;;  %v10195_v35 = vld [vmem:[#allocation9_spill] sm:$0xff] }
 0x1ca   :  { %10193 = vst [vmem:[#allocation19_spill] sm:$0xff] %v9269_v53  ;;  %v10194_v52 = vld [vmem:[#allocation8_spill] sm:$0xff]  ;;  %v2960_v51 = vadd.f32 %v10195_v35, %v358_v11  ;;  %v365_v15 = vld [vmem:[#allocation2 + $0x290] sm:$0xff]  ;;  %v363_v1 = vld [vmem:[#allocation2 + $0x280] sm:$0xff]  ;;  %v9278_v57 = vpop.f32.mrb[97].mxu0  ;;  %v9280_v30 = vpop.f32.mrb[97].mxu1  ;;  %v6420_v53 = vpack.c.bf16 %v4365_v31, %v4365_v31  ;;  %v4242_v37 = vsel %vm3730_vm6, %v3474_v63, %v3986_v54 }
 0x1cb   :  { %v3085_v61 = vadd.f32 %v10194_v52, %v483_v4  ;;  %v493_v50 = vld [vmem:[#allocation2 + $0x690] sm:$0xff]  ;;  %3343 = vst.msk [vmem:[#allocation2 + $0x650] sm:$0xff] %vm26_vm0, %v3087_v29  ;;  %3213 = vst.msk [vmem:[#allocation2 + $0x240] sm:$0xff] %vm26_vm0, %v2957_v6  ;;  %v10196_v0 = vld [vmem:[#allocation10_spill] sm:$0xff]  ;;  %v2958_v4 = vadd.f32 %v8947_v59, %v356_v7  ;;  %v9287_v12 = vpop.f32.mrb[98].mxu0  ;;  %v9289_v52 = vpop.f32.mrb[98].mxu1  ;;  %v6297_v63 = vpack.c.bf16 %v4242_v37, %v4242_v37 }
 0x1cc   :  { %v3088_v55 = vadd.f32 %v10196_v0, %v486_v49  ;;  %v491_v5 = vld [vmem:[#allocation2 + $0x680] sm:$0xff]  ;;  %v366_v35 = vld [vmem:[#allocation2 + $0x298] sm:$0xff]  ;;  %5518 = vst.msk [vmem:[%s10166_s3 + $0x114] sm:$0xf] %vm5448_vm3, %v6292_v17  ;;  %v3086_v49 = vadd.f32 %v8949_v62, %v484_v38  ;;  %v2963_v59 = vadd.f32 %v8996_v13, %v361_v2  ;;  %v3091_v7 = vadd.f32 %v8998_v43, %v489_v21  ;;  %v364_v54 = vld [vmem:[#allocation2 + $0x288] sm:$0xff]  ;;  %v9300_v31 = vpop.f32.mrb[99].mxu0 }
 0x1cd   :  { %v494_v11 = vld [vmem:[#allocation2 + $0x698] sm:$0xff]  ;;  %3341 = vst.msk [vmem:[#allocation2 + $0x640] sm:$0xff] %vm26_vm0, %v3085_v61  ;;  %3216 = vst.msk [vmem:[#allocation2 + $0x258] sm:$0xff] %vm26_vm0, %v2960_v51  ;;  %v492_v29 = vld [vmem:[#allocation2 + $0x688] sm:$0xff]  ;;  %v9302_v0 = vpop.f32.mrb[99].mxu1  ;;  %v2961_v62 = vadd.f32 %v9008_v19, %v359_v26  ;;  %v3089_v13 = vadd.f32 %v9010_v27, %v487_v44  ;;  %v2964_v43 = vadd.f32 %v9020_v32, %v362_v60 }
 0x1ce   :  { %v369_v6 = vld [vmem:[#allocation2 + $0x2b0] sm:$0xff]  ;;  %5646 = vst.msk [vmem:[%s10166_s3 + $0x314] sm:$0xf] %vm5448_vm3, %v6420_v53  ;;  %v3092_v37 = vadd.f32 %v9022_v18, %v490_v56  ;;  %v367_v38 = vld [vmem:[#allocation2 + $0x2a0] sm:$0xff]  ;;  %5523 = vst.msk [vmem:[%s10166_s3 + $0x128] sm:$0xf] %vm5448_vm3, %v6297_v63  ;;  %v2962_v19 = vadd.f32 %v9032_v45, %v360_v46  ;;  %v3090_v27 = vadd.f32 %v9034_v24, %v488_v23 }
 0x1cf   :  { %3344 = vst.msk [vmem:[#allocation2 + $0x658] sm:$0xff] %vm26_vm0, %v3088_v55  ;;  %3214 = vst.msk [vmem:[#allocation2 + $0x248] sm:$0xff] %vm26_vm0, %v2958_v4  ;;  %v497_v21 = vld [vmem:[#allocation2 + $0x6b0] sm:$0xff]  ;;  %v495_v2 = vld [vmem:[#allocation2 + $0x6a0] sm:$0xff]  ;;  %v2967_v32 = vadd.f32 %v9053_v8, %v365_v15  ;;  %v3095_v18 = vadd.f32 %v9073_v40, %v493_v50  ;;  %v2965_v60 = vadd.f32 %v9075_v33, %v363_v1  ;;  %v9349_v15 = vpop.f32.mrb[100].mxu0  ;;  %v9351_v50 = vpop.f32.mrb[100].mxu1 }
 0x1d0   :  { %3342 = vst.msk [vmem:[#allocation2 + $0x648] sm:$0xff] %vm26_vm0, %v3086_v49  ;;  %3219 = vst.msk [vmem:[#allocation2 + $0x270] sm:$0xff] %vm26_vm0, %v2963_v59  ;;  %v370_v53 = vld [vmem:[#allocation2 + $0x2b8] sm:$0xff]  ;;  %v368_v44 = vld [vmem:[#allocation2 + $0x2a8] sm:$0xff]  ;;  %v3093_v45 = vadd.f32 %v9081_v28, %v491_v5  ;;  %v2968_v24 = vadd.f32 %v9101_v47, %v366_v35  ;;  %v3096_v8 = vadd.f32 %v9103_v34, %v494_v11  ;;  %v9361_v4 = vpop.f32.mrb[101].mxu0  ;;  %v9363_v5 = vpop.f32.mrb[101].mxu1 }
 0x1d1   :  { %3347 = vst.msk [vmem:[#allocation2 + $0x670] sm:$0xff] %vm26_vm0, %v3091_v7  ;;  %v498_v26 = vld [vmem:[#allocation2 + $0x6b8] sm:$0xff]  ;;  %3217 = vst.msk [vmem:[#allocation2 + $0x260] sm:$0xff] %vm26_vm0, %v2961_v62  ;;  %v496_v40 = vld [vmem:[#allocation2 + $0x6a8] sm:$0xff]  ;;  %v2966_v56 = vadd.f32 %v9109_v14, %v364_v54  ;;  %v3094_v33 = vadd.f32 %v9115_v36, %v492_v29  ;;  %v2971_v28 = vadd.f32 %v9117_v42, %v369_v6  ;;  %v9377_v29 = vpop.f32.mrb[102].mxu0  ;;  %v9379_v6 = vpop.f32.mrb[102].mxu1 }
 0x1d2   :  { %3345 = vst.msk [vmem:[#allocation2 + $0x660] sm:$0xff] %vm26_vm0, %v3089_v13  ;;  %3220 = vst.msk [vmem:[#allocation2 + $0x278] sm:$0xff] %vm26_vm0, %v2964_v43  ;;  %v373_v23 = vld [vmem:[#allocation2 + $0x2d0] sm:$0xff]  ;;  %v3099_v47 = vadd.f32 %v9128_v20, %v497_v21  ;;  %v371_v34 = vld [vmem:[#allocation2 + $0x2c0] sm:$0xff]  ;;  %v2969_v17 = vadd.f32 %v9134_v10, %v367_v38  ;;  %v3097_v61 = vadd.f32 %v9136_v41, %v495_v2 }
 0x1d3   :  { %3348 = vst.msk [vmem:[#allocation2 + $0x678] sm:$0xff] %vm26_vm0, %v3092_v37  ;;  %v501_v46 = vld [vmem:[#allocation2 + $0x6d0] sm:$0xff]  ;;  %3218 = vst.msk [vmem:[#allocation2 + $0x268] sm:$0xff] %vm26_vm0, %v2962_v19  ;;  %v2972_v14 = vadd.f32 %v9139_v16, %v370_v53  ;;  %v3100_v36 = vadd.f32 %v9141_v48, %v498_v26  ;;  %v499_v42 = vld [vmem:[#allocation2 + $0x6c0] sm:$0xff]  ;;  %v2970_v10 = vadd.f32 %v9147_v58, %v368_v44 }
 0x1d4   :  { %3346 = vst.msk [vmem:[#allocation2 + $0x668] sm:$0xff] %vm26_vm0, %v3090_v27  ;;  %3223 = vst.msk [vmem:[#allocation2 + $0x290] sm:$0xff] %vm26_vm0, %v2967_v32  ;;  %v374_v51 = vld [vmem:[#allocation2 + $0x2d8] sm:$0xff]  ;;  %v3602_v1 = vld [vmem:[#allocation2 + $0x650] sm:$0xff]  ;;  %v3098_v41 = vadd.f32 %v9149_v25, %v496_v40  ;;  %v2975_v16 = vadd.f32 %v9155_v39, %v373_v23  ;;  %v3103_v48 = vadd.f32 %v9157_v22, %v501_v46 }
 0x1d5   :  { %3351 = vst.msk [vmem:[#allocation2 + $0x690] sm:$0xff] %vm26_vm0, %v3095_v18  ;;  %3221 = vst.msk [vmem:[#allocation2 + $0x280] sm:$0xff] %vm26_vm0, %v2965_v60  ;;  %v502_v20 = vld [vmem:[#allocation2 + $0x6d8] sm:$0xff]  ;;  %v3472_v55 = vld [vmem:[#allocation2 + $0x240] sm:$0xff]  ;;  %vm3858_vm7 = vcmp.ge.f32.partialorder %v3602_v1, 0.0  ;;  %v2973_v22 = vadd.f32 %v9168_v3, %v371_v34  ;;  %v3101_v63 = vadd.f32 %v9174_v9, %v499_v42 }
 0x1d6   :  { %3349 = vst.msk [vmem:[#allocation2 + $0x680] sm:$0xff] %vm26_vm0, %v3093_v45  ;;  %3224 = vst.msk [vmem:[#allocation2 + $0x298] sm:$0xff] %vm26_vm0, %v2968_v24  ;;  %v4114_v35 = vmul.f32 0.2, %v3602_v1  ;;  %vm3728_vm8 = vcmp.ge.f32.partialorder %v3472_v55, 0.0  ;;  %v3600_v58 = vld [vmem:[#allocation2 + $0x640] sm:$0xff] }
 0x1d7   :  { %3352 = vst.msk [vmem:[#allocation2 + $0x698] sm:$0xff] %vm26_vm0, %v3096_v8  ;;  %3222 = vst.msk [vmem:[#allocation2 + $0x288] sm:$0xff] %vm26_vm0, %v2966_v56  ;;  %v3984_v11 = vmul.f32 0.2, %v3472_v55  ;;  %v3475_v25 = vld [vmem:[#allocation2 + $0x258] sm:$0xff]  ;;  %v10197_v49 = vld [vmem:[#allocation3_spill] sm:$0xff] }
 0x1d8   :  { %3350 = vst.msk [vmem:[#allocation2 + $0x688] sm:$0xff] %vm26_vm0, %v3094_v33  ;;  %3227 = vst.msk [vmem:[#allocation2 + $0x2b0] sm:$0xff] %vm26_vm0, %v2971_v28  ;;  %v3603_v39 = vld [vmem:[#allocation2 + $0x658] sm:$0xff]  ;;  %v2976_v59 = vadd.f32 %v10197_v49, %v374_v51  ;;  %v10198_v7 = vld [vmem:[#allocation4_spill] sm:$0xff]  ;;  %v4370_v62 = vsel %vm3858_vm7, %v3602_v1, %v4114_v35  ;;  %vm3856_vm9 = vcmp.ge.f32.partialorder %v3600_v58, 0.0  ;;  %vm3731_vm10 = vcmp.ge.f32.partialorder %v3475_v25, 0.0 }
 0x1d9   :  { %3355 = vst.msk [vmem:[#allocation2 + $0x6b0] sm:$0xff] %vm26_vm0, %v3099_v47  ;;  %3225 = vst.msk [vmem:[#allocation2 + $0x2a0] sm:$0xff] %vm26_vm0, %v2969_v17  ;;  %v3104_v54 = vadd.f32 %v10198_v7, %v502_v20  ;;  %v4240_v13 = vsel %vm3728_vm8, %v3472_v55, %v3984_v11  ;;  %v4112_v43 = vmul.f32 0.2, %v3600_v58  ;;  %v3473_v37 = vld [vmem:[#allocation2 + $0x248] sm:$0xff]  ;;  %v6425_v38 = vpack.c.bf16 %v4370_v62, %v4370_v62  ;;  %v3478_v2 = vld [vmem:[#allocation2 + $0x270] sm:$0xff] }
 0x1da   :  { %3353 = vst.msk [vmem:[#allocation2 + $0x6a0] sm:$0xff] %vm26_vm0, %v3097_v61  ;;  %3228 = vst.msk [vmem:[#allocation2 + $0x2b8] sm:$0xff] %vm26_vm0, %v2972_v14  ;;  %v3601_v21 = vld [vmem:[#allocation2 + $0x648] sm:$0xff]  ;;  %v6295_v3 = vpack.c.bf16 %v4240_v13, %v4240_v13  ;;  %v3987_v9 = vmul.f32 0.2, %v3475_v25  ;;  %vm3859_vm11 = vcmp.ge.f32.partialorder %v3603_v39, 0.0 }
 0x1db   :  { %3356 = vst.msk [vmem:[#allocation2 + $0x6b8] sm:$0xff] %vm26_vm0, %v3100_v36  ;;  %3226 = vst.msk [vmem:[#allocation2 + $0x2a8] sm:$0xff] %vm26_vm0, %v2970_v10  ;;  %v4368_v19 = vsel %vm3856_vm9, %v3600_v58, %v4112_v43  ;;  %v4115_v27 = vmul.f32 0.2, %v3603_v39  ;;  %vm3729_vm12 = vcmp.ge.f32.partialorder %v3473_v37, 0.0  ;;  %v3606_v32 = vld [vmem:[#allocation2 + $0x670] sm:$0xff] }
 0x1dc   :  { %3354 = vst.msk [vmem:[#allocation2 + $0x6a8] sm:$0xff] %vm26_vm0, %v3098_v41  ;;  %3231 = vst.msk [vmem:[#allocation2 + $0x2d0] sm:$0xff] %vm26_vm0, %v2975_v16  ;;  %v6423_v18 = vpack.c.bf16 %v4368_v19, %v4368_v19  ;;  %v4243_v53 = vsel %vm3731_vm10, %v3475_v25, %v3987_v9  ;;  %v3985_v26 = vmul.f32 0.2, %v3473_v37  ;;  %vm3857_vm13 = vcmp.ge.f32.partialorder %v3601_v21, 0.0  ;;  %v3476_v44 = vld [vmem:[#allocation2 + $0x260] sm:$0xff] }
 0x1dd   :  { %3359 = vst.msk [vmem:[#allocation2 + $0x6d0] sm:$0xff] %vm26_vm0, %v3103_v48  ;;  %3229 = vst.msk [vmem:[#allocation2 + $0x2c0] sm:$0xff] %vm26_vm0, %v2973_v22  ;;  %v6298_v60 = vpack.c.bf16 %v4243_v53, %v4243_v53  ;;  %v4371_v45 = vsel %vm3859_vm11, %v3603_v39, %v4115_v27  ;;  %v4113_v24 = vmul.f32 0.2, %v3601_v21  ;;  %vm3734_vm14 = vcmp.ge.f32.partialorder %v3478_v2, 0.0  ;;  %v3604_v8 = vld [vmem:[#allocation2 + $0x660] sm:$0xff] }
 0x1de   :  { %3357 = vst.msk [vmem:[#allocation2 + $0x6c0] sm:$0xff] %vm26_vm0, %v3101_v63  ;;  %3232 = vst.msk [vmem:[#allocation2 + $0x2d8] sm:$0xff] %vm26_vm0, %v2976_v59  ;;  %v6426_v40 = vpack.c.bf16 %v4371_v45, %v4371_v45  ;;  %v4241_v23 = vsel %vm3729_vm12, %v3473_v37, %v3985_v26  ;;  %v3990_v46 = vmul.f32 0.2, %v3478_v2  ;;  %vm3862_vm15 = vcmp.ge.f32.partialorder %v3606_v32, 0.0  ;;  %v3479_v56 = vld [vmem:[#allocation2 + $0x278] sm:$0xff] }
 0x1df   :  { %3360 = vst.msk [vmem:[#allocation2 + $0x6d8] sm:$0xff] %vm26_vm0, %v3104_v54  ;;  %v6296_v33 = vpack.c.bf16 %v4241_v23, %v4241_v23  ;;  %v4369_v28 = vsel %vm3857_vm13, %v3601_v21, %v4113_v24  ;;  %v4118_v47 = vmul.f32 0.2, %v3606_v32  ;;  %vm3732_vm1 = vcmp.ge.f32.partialorder %v3476_v44, 0.0  ;;  %v3607_v34 = vld [vmem:[#allocation2 + $0x678] sm:$0xff]  ;;  %v3477_v36 = vld [vmem:[#allocation2 + $0x268] sm:$0xff] }
 0x1e0   :  { %5651 = vst.msk [vmem:[%s10166_s3 + $0x328] sm:$0xf] %vm5448_vm3, %v6425_v38  ;;  %5521 = vst.msk [vmem:[%s10166_s3 + $0x120] sm:$0xf] %vm5448_vm3, %v6295_v3  ;;  %v6424_v17 = vpack.c.bf16 %v4369_v28, %v4369_v28  ;;  %v4246_v61 = vsel %vm3734_vm14, %v3478_v2, %v3990_v46  ;;  %v3988_v14 = vmul.f32 0.2, %v3476_v44 }
 0x1e1   :  { %5649 = vst.msk [vmem:[%s10166_s3 + $0x320] sm:$0xf] %vm5448_vm3, %v6423_v18  ;;  %5524 = vst.msk [vmem:[%s10166_s3 + $0x12c] sm:$0xf] %vm5448_vm3, %v6298_v60  ;;  %vm3860_vm2 = vcmp.ge.f32.partialorder %v3604_v8, 0.0  ;;  %v6301_v42 = vpack.c.bf16 %v4246_v61, %v4246_v61  ;;  %v4374_v51 = vsel %vm3862_vm15, %v3606_v32, %v4118_v47  ;;  %vm3735_vm4 = vcmp.ge.f32.partialorder %v3479_v56, 0.0 }
 0x1e2   :  { %5652 = vst.msk [vmem:[%s10166_s3 + $0x32c] sm:$0xf] %vm5448_vm3, %v6426_v40  ;;  %5522 = vst.msk [vmem:[%s10166_s3 + $0x124] sm:$0xf] %vm5448_vm3, %v6296_v33  ;;  %v4116_v20 = vmul.f32 0.2, %v3604_v8  ;;  %v6429_v55 = vpack.c.bf16 %v4374_v51, %v4374_v51  ;;  %v4244_v10 = vsel %vm3732_vm1, %v3476_v44, %v3988_v14 }
 0x1e3   :  { %v3605_v1 = vld [vmem:[#allocation2 + $0x668] sm:$0xff]  ;;  %5650 = vst.msk [vmem:[%s10166_s3 + $0x324] sm:$0xf] %vm5448_vm3, %v6424_v17  ;;  %v3991_v41 = vmul.f32 0.2, %v3479_v56  ;;  %vm3863_vm5 = vcmp.ge.f32.partialorder %v3607_v34, 0.0  ;;  %v6299_v48 = vpack.c.bf16 %v4244_v10, %v4244_v10 }
 0x1e4   :  { %v3482_v16 = vld [vmem:[#allocation2 + $0x290] sm:$0xff]  ;;  %5527 = vst.msk [vmem:[%s10166_s3 + $0x138] sm:$0xf] %vm5448_vm3, %v6301_v42  ;;  %v4372_v35 = vsel %vm3860_vm2, %v3604_v8, %v4116_v20  ;;  %v4119_v11 = vmul.f32 0.2, %v3607_v34  ;;  %vm3733_vm6 = vcmp.ge.f32.partialorder %v3477_v36, 0.0 }
 0x1e5   :  { %v3610_v58 = vld [vmem:[#allocation2 + $0x690] sm:$0xff]  ;;  %5655 = vst.msk [vmem:[%s10166_s3 + $0x338] sm:$0xf] %vm5448_vm3, %v6429_v55  ;;  %v6427_v25 = vpack.c.bf16 %v4372_v35, %v4372_v35  ;;  %v4247_v39 = vsel %vm3735_vm4, %v3479_v56, %v3991_v41  ;;  %v3989_v22 = vmul.f32 0.2, %v3477_v36  ;;  %vm3861_vm7 = vcmp.ge.f32.partialorder %v3605_v1, 0.0 }
 0x1e6   :  { %v3480_v63 = vld [vmem:[#allocation2 + $0x280] sm:$0xff]  ;;  %v9429_v49 = vpop.f32.mrb[103].mxu0  ;;  %v9431_v59 = vpop.f32.mrb[103].mxu1  ;;  %5525 = vst.msk [vmem:[%s10166_s3 + $0x130] sm:$0xf] %vm5448_vm3, %v6299_v48  ;;  %v6302_v7 = vpack.c.bf16 %v4247_v39, %v4247_v39  ;;  %v4375_v54 = vsel %vm3863_vm5, %v3607_v34, %v4119_v11  ;;  %vm3738_vm8 = vcmp.ge.f32.partialorder %v3482_v16, 0.0 }
 0x1e7   :  { %v4117_v62 = vmul.f32 0.2, %v3605_v1  ;;  %v3608_v13 = vld [vmem:[#allocation2 + $0x680] sm:$0xff]  ;;  %v9438_v43 = vpop.f32.mrb[104].mxu0  ;;  %v9440_v37 = vpop.f32.mrb[104].mxu1  ;;  %v6430_v21 = vpack.c.bf16 %v4375_v54, %v4375_v54  ;;  %v4245_v38 = vsel %vm3733_vm6, %v3477_v36, %v3989_v22  ;;  %vm3866_vm9 = vcmp.ge.f32.partialorder %v3610_v58, 0.0 }
 0x1e8   :  { %5653 = vst.msk [vmem:[%s10166_s3 + $0x330] sm:$0xf] %vm5448_vm3, %v6427_v25  ;;  %v3994_v3 = vmul.f32 0.2, %v3482_v16  ;;  %v3483_v9 = vld [vmem:[#allocation2 + $0x298] sm:$0xff]  ;;  %v9447_v2 = vpop.f32.mrb[105].mxu0  ;;  %v6300_v27 = vpack.c.bf16 %v4245_v38, %v4245_v38 }
 0x1e9   :  { %v9449_v19 = vpop.f32.mrb[105].mxu1  ;;  %5528 = vst.msk [vmem:[%s10166_s3 + $0x13c] sm:$0xf] %vm5448_vm3, %v6302_v7  ;;  %v4373_v32 = vsel %vm3861_vm7, %v3605_v1, %v4117_v62  ;;  %v4122_v18 = vmul.f32 0.2, %v3610_v58  ;;  %vm3736_vm10 = vcmp.ge.f32.partialorder %v3480_v63, 0.0 }
 0x1ea   :  { %v3611_v53 = vld [vmem:[#allocation2 + $0x698] sm:$0xff]  ;;  %v9456_v26 = vpop.f32.mrb[106].mxu0  ;;  %v9458_v44 = vpop.f32.mrb[106].mxu1  ;;  %5656 = vst.msk [vmem:[%s10166_s3 + $0x33c] sm:$0xf] %vm5448_vm3, %v6430_v21  ;;  %v6428_v60 = vpack.c.bf16 %v4373_v32, %v4373_v32  ;;  %v4250_v45 = vsel %vm3738_vm8, %v3482_v16, %v3994_v3  ;;  %vm3864_vm11 = vcmp.ge.f32.partialorder %v3608_v13, 0.0 }
 0x1eb   :  { %v3992_v24 = vmul.f32 0.2, %v3480_v63  ;;  %v3481_v8 = vld [vmem:[#allocation2 + $0x288] sm:$0xff]  ;;  %v9465_v40 = vpop.f32.mrb[107].mxu0  ;;  %v9467_v23 = vpop.f32.mrb[107].mxu1  ;;  %v6305_v46 = vpack.c.bf16 %v4250_v45, %v4250_v45  ;;  %v4378_v56 = vsel %vm3866_vm9, %v3610_v58, %v4122_v18  ;;  %vm3739_vm12 = vcmp.ge.f32.partialorder %v3483_v9, 0.0 }
 0x1ec   :  { %5526 = vst.msk [vmem:[%s10166_s3 + $0x134] sm:$0xf] %vm5448_vm3, %v6300_v27  ;;  %v4120_v33 = vmul.f32 0.2, %v3608_v13  ;;  %v3609_v28 = vld [vmem:[#allocation2 + $0x688] sm:$0xff]  ;;  %v9474_v47 = vpop.f32.mrb[108].mxu0  ;;  %v6433_v17 = vpack.c.bf16 %v4378_v56, %v4378_v56 }
 0x1ed   :  { %v9476_v34 = vpop.f32.mrb[108].mxu1  ;;  %5654 = vst.msk [vmem:[%s10166_s3 + $0x334] sm:$0xf] %vm5448_vm3, %v6428_v60  ;;  %v4248_v61 = vsel %vm3736_vm10, %v3480_v63, %v3992_v24  ;;  %v3995_v14 = vmul.f32 0.2, %v3483_v9  ;;  %vm3867_vm13 = vcmp.ge.f32.partialorder %v3611_v53, 0.0 }
 0x1ee   :  { %v3486_v36 = vld [vmem:[#allocation2 + $0x2b0] sm:$0xff]  ;;  %v9483_v42 = vpop.f32.mrb[109].mxu0  ;;  %v9485_v51 = vpop.f32.mrb[109].mxu1  ;;  %5531 = vst.msk [vmem:[%s10166_s3 + $0x148] sm:$0xf] %vm5448_vm3, %v6305_v46  ;;  %v6303_v20 = vpack.c.bf16 %v4248_v61, %v4248_v61  ;;  %v4376_v1 = vsel %vm3864_vm11, %v3608_v13, %v4120_v33  ;;  %vm3737_vm14 = vcmp.ge.f32.partialorder %v3481_v8, 0.0 }
 0x1ef   :  { %v4123_v55 = vmul.f32 0.2, %v3611_v53  ;;  %v3614_v10 = vld [vmem:[#allocation2 + $0x6b0] sm:$0xff]  ;;  %v9492_v41 = vpop.f32.mrb[110].mxu0  ;;  %v9494_v16 = vpop.f32.mrb[110].mxu1  ;;  %v6431_v48 = vpack.c.bf16 %v4376_v1, %v4376_v1  ;;  %v4251_v35 = vsel %vm3739_vm12, %v3483_v9, %v3995_v14  ;;  %vm3865_vm15 = vcmp.ge.f32.partialorder %v3609_v28, 0.0 }
 0x1f0   :  { %5659 = vst.msk [vmem:[%s10166_s3 + $0x348] sm:$0xf] %vm5448_vm3, %v6433_v17  ;;  %v3993_v11 = vmul.f32 0.2, %v3481_v8  ;;  %v3484_v58 = vld [vmem:[#allocation2 + $0x2a0] sm:$0xff]  ;;  %v9501_v25 = vpop.f32.mrb[111].mxu0  ;;  %v6306_v22 = vpack.c.bf16 %v4251_v35, %v4251_v35 }
 0x1f1   :  { %v9503_v39 = vpop.f32.mrb[111].mxu1  ;;  %5529 = vst.msk [vmem:[%s10166_s3 + $0x140] sm:$0xf] %vm5448_vm3, %v6303_v20  ;;  %v4379_v63 = vsel %vm3867_vm13, %v3611_v53, %v4123_v55  ;;  %v4121_v7 = vmul.f32 0.2, %v3609_v28  ;;  %vm3742_vm1 = vcmp.ge.f32.partialorder %v3486_v36, 0.0 }
 0x1f2   :  { %10199 = vst [vmem:[#allocation8_spill] sm:$0xff] %v9503_v39  ;;  %v3612_v54 = vld [vmem:[#allocation2 + $0x6a0] sm:$0xff]  ;;  %v9510_v62 = vpop.f32.mrb[112].mxu0  ;;  %v9512_v13 = vpop.f32.mrb[112].mxu1  ;;  %5657 = vst.msk [vmem:[%s10166_s3 + $0x340] sm:$0xf] %vm5448_vm3, %v6431_v48  ;;  %v6434_v21 = vpack.c.bf16 %v4379_v63, %v4379_v63  ;;  %v4249_v38 = vsel %vm3737_vm14, %v3481_v8, %v3993_v11 }
 0x1f3   :  { %10200 = vst [vmem:[#allocation9_spill] sm:$0xff] %v9510_v62  ;;  %10201 = vst [vmem:[#allocation10_spill] sm:$0xff] %v9512_v13  ;;  %v3998_v3 = vmul.f32 0.2, %v3486_v36  ;;  %vm3870_vm2 = vcmp.ge.f32.partialorder %v3614_v10, 0.0  ;;  %v3487_v9 = vld [vmem:[#allocation2 + $0x2b8] sm:$0xff]  ;;  %v6304_v18 = vpack.c.bf16 %v4249_v38, %v4249_v38  ;;  %v4377_v53 = vsel %vm3865_vm15, %v3609_v28, %v4121_v7 }
 0x1f4   :  { %v9519_v27 = vpop.f32.mrb[113].mxu0  ;;  %v9521_v32 = vpop.f32.mrb[113].mxu1  ;;  %5532 = vst.msk [vmem:[%s10166_s3 + $0x14c] sm:$0xf] %vm5448_vm3, %v6306_v22  ;;  %v4126_v60 = vmul.f32 0.2, %v3614_v10  ;;  %v6432_v46 = vpack.c.bf16 %v4377_v53, %v4377_v53 }
 0x1f5   :  { %10202 = vst [vmem:[#allocation3_spill] sm:$0xff] %v9519_v27  ;;  %10203 = vst [vmem:[#allocation4_spill] sm:$0xff] %v9521_v32  ;;  %vm3740_vm4 = vcmp.ge.f32.partialorder %v3484_v58, 0.0  ;;  %v3615_v45 = vld [vmem:[#allocation2 + $0x6b8] sm:$0xff]  ;;  %v9528_v24 = vpop.f32.mrb[114].mxu0  ;;  %v9530_v8 = vpop.f32.mrb[114].mxu1  ;;  %v4254_v56 = vsel %vm3742_vm1, %v3486_v36, %v3998_v3 }
 0x1f6   :  { %10204 = vst [vmem:[#allocation20_spill] sm:$0xff] %v9528_v24  ;;  %10205 = vst [vmem:[#allocation21_spill] sm:$0xff] %v9530_v8  ;;  %v3996_v33 = vmul.f32 0.2, %v3484_v58  ;;  %vm3868_vm5 = vcmp.ge.f32.partialorder %v3612_v54, 0.0  ;;  %v3485_v17 = vld [vmem:[#allocation2 + $0x2a8] sm:$0xff]  ;;  %v6309_v14 = vpack.c.bf16 %v4254_v56, %v4254_v56  ;;  %v4382_v20 = vsel %vm3870_vm2, %v3614_v10, %v4126_v60 }
 0x1f7   :  { %5660 = vst.msk [vmem:[%s10166_s3 + $0x34c] sm:$0xf] %vm5448_vm3, %v6434_v21  ;;  %v9537_v61 = vpop.f32.mrb[115].mxu0  ;;  %v9539_v28 = vpop.f32.mrb[115].mxu1  ;;  %5530 = vst.msk [vmem:[%s10166_s3 + $0x144] sm:$0xf] %vm5448_vm3, %v6304_v18  ;;  %v6437_v36 = vpack.c.bf16 %v4382_v20, %v4382_v20 }
 0x1f8   :  { %10206 = vst [vmem:[#allocation22_spill] sm:$0xff] %v9537_v61  ;;  %10207 = vst [vmem:[#allocation23_spill] sm:$0xff] %v9539_v28  ;;  %v4124_v1 = vmul.f32 0.2, %v3612_v54  ;;  %vm3743_vm6 = vcmp.ge.f32.partialorder %v3487_v9, 0.0  ;;  %v3613_v55 = vld [vmem:[#allocation2 + $0x6a8] sm:$0xff]  ;;  %v4252_v48 = vsel %vm3740_vm4, %v3484_v58, %v3996_v33 }
 0x1f9   :  { %5658 = vst.msk [vmem:[%s10166_s3 + $0x344] sm:$0xf] %vm5448_vm3, %v6432_v46  ;;  %v3999_v35 = vmul.f32 0.2, %v3487_v9  ;;  %vm3871_vm7 = vcmp.ge.f32.partialorder %v3615_v45, 0.0  ;;  %v3490_v11 = vld [vmem:[#allocation2 + $0x2d0] sm:$0xff]  ;;  %v6307_v10 = vpack.c.bf16 %v4252_v48, %v4252_v48 }
 0x1fa   :  { %5535 = vst.msk [vmem:[%s10166_s3 + $0x158] sm:$0xf] %vm5448_vm3, %v6309_v14  ;;  %v4380_v22 = vsel %vm3868_vm5, %v3612_v54, %v4124_v1  ;;  %v4127_v63 = vmul.f32 0.2, %v3615_v45  ;;  %vm3741_vm8 = vcmp.ge.f32.partialorder %v3485_v17, 0.0  ;;  %v3618_v7 = vld [vmem:[#allocation2 + $0x6d0] sm:$0xff] }
 0x1fb   :  { %5663 = vst.msk [vmem:[%s10166_s3 + $0x358] sm:$0xf] %vm5448_vm3, %v6437_v36  ;;  %v6435_v58 = vpack.c.bf16 %v4380_v22, %v4380_v22  ;;  %v4255_v21 = vsel %vm3743_vm6, %v3487_v9, %v3999_v35  ;;  %v3997_v38 = vmul.f32 0.2, %v3485_v17  ;;  %vm3869_vm9 = vcmp.ge.f32.partialorder %v3613_v55, 0.0  ;;  %v3488_v3 = vld [vmem:[#allocation2 + $0x2c0] sm:$0xff] }
 0x1fc   :  { %5533 = vst.msk [vmem:[%s10166_s3 + $0x150] sm:$0xf] %vm5448_vm3, %v6307_v10  ;;  %v6310_v54 = vpack.c.bf16 %v4255_v21, %v4255_v21  ;;  %v4383_v18 = vsel %vm3871_vm7, %v3615_v45, %v4127_v63  ;;  %v4125_v53 = vmul.f32 0.2, %v3613_v55  ;;  %vm3746_vm10 = vcmp.ge.f32.partialorder %v3490_v11, 0.0  ;;  %v3616_v60 = vld [vmem:[#allocation2 + $0x6c0] sm:$0xff] }
 0x1fd   :  { %v9566_v46 = vpop.f32.mrb[116].mxu0  ;;  %v9568_v56 = vpop.f32.mrb[116].mxu1  ;;  %5661 = vst.msk [vmem:[%s10166_s3 + $0x350] sm:$0xf] %vm5448_vm3, %v6435_v58  ;;  %v6438_v9 = vpack.c.bf16 %v4383_v18, %v4383_v18  ;;  %v4253_v33 = vsel %vm3741_vm8, %v3485_v17, %v3997_v38  ;;  %v4002_v14 = vmul.f32 0.2, %v3490_v11 }
 0x1fe   :  { %10208 = vst [vmem:[#allocation24_spill] sm:$0xff] %v9566_v46  ;;  %10209 = vst [vmem:[#allocation25_spill] sm:$0xff] %v9568_v56  ;;  %vm3874_vm11 = vcmp.ge.f32.partialorder %v3618_v7, 0.0  ;;  %v3491_v20 = vld [vmem:[#allocation2 + $0x2d8] sm:$0xff]  ;;  %v372_v1 = vld [vmem:[#allocation2 + $0x2c8] sm:$0xff]  ;;  %v9575_v45 = vpop.f32.mrb[117].mxu0  ;;  %v6308_v48 = vpack.c.bf16 %v4253_v33, %v4253_v33  ;;  %v4381_v35 = vsel %vm3869_vm9, %v3613_v55, %v4125_v53 }
 0x1ff   :  { %10210 = vst [vmem:[#allocation26_spill] sm:$0xff] %v9575_v45  ;;  %v9577_v36 = vpop.f32.mrb[117].mxu1  ;;  %5536 = vst.msk [vmem:[%s10166_s3 + $0x15c] sm:$0xf] %vm5448_vm3, %v6310_v54  ;;  %v4130_v10 = vmul.f32 0.2, %v3618_v7  ;;  %v6436_v38 = vpack.c.bf16 %v4381_v35, %v4381_v35  ;;  %v4258_v54 = vsel %vm3746_vm10, %v3490_v11, %v4002_v14 }
 0x200   :  { %10211 = vst [vmem:[#allocation27_spill] sm:$0xff] %v9577_v36  ;;  %vm3744_vm12 = vcmp.ge.f32.partialorder %v3488_v3, 0.0  ;;  %v3619_v22 = vld [vmem:[#allocation2 + $0x6d8] sm:$0xff]  ;;  %v500_v17 = vld [vmem:[#allocation2 + $0x6c8] sm:$0xff]  ;;  %v377_v63 = vld [vmem:[#allocation2 + $0x2f0] sm:$0xff]  ;;  %v9584_v58 = vpop.f32.mrb[118].mxu0 }
 0x201   :  { %10212 = vst [vmem:[#allocation28_spill] sm:$0xff] %v9584_v58  ;;  %v9586_v21 = vpop.f32.mrb[118].mxu1  ;;  %5664 = vst.msk [vmem:[%s10166_s3 + $0x35c] sm:$0xf] %vm5448_vm3, %v6438_v9  ;;  %v4000_v18 = vmul.f32 0.2, %v3488_v3  ;;  %v4386_v58 = vsel %vm3874_vm11, %v3618_v7, %v4130_v10 }
 0x202   :  { %10213 = vst [vmem:[#allocation29_spill] sm:$0xff] %v9586_v21  ;;  %vm3872_vm13 = vcmp.ge.f32.partialorder %v3616_v60, 0.0  ;;  %v505_v55 = vld [vmem:[#allocation2 + $0x6f0] sm:$0xff]  ;;  %v375_v53 = vld [vmem:[#allocation2 + $0x2e0] sm:$0xff]  ;;  %v9593_v33 = vpop.f32.mrb[119].mxu0  ;;  %v9595_v36 = vpop.f32.mrb[119].mxu1  ;;  %v6313_v21 = vpack.c.bf16 %v4258_v54, %v4258_v54 }
 0x203   :  { %10214 = vst [vmem:[#allocation30_spill] sm:$0xff] %v9593_v33  ;;  %10215 = vst [vmem:[#allocation31_spill] sm:$0xff] %v9595_v36  ;;  %v4128_v9 = vmul.f32 0.2, %v3616_v60  ;;  %vm3747_vm14 = vcmp.ge.f32.partialorder %v3491_v20, 0.0  ;;  %v503_v35 = vld [vmem:[#allocation2 + $0x6e0] sm:$0xff]  ;;  %v6441_v33 = vpack.c.bf16 %v4386_v58, %v4386_v58  ;;  %v4256_v36 = vsel %vm3744_vm12, %v3488_v3, %v4000_v18 }
 0x204   :  { %5534 = vst.msk [vmem:[%s10166_s3 + $0x154] sm:$0xf] %vm5448_vm3, %v6308_v48  ;;  %v378_v11 = vld [vmem:[#allocation2 + $0x2f8] sm:$0xff]  ;;  %5662 = vst.msk [vmem:[%s10166_s3 + $0x354] sm:$0xf] %vm5448_vm3, %v6436_v38  ;;  %vm3875_vm15 = vcmp.ge.f32.partialorder %v3619_v22, 0.0  ;;  %v6311_v7 = vpack.c.bf16 %v4256_v36, %v4256_v36 }
 0x205   :  { %v506_v14 = vld [vmem:[#allocation2 + $0x6f8] sm:$0xff]  ;;  %v4003_v45 = vmul.f32 0.2, %v3491_v20  ;;  %v376_v56 = vld [vmem:[#allocation2 + $0x2e8] sm:$0xff]  ;;  %v381_v54 = vld [vmem:[#allocation2 + $0x310] sm:$0xff]  ;;  %v4384_v10 = vsel %vm3872_vm13, %v3616_v60, %v4128_v9 }
 0x206   :  { %v504_v48 = vld [vmem:[#allocation2 + $0x6e8] sm:$0xff]  ;;  %5539 = vst.msk [vmem:[%s10166_s3 + $0x168] sm:$0xf] %vm5448_vm3, %v6313_v21  ;;  %v4131_v46 = vmul.f32 0.2, %v3619_v22  ;;  %v10216_v28 = vld [vmem:[#allocation5_spill] sm:$0xff]  ;;  %v6439_v3 = vpack.c.bf16 %v4384_v10, %v4384_v10 }
 0x207   :  { %v2974_v61 = vadd.f32 %v10216_v28, %v372_v1  ;;  %v509_v38 = vld [vmem:[#allocation2 + $0x710] sm:$0xff]  ;;  %v379_v58 = vld [vmem:[#allocation2 + $0x300] sm:$0xff]  ;;  %5667 = vst.msk [vmem:[%s10166_s3 + $0x368] sm:$0xf] %vm5448_vm3, %v6441_v33  ;;  %v4259_v18 = vsel %vm3747_vm14, %v3491_v20, %v4003_v45  ;;  %v10217_v24 = vld [vmem:[#allocation6_spill] sm:$0xff] }
 0x208   :  { %v507_v8 = vld [vmem:[#allocation2 + $0x700] sm:$0xff]  ;;  %v3102_v32 = vadd.f32 %v10217_v24, %v500_v17  ;;  %v382_v27 = vld [vmem:[#allocation2 + $0x318] sm:$0xff]  ;;  %v380_v9 = vld [vmem:[#allocation2 + $0x308] sm:$0xff]  ;;  %5537 = vst.msk [vmem:[%s10166_s3 + $0x160] sm:$0xf] %vm5448_vm3, %v6311_v7  ;;  %v6314_v28 = vpack.c.bf16 %v4259_v18, %v4259_v18  ;;  %v4387_v1 = vsel %vm3875_vm15, %v3619_v22, %v4131_v46 }
 0x209   :  { %v10218_v21 = vld [vmem:[#allocation11_spill] sm:$0xff]  ;;  %v510_v60 = vld [vmem:[#allocation2 + $0x718] sm:$0xff]  ;;  %3230 = vst.msk [vmem:[#allocation2 + $0x2c8] sm:$0xff] %vm26_vm0, %v2974_v61  ;;  %v10219_v33 = vld [vmem:[#allocation12_spill] sm:$0xff]  ;;  %v6442_v7 = vpack.c.bf16 %v4387_v1, %v4387_v1 }
 0x20a   :  { %v2979_v36 = vadd.f32 %v10218_v21, %v377_v63  ;;  %v3107_v10 = vadd.f32 %v10219_v33, %v505_v55  ;;  %v10220_v20 = vld [vmem:[#allocation13_spill] sm:$0xff]  ;;  %v508_v24 = vld [vmem:[#allocation2 + $0x708] sm:$0xff]  ;;  %v9628_v21 = vpop.f32.mrb[120].mxu0  ;;  %5665 = vst.msk [vmem:[%s10166_s3 + $0x360] sm:$0xf] %vm5448_vm3, %v6439_v3  ;;  %v10222_v61 = vld [vmem:[#allocation14_spill] sm:$0xff] }
 0x20b   :  { %v2977_v45 = vadd.f32 %v10220_v20, %v375_v53  ;;  %v385_v17 = vld [vmem:[#allocation2 + $0x330] sm:$0xff]  ;;  %10221 = vst [vmem:[#allocation5_spill] sm:$0xff] %v9628_v21  ;;  %3358 = vst.msk [vmem:[#allocation2 + $0x6c8] sm:$0xff] %vm26_vm0, %v3102_v32  ;;  %v3105_v46 = vadd.f32 %v10222_v61, %v503_v35  ;;  %v10223_v22 = vld [vmem:[#allocation15_spill] sm:$0xff]  ;;  %v9639_v21 = vpop.f32.mrb[120].mxu1  ;;  %v9641_v62 = vpop.f32.mrb[121].mxu0 }
 0x20c   :  { %v513_v63 = vld [vmem:[#allocation2 + $0x730] sm:$0xff]  ;;  %3235 = vst.msk [vmem:[#allocation2 + $0x2f0] sm:$0xff] %vm26_vm0, %v2979_v36  ;;  %v2980_v55 = vadd.f32 %v10223_v22, %v378_v11  ;;  %v10224_v53 = vld [vmem:[#allocation16_spill] sm:$0xff]  ;;  %v383_v33 = vld [vmem:[#allocation2 + $0x320] sm:$0xff]  ;;  %v9655_v39 = vpop.f32.mrb[122].mxu0 }
 0x20d   :  { %v3108_v18 = vadd.f32 %v10224_v53, %v506_v14  ;;  %v511_v20 = vld [vmem:[#allocation2 + $0x720] sm:$0xff]  ;;  %v386_v13 = vld [vmem:[#allocation2 + $0x338] sm:$0xff]  ;;  %10225 = vst [vmem:[#allocation6_spill] sm:$0xff] %v9639_v21  ;;  %10226 = vst [vmem:[#allocation11_spill] sm:$0xff] %v9641_v62  ;;  %v9653_v21 = vpop.f32.mrb[121].mxu1 }
 0x20e   :  { %5540 = vst.msk [vmem:[%s10166_s3 + $0x16c] sm:$0xf] %vm5448_vm3, %v6314_v28  ;;  %v10227_v32 = vld [vmem:[#allocation17_spill] sm:$0xff]  ;;  %v10228_v11 = vld [vmem:[#allocation18_spill] sm:$0xff]  ;;  %v10229_v3 = vld [vmem:[#allocation7_spill] sm:$0xff] }
 0x20f   :  { %3363 = vst.msk [vmem:[#allocation2 + $0x6f0] sm:$0xff] %vm26_vm0, %v3107_v10  ;;  %3233 = vst.msk [vmem:[#allocation2 + $0x2e0] sm:$0xff] %vm26_vm0, %v2977_v45  ;;  %v2978_v35 = vadd.f32 %v10227_v32, %v376_v56  ;;  %v3106_v14 = vadd.f32 %v10228_v11, %v504_v48  ;;  %v2983_v36 = vadd.f32 %v10229_v3, %v381_v54  ;;  %v10230_v1 = vld [vmem:[#allocation19_spill] sm:$0xff]  ;;  %v514_v22 = vld [vmem:[#allocation2 + $0x738] sm:$0xff]  ;;  %v9668_v32 = vpop.f32.mrb[122].mxu1 }
 0x210   :  { %v3111_v61 = vadd.f32 %v10230_v1, %v509_v38  ;;  %v384_v53 = vld [vmem:[#allocation2 + $0x328] sm:$0xff]  ;;  %5668 = vst.msk [vmem:[%s10166_s3 + $0x36c] sm:$0xf] %vm5448_vm3, %v6442_v7  ;;  %v2981_v56 = vadd.f32 %v9278_v57, %v379_v58  ;;  %v3109_v48 = vadd.f32 %v9280_v30, %v507_v8  ;;  %v2984_v54 = vadd.f32 %v9287_v12, %v382_v27  ;;  %v389_v28 = vld [vmem:[#allocation2 + $0x350] sm:$0xff]  ;;  %v387_v45 = vld [vmem:[#allocation2 + $0x340] sm:$0xff]  ;;  %v9670_v7 = vpop.f32.mrb[123].mxu0 }
 0x211   :  { %v512_v62 = vld [vmem:[#allocation2 + $0x728] sm:$0xff]  ;;  %3361 = vst.msk [vmem:[#allocation2 + $0x6e0] sm:$0xff] %vm26_vm0, %v3105_v46  ;;  %3236 = vst.msk [vmem:[#allocation2 + $0x2f8] sm:$0xff] %vm26_vm0, %v2980_v55  ;;  %v3112_v38 = vadd.f32 %v9289_v52, %v510_v60  ;;  %v517_v10 = vld [vmem:[#allocation2 + $0x750] sm:$0xff]  ;;  %v2982_v57 = vadd.f32 %v9300_v31, %v380_v9  ;;  %v3110_v30 = vadd.f32 %v9302_v0, %v508_v24  ;;  %v9680_v60 = vpop.f32.mrb[123].mxu1 }
 0x212   :  { %3364 = vst.msk [vmem:[#allocation2 + $0x6f8] sm:$0xff] %vm26_vm0, %v3108_v18  ;;  %3234 = vst.msk [vmem:[#allocation2 + $0x2e8] sm:$0xff] %vm26_vm0, %v2978_v35  ;;  %v2987_v12 = vadd.f32 %v9349_v15, %v385_v17  ;;  %v3115_v52 = vadd.f32 %v9351_v50, %v513_v63  ;;  %v515_v27 = vld [vmem:[#allocation2 + $0x740] sm:$0xff]  ;;  %v390_v8 = vld [vmem:[#allocation2 + $0x358] sm:$0xff]  ;;  %v2985_v31 = vadd.f32 %v9361_v4, %v383_v33 }
 0x213   :  { %3362 = vst.msk [vmem:[#allocation2 + $0x6e8] sm:$0xff] %vm26_vm0, %v3106_v14  ;;  %3239 = vst.msk [vmem:[#allocation2 + $0x310] sm:$0xff] %vm26_vm0, %v2983_v36  ;;  %v518_v58 = vld [vmem:[#allocation2 + $0x758] sm:$0xff]  ;;  %v3113_v0 = vadd.f32 %v9363_v5, %v511_v20  ;;  %v2988_v15 = vadd.f32 %v9377_v29, %v386_v13  ;;  %v3116_v50 = vadd.f32 %v9379_v6, %v514_v22  ;;  %v388_v9 = vld [vmem:[#allocation2 + $0x348] sm:$0xff]  ;;  %v9724_v36 = vpop.f32.mrb[124].mxu1 }
 0x214   :  { %3367 = vst.msk [vmem:[#allocation2 + $0x710] sm:$0xff] %vm26_vm0, %v3111_v61  ;;  %3237 = vst.msk [vmem:[#allocation2 + $0x300] sm:$0xff] %vm26_vm0, %v2981_v56  ;;  %v516_v24 = vld [vmem:[#allocation2 + $0x748] sm:$0xff]  ;;  %v2986_v17 = vadd.f32 %v9429_v49, %v384_v53  ;;  %v3114_v4 = vadd.f32 %v9431_v59, %v512_v62  ;;  %v2991_v5 = vadd.f32 %v9438_v43, %v389_v28  ;;  %v393_v13 = vld [vmem:[#allocation2 + $0x370] sm:$0xff] }
 0x215   :  { %3365 = vst.msk [vmem:[#allocation2 + $0x700] sm:$0xff] %vm26_vm0, %v3109_v48  ;;  %3240 = vst.msk [vmem:[#allocation2 + $0x318] sm:$0xff] %vm26_vm0, %v2984_v54  ;;  %v3119_v29 = vadd.f32 %v9440_v37, %v517_v10  ;;  %v3489_v6 = vld [vmem:[#allocation2 + $0x2c8] sm:$0xff]  ;;  %v2989_v63 = vadd.f32 %v9447_v2, %v387_v45  ;;  %v3117_v49 = vadd.f32 %v9449_v19, %v515_v27  ;;  %v521_v62 = vld [vmem:[#allocation2 + $0x770] sm:$0xff]  ;;  %v9730_v54 = vpop.f32.mrb[125].mxu1 }
 0x216   :  { %3368 = vst.msk [vmem:[#allocation2 + $0x718] sm:$0xff] %vm26_vm0, %v3112_v38  ;;  %3238 = vst.msk [vmem:[#allocation2 + $0x308] sm:$0xff] %vm26_vm0, %v2982_v57  ;;  %v2992_v59 = vadd.f32 %v9456_v26, %v390_v8  ;;  %v3120_v43 = vadd.f32 %v9458_v44, %v518_v58  ;;  %v391_v37 = vld [vmem:[#allocation2 + $0x360] sm:$0xff]  ;;  %vm3745_vm1 = vcmp.ge.f32.partialorder %v3489_v6, 0.0  ;;  %v4001_v46 = vmul.f32 0.2, %v3489_v6 }
 0x217   :  { %3366 = vst.msk [vmem:[#allocation2 + $0x708] sm:$0xff] %vm26_vm0, %v3110_v30  ;;  %3243 = vst.msk [vmem:[#allocation2 + $0x330] sm:$0xff] %vm26_vm0, %v2987_v12  ;;  %v3617_v55 = vld [vmem:[#allocation2 + $0x6c8] sm:$0xff]  ;;  %v3494_v18 = vld [vmem:[#allocation2 + $0x2f0] sm:$0xff]  ;;  %v2990_v2 = vadd.f32 %v9465_v40, %v388_v9  ;;  %v3118_v19 = vadd.f32 %v9467_v23, %v516_v24  ;;  %v9712_v26 = vpop.f32.mrb[124].mxu0  ;;  %v2995_v23 = vadd.f32 %v9474_v47, %v393_v13 }
 0x218   :  { %3371 = vst.msk [vmem:[#allocation2 + $0x730] sm:$0xff] %vm26_vm0, %v3115_v52  ;;  %3241 = vst.msk [vmem:[#allocation2 + $0x320] sm:$0xff] %vm26_vm0, %v2985_v31  ;;  %vm3873_vm2 = vcmp.ge.f32.partialorder %v3617_v55, 0.0  ;;  %v4129_v44 = vmul.f32 0.2, %v3617_v55  ;;  %vm3750_vm4 = vcmp.ge.f32.partialorder %v3494_v18, 0.0  ;;  %v4257_v20 = vsel %vm3745_vm1, %v3489_v6, %v4001_v46 }
 0x219   :  { %3369 = vst.msk [vmem:[#allocation2 + $0x720] sm:$0xff] %vm26_vm0, %v3113_v0  ;;  %3244 = vst.msk [vmem:[#allocation2 + $0x338] sm:$0xff] %vm26_vm0, %v2988_v15  ;;  %v4006_v33 = vmul.f32 0.2, %v3494_v18  ;;  %v3622_v35 = vld [vmem:[#allocation2 + $0x6f0] sm:$0xff]  ;;  %v3492_v40 = vld [vmem:[#allocation2 + $0x2e0] sm:$0xff]  ;;  %v3123_v14 = vadd.f32 %v9476_v34, %v521_v62  ;;  %v2993_v3 = vadd.f32 %v9483_v42, %v391_v37  ;;  %v6312_v61 = vpack.c.bf16 %v4257_v20, %v4257_v20 }
 0x21a   :  { %3372 = vst.msk [vmem:[#allocation2 + $0x738] sm:$0xff] %vm26_vm0, %v3116_v50  ;;  %3242 = vst.msk [vmem:[#allocation2 + $0x328] sm:$0xff] %vm26_vm0, %v2986_v17  ;;  %v3620_v11 = vld [vmem:[#allocation2 + $0x6e0] sm:$0xff]  ;;  %v9726_v1 = vpop.f32.mrb[125].mxu0  ;;  %v4385_v22 = vsel %vm3873_vm2, %v3617_v55, %v4129_v44  ;;  %vm3878_vm5 = vcmp.ge.f32.partialorder %v3622_v35, 0.0  ;;  %v3495_v56 = vld [vmem:[#allocation2 + $0x2f8] sm:$0xff] }
 0x21b   :  { %3370 = vst.msk [vmem:[#allocation2 + $0x728] sm:$0xff] %vm26_vm0, %v3114_v4  ;;  %3247 = vst.msk [vmem:[#allocation2 + $0x350] sm:$0xff] %vm26_vm0, %v2991_v5  ;;  %v4262_v53 = vsel %vm3750_vm4, %v3494_v18, %v4006_v33  ;;  %v3623_v48 = vld [vmem:[#allocation2 + $0x6f8] sm:$0xff]  ;;  %v9732_v38 = vpop.f32.mrb[126].mxu0  ;;  %v6440_v47 = vpack.c.bf16 %v4385_v22, %v4385_v22  ;;  %v4134_v28 = vmul.f32 0.2, %v3622_v35 }
 0x21c   :  { %3375 = vst.msk [vmem:[#allocation2 + $0x750] sm:$0xff] %vm26_vm0, %v3119_v29  ;;  %3245 = vst.msk [vmem:[#allocation2 + $0x340] sm:$0xff] %vm26_vm0, %v2989_v63  ;;  %v6317_v34 = vpack.c.bf16 %v4262_v53, %v4262_v53  ;;  %vm3748_vm6 = vcmp.ge.f32.partialorder %v3492_v40, 0.0  ;;  %v3493_v42 = vld [vmem:[#allocation2 + $0x2e8] sm:$0xff]  ;;  %v4004_v10 = vmul.f32 0.2, %v3492_v40 }
 0x21d   :  { %3373 = vst.msk [vmem:[#allocation2 + $0x740] sm:$0xff] %vm26_vm0, %v3117_v49  ;;  %3248 = vst.msk [vmem:[#allocation2 + $0x358] sm:$0xff] %vm26_vm0, %v2992_v59  ;;  %vm3876_vm7 = vcmp.ge.f32.partialorder %v3620_v11, 0.0  ;;  %v4132_v45 = vmul.f32 0.2, %v3620_v11  ;;  %vm3751_vm8 = vcmp.ge.f32.partialorder %v3495_v56, 0.0  ;;  %v4390_v57 = vsel %vm3878_vm5, %v3622_v35, %v4134_v28 }
 0x21e   :  { %3376 = vst.msk [vmem:[#allocation2 + $0x758] sm:$0xff] %vm26_vm0, %v3120_v43  ;;  %3246 = vst.msk [vmem:[#allocation2 + $0x348] sm:$0xff] %vm26_vm0, %v2990_v2  ;;  %v4007_v30 = vmul.f32 0.2, %v3495_v56  ;;  %vm3879_vm9 = vcmp.ge.f32.partialorder %v3623_v48, 0.0  ;;  %v3621_v52 = vld [vmem:[#allocation2 + $0x6e8] sm:$0xff]  ;;  %v6445_v27 = vpack.c.bf16 %v4390_v57, %v4390_v57  ;;  %v4260_v8 = vsel %vm3748_vm6, %v3492_v40, %v4004_v10 }
 0x21f   :  { %3374 = vst.msk [vmem:[#allocation2 + $0x748] sm:$0xff] %vm26_vm0, %v3118_v19  ;;  %3251 = vst.msk [vmem:[#allocation2 + $0x370] sm:$0xff] %vm26_vm0, %v2995_v23  ;;  %v4135_v12 = vmul.f32 0.2, %v3623_v48  ;;  %v4388_v58 = vsel %vm3876_vm7, %v3620_v11, %v4132_v45  ;;  %vm3749_vm10 = vcmp.ge.f32.partialorder %v3493_v42, 0.0  ;;  %v3498_v31 = vld [vmem:[#allocation2 + $0x310] sm:$0xff]  ;;  %v6315_v9 = vpack.c.bf16 %v4260_v8, %v4260_v8 }
 0x220   :  { %3379 = vst.msk [vmem:[#allocation2 + $0x770] sm:$0xff] %vm26_vm0, %v3123_v14  ;;  %3249 = vst.msk [vmem:[#allocation2 + $0x360] sm:$0xff] %vm26_vm0, %v2993_v3  ;;  %v3626_v0 = vld [vmem:[#allocation2 + $0x710] sm:$0xff]  ;;  %v9751_v15 = vpop.f32.mrb[126].mxu1  ;;  %v9753_v50 = vpop.f32.mrb[127].mxu0  ;;  %v6443_v24 = vpack.c.bf16 %v4388_v58, %v4388_v58  ;;  %v4263_v17 = vsel %vm3751_vm8, %v3495_v56, %v4007_v30  ;;  %v3496_v5 = vld [vmem:[#allocation2 + $0x300] sm:$0xff] }
 0x221   :  { %5538 = vst.msk [vmem:[%s10166_s3 + $0x164] sm:$0xf] %vm5448_vm3, %v6312_v61  ;;  %5666 = vst.msk [vmem:[%s10166_s3 + $0x364] sm:$0xf] %vm5448_vm3, %v6440_v47  ;;  %v4391_v4 = vsel %vm3879_vm9, %v3623_v48, %v4135_v12  ;;  %v9756_v29 = vpop.f32.mrb[127].mxu1  ;;  %v6318_v13 = vpack.c.bf16 %v4263_v17, %v4263_v17  ;;  %vm3877_vm11 = vcmp.ge.f32.partialorder %v3621_v52, 0.0 }
 0x222   :  { %5543 = vst.msk [vmem:[%s10166_s3 + $0x178] sm:$0xf] %vm5448_vm3, %v6317_v34  ;;  %5671 = vst.msk [vmem:[%s10166_s3 + $0x378] sm:$0xf] %vm5448_vm3, %v6445_v27  ;;  %v6446_v6 = vpack.c.bf16 %v4391_v4, %v4391_v4  ;;  %v4005_v63 = vmul.f32 0.2, %v3493_v42 }
 0x223   :  { %v3624_v49 = vld [vmem:[#allocation2 + $0x700] sm:$0xff]  ;;  %5541 = vst.msk [vmem:[%s10166_s3 + $0x170] sm:$0xf] %vm5448_vm3, %v6315_v9  ;;  %5669 = vst.msk [vmem:[%s10166_s3 + $0x370] sm:$0xf] %vm5448_vm3, %v6443_v24  ;;  %vm3754_vm12 = vcmp.ge.f32.partialorder %v3498_v31, 0.0 }
 0x224   :  { %v4133_v59 = vmul.f32 0.2, %v3621_v52  ;;  %v4010_v43 = vmul.f32 0.2, %v3498_v31  ;;  %vm3882_vm13 = vcmp.ge.f32.partialorder %v3626_v0, 0.0  ;;  %v4261_v62 = vsel %vm3749_vm10, %v3493_v42, %v4005_v63  ;;  %v3499_v55 = vld [vmem:[#allocation2 + $0x318] sm:$0xff] }
 0x225   :  { %5544 = vst.msk [vmem:[%s10166_s3 + $0x17c] sm:$0xf] %vm5448_vm3, %v6318_v13  ;;  %5672 = vst.msk [vmem:[%s10166_s3 + $0x37c] sm:$0xf] %vm5448_vm3, %v6446_v6  ;;  %v4138_v37 = vmul.f32 0.2, %v3626_v0  ;;  %v6316_v18 = vpack.c.bf16 %v4261_v62, %v4261_v62 }
 0x226   :  { %vm3752_vm14 = vcmp.ge.f32.partialorder %v3496_v5, 0.0  ;;  %v4008_v46 = vmul.f32 0.2, %v3496_v5  ;;  %v4389_v2 = vsel %vm3877_vm11, %v3621_v52, %v4133_v59  ;;  %v4266_v19 = vsel %vm3754_vm12, %v3498_v31, %v4010_v43  ;;  %v3627_v44 = vld [vmem:[#allocation2 + $0x718] sm:$0xff]  ;;  %v3497_v33 = vld [vmem:[#allocation2 + $0x308] sm:$0xff]  ;;  %v3502_v22 = vld [vmem:[#allocation2 + $0x330] sm:$0xff] }
 0x227   :  { %vm3880_vm15 = vcmp.ge.f32.partialorder %v3624_v49, 0.0  ;;  %v6444_v20 = vpack.c.bf16 %v4389_v2, %v4389_v2  ;;  %v6321_v35 = vpack.c.bf16 %v4266_v19, %v4266_v19  ;;  %v4394_v40 = vsel %vm3882_vm13, %v3626_v0, %v4138_v37  ;;  %v3625_v23 = vld [vmem:[#allocation2 + $0x708] sm:$0xff]  ;;  %5542 = vst.msk [vmem:[%s10166_s3 + $0x174] sm:$0xf] %vm5448_vm3, %v6316_v18  ;;  %v3630_v28 = vld [vmem:[#allocation2 + $0x730] sm:$0xff]  ;;  %v3500_v57 = vld [vmem:[#allocation2 + $0x320] sm:$0xff] }
 0x228   :  { %v4264_v11 = vsel %vm3752_vm14, %v3496_v5, %v4008_v46  ;;  %v6449_v14 = vpack.c.bf16 %v4394_v40, %v4394_v40  ;;  %v4136_v61 = vmul.f32 0.2, %v3624_v49  ;;  %vm3755_vm1 = vcmp.ge.f32.partialorder %v3499_v55, 0.0  ;;  %v3628_v30 = vld [vmem:[#allocation2 + $0x720] sm:$0xff]  ;;  %v3503_v58 = vld [vmem:[#allocation2 + $0x338] sm:$0xff]  ;;  %v3501_v63 = vld [vmem:[#allocation2 + $0x328] sm:$0xff] }
 0x229   :  { %v6319_v3 = vpack.c.bf16 %v4264_v11, %v4264_v11  ;;  %5670 = vst.msk [vmem:[%s10166_s3 + $0x374] sm:$0xf] %vm5448_vm3, %v6444_v20  ;;  %5547 = vst.msk [vmem:[%s10166_s3 + $0x188] sm:$0xf] %vm5448_vm3, %v6321_v35  ;;  %v4011_v53 = vmul.f32 0.2, %v3499_v55 }
 0x22a   :  { %vm3883_vm2 = vcmp.ge.f32.partialorder %v3627_v44, 0.0  ;;  %v4139_v56 = vmul.f32 0.2, %v3627_v44  ;;  %vm3753_vm4 = vcmp.ge.f32.partialorder %v3497_v33, 0.0  ;;  %5675 = vst.msk [vmem:[%s10166_s3 + $0x388] sm:$0xf] %vm5448_vm3, %v6449_v14  ;;  %v4392_v48 = vsel %vm3880_vm15, %v3624_v49, %v4136_v61 }
 0x22b   :  { %5545 = vst.msk [vmem:[%s10166_s3 + $0x180] sm:$0xf] %vm5448_vm3, %v6319_v3  ;;  %v4009_v47 = vmul.f32 0.2, %v3497_v33  ;;  %vm3881_vm5 = vcmp.ge.f32.partialorder %v3625_v23, 0.0  ;;  %v6447_v42 = vpack.c.bf16 %v4392_v48, %v4392_v48  ;;  %v4267_v10 = vsel %vm3755_vm1, %v3499_v55, %v4011_v53  ;;  %v3631_v24 = vld [vmem:[#allocation2 + $0x738] sm:$0xff] }
 0x22c   :  { %v4137_v34 = vmul.f32 0.2, %v3625_v23  ;;  %v4395_v45 = vsel %vm3883_vm2, %v3627_v44, %v4139_v56  ;;  %vm3758_vm6 = vcmp.ge.f32.partialorder %v3502_v22, 0.0  ;;  %v6322_v12 = vpack.c.bf16 %v4267_v10, %v4267_v10  ;;  %v3629_v62 = vld [vmem:[#allocation2 + $0x728] sm:$0xff]  ;;  %v3506_v37 = vld [vmem:[#allocation2 + $0x350] sm:$0xff]  ;;  %v3504_v35 = vld [vmem:[#allocation2 + $0x340] sm:$0xff] }
 0x22d   :  { %v6450_v52 = vpack.c.bf16 %v4395_v45, %v4395_v45  ;;  %v4265_v27 = vsel %vm3753_vm4, %v3497_v33, %v4009_v47  ;;  %5673 = vst.msk [vmem:[%s10166_s3 + $0x380] sm:$0xf] %vm5448_vm3, %v6447_v42  ;;  %v4014_v9 = vmul.f32 0.2, %v3502_v22  ;;  %vm3886_vm7 = vcmp.ge.f32.partialorder %v3630_v28, 0.0  ;;  %v3634_v19 = vld [vmem:[#allocation2 + $0x750] sm:$0xff] }
 0x22e   :  { %v4393_v8 = vsel %vm3881_vm5, %v3625_v23, %v4137_v34  ;;  %v6320_v31 = vpack.c.bf16 %v4265_v27, %v4265_v27  ;;  %5548 = vst.msk [vmem:[%s10166_s3 + $0x18c] sm:$0xf] %vm5448_vm3, %v6322_v12  ;;  %v4142_v17 = vmul.f32 0.2, %v3630_v28  ;;  %vm3756_vm8 = vcmp.ge.f32.partialorder %v3500_v57, 0.0  ;;  %v3632_v61 = vld [vmem:[#allocation2 + $0x740] sm:$0xff] }
 0x22f   :  { %v6448_v0 = vpack.c.bf16 %v4393_v8, %v4393_v8  ;;  %5676 = vst.msk [vmem:[%s10166_s3 + $0x38c] sm:$0xf] %vm5448_vm3, %v6450_v52  ;;  %v4012_v4 = vmul.f32 0.2, %v3500_v57  ;;  %vm3884_vm9 = vcmp.ge.f32.partialorder %v3628_v30, 0.0  ;;  %v4270_v5 = vsel %vm3758_vm6, %v3502_v22, %v4014_v9  ;;  %v3507_v48 = vld [vmem:[#allocation2 + $0x358] sm:$0xff] }
 0x230   :  { %5546 = vst.msk [vmem:[%s10166_s3 + $0x184] sm:$0xf] %vm5448_vm3, %v6320_v31  ;;  %v4140_v13 = vmul.f32 0.2, %v3628_v30  ;;  %vm3759_vm10 = vcmp.ge.f32.partialorder %v3503_v58, 0.0  ;;  %v6325_v49 = vpack.c.bf16 %v4270_v5, %v4270_v5  ;;  %v4398_v59 = vsel %vm3886_vm7, %v3630_v28, %v4142_v17  ;;  %v3635_v47 = vld [vmem:[#allocation2 + $0x758] sm:$0xff] }
 0x231   :  { %5674 = vst.msk [vmem:[%s10166_s3 + $0x384] sm:$0xf] %vm5448_vm3, %v6448_v0  ;;  %v4015_v6 = vmul.f32 0.2, %v3503_v58  ;;  %v4268_v43 = vsel %vm3756_vm8, %v3500_v57, %v4012_v4  ;;  %vm3887_vm11 = vcmp.ge.f32.partialorder %v3631_v24, 0.0  ;;  %v6453_v46 = vpack.c.bf16 %v4398_v59, %v4398_v59  ;;  %v3505_v45 = vld [vmem:[#allocation2 + $0x348] sm:$0xff] }
 0x232   :  { %v6323_v55 = vpack.c.bf16 %v4268_v43, %v4268_v43  ;;  %v4396_v18 = vsel %vm3884_vm9, %v3628_v30, %v4140_v13  ;;  %5551 = vst.msk [vmem:[%s10166_s3 + $0x198] sm:$0xf] %vm5448_vm3, %v6325_v49  ;;  %v4143_v20 = vmul.f32 0.2, %v3631_v24  ;;  %vm3757_vm12 = vcmp.ge.f32.partialorder %v3501_v63, 0.0  ;;  %v3633_v52 = vld [vmem:[#allocation2 + $0x748] sm:$0xff] }
 0x233   :  { %v4271_v2 = vsel %vm3759_vm10, %v3503_v58, %v4015_v6  ;;  %v6451_v44 = vpack.c.bf16 %v4396_v18, %v4396_v18  ;;  %5679 = vst.msk [vmem:[%s10166_s3 + $0x398] sm:$0xf] %vm5448_vm3, %v6453_v46  ;;  %v4013_v40 = vmul.f32 0.2, %v3501_v63  ;;  %vm3885_vm13 = vcmp.ge.f32.partialorder %v3629_v62, 0.0  ;;  %v3510_v9 = vld [vmem:[#allocation2 + $0x370] sm:$0xff] }
 0x234   :  { %v6326_v33 = vpack.c.bf16 %v4271_v2, %v4271_v2  ;;  %5549 = vst.msk [vmem:[%s10166_s3 + $0x190] sm:$0xf] %vm5448_vm3, %v6323_v55  ;;  %v4141_v11 = vmul.f32 0.2, %v3629_v62  ;;  %vm3762_vm14 = vcmp.ge.f32.partialorder %v3506_v37, 0.0  ;;  %v4399_v23 = vsel %vm3887_vm11, %v3631_v24, %v4143_v20  ;;  %v3638_v5 = vld [vmem:[#allocation2 + $0x770] sm:$0xff] }
 0x235   :  { %5677 = vst.msk [vmem:[%s10166_s3 + $0x390] sm:$0xf] %vm5448_vm3, %v6451_v44  ;;  %v4018_v14 = vmul.f32 0.2, %v3506_v37  ;;  %vm3890_vm15 = vcmp.ge.f32.partialorder %v3634_v19, 0.0  ;;  %v6454_v22 = vpack.c.bf16 %v4399_v23, %v4399_v23  ;;  %v4269_v53 = vsel %vm3757_vm12, %v3501_v63, %v4013_v40  ;;  %v3508_v13 = vld [vmem:[#allocation2 + $0x360] sm:$0xff] }
 0x236   :  { %5552 = vst.msk [vmem:[%s10166_s3 + $0x19c] sm:$0xf] %vm5448_vm3, %v6326_v33  ;;  %v4146_v3 = vmul.f32 0.2, %v3634_v19  ;;  %v4397_v56 = vsel %vm3885_vm13, %v3629_v62, %v4141_v11  ;;  %vm3760_vm1 = vcmp.ge.f32.partialorder %v3504_v35, 0.0  ;;  %v6324_v34 = vpack.c.bf16 %v4269_v53, %v4269_v53  ;;  %v519_v6 = vld [vmem:[#allocation2 + $0x760] sm:$0xff] }
 0x237   :  { %v6452_v28 = vpack.c.bf16 %v4397_v56, %v4397_v56  ;;  %v4274_v42 = vsel %vm3762_vm14, %v3506_v37, %v4018_v14  ;;  %5680 = vst.msk [vmem:[%s10166_s3 + $0x39c] sm:$0xf] %vm5448_vm3, %v6454_v22  ;;  %v4016_v12 = vmul.f32 0.2, %v3504_v35  ;;  %vm3888_vm2 = vcmp.ge.f32.partialorder %v3632_v61, 0.0  ;;  %v394_v62 = vld [vmem:[#allocation2 + $0x378] sm:$0xff] }
 0x238   :  { %v4402_v10 = vsel %vm3890_vm15, %v3634_v19, %v4146_v3  ;;  %v6329_v57 = vpack.c.bf16 %v4274_v42, %v4274_v42  ;;  %5550 = vst.msk [vmem:[%s10166_s3 + $0x194] sm:$0xf] %vm5448_vm3, %v6324_v34  ;;  %v4144_v27 = vmul.f32 0.2, %v3632_v61  ;;  %vm3763_vm4 = vcmp.ge.f32.partialorder %v3507_v48, 0.0  ;;  %v522_v37 = vld [vmem:[#allocation2 + $0x778] sm:$0xff] }
 0x239   :  { %v6457_v30 = vpack.c.bf16 %v4402_v10, %v4402_v10  ;;  %5678 = vst.msk [vmem:[%s10166_s3 + $0x394] sm:$0xf] %vm5448_vm3, %v6452_v28  ;;  %v4019_v8 = vmul.f32 0.2, %v3507_v48  ;;  %vm3891_vm5 = vcmp.ge.f32.partialorder %v3635_v47, 0.0  ;;  %v4272_v58 = vsel %vm3760_vm1, %v3504_v35, %v4016_v12  ;;  %v392_v46 = vld [vmem:[#allocation2 + $0x368] sm:$0xff] }
 0x23a   :  { %5555 = vst.msk [vmem:[%s10166_s3 + $0x1a8] sm:$0xf] %vm5448_vm3, %v6329_v57  ;;  %v4147_v31 = vmul.f32 0.2, %v3635_v47  ;;  %vm3761_vm6 = vcmp.ge.f32.partialorder %v3505_v45, 0.0  ;;  %v6327_v24 = vpack.c.bf16 %v4272_v58, %v4272_v58  ;;  %v4400_v17 = vsel %vm3888_vm2, %v3632_v61, %v4144_v27  ;;  %v520_v19 = vld [vmem:[#allocation2 + $0x768] sm:$0xff] }
 0x23b   :  { %5683 = vst.msk [vmem:[%s10166_s3 + $0x3a8] sm:$0xf] %vm5448_vm3, %v6457_v30  ;;  %v4017_v0 = vmul.f32 0.2, %v3505_v45  ;;  %v4275_v4 = vsel %vm3763_vm4, %v3507_v48, %v4019_v8  ;;  %vm3889_vm7 = vcmp.ge.f32.partialorder %v3633_v52, 0.0  ;;  %v6455_v63 = vpack.c.bf16 %v4400_v17, %v4400_v17  ;;  %v397_v44 = vld [vmem:[#allocation2 + $0x390] sm:$0xff] }
 0x23c   :  { %v6330_v49 = vpack.c.bf16 %v4275_v4, %v4275_v4  ;;  %v4403_v59 = vsel %vm3891_vm5, %v3635_v47, %v4147_v31  ;;  %5553 = vst.msk [vmem:[%s10166_s3 + $0x1a0] sm:$0xf] %vm5448_vm3, %v6327_v24  ;;  %v4145_v2 = vmul.f32 0.2, %v3633_v52  ;;  %vm3766_vm8 = vcmp.ge.f32.partialorder %v3510_v9, 0.0  ;;  %v525_v33 = vld [vmem:[#allocation2 + $0x790] sm:$0xff] }
 0x23d   :  { %v4273_v43 = vsel %vm3761_vm6, %v3505_v45, %v4017_v0  ;;  %v6458_v55 = vpack.c.bf16 %v4403_v59, %v4403_v59  ;;  %5681 = vst.msk [vmem:[%s10166_s3 + $0x3a0] sm:$0xf] %vm5448_vm3, %v6455_v63  ;;  %v4022_v20 = vmul.f32 0.2, %v3510_v9  ;;  %vm3894_vm9 = vcmp.ge.f32.partialorder %v3638_v5, 0.0  ;;  %v395_v40 = vld [vmem:[#allocation2 + $0x380] sm:$0xff] }
 0x23e   :  { %v6328_v18 = vpack.c.bf16 %v4273_v43, %v4273_v43  ;;  %5556 = vst.msk [vmem:[%s10166_s3 + $0x1ac] sm:$0xf] %vm5448_vm3, %v6330_v49  ;;  %v4150_v35 = vmul.f32 0.2, %v3638_v5  ;;  %vm3764_vm10 = vcmp.ge.f32.partialorder %v3508_v13, 0.0  ;;  %v523_v11 = vld [vmem:[#allocation2 + $0x780] sm:$0xff]  ;;  %v4401_v14 = vsel %vm3889_vm7, %v3633_v52, %v4145_v2 }
 0x23f   :  { %v398_v23 = vld [vmem:[#allocation2 + $0x398] sm:$0xff]  ;;  %5684 = vst.msk [vmem:[%s10166_s3 + $0x3ac] sm:$0xf] %vm5448_vm3, %v6458_v55  ;;  %v4020_v3 = vmul.f32 0.2, %v3508_v13  ;;  %v3121_v61 = vadd.f32 %v9485_v51, %v519_v6  ;;  %v2996_v22 = vadd.f32 %v9492_v41, %v394_v62  ;;  %v396_v56 = vld [vmem:[#allocation2 + $0x388] sm:$0xff]  ;;  %v6456_v47 = vpack.c.bf16 %v4401_v14, %v4401_v14 }
 0x240   :  { %5554 = vst.msk [vmem:[%s10166_s3 + $0x1a4] sm:$0xf] %vm5448_vm3, %v6328_v18  ;;  %v526_v53 = vld [vmem:[#allocation2 + $0x798] sm:$0xff]  ;;  %v524_v48 = vld [vmem:[#allocation2 + $0x788] sm:$0xff]  ;;  %v4278_v34 = vsel %vm3766_vm8, %v3510_v9, %v4022_v20  ;;  %v4406_v28 = vsel %vm3894_vm9, %v3638_v5, %v4150_v35  ;;  %v3124_v42 = vadd.f32 %v9494_v16, %v522_v37  ;;  %v401_v10 = vld [vmem:[#allocation2 + $0x3b0] sm:$0xff]  ;;  %v2994_v51 = vadd.f32 %v9501_v25, %v392_v46 }
 0x241   :  { %v529_v45 = vld [vmem:[#allocation2 + $0x7b0] sm:$0xff]  ;;  %v399_v57 = vld [vmem:[#allocation2 + $0x3a0] sm:$0xff]  ;;  %v6333_v30 = vpack.c.bf16 %v4278_v34, %v4278_v34  ;;  %v6461_v12 = vpack.c.bf16 %v4406_v28, %v4406_v28  ;;  %v4276_v52 = vsel %vm3764_vm10, %v3508_v13, %v4020_v3  ;;  %3377 = vst.msk [vmem:[#allocation2 + $0x760] sm:$0xff] %vm26_vm0, %v3121_v61  ;;  %3252 = vst.msk [vmem:[#allocation2 + $0x378] sm:$0xff] %vm26_vm0, %v2996_v22 }
 0x242   :  { %v527_v41 = vld [vmem:[#allocation2 + $0x7a0] sm:$0xff]  ;;  %v402_v27 = vld [vmem:[#allocation2 + $0x3b8] sm:$0xff]  ;;  %5682 = vst.msk [vmem:[%s10166_s3 + $0x3a4] sm:$0xf] %vm5448_vm3, %v6456_v47  ;;  %v6331_v16 = vpack.c.bf16 %v4276_v52, %v4276_v52  ;;  %v10231_v58 = vld [vmem:[#allocation8_spill] sm:$0xff] }
 0x243   :  { %v530_v8 = vld [vmem:[#allocation2 + $0x7b8] sm:$0xff]  ;;  %3380 = vst.msk [vmem:[#allocation2 + $0x778] sm:$0xff] %vm26_vm0, %v3124_v42  ;;  %v3122_v31 = vadd.f32 %v10231_v58, %v520_v19  ;;  %v10232_v0 = vld [vmem:[#allocation9_spill] sm:$0xff]  ;;  %v400_v4 = vld [vmem:[#allocation2 + $0x3a8] sm:$0xff] }
 0x244   :  { %v2999_v9 = vadd.f32 %v10232_v0, %v397_v44  ;;  %v10233_v24 = vld [vmem:[#allocation10_spill] sm:$0xff]  ;;  %v528_v5 = vld [vmem:[#allocation2 + $0x7a8] sm:$0xff]  ;;  %v405_v25 = vld [vmem:[#allocation2 + $0x3d0] sm:$0xff]  ;;  %5559 = vst.msk [vmem:[%s10166_s3 + $0x1b8] sm:$0xf] %vm5448_vm3, %v6333_v30 }
 0x245   :  { %v3127_v17 = vadd.f32 %v10233_v24, %v525_v33  ;;  %5687 = vst.msk [vmem:[%s10166_s3 + $0x3b8] sm:$0xf] %vm5448_vm3, %v6461_v12  ;;  %v10234_v13 = vld [vmem:[#allocation3_spill] sm:$0xff]  ;;  %v10235_v63 = vld [vmem:[#allocation4_spill] sm:$0xff]  ;;  %v10237_v62 = vld [vmem:[#allocation21_spill] sm:$0xff] }
 0x246   :  { %3250 = vst.msk [vmem:[#allocation2 + $0x368] sm:$0xff] %vm26_vm0, %v2994_v51  ;;  %v2997_v6 = vadd.f32 %v10234_v13, %v395_v40  ;;  %v3125_v49 = vadd.f32 %v10235_v63, %v523_v11  ;;  %v10236_v59 = vld [vmem:[#allocation20_spill] sm:$0xff]  ;;  %v3128_v37 = vadd.f32 %v10237_v62, %v526_v53  ;;  %v533_v46 = vld [vmem:[#allocation2 + $0x7d0] sm:$0xff]  ;;  %v403_v55 = vld [vmem:[#allocation2 + $0x3c0] sm:$0xff] }
 0x247   :  { %v3000_v43 = vadd.f32 %v10236_v59, %v398_v23  ;;  %v531_v18 = vld [vmem:[#allocation2 + $0x7c0] sm:$0xff]  ;;  %5557 = vst.msk [vmem:[%s10166_s3 + $0x1b0] sm:$0xf] %vm5448_vm3, %v6331_v16  ;;  %v10238_v2 = vld [vmem:[#allocation22_spill] sm:$0xff]  ;;  %v10240_v20 = vld [vmem:[#allocation24_spill] sm:$0xff] }
 0x248   :  { %3378 = vst.msk [vmem:[#allocation2 + $0x768] sm:$0xff] %vm26_vm0, %v3122_v31  ;;  %3255 = vst.msk [vmem:[#allocation2 + $0x390] sm:$0xff] %vm26_vm0, %v2999_v9  ;;  %v2998_v19 = vadd.f32 %v10238_v2, %v396_v56  ;;  %v10239_v44 = vld [vmem:[#allocation23_spill] sm:$0xff]  ;;  %v3003_v35 = vadd.f32 %v10240_v20, %v401_v10  ;;  %v10241_v40 = vld [vmem:[#allocation25_spill] sm:$0xff]  ;;  %v3133_v0 = vadd.f32 %v9653_v21, %v531_v18 }
 0x249   :  { %3383 = vst.msk [vmem:[#allocation2 + $0x790] sm:$0xff] %vm26_vm0, %v3127_v17  ;;  %v3126_v33 = vadd.f32 %v10239_v44, %v524_v48  ;;  %v3131_v11 = vadd.f32 %v10241_v40, %v529_v45  ;;  %v406_v23 = vld [vmem:[#allocation2 + $0x3d8] sm:$0xff]  ;;  %v404_v3 = vld [vmem:[#allocation2 + $0x3c8] sm:$0xff]  ;;  %3253 = vst.msk [vmem:[#allocation2 + $0x380] sm:$0xff] %vm26_vm0, %v2997_v6 }
 0x24a   :  { %v534_v14 = vld [vmem:[#allocation2 + $0x7d8] sm:$0xff]  ;;  %3381 = vst.msk [vmem:[#allocation2 + $0x780] sm:$0xff] %vm26_vm0, %v3125_v49  ;;  %3256 = vst.msk [vmem:[#allocation2 + $0x398] sm:$0xff] %vm26_vm0, %v3000_v43  ;;  %v10243_v53 = vld [vmem:[#allocation27_spill] sm:$0xff]  ;;  %v3008_v9 = vadd.f32 %v9655_v39, %v406_v23  ;;  %v3006_v6 = vadd.f32 %v9670_v7, %v404_v3 }
 0x24b   :  { %3384 = vst.msk [vmem:[#allocation2 + $0x798] sm:$0xff] %vm26_vm0, %v3128_v37  ;;  %v10242_v61 = vld [vmem:[#allocation26_spill] sm:$0xff]  ;;  %v3129_v56 = vadd.f32 %v10243_v53, %v527_v41  ;;  %v10244_v48 = vld [vmem:[#allocation28_spill] sm:$0xff]  ;;  %v10245_v34 = vld [vmem:[#allocation29_spill] sm:$0xff]  ;;  %v3136_v24 = vadd.f32 %v9668_v32, %v534_v14 }
 0x24c   :  { %v3001_v22 = vadd.f32 %v10242_v61, %v399_v57  ;;  %v3004_v47 = vadd.f32 %v10244_v48, %v402_v27  ;;  %v3132_v28 = vadd.f32 %v10245_v34, %v530_v8  ;;  %v532_v42 = vld [vmem:[#allocation2 + $0x7c8] sm:$0xff]  ;;  %v409_v10 = vld [vmem:[#allocation2 + $0x3f0] sm:$0xff]  ;;  %3254 = vst.msk [vmem:[#allocation2 + $0x388] sm:$0xff] %vm26_vm0, %v2998_v19  ;;  %3382 = vst.msk [vmem:[#allocation2 + $0x788] sm:$0xff] %vm26_vm0, %v3126_v33 }
 0x24d   :  { %v537_v45 = vld [vmem:[#allocation2 + $0x7f0] sm:$0xff]  ;;  %3259 = vst.msk [vmem:[#allocation2 + $0x3b0] sm:$0xff] %vm26_vm0, %v3003_v35  ;;  %3387 = vst.msk [vmem:[#allocation2 + $0x7b0] sm:$0xff] %vm26_vm0, %v3131_v11  ;;  %v10246_v30 = vld [vmem:[#allocation30_spill] sm:$0xff]  ;;  %v3134_v21 = vadd.f32 %v9680_v60, %v532_v42  ;;  %v3011_v39 = vadd.f32 %v9712_v26, %v409_v10 }
 0x24e   :  { %v3002_v12 = vadd.f32 %v10246_v30, %v400_v4  ;;  %v10247_v57 = vld [vmem:[#allocation31_spill] sm:$0xff]  ;;  %v10248_v51 = vld [vmem:[#allocation5_spill] sm:$0xff]  ;;  %v10249_v27 = vld [vmem:[#allocation6_spill] sm:$0xff]  ;;  %3257 = vst.msk [vmem:[#allocation2 + $0x3a0] sm:$0xff] %vm26_vm0, %v3001_v22  ;;  %v3139_v32 = vadd.f32 %v9724_v36, %v537_v45 }
 0x24f   :  { %v3130_v52 = vadd.f32 %v10247_v57, %v528_v5  ;;  %v3007_v41 = vadd.f32 %v10248_v51, %v405_v25  ;;  %v3135_v16 = vadd.f32 %v10249_v27, %v533_v46  ;;  %v407_v8 = vld [vmem:[#allocation2 + $0x3e0] sm:$0xff]  ;;  %3385 = vst.msk [vmem:[#allocation2 + $0x7a0] sm:$0xff] %vm26_vm0, %v3129_v56  ;;  %3260 = vst.msk [vmem:[#allocation2 + $0x3b8] sm:$0xff] %vm26_vm0, %v3004_v47  ;;  %v410_v4 = vld [vmem:[#allocation2 + $0x3f8] sm:$0xff] }
 0x250   :  { %3388 = vst.msk [vmem:[#allocation2 + $0x7b8] sm:$0xff] %vm26_vm0, %v3132_v28  ;;  %v10250_v58 = vld [vmem:[#allocation11_spill] sm:$0xff]  ;;  %v538_v5 = vld [vmem:[#allocation2 + $0x7f8] sm:$0xff]  ;;  %3258 = vst.msk [vmem:[#allocation2 + $0x3a8] sm:$0xff] %vm26_vm0, %v3002_v12  ;;  %v3009_v60 = vadd.f32 %v9726_v1, %v407_v8  ;;  %v3012_v36 = vadd.f32 %v9732_v38, %v410_v4 }
 0x251   :  { %v3005_v31 = vadd.f32 %v10250_v58, %v403_v55  ;;  %v535_v17 = vld [vmem:[#allocation2 + $0x7e0] sm:$0xff]  ;;  %v3511_v13 = vld [vmem:[#allocation2 + $0x378] sm:$0xff]  ;;  %3386 = vst.msk [vmem:[#allocation2 + $0x7a8] sm:$0xff] %vm26_vm0, %v3130_v52  ;;  %3263 = vst.msk [vmem:[#allocation2 + $0x3d0] sm:$0xff] %vm26_vm0, %v3007_v41  ;;  %v3140_v43 = vadd.f32 %v9751_v15, %v538_v5 }
 0x252   :  { %v3636_v25 = vld [vmem:[#allocation2 + $0x760] sm:$0xff]  ;;  %3391 = vst.msk [vmem:[#allocation2 + $0x7d0] sm:$0xff] %vm26_vm0, %v3135_v16  ;;  %vm3767_vm12 = vcmp.ge.f32.partialorder %v3511_v13, 0.0  ;;  %v4023_v49 = vmul.f32 0.2, %v3511_v13  ;;  %3389 = vst.msk [vmem:[#allocation2 + $0x7c0] sm:$0xff] %vm26_vm0, %v3133_v0  ;;  %v3137_v26 = vadd.f32 %v9730_v54, %v535_v17 }
 0x253   :  { %vm3892_vm11 = vcmp.ge.f32.partialorder %v3636_v25, 0.0  ;;  %v4148_v63 = vmul.f32 0.2, %v3636_v25  ;;  %3261 = vst.msk [vmem:[#allocation2 + $0x3c0] sm:$0xff] %vm26_vm0, %v3005_v31  ;;  %3264 = vst.msk [vmem:[#allocation2 + $0x3d8] sm:$0xff] %vm26_vm0, %v3008_v9  ;;  %v3639_v59 = vld [vmem:[#allocation2 + $0x778] sm:$0xff] }
 0x254   :  { %3392 = vst.msk [vmem:[#allocation2 + $0x7d8] sm:$0xff] %vm26_vm0, %v3136_v24  ;;  %v3509_v7 = vld [vmem:[#allocation2 + $0x368] sm:$0xff]  ;;  %3262 = vst.msk [vmem:[#allocation2 + $0x3c8] sm:$0xff] %vm26_vm0, %v3006_v6  ;;  %v4279_v37 = vsel %vm3767_vm12, %v3511_v13, %v4023_v49  ;;  %vm3895_vm13 = vcmp.ge.f32.partialorder %v3639_v59, 0.0  ;;  %v4151_v46 = vmul.f32 0.2, %v3639_v59 }
 0x255   :  { %3390 = vst.msk [vmem:[#allocation2 + $0x7c8] sm:$0xff] %vm26_vm0, %v3134_v21  ;;  %3267 = vst.msk [vmem:[#allocation2 + $0x3f0] sm:$0xff] %vm26_vm0, %v3011_v39  ;;  %v4404_v62 = vsel %vm3892_vm11, %v3636_v25, %v4148_v63  ;;  %v3637_v55 = vld [vmem:[#allocation2 + $0x768] sm:$0xff]  ;;  %v3514_v18 = vld [vmem:[#allocation2 + $0x390] sm:$0xff]  ;;  %v6334_v44 = vpack.c.bf16 %v4279_v37, %v4279_v37  ;;  %vm3765_vm14 = vcmp.ge.f32.partialorder %v3509_v7, 0.0 }
 0x256   :  { %3395 = vst.msk [vmem:[#allocation2 + $0x7f0] sm:$0xff] %vm26_vm0, %v3139_v32  ;;  %v3642_v2 = vld [vmem:[#allocation2 + $0x790] sm:$0xff]  ;;  %v6459_v19 = vpack.c.bf16 %v4404_v62, %v4404_v62  ;;  %v4021_v33 = vmul.f32 0.2, %v3509_v7  ;;  %v3512_v1 = vld [vmem:[#allocation2 + $0x380] sm:$0xff]  ;;  %3265 = vst.msk [vmem:[#allocation2 + $0x3e0] sm:$0xff] %vm26_vm0, %v3009_v60  ;;  %v4407_v54 = vsel %vm3895_vm13, %v3639_v59, %v4151_v46 }
 0x257   :  { %3393 = vst.msk [vmem:[#allocation2 + $0x7e0] sm:$0xff] %vm26_vm0, %v3137_v26  ;;  %3268 = vst.msk [vmem:[#allocation2 + $0x3f8] sm:$0xff] %vm26_vm0, %v3012_v36  ;;  %vm3893_vm15 = vcmp.ge.f32.partialorder %v3637_v55, 0.0  ;;  %v4149_v38 = vmul.f32 0.2, %v3637_v55  ;;  %vm3770_vm1 = vcmp.ge.f32.partialorder %v3514_v18, 0.0  ;;  %v6462_v20 = vpack.c.bf16 %v4407_v54, %v4407_v54 }
 0x258   :  { %3396 = vst.msk [vmem:[#allocation2 + $0x7f8] sm:$0xff] %vm26_vm0, %v3140_v43  ;;  %v3640_v15 = vld [vmem:[#allocation2 + $0x780] sm:$0xff]  ;;  %v4277_v35 = vsel %vm3765_vm14, %v3509_v7, %v4021_v33  ;;  %v4026_v40 = vmul.f32 0.2, %v3514_v18  ;;  %vm3898_vm2 = vcmp.ge.f32.partialorder %v3642_v2, 0.0  ;;  %v3515_v11 = vld [vmem:[#allocation2 + $0x398] sm:$0xff] }
 0x259   :  { %5685 = vst.msk [vmem:[%s10166_s3 + $0x3b0] sm:$0xf] %vm5448_vm3, %v6459_v19  ;;  %5560 = vst.msk [vmem:[%s10166_s3 + $0x1bc] sm:$0xf] %vm5448_vm3, %v6334_v44  ;;  %v6332_v23 = vpack.c.bf16 %v4277_v35, %v4277_v35  ;;  %v4405_v14 = vsel %vm3893_vm15, %v3637_v55, %v4149_v38  ;;  %v4154_v3 = vmul.f32 0.2, %v3642_v2 }
 0x25a   :  { %vm3768_vm4 = vcmp.ge.f32.partialorder %v3512_v1, 0.0  ;;  %v3643_v61 = vld [vmem:[#allocation2 + $0x798] sm:$0xff]  ;;  %5688 = vst.msk [vmem:[%s10166_s3 + $0x3bc] sm:$0xf] %vm5448_vm3, %v6462_v20  ;;  %v6460_v22 = vpack.c.bf16 %v4405_v14, %v4405_v14  ;;  %v4282_v53 = vsel %vm3770_vm1, %v3514_v18, %v4026_v40  ;;  %v4024_v56 = vmul.f32 0.2, %v3512_v1 }
 0x25b   :  { %vm3896_vm5 = vcmp.ge.f32.partialorder %v3640_v15, 0.0  ;;  %v3513_v48 = vld [vmem:[#allocation2 + $0x388] sm:$0xff]  ;;  %5558 = vst.msk [vmem:[%s10166_s3 + $0x1b4] sm:$0xf] %vm5448_vm3, %v6332_v23  ;;  %v6337_v47 = vpack.c.bf16 %v4282_v53, %v4282_v53  ;;  %v4410_v34 = vsel %vm3898_vm2, %v3642_v2, %v4154_v3  ;;  %v4152_v28 = vmul.f32 0.2, %v3640_v15 }
 0x25c   :  { %vm3771_vm6 = vcmp.ge.f32.partialorder %v3515_v11, 0.0  ;;  %v3641_v42 = vld [vmem:[#allocation2 + $0x788] sm:$0xff]  ;;  %5686 = vst.msk [vmem:[%s10166_s3 + $0x3b4] sm:$0xf] %vm5448_vm3, %v6460_v22  ;;  %v6465_v10 = vpack.c.bf16 %v4410_v34, %v4410_v34  ;;  %v4280_v45 = vsel %vm3768_vm4, %v3512_v1, %v4024_v56  ;;  %v4027_v30 = vmul.f32 0.2, %v3515_v11 }
 0x25d   :  { %vm3899_vm7 = vcmp.ge.f32.partialorder %v3643_v61, 0.0  ;;  %v3518_v12 = vld [vmem:[#allocation2 + $0x3b0] sm:$0xff]  ;;  %5563 = vst.msk [vmem:[%s10166_s3 + $0x1c8] sm:$0xf] %vm5448_vm3, %v6337_v47  ;;  %v6335_v57 = vpack.c.bf16 %v4280_v45, %v4280_v45  ;;  %v4408_v52 = vsel %vm3896_vm5, %v3640_v15, %v4152_v28  ;;  %v4155_v51 = vmul.f32 0.2, %v3643_v61 }
 0x25e   :  { %vm3769_vm8 = vcmp.ge.f32.partialorder %v3513_v48, 0.0  ;;  %v3646_v41 = vld [vmem:[#allocation2 + $0x7b0] sm:$0xff]  ;;  %5691 = vst.msk [vmem:[%s10166_s3 + $0x3c8] sm:$0xf] %vm5448_vm3, %v6465_v10  ;;  %v6463_v27 = vpack.c.bf16 %v4408_v52, %v4408_v52  ;;  %v4283_v16 = vsel %vm3771_vm6, %v3515_v11, %v4027_v30  ;;  %v4025_v8 = vmul.f32 0.2, %v3513_v48 }
 0x25f   :  { %vm3897_vm9 = vcmp.ge.f32.partialorder %v3641_v42, 0.0  ;;  %v3516_v58 = vld [vmem:[#allocation2 + $0x3a0] sm:$0xff]  ;;  %5561 = vst.msk [vmem:[%s10166_s3 + $0x1c0] sm:$0xf] %vm5448_vm3, %v6335_v57  ;;  %v6338_v31 = vpack.c.bf16 %v4283_v16, %v4283_v16  ;;  %v4411_v0 = vsel %vm3899_vm7, %v3643_v61, %v4155_v51  ;;  %v4153_v9 = vmul.f32 0.2, %v3641_v42 }
 0x260   :  { %vm3774_vm10 = vcmp.ge.f32.partialorder %v3518_v12, 0.0  ;;  %v3644_v24 = vld [vmem:[#allocation2 + $0x7a0] sm:$0xff]  ;;  %5689 = vst.msk [vmem:[%s10166_s3 + $0x3c0] sm:$0xf] %vm5448_vm3, %v6463_v27  ;;  %v6466_v17 = vpack.c.bf16 %v4411_v0, %v4411_v0  ;;  %v4281_v4 = vsel %vm3769_vm8, %v3513_v48, %v4025_v8  ;;  %v4030_v5 = vmul.f32 0.2, %v3518_v12 }
 0x261   :  { %vm3902_vm11 = vcmp.ge.f32.partialorder %v3646_v41, 0.0  ;;  %v3519_v25 = vld [vmem:[#allocation2 + $0x3b8] sm:$0xff]  ;;  %5564 = vst.msk [vmem:[%s10166_s3 + $0x1cc] sm:$0xf] %vm5448_vm3, %v6338_v31  ;;  %v6336_v13 = vpack.c.bf16 %v4281_v4, %v4281_v4  ;;  %v4409_v6 = vsel %vm3897_vm9, %v3641_v42, %v4153_v9  ;;  %v4158_v21 = vmul.f32 0.2, %v3646_v41 }
 0x262   :  { %vm3772_vm12 = vcmp.ge.f32.partialorder %v3516_v58, 0.0  ;;  %v3647_v39 = vld [vmem:[#allocation2 + $0x7b8] sm:$0xff]  ;;  %5692 = vst.msk [vmem:[%s10166_s3 + $0x3cc] sm:$0xf] %vm5448_vm3, %v6466_v17  ;;  %v6464_v32 = vpack.c.bf16 %v4409_v6, %v4409_v6  ;;  %v4286_v63 = vsel %vm3774_vm10, %v3518_v12, %v4030_v5  ;;  %v4028_v49 = vmul.f32 0.2, %v3516_v58 }
 0x263   :  { %vm3900_vm13 = vcmp.ge.f32.partialorder %v3644_v24, 0.0  ;;  %v3517_v59 = vld [vmem:[#allocation2 + $0x3a8] sm:$0xff]  ;;  %5562 = vst.msk [vmem:[%s10166_s3 + $0x1c4] sm:$0xf] %vm5448_vm3, %v6336_v13  ;;  %v6341_v7 = vpack.c.bf16 %v4286_v63, %v4286_v63  ;;  %v4414_v60 = vsel %vm3902_vm11, %v3646_v41, %v4158_v21  ;;  %v4156_v26 = vmul.f32 0.2, %v3644_v24 }
 0x264   :  { %vm3775_vm14 = vcmp.ge.f32.partialorder %v3519_v25, 0.0  ;;  %v3645_v36 = vld [vmem:[#allocation2 + $0x7a8] sm:$0xff]  ;;  %5690 = vst.msk [vmem:[%s10166_s3 + $0x3c4] sm:$0xf] %vm5448_vm3, %v6464_v32  ;;  %v6469_v43 = vpack.c.bf16 %v4414_v60, %v4414_v60  ;;  %v4284_v62 = vsel %vm3772_vm12, %v3516_v58, %v4028_v49  ;;  %v4031_v37 = vmul.f32 0.2, %v3519_v25 }
 0x265   :  { %vm3903_vm15 = vcmp.ge.f32.partialorder %v3647_v39, 0.0  ;;  %v3522_v46 = vld [vmem:[#allocation2 + $0x3d0] sm:$0xff]  ;;  %5567 = vst.msk [vmem:[%s10166_s3 + $0x1d8] sm:$0xf] %vm5448_vm3, %v6341_v7  ;;  %v6339_v55 = vpack.c.bf16 %v4284_v62, %v4284_v62  ;;  %v4412_v18 = vsel %vm3900_vm13, %v3644_v24, %v4156_v26  ;;  %v4159_v2 = vmul.f32 0.2, %v3647_v39 }
 0x266   :  { %vm3773_vm1 = vcmp.ge.f32.partialorder %v3517_v59, 0.0  ;;  %v3650_v19 = vld [vmem:[#allocation2 + $0x7d0] sm:$0xff]  ;;  %5695 = vst.msk [vmem:[%s10166_s3 + $0x3d8] sm:$0xf] %vm5448_vm3, %v6469_v43  ;;  %v6467_v44 = vpack.c.bf16 %v4412_v18, %v4412_v18  ;;  %v4287_v33 = vsel %vm3775_vm14, %v3519_v25, %v4031_v37  ;;  %v4029_v1 = vmul.f32 0.2, %v3517_v59 }
 0x267   :  { %vm3901_vm2 = vcmp.ge.f32.partialorder %v3645_v36, 0.0  ;;  %v3520_v54 = vld [vmem:[#allocation2 + $0x3c0] sm:$0xff]  ;;  %5565 = vst.msk [vmem:[%s10166_s3 + $0x1d0] sm:$0xf] %vm5448_vm3, %v6339_v55  ;;  %v6342_v38 = vpack.c.bf16 %v4287_v33, %v4287_v33  ;;  %v4415_v15 = vsel %vm3903_vm15, %v3647_v39, %v4159_v2  ;;  %v4157_v20 = vmul.f32 0.2, %v3645_v36 }
 0x268   :  { %vm3778_vm4 = vcmp.ge.f32.partialorder %v3522_v46, 0.0  ;;  %v3648_v35 = vld [vmem:[#allocation2 + $0x7c0] sm:$0xff]  ;;  %5693 = vst.msk [vmem:[%s10166_s3 + $0x3d0] sm:$0xf] %vm5448_vm3, %v6467_v44  ;;  %v6470_v40 = vpack.c.bf16 %v4415_v15, %v4415_v15  ;;  %v4285_v11 = vsel %vm3773_vm1, %v3517_v59, %v4029_v1  ;;  %v4034_v23 = vmul.f32 0.2, %v3522_v46 }
 0x269   :  { %vm3906_vm5 = vcmp.ge.f32.partialorder %v3650_v19, 0.0  ;;  %v3523_v14 = vld [vmem:[#allocation2 + $0x3d8] sm:$0xff]  ;;  %5568 = vst.msk [vmem:[%s10166_s3 + $0x1dc] sm:$0xf] %vm5448_vm3, %v6342_v38  ;;  %v6340_v3 = vpack.c.bf16 %v4285_v11, %v4285_v11  ;;  %v4413_v61 = vsel %vm3901_vm2, %v3645_v36, %v4157_v20  ;;  %v4162_v22 = vmul.f32 0.2, %v3650_v19 }
 0x26a   :  { %vm3776_vm6 = vcmp.ge.f32.partialorder %v3520_v54, 0.0  ;;  %v3651_v53 = vld [vmem:[#allocation2 + $0x7d8] sm:$0xff]  ;;  %5696 = vst.msk [vmem:[%s10166_s3 + $0x3dc] sm:$0xf] %vm5448_vm3, %v6470_v40  ;;  %v6468_v56 = vpack.c.bf16 %v4413_v61, %v4413_v61  ;;  %v4290_v48 = vsel %vm3778_vm4, %v3522_v46, %v4034_v23  ;;  %v4032_v47 = vmul.f32 0.2, %v3520_v54 }
 0x26b   :  { %vm3904_vm7 = vcmp.ge.f32.partialorder %v3648_v35, 0.0  ;;  %v3521_v34 = vld [vmem:[#allocation2 + $0x3c8] sm:$0xff]  ;;  %5566 = vst.msk [vmem:[%s10166_s3 + $0x1d4] sm:$0xf] %vm5448_vm3, %v6340_v3  ;;  %v6345_v28 = vpack.c.bf16 %v4290_v48, %v4290_v48  ;;  %v4418_v42 = vsel %vm3906_vm5, %v3650_v19, %v4162_v22  ;;  %v4160_v10 = vmul.f32 0.2, %v3648_v35 }
 0x26c   :  { %vm3779_vm8 = vcmp.ge.f32.partialorder %v3523_v14, 0.0  ;;  %v3649_v45 = vld [vmem:[#allocation2 + $0x7c8] sm:$0xff]  ;;  %5694 = vst.msk [vmem:[%s10166_s3 + $0x3d4] sm:$0xf] %vm5448_vm3, %v6468_v56  ;;  %v6473_v30 = vpack.c.bf16 %v4418_v42, %v4418_v42  ;;  %v4288_v12 = vsel %vm3776_vm6, %v3520_v54, %v4032_v47  ;;  %v4035_v57 = vmul.f32 0.2, %v3523_v14 }
 0x26d   :  { %vm3907_vm9 = vcmp.ge.f32.partialorder %v3651_v53, 0.0  ;;  %v3526_v52 = vld [vmem:[#allocation2 + $0x3f0] sm:$0xff]  ;;  %5571 = vst.msk [vmem:[%s10166_s3 + $0x1e8] sm:$0xf] %vm5448_vm3, %v6345_v28  ;;  %v6343_v51 = vpack.c.bf16 %v4288_v12, %v4288_v12  ;;  %v4416_v41 = vsel %vm3904_vm7, %v3648_v35, %v4160_v10  ;;  %v4163_v27 = vmul.f32 0.2, %v3651_v53 }
 0x26e   :  { %vm3777_vm10 = vcmp.ge.f32.partialorder %v3521_v34, 0.0  ;;  %v3654_v16 = vld [vmem:[#allocation2 + $0x7f0] sm:$0xff]  ;;  %5699 = vst.msk [vmem:[%s10166_s3 + $0x3e8] sm:$0xf] %vm5448_vm3, %v6473_v30  ;;  %v6471_v8 = vpack.c.bf16 %v4416_v41, %v4416_v41  ;;  %v4291_v58 = vsel %vm3779_vm8, %v3523_v14, %v4035_v57  ;;  %v4033_v31 = vmul.f32 0.2, %v3521_v34 }
 0x26f   :  { %vm3905_vm11 = vcmp.ge.f32.partialorder %v3649_v45, 0.0  ;;  %v3524_v0 = vld [vmem:[#allocation2 + $0x3e0] sm:$0xff]  ;;  %5569 = vst.msk [vmem:[%s10166_s3 + $0x1e0] sm:$0xf] %vm5448_vm3, %v6343_v51  ;;  %v6346_v9 = vpack.c.bf16 %v4291_v58, %v4291_v58  ;;  %v4419_v24 = vsel %vm3907_vm9, %v3651_v53, %v4163_v27  ;;  %v4161_v17 = vmul.f32 0.2, %v3649_v45 }
 0x270   :  { %vm3782_vm12 = vcmp.ge.f32.partialorder %v3526_v52, 0.0  ;;  %v3652_v4 = vld [vmem:[#allocation2 + $0x7e0] sm:$0xff]  ;;  %5697 = vst.msk [vmem:[%s10166_s3 + $0x3e0] sm:$0xf] %vm5448_vm3, %v6471_v8  ;;  %v6474_v5 = vpack.c.bf16 %v4419_v24, %v4419_v24  ;;  %v4289_v25 = vsel %vm3777_vm10, %v3521_v34, %v4033_v31  ;;  %v4038_v13 = vmul.f32 0.2, %v3526_v52 }
 0x271   :  { %vm3910_vm13 = vcmp.ge.f32.partialorder %v3654_v16, 0.0  ;;  %v3527_v6 = vld [vmem:[#allocation2 + $0x3f8] sm:$0xff]  ;;  %5572 = vst.msk [vmem:[%s10166_s3 + $0x1ec] sm:$0xf] %vm5448_vm3, %v6346_v9  ;;  %v6344_v21 = vpack.c.bf16 %v4289_v25, %v4289_v25  ;;  %v4417_v39 = vsel %vm3905_vm11, %v3649_v45, %v4161_v17  ;;  %v4166_v32 = vmul.f32 0.2, %v3654_v16 }
 0x272   :  { %vm3780_vm14 = vcmp.ge.f32.partialorder %v3524_v0, 0.0  ;;  %v3655_v63 = vld [vmem:[#allocation2 + $0x7f8] sm:$0xff]  ;;  %5700 = vst.msk [vmem:[%s10166_s3 + $0x3ec] sm:$0xf] %vm5448_vm3, %v6474_v5  ;;  %v6472_v49 = vpack.c.bf16 %v4417_v39, %v4417_v39  ;;  %v4294_v59 = vsel %vm3782_vm12, %v3526_v52, %v4038_v13  ;;  %v4036_v7 = vmul.f32 0.2, %v3524_v0 }
 0x273   :  { %vm3908_vm15 = vcmp.ge.f32.partialorder %v3652_v4, 0.0  ;;  %v408_v60 = vld [vmem:[#allocation2 + $0x3e8] sm:$0xff]  ;;  %5570 = vst.msk [vmem:[%s10166_s3 + $0x1e4] sm:$0xf] %vm5448_vm3, %v6344_v21  ;;  %v6349_v26 = vpack.c.bf16 %v4294_v59, %v4294_v59  ;;  %v4422_v36 = vsel %vm3910_vm13, %v3654_v16, %v4166_v32  ;;  %v4164_v43 = vmul.f32 0.2, %v3652_v4 }
 0x274   :  { %vm3783_vm1 = vcmp.ge.f32.partialorder %v3527_v6, 0.0  ;;  %v536_v62 = vld [vmem:[#allocation2 + $0x7e8] sm:$0xff]  ;;  %5698 = vst.msk [vmem:[%s10166_s3 + $0x3e4] sm:$0xf] %vm5448_vm3, %v6472_v49  ;;  %v6477_v37 = vpack.c.bf16 %v4422_v36, %v4422_v36  ;;  %v4292_v46 = vsel %vm3780_vm14, %v3524_v0, %v4036_v7  ;;  %v4039_v55 = vmul.f32 0.2, %v3527_v6 }
 0x275   :  { %vm3911_vm2 = vcmp.ge.f32.partialorder %v3655_v63, 0.0  ;;  %5575 = vst.msk [vmem:[%s10166_s3 + $0x1f8] sm:$0xf] %vm5448_vm3, %v6349_v26  ;;  %v6347_v18 = vpack.c.bf16 %v4292_v46, %v4292_v46  ;;  %v4420_v2 = vsel %vm3908_vm15, %v3652_v4, %v4164_v43  ;;  %v4167_v19 = vmul.f32 0.2, %v3655_v63 }
 0x276   :  { %v3010_v44 = vadd.f32 %v9753_v50, %v408_v60  ;;  %5703 = vst.msk [vmem:[%s10166_s3 + $0x3f8] sm:$0xf] %vm5448_vm3, %v6477_v37  ;;  %v6475_v33 = vpack.c.bf16 %v4420_v2, %v4420_v2  ;;  %v4295_v1 = vsel %vm3783_vm1, %v3527_v6, %v4039_v55  ;;  %v3138_v54 = vadd.f32 %v9756_v29, %v536_v62 }
 0x277   :  { %5573 = vst.msk [vmem:[%s10166_s3 + $0x1f0] sm:$0xf] %vm5448_vm3, %v6347_v18  ;;  %v6350_v38 = vpack.c.bf16 %v4295_v1, %v4295_v1  ;;  %v4423_v15 = vsel %vm3911_vm2, %v3655_v63, %v4167_v19 }
 0x278   :  { %3266 = vst.msk [vmem:[#allocation2 + $0x3e8] sm:$0xff] %vm26_vm0, %v3010_v44  ;;  %v6478_v50 = vpack.c.bf16 %v4423_v15, %v4423_v15  ;;  %3394 = vst.msk [vmem:[#allocation2 + $0x7e8] sm:$0xff] %vm26_vm0, %v3138_v54 }
 0x279   :  { %5701 = vst.msk [vmem:[%s10166_s3 + $0x3f0] sm:$0xf] %vm5448_vm3, %v6475_v33  ;;  %5576 = vst.msk [vmem:[%s10166_s3 + $0x1fc] sm:$0xf] %vm5448_vm3, %v6350_v38 }
 0x27a   :  { %5704 = vst.msk [vmem:[%s10166_s3 + $0x3fc] sm:$0xf] %vm5448_vm3, %v6478_v50 }
 0x27f   :  { %v3525_v29 = vld [vmem:[#allocation2 + $0x3e8] sm:$0xff] }
 0x280   :  { %vm3781_vm4 = vcmp.ge.f32.partialorder %v3525_v29, 0.0  ;;  %v4037_v20 = vmul.f32 0.2, %v3525_v29  ;;  %v3653_v35 = vld [vmem:[#allocation2 + $0x7e8] sm:$0xff] }
 0x281   :  { %vm3909_vm5 = vcmp.ge.f32.partialorder %v3653_v35, 0.0  ;;  %v4165_v40 = vmul.f32 0.2, %v3653_v35 }
 0x282   :  { %v4293_v11 = vsel %vm3781_vm4, %v3525_v29, %v4037_v20 }
 0x283   :  { %v6348_v23 = vpack.c.bf16 %v4293_v11, %v4293_v11  ;;  %v4421_v14 = vsel %vm3909_vm5, %v3653_v35, %v4165_v40 }
 0x284   :  { %v6476_v3 = vpack.c.bf16 %v4421_v14, %v4421_v14 }
 0x285   :  { %5574 = vst.msk [vmem:[%s10166_s3 + $0x1f4] sm:$0xf] %vm5448_vm3, %v6348_v23 }
 0x286   :  { %5702 = vst.msk [vmem:[%s10166_s3 + $0x3f4] sm:$0xf] %vm5448_vm3, %v6476_v3 }

// kernel: discriminator_forward.6
= control target key start
LH: loop header
LB: loop body
LE: loop exit
PB: predicated region body
PF: predicated region fallthrough
CT: control target
= control target key end

     0   :  { %v2023_v0 = vmov 0   ;;  %vm26_vm0 = vcmask 261120   ;;  %vm1600_vm3 = vcmask 257024   ;;  %s2773_s1 = inlined_call_operand.vmem [shape: bf16[256,32], index: 1, kind: input, shape index: {}]   ;;  %s2774_s0 = inlined_call_operand.vmem [shape: bf16[512,256], index: 0, kind: input, shape index: {}]   ;;  %s2775_s2 = inlined_call_operand.vmem [shape: f32[1,32], index: 2, kind: input, shape index: {}]   ;;  %s2776_s3 = inlined_call_operand.vmem [shape: bf16[512,32], index: 3, kind: output, shape index: {}]  }
   0x1   :  { %667 = vmatprep.subr.bf16.mxu0 %v2023_v0  ;;  %1878 = vmatprep.subr.bf16.mxu1 %v2023_v0  ;;  %v1911_v1 = vld [vmem:[%s2773_s1] sm:$0xff]   ;;  %v1912_v2 = vld [vmem:[%s2773_s1 + $0x8] sm:$0xff]   ;;  %v1913_v3 = vld [vmem:[%s2773_s1 + $0x10] sm:$0xff]  }
   0x2   :  { %668 = vmatpush1.bf16.msra.mxu0 %v1911_v1  ;;  %1894 = vmatpush1.bf16.msra.mxu1 %v1911_v1  ;;  %v1914_v4 = vld [vmem:[%s2773_s1 + $0x18] sm:$0xff]   ;;  %v1915_v5 = vld [vmem:[%s2773_s1 + $0x20] sm:$0xff]   ;;  %v1916_v7 = vld [vmem:[%s2773_s1 + $0x28] sm:$0xff]  }
   0x3   :  { %669 = vmatprep.subr.bf16.mxu0 %v2023_v0  ;;  %1879 = vmatprep.subr.bf16.mxu1 %v2023_v0  ;;  %v1929_v6 = vld [vmem:[%s2774_s0 + $0x4] ss:$8 sps:$4 sm:$0xff]   ;;  %v1917_v9 = vld [vmem:[%s2773_s1 + $0x30] sm:$0xff]   ;;  %v1918_v10 = vld [vmem:[%s2773_s1 + $0x38] sm:$0xff]  }
   0x4   :  { %v1932_v8 = vld [vmem:[%s2774_s0 + $0x104] ss:$8 sps:$4 sm:$0xff]   ;;  %699 = vmatprep.mubr.bf16.mxu0 %v1929_v6  ;;  %v1921_v13 = vld [vmem:[%s2773_s1 + $0x50] sm:$0xff]   ;;  %v1922_v14 = vld [vmem:[%s2773_s1 + $0x58] sm:$0xff]  }
   0x5   :  { %827 = vmatprep.mubr.bf16.mxu1 %v1932_v8  ;;  %v1919_v11 = vld [vmem:[%s2773_s1 + $0x40] sm:$0xff]   ;;  %v1920_v12 = vld [vmem:[%s2773_s1 + $0x48] sm:$0xff]   ;;  %v1925_v17 = vld [vmem:[%s2773_s1 + $0x70] sm:$0xff]  }
   0x6   :  { %670 = vmatpush1.bf16.msra.mxu0 %v1912_v2  ;;  %1895 = vmatpush1.bf16.msra.mxu1 %v1912_v2  ;;  %v1923_v15 = vld [vmem:[%s2773_s1 + $0x60] sm:$0xff]   ;;  %v1924_v16 = vld [vmem:[%s2773_s1 + $0x68] sm:$0xff]   ;;  %v2128_v18 = vld [vmem:[%s2773_s1 + $0x78] sm:$0xff]  }
   0x7   :  { %671 = vmatprep.subr.bf16.mxu0 %v2023_v0  ;;  %1880 = vmatprep.subr.bf16.mxu1 %v2023_v0  ;;  %v2133_v19 = vld [vmem:[%s2775_s2] ss:$0 sm:$0xff]  ;;  %v1933_v22 = vld [vmem:[%s2774_s0 + $0x14] ss:$8 sps:$4 sm:$0xff]   ;;  %v1937_v24 = vld [vmem:[%s2774_s0 + $0x10] ss:$8 sps:$4 sm:$0xff]  }
   0x8   :  { %27 = vst.msk [vmem:[#allocation2] sm:$0xff] %vm26_vm0, %v2133_v19  ;;  %28 = vst.msk [vmem:[#allocation2 + $0x8] sm:$0xff] %vm26_vm0, %v2133_v19  ;;  %v1927_v20 = vld [vmem:[%s2774_s0] ss:$8 sps:$4 sm:$0xff]   ;;  %v1935_v23 = vld [vmem:[%s2774_s0 + $0x114] ss:$8 sps:$4 sm:$0xff]  }
   0x9   :  { %29 = vst.msk [vmem:[#allocation2 + $0x10] sm:$0xff] %vm26_vm0, %v2133_v19  ;;  %30 = vst.msk [vmem:[#allocation2 + $0x18] sm:$0xff] %vm26_vm0, %v2133_v19  ;;  %v1930_v21 = vld [vmem:[%s2774_s0 + $0x100] ss:$8 sps:$4 sm:$0xff]   ;;  %v1938_v25 = vld [vmem:[%s2774_s0 + $0x110] ss:$8 sps:$4 sm:$0xff]  }
   0xa   :  { %672 = vmatpush1.bf16.msra.mxu0 %v1913_v3  ;;  %1896 = vmatpush1.bf16.msra.mxu1 %v1913_v3  ;;  %31 = vst.msk [vmem:[#allocation2 + $0x20] sm:$0xff] %vm26_vm0, %v2133_v19  ;;  %32 = vst.msk [vmem:[#allocation2 + $0x28] sm:$0xff] %vm26_vm0, %v2133_v19  ;;  %v1939_v26 = vld [vmem:[%s2774_s0 + $0x24] ss:$8 sps:$4 sm:$0xff]   ;;  %v1943_v28 = vld [vmem:[%s2774_s0 + $0x20] ss:$8 sps:$4 sm:$0xff]  }
   0xb   :  { %673 = vmatprep.subr.bf16.mxu0 %v2023_v0  ;;  %1881 = vmatprep.subr.bf16.mxu1 %v2023_v0  ;;  %33 = vst.msk [vmem:[#allocation2 + $0x30] sm:$0xff] %vm26_vm0, %v2133_v19  ;;  %34 = vst.msk [vmem:[#allocation2 + $0x38] sm:$0xff] %vm26_vm0, %v2133_v19  ;;  %v1941_v27 = vld [vmem:[%s2774_s0 + $0x124] ss:$8 sps:$4 sm:$0xff]   ;;  %v1944_v29 = vld [vmem:[%s2774_s0 + $0x120] ss:$8 sps:$4 sm:$0xff]  }
   0xc   :  { %35 = vst.msk [vmem:[#allocation2 + $0x40] sm:$0xff] %vm26_vm0, %v2133_v19  ;;  %36 = vst.msk [vmem:[#allocation2 + $0x48] sm:$0xff] %vm26_vm0, %v2133_v19  ;;  %v1945_v30 = vld [vmem:[%s2774_s0 + $0x34] ss:$8 sps:$4 sm:$0xff]   ;;  %v1949_v32 = vld [vmem:[%s2774_s0 + $0x30] ss:$8 sps:$4 sm:$0xff]  }
   0xd   :  { %37 = vst.msk [vmem:[#allocation2 + $0x50] sm:$0xff] %vm26_vm0, %v2133_v19  ;;  %38 = vst.msk [vmem:[#allocation2 + $0x58] sm:$0xff] %vm26_vm0, %v2133_v19  ;;  %v1947_v31 = vld [vmem:[%s2774_s0 + $0x134] ss:$8 sps:$4 sm:$0xff]   ;;  %v1950_v33 = vld [vmem:[%s2774_s0 + $0x130] ss:$8 sps:$4 sm:$0xff]  }
   0xe   :  { %674 = vmatpush1.bf16.msra.mxu0 %v1914_v4  ;;  %1897 = vmatpush1.bf16.msra.mxu1 %v1914_v4  ;;  %39 = vst.msk [vmem:[#allocation2 + $0x60] sm:$0xff] %vm26_vm0, %v2133_v19  ;;  %40 = vst.msk [vmem:[#allocation2 + $0x68] sm:$0xff] %vm26_vm0, %v2133_v19  ;;  %v1951_v34 = vld [vmem:[%s2774_s0 + $0x44] ss:$8 sps:$4 sm:$0xff]   ;;  %v1955_v36 = vld [vmem:[%s2774_s0 + $0x40] ss:$8 sps:$4 sm:$0xff]  }
   0xf   :  { %675 = vmatprep.subr.bf16.mxu0 %v2023_v0  ;;  %1882 = vmatprep.subr.bf16.mxu1 %v2023_v0  ;;  %41 = vst.msk [vmem:[#allocation2 + $0x70] sm:$0xff] %vm26_vm0, %v2133_v19  ;;  %42 = vst.msk [vmem:[#allocation2 + $0x78] sm:$0xff] %vm26_vm0, %v2133_v19  ;;  %v1953_v35 = vld [vmem:[%s2774_s0 + $0x144] ss:$8 sps:$4 sm:$0xff]   ;;  %v1956_v37 = vld [vmem:[%s2774_s0 + $0x140] ss:$8 sps:$4 sm:$0xff]  }
  0x10   :  { %43 = vst.msk [vmem:[#allocation2 + $0x80] sm:$0xff] %vm26_vm0, %v2133_v19  ;;  %44 = vst.msk [vmem:[#allocation2 + $0x88] sm:$0xff] %vm26_vm0, %v2133_v19  ;;  %v1957_v38 = vld [vmem:[%s2774_s0 + $0x54] ss:$8 sps:$4 sm:$0xff]   ;;  %v1961_v40 = vld [vmem:[%s2774_s0 + $0x50] ss:$8 sps:$4 sm:$0xff]  }
  0x11   :  { %45 = vst.msk [vmem:[#allocation2 + $0x90] sm:$0xff] %vm26_vm0, %v2133_v19  ;;  %46 = vst.msk [vmem:[#allocation2 + $0x98] sm:$0xff] %vm26_vm0, %v2133_v19  ;;  %v1959_v39 = vld [vmem:[%s2774_s0 + $0x154] ss:$8 sps:$4 sm:$0xff]   ;;  %v1962_v41 = vld [vmem:[%s2774_s0 + $0x150] ss:$8 sps:$4 sm:$0xff]  }
  0x12   :  { %676 = vmatpush1.bf16.msra.mxu0 %v1915_v5  ;;  %1898 = vmatpush1.bf16.msra.mxu1 %v1915_v5  ;;  %47 = vst.msk [vmem:[#allocation2 + $0xa0] sm:$0xff] %vm26_vm0, %v2133_v19  ;;  %48 = vst.msk [vmem:[#allocation2 + $0xa8] sm:$0xff] %vm26_vm0, %v2133_v19  ;;  %v1963_v42 = vld [vmem:[%s2774_s0 + $0x64] ss:$8 sps:$4 sm:$0xff]   ;;  %v1967_v44 = vld [vmem:[%s2774_s0 + $0x60] ss:$8 sps:$4 sm:$0xff]  }
  0x13   :  { %677 = vmatprep.subr.bf16.mxu0 %v2023_v0  ;;  %1883 = vmatprep.subr.bf16.mxu1 %v2023_v0  ;;  %49 = vst.msk [vmem:[#allocation2 + $0xb0] sm:$0xff] %vm26_vm0, %v2133_v19  ;;  %50 = vst.msk [vmem:[#allocation2 + $0xb8] sm:$0xff] %vm26_vm0, %v2133_v19  ;;  %v1965_v43 = vld [vmem:[%s2774_s0 + $0x164] ss:$8 sps:$4 sm:$0xff]   ;;  %v1968_v45 = vld [vmem:[%s2774_s0 + $0x160] ss:$8 sps:$4 sm:$0xff]  }
  0x14   :  { %51 = vst.msk [vmem:[#allocation2 + $0xc0] sm:$0xff] %vm26_vm0, %v2133_v19  ;;  %52 = vst.msk [vmem:[#allocation2 + $0xc8] sm:$0xff] %vm26_vm0, %v2133_v19  ;;  %v1969_v46 = vld [vmem:[%s2774_s0 + $0x74] ss:$8 sps:$4 sm:$0xff]   ;;  %v1973_v48 = vld [vmem:[%s2774_s0 + $0x70] ss:$8 sps:$4 sm:$0xff]  }
  0x15   :  { %53 = vst.msk [vmem:[#allocation2 + $0xd0] sm:$0xff] %vm26_vm0, %v2133_v19  ;;  %54 = vst.msk [vmem:[#allocation2 + $0xd8] sm:$0xff] %vm26_vm0, %v2133_v19  ;;  %v1971_v47 = vld [vmem:[%s2774_s0 + $0x174] ss:$8 sps:$4 sm:$0xff]   ;;  %v1974_v49 = vld [vmem:[%s2774_s0 + $0x170] ss:$8 sps:$4 sm:$0xff]  }
  0x16   :  { %678 = vmatpush1.bf16.msra.mxu0 %v1916_v7  ;;  %1899 = vmatpush1.bf16.msra.mxu1 %v1916_v7  ;;  %55 = vst.msk [vmem:[#allocation2 + $0xe0] sm:$0xff] %vm26_vm0, %v2133_v19  ;;  %56 = vst.msk [vmem:[#allocation2 + $0xe8] sm:$0xff] %vm26_vm0, %v2133_v19  ;;  %v1975_v50 = vld [vmem:[%s2774_s0 + $0x84] ss:$8 sps:$4 sm:$0xff]   ;;  %v1979_v52 = vld [vmem:[%s2774_s0 + $0x80] ss:$8 sps:$4 sm:$0xff]  }
  0x17   :  { %679 = vmatprep.subr.bf16.mxu0 %v2023_v0  ;;  %1884 = vmatprep.subr.bf16.mxu1 %v2023_v0  ;;  %57 = vst.msk [vmem:[#allocation2 + $0xf0] sm:$0xff] %vm26_vm0, %v2133_v19  ;;  %58 = vst.msk [vmem:[#allocation2 + $0xf8] sm:$0xff] %vm26_vm0, %v2133_v19  ;;  %v1977_v51 = vld [vmem:[%s2774_s0 + $0x184] ss:$8 sps:$4 sm:$0xff]   ;;  %v1980_v53 = vld [vmem:[%s2774_s0 + $0x180] ss:$8 sps:$4 sm:$0xff]  }
  0x18   :  { %59 = vst.msk [vmem:[#allocation2 + $0x100] sm:$0xff] %vm26_vm0, %v2133_v19  ;;  %60 = vst.msk [vmem:[#allocation2 + $0x108] sm:$0xff] %vm26_vm0, %v2133_v19  ;;  %v1981_v54 = vld [vmem:[%s2774_s0 + $0x94] ss:$8 sps:$4 sm:$0xff]   ;;  %v1985_v56 = vld [vmem:[%s2774_s0 + $0x90] ss:$8 sps:$4 sm:$0xff]  }
  0x19   :  { %61 = vst.msk [vmem:[#allocation2 + $0x110] sm:$0xff] %vm26_vm0, %v2133_v19  ;;  %62 = vst.msk [vmem:[#allocation2 + $0x118] sm:$0xff] %vm26_vm0, %v2133_v19  ;;  %v1983_v55 = vld [vmem:[%s2774_s0 + $0x194] ss:$8 sps:$4 sm:$0xff]   ;;  %v1986_v57 = vld [vmem:[%s2774_s0 + $0x190] ss:$8 sps:$4 sm:$0xff]  }
  0x1a   :  { %680 = vmatpush1.bf16.msra.mxu0 %v1917_v9  ;;  %1900 = vmatpush1.bf16.msra.mxu1 %v1917_v9  ;;  %63 = vst.msk [vmem:[#allocation2 + $0x120] sm:$0xff] %vm26_vm0, %v2133_v19  ;;  %64 = vst.msk [vmem:[#allocation2 + $0x128] sm:$0xff] %vm26_vm0, %v2133_v19  ;;  %v1987_v58 = vld [vmem:[%s2774_s0 + $0xa4] ss:$8 sps:$4 sm:$0xff]   ;;  %v1991_v60 = vld [vmem:[%s2774_s0 + $0xa0] ss:$8 sps:$4 sm:$0xff]  }
  0x1b   :  { %681 = vmatprep.subr.bf16.mxu0 %v2023_v0  ;;  %1885 = vmatprep.subr.bf16.mxu1 %v2023_v0  ;;  %65 = vst.msk [vmem:[#allocation2 + $0x130] sm:$0xff] %vm26_vm0, %v2133_v19  ;;  %66 = vst.msk [vmem:[#allocation2 + $0x138] sm:$0xff] %vm26_vm0, %v2133_v19  ;;  %v1989_v59 = vld [vmem:[%s2774_s0 + $0x1a4] ss:$8 sps:$4 sm:$0xff]   ;;  %v1992_v61 = vld [vmem:[%s2774_s0 + $0x1a0] ss:$8 sps:$4 sm:$0xff]  }
  0x1c   :  { %67 = vst.msk [vmem:[#allocation2 + $0x140] sm:$0xff] %vm26_vm0, %v2133_v19  ;;  %68 = vst.msk [vmem:[#allocation2 + $0x148] sm:$0xff] %vm26_vm0, %v2133_v19  ;;  %v1993_v62 = vld [vmem:[%s2774_s0 + $0xb4] ss:$8 sps:$4 sm:$0xff]   ;;  %v1998_v1 = vld [vmem:[%s2774_s0 + $0x1b0] ss:$8 sps:$4 sm:$0xff]  }
  0x1d   :  { %69 = vst.msk [vmem:[#allocation2 + $0x150] sm:$0xff] %vm26_vm0, %v2133_v19  ;;  %70 = vst.msk [vmem:[#allocation2 + $0x158] sm:$0xff] %vm26_vm0, %v2133_v19  ;;  %v1995_v63 = vld [vmem:[%s2774_s0 + $0x1b4] ss:$8 sps:$4 sm:$0xff]   ;;  %v1999_v2 = vld [vmem:[%s2774_s0 + $0xc4] ss:$8 sps:$4 sm:$0xff]  }
  0x1e   :  { %682 = vmatpush1.bf16.msra.mxu0 %v1918_v10  ;;  %1901 = vmatpush1.bf16.msra.mxu1 %v1918_v10  ;;  %71 = vst.msk [vmem:[#allocation2 + $0x160] sm:$0xff] %vm26_vm0, %v2133_v19  ;;  %72 = vst.msk [vmem:[#allocation2 + $0x168] sm:$0xff] %vm26_vm0, %v2133_v19  ;;  %v2001_v3 = vld [vmem:[%s2774_s0 + $0x1c4] ss:$8 sps:$4 sm:$0xff]   ;;  %v2003_v4 = vld [vmem:[%s2774_s0 + $0xc0] ss:$8 sps:$4 sm:$0xff]  }
  0x1f   :  { %683 = vmatprep.subr.bf16.mxu0 %v2023_v0  ;;  %1886 = vmatprep.subr.bf16.mxu1 %v2023_v0  ;;  %73 = vst.msk [vmem:[#allocation2 + $0x170] sm:$0xff] %vm26_vm0, %v2133_v19  ;;  %74 = vst.msk [vmem:[#allocation2 + $0x178] sm:$0xff] %vm26_vm0, %v2133_v19  ;;  %v2004_v5 = vld [vmem:[%s2774_s0 + $0x1c0] ss:$8 sps:$4 sm:$0xff]   ;;  %v2005_v6 = vld [vmem:[%s2774_s0 + $0xd4] ss:$8 sps:$4 sm:$0xff]  }
  0x20   :  { %75 = vst.msk [vmem:[#allocation2 + $0x180] sm:$0xff] %vm26_vm0, %v2133_v19  ;;  %76 = vst.msk [vmem:[#allocation2 + $0x188] sm:$0xff] %vm26_vm0, %v2133_v19  ;;  %v2007_v7 = vld [vmem:[%s2774_s0 + $0x1d4] ss:$8 sps:$4 sm:$0xff]   ;;  %v2009_v8 = vld [vmem:[%s2774_s0 + $0xd0] ss:$8 sps:$4 sm:$0xff]  }
  0x21   :  { %77 = vst.msk [vmem:[#allocation2 + $0x190] sm:$0xff] %vm26_vm0, %v2133_v19  ;;  %78 = vst.msk [vmem:[#allocation2 + $0x198] sm:$0xff] %vm26_vm0, %v2133_v19  ;;  %v2010_v9 = vld [vmem:[%s2774_s0 + $0x1d0] ss:$8 sps:$4 sm:$0xff]   ;;  %v2011_v10 = vld [vmem:[%s2774_s0 + $0xe4] ss:$8 sps:$4 sm:$0xff]  }
  0x22   :  { %684 = vmatpush1.bf16.msra.mxu0 %v1919_v11  ;;  %1902 = vmatpush1.bf16.msra.mxu1 %v1919_v11  ;;  %79 = vst.msk [vmem:[#allocation2 + $0x1a0] sm:$0xff] %vm26_vm0, %v2133_v19  ;;  %80 = vst.msk [vmem:[#allocation2 + $0x1a8] sm:$0xff] %vm26_vm0, %v2133_v19  ;;  %v2013_v11 = vld [vmem:[%s2774_s0 + $0x1e4] ss:$8 sps:$4 sm:$0xff]  }
  0x23   :  { %685 = vmatprep.subr.bf16.mxu0 %v2023_v0  ;;  %1887 = vmatprep.subr.bf16.mxu1 %v2023_v0  ;;  %81 = vst.msk [vmem:[#allocation2 + $0x1b0] sm:$0xff] %vm26_vm0, %v2133_v19  ;;  %82 = vst.msk [vmem:[#allocation2 + $0x1b8] sm:$0xff] %vm26_vm0, %v2133_v19 }
  0x24   :  { %83 = vst.msk [vmem:[#allocation2 + $0x1c0] sm:$0xff] %vm26_vm0, %v2133_v19  ;;  %84 = vst.msk [vmem:[#allocation2 + $0x1c8] sm:$0xff] %vm26_vm0, %v2133_v19 }
  0x25   :  { %85 = vst.msk [vmem:[#allocation2 + $0x1d0] sm:$0xff] %vm26_vm0, %v2133_v19  ;;  %86 = vst.msk [vmem:[#allocation2 + $0x1d8] sm:$0xff] %vm26_vm0, %v2133_v19 }
  0x26   :  { %686 = vmatpush1.bf16.msra.mxu0 %v1920_v12  ;;  %1903 = vmatpush1.bf16.msra.mxu1 %v1920_v12  ;;  %87 = vst.msk [vmem:[#allocation2 + $0x1e0] sm:$0xff] %vm26_vm0, %v2133_v19  ;;  %88 = vst.msk [vmem:[#allocation2 + $0x1e8] sm:$0xff] %vm26_vm0, %v2133_v19  ;;  %v2015_v12 = vld [vmem:[%s2774_s0 + $0xe0] ss:$8 sps:$4 sm:$0xff]  }
  0x27   :  { %687 = vmatprep.subr.bf16.mxu0 %v2023_v0  ;;  %1888 = vmatprep.subr.bf16.mxu1 %v2023_v0  ;;  %89 = vst.msk [vmem:[#allocation2 + $0x1f0] sm:$0xff] %vm26_vm0, %v2133_v19  ;;  %90 = vst.msk [vmem:[#allocation2 + $0x1f8] sm:$0xff] %vm26_vm0, %v2133_v19  ;;  %v123_v19 = vld [vmem:[#allocation2 + $0x100] sm:$0xff] }
  0x2a   :  { %688 = vmatpush1.bf16.msra.mxu0 %v1921_v13  ;;  %1904 = vmatpush1.bf16.msra.mxu1 %v1921_v13  ;;  %v2016_v13 = vld [vmem:[%s2774_s0 + $0x1e0] ss:$8 sps:$4 sm:$0xff]  }
  0x2b   :  { %689 = vmatprep.subr.bf16.mxu0 %v2023_v0  ;;  %1889 = vmatprep.subr.bf16.mxu1 %v2023_v0 }
  0x2e   :  { %690 = vmatpush1.bf16.msra.mxu0 %v1922_v14  ;;  %1905 = vmatpush1.bf16.msra.mxu1 %v1922_v14  ;;  %v2017_v14 = vld [vmem:[%s2774_s0 + $0xf4] ss:$8 sps:$4 sm:$0xff]  }
  0x2f   :  { %691 = vmatprep.subr.bf16.mxu0 %v2023_v0  ;;  %1890 = vmatprep.subr.bf16.mxu1 %v2023_v0 }
  0x32   :  { %692 = vmatpush1.bf16.msra.mxu0 %v1923_v15  ;;  %1906 = vmatpush1.bf16.msra.mxu1 %v1923_v15  ;;  %v2019_v15 = vld [vmem:[%s2774_s0 + $0x1f4] ss:$8 sps:$4 sm:$0xff]  }
  0x33   :  { %693 = vmatprep.subr.bf16.mxu0 %v2023_v0  ;;  %1891 = vmatprep.subr.bf16.mxu1 %v2023_v0 }
  0x36   :  { %694 = vmatpush1.bf16.msra.mxu0 %v1924_v16  ;;  %1907 = vmatpush1.bf16.msra.mxu1 %v1924_v16  ;;  %v2021_v16 = vld [vmem:[%s2774_s0 + $0xf0] ss:$8 sps:$4 sm:$0xff]  }
  0x37   :  { %695 = vmatprep.subr.bf16.mxu0 %v2023_v0  ;;  %1892 = vmatprep.subr.bf16.mxu1 %v2023_v0 }
  0x3a   :  { %696 = vmatpush1.bf16.msra.mxu0 %v1925_v17  ;;  %1908 = vmatpush1.bf16.msra.mxu1 %v1925_v17  ;;  %v2022_v17 = vld [vmem:[%s2774_s0 + $0x1f0] ss:$8 sps:$4 sm:$0xff]  }
  0x3b   :  { %697 = vmatprep.subr.bf16.mxu0 %v2023_v0  ;;  %1893 = vmatprep.subr.bf16.mxu1 %v2023_v0  ;;  %v1997_v0 = vld [vmem:[%s2774_s0 + $0xb0] ss:$8 sps:$4 sm:$0xff]  }
  0x3e   :  { %698 = vmatpush1.bf16.msra.mxu0 %v2128_v18  ;;  %1909 = vmatpush1.bf16.msra.mxu1 %v2128_v18  ;;  %v91_v18 = vld [vmem:[#allocation2] sm:$0xff] }
  0x41   :  { %700 = vmatmul.mubr.bf16.vlgmr.msra.gmra.mrb[0].mxu0 %v1927_v20  ;;  %828 = vmatmul.mubr.bf16.vlgmr.msra.gmra.mrb[0].mxu1 %v1930_v21 }
  0x42   :  { %707 = vmatprep.mubr.bf16.mxu0 %v1933_v22  ;;  %835 = vmatprep.mubr.bf16.mxu1 %v1935_v23  ;;  %v92_v22 = vld [vmem:[#allocation2 + $0x8] sm:$0xff] }
  0x43   :  { %v124_v23 = vld [vmem:[#allocation2 + $0x108] sm:$0xff] }
  0x49   :  { %708 = vmatmul.mubr.bf16.gmra.mrb[4].mxu0 %v1937_v24  ;;  %836 = vmatmul.mubr.bf16.gmra.mrb[4].mxu1 %v1938_v25 }
  0x4a   :  { %715 = vmatprep.mubr.bf16.mxu0 %v1939_v26  ;;  %843 = vmatprep.mubr.bf16.mxu1 %v1941_v27 }
  0x51   :  { %716 = vmatmul.mubr.bf16.gmra.mrb[8].mxu0 %v1943_v28  ;;  %844 = vmatmul.mubr.bf16.gmra.mrb[8].mxu1 %v1944_v29 }
  0x52   :  { %723 = vmatprep.mubr.bf16.mxu0 %v1945_v30  ;;  %851 = vmatprep.mubr.bf16.mxu1 %v1947_v31 }
  0x59   :  { %724 = vmatmul.mubr.bf16.gmra.mrb[12].mxu0 %v1949_v32  ;;  %852 = vmatmul.mubr.bf16.gmra.mrb[12].mxu1 %v1950_v33 }
  0x5a   :  { %731 = vmatprep.mubr.bf16.mxu0 %v1951_v34  ;;  %859 = vmatprep.mubr.bf16.mxu1 %v1953_v35  ;;  %v93_v34 = vld [vmem:[#allocation2 + $0x10] sm:$0xff] }
  0x5b   :  { %v125_v35 = vld [vmem:[#allocation2 + $0x110] sm:$0xff] }
  0x61   :  { %732 = vmatmul.mubr.bf16.gmra.mrb[16].mxu0 %v1955_v36  ;;  %860 = vmatmul.mubr.bf16.gmra.mrb[16].mxu1 %v1956_v37 }
  0x62   :  { %739 = vmatprep.mubr.bf16.mxu0 %v1957_v38  ;;  %867 = vmatprep.mubr.bf16.mxu1 %v1959_v39 }
  0x69   :  { %740 = vmatmul.mubr.bf16.gmra.mrb[20].mxu0 %v1961_v40  ;;  %868 = vmatmul.mubr.bf16.gmra.mrb[20].mxu1 %v1962_v41 }
  0x6a   :  { %747 = vmatprep.mubr.bf16.mxu0 %v1963_v42  ;;  %875 = vmatprep.mubr.bf16.mxu1 %v1965_v43  ;;  %v94_v42 = vld [vmem:[#allocation2 + $0x18] sm:$0xff] }
  0x6b   :  { %v126_v43 = vld [vmem:[#allocation2 + $0x118] sm:$0xff] }
  0x71   :  { %748 = vmatmul.mubr.bf16.gmra.mrb[24].mxu0 %v1967_v44  ;;  %876 = vmatmul.mubr.bf16.gmra.mrb[24].mxu1 %v1968_v45 }
  0x72   :  { %755 = vmatprep.mubr.bf16.mxu0 %v1969_v46  ;;  %883 = vmatprep.mubr.bf16.mxu1 %v1971_v47 }
  0x79   :  { %756 = vmatmul.mubr.bf16.gmra.mrb[28].mxu0 %v1973_v48  ;;  %884 = vmatmul.mubr.bf16.gmra.mrb[28].mxu1 %v1974_v49 }
  0x7a   :  { %763 = vmatprep.mubr.bf16.mxu0 %v1975_v50  ;;  %891 = vmatprep.mubr.bf16.mxu1 %v1977_v51 }
  0x81   :  { %764 = vmatmul.mubr.bf16.gmra.mrb[32].mxu0 %v1979_v52  ;;  %892 = vmatmul.mubr.bf16.gmra.mrb[32].mxu1 %v1980_v53 }
  0x82   :  { %771 = vmatprep.mubr.bf16.mxu0 %v1981_v54  ;;  %899 = vmatprep.mubr.bf16.mxu1 %v1983_v55 }
  0x89   :  { %772 = vmatmul.mubr.bf16.gmra.mrb[36].mxu0 %v1985_v56  ;;  %900 = vmatmul.mubr.bf16.gmra.mrb[36].mxu1 %v1986_v57 }
  0x8a   :  { %779 = vmatprep.mubr.bf16.mxu0 %v1987_v58  ;;  %907 = vmatprep.mubr.bf16.mxu1 %v1989_v59 }
  0x91   :  { %780 = vmatmul.mubr.bf16.gmra.mrb[40].mxu0 %v1991_v60  ;;  %908 = vmatmul.mubr.bf16.gmra.mrb[40].mxu1 %v1992_v61 }
  0x92   :  { %787 = vmatprep.mubr.bf16.mxu0 %v1993_v62  ;;  %915 = vmatprep.mubr.bf16.mxu1 %v1995_v63  ;;  %v95_v62 = vld [vmem:[#allocation2 + $0x20] sm:$0xff] }
  0x93   :  { %v127_v63 = vld [vmem:[#allocation2 + $0x120] sm:$0xff] }
  0x99   :  { %788 = vmatmul.mubr.bf16.gmra.mrb[44].mxu0 %v1997_v0  ;;  %916 = vmatmul.mubr.bf16.gmra.mrb[44].mxu1 %v1998_v1 }
  0x9a   :  { %795 = vmatprep.mubr.bf16.mxu0 %v1999_v2  ;;  %923 = vmatprep.mubr.bf16.mxu1 %v2001_v3 }
  0xa1   :  { %796 = vmatmul.mubr.bf16.gmra.mrb[48].mxu0 %v2003_v4  ;;  %924 = vmatmul.mubr.bf16.gmra.mrb[48].mxu1 %v2004_v5 }
  0xa2   :  { %803 = vmatprep.mubr.bf16.mxu0 %v2005_v6  ;;  %931 = vmatprep.mubr.bf16.mxu1 %v2007_v7 }
  0xa9   :  { %804 = vmatmul.mubr.bf16.gmra.mrb[52].mxu0 %v2009_v8  ;;  %932 = vmatmul.mubr.bf16.gmra.mrb[52].mxu1 %v2010_v9 }
  0xaa   :  { %811 = vmatprep.mubr.bf16.mxu0 %v2011_v10  ;;  %939 = vmatprep.mubr.bf16.mxu1 %v2013_v11  ;;  %v96_v10 = vld [vmem:[#allocation2 + $0x28] sm:$0xff] }
  0xab   :  { %v128_v11 = vld [vmem:[#allocation2 + $0x128] sm:$0xff] }
  0xb1   :  { %812 = vmatmul.mubr.bf16.gmra.mrb[56].mxu0 %v2015_v12  ;;  %940 = vmatmul.mubr.bf16.gmra.mrb[56].mxu1 %v2016_v13 }
  0xb2   :  { %819 = vmatprep.mubr.bf16.mxu0 %v2017_v14  ;;  %947 = vmatprep.mubr.bf16.mxu1 %v2019_v15 }
  0xb9   :  { %820 = vmatmul.mubr.bf16.gmra.mrb[60].mxu0 %v2021_v16  ;;  %948 = vmatmul.mubr.bf16.gmra.mrb[60].mxu1 %v2022_v17 }
 0x114   :  { %v701_v20 = vpop.f32.mrb[0].mxu0  ;;  %v829_v21 = vpop.f32.mrb[0].mxu1 }
 0x115   :  { %v956_v24 = vadd.f32 %v701_v20, %v91_v18  ;;  %v988_v25 = vadd.f32 %v829_v21, %v123_v19  ;;  %v703_v26 = vpop.f32.mrb[1].mxu0  ;;  %v831_v27 = vpop.f32.mrb[1].mxu1 }
 0x116   :  { %v704_v28 = vpop.f32.mrb[2].mxu0  ;;  %v832_v29 = vpop.f32.mrb[2].mxu1 }
 0x117   :  { %1021 = vst.msk [vmem:[#allocation2] sm:$0xff] %vm26_vm0, %v956_v24  ;;  %1053 = vst.msk [vmem:[#allocation2 + $0x100] sm:$0xff] %vm26_vm0, %v988_v25  ;;  %v957_v30 = vadd.f32 %v704_v28, %v92_v22  ;;  %v989_v31 = vadd.f32 %v832_v29, %v124_v23  ;;  %v706_v32 = vpop.f32.mrb[3].mxu0  ;;  %v834_v33 = vpop.f32.mrb[3].mxu1  ;;  %v97_v29 = vld [vmem:[#allocation2 + $0x30] sm:$0xff] }
 0x119   :  { %1022 = vst.msk [vmem:[#allocation2 + $0x8] sm:$0xff] %vm26_vm0, %v957_v30  ;;  %1054 = vst.msk [vmem:[#allocation2 + $0x108] sm:$0xff] %vm26_vm0, %v989_v31  ;;  %v129_v30 = vld [vmem:[#allocation2 + $0x130] sm:$0xff] }
 0x11c   :  { %v709_v36 = vpop.f32.mrb[4].mxu0  ;;  %v837_v37 = vpop.f32.mrb[4].mxu1 }
 0x11d   :  { %v958_v38 = vadd.f32 %v709_v36, %v93_v34  ;;  %v990_v39 = vadd.f32 %v837_v37, %v125_v35  ;;  %v711_v40 = vpop.f32.mrb[5].mxu0  ;;  %v839_v41 = vpop.f32.mrb[5].mxu1 }
 0x11e   :  { %v1088_v44 = vld [vmem:[#allocation2] sm:$0xff]  ;;  %v712_v46 = vpop.f32.mrb[6].mxu0  ;;  %v840_v47 = vpop.f32.mrb[6].mxu1  ;;  %v98_v41 = vld [vmem:[#allocation2 + $0x38] sm:$0xff] }
 0x11f   :  { %v1120_v45 = vld [vmem:[#allocation2 + $0x100] sm:$0xff]  ;;  %vm1152_vm1 = vcmp.ge.f32.partialorder %v1088_v44, 0.0  ;;  %v1216_v48 = vmul.f32 0.2, %v1088_v44  ;;  %1023 = vst.msk [vmem:[#allocation2 + $0x10] sm:$0xff] %vm26_vm0, %v958_v38  ;;  %1055 = vst.msk [vmem:[#allocation2 + $0x110] sm:$0xff] %vm26_vm0, %v990_v39  ;;  %v959_v52 = vadd.f32 %v712_v46, %v94_v42  ;;  %v991_v53 = vadd.f32 %v840_v47, %v126_v43 }
 0x120   :  { %vm1184_vm2 = vcmp.ge.f32.partialorder %v1120_v45, 0.0  ;;  %v1248_v49 = vmul.f32 0.2, %v1120_v45  ;;  %v1089_v50 = vld [vmem:[#allocation2 + $0x8] sm:$0xff]  ;;  %v714_v54 = vpop.f32.mrb[7].mxu0  ;;  %v842_v55 = vpop.f32.mrb[7].mxu1 }
 0x121   :  { %v1121_v51 = vld [vmem:[#allocation2 + $0x108] sm:$0xff]  ;;  %v1280_v56 = vsel %vm1152_vm1, %v1088_v44, %v1216_v48  ;;  %vm1153_vm4 = vcmp.ge.f32.partialorder %v1089_v50, 0.0  ;;  %v1217_v58 = vmul.f32 0.2, %v1089_v50  ;;  %1024 = vst.msk [vmem:[#allocation2 + $0x18] sm:$0xff] %vm26_vm0, %v959_v52  ;;  %1056 = vst.msk [vmem:[#allocation2 + $0x118] sm:$0xff] %vm26_vm0, %v991_v53 }
 0x122   :  { %v1312_v57 = vsel %vm1184_vm2, %v1120_v45, %v1248_v49  ;;  %v1814_v59 = vpack.c.bf16 %v1280_v56, %v1280_v56  ;;  %vm1185_vm5 = vcmp.ge.f32.partialorder %v1121_v51, 0.0  ;;  %v1249_v61 = vmul.f32 0.2, %v1121_v51  ;;  %v130_v42 = vld [vmem:[#allocation2 + $0x138] sm:$0xff] }
 0x123   :  { %v1846_v60 = vpack.c.bf16 %v1312_v57, %v1312_v57  ;;  %v1281_v0 = vsel %vm1153_vm4, %v1089_v50, %v1217_v58 }
 0x124   :  { %1601 = vst.msk [vmem:[%s2776_s3] sm:$0xf] %vm1600_vm3, %v1814_v59  ;;  %v1815_v1 = vpack.c.bf16 %v1281_v0, %v1281_v0  ;;  %v1313_v2 = vsel %vm1185_vm5, %v1121_v51, %v1249_v61  ;;  %v717_v3 = vpop.f32.mrb[8].mxu0  ;;  %v845_v4 = vpop.f32.mrb[8].mxu1  ;;  %v99_v61 = vld [vmem:[#allocation2 + $0x40] sm:$0xff] }
 0x125   :  { %1633 = vst.msk [vmem:[%s2776_s3 + $0x80] sm:$0xf] %vm1600_vm3, %v1846_v60  ;;  %v1847_v5 = vpack.c.bf16 %v1313_v2, %v1313_v2  ;;  %v960_v6 = vadd.f32 %v717_v3, %v95_v62  ;;  %v992_v7 = vadd.f32 %v845_v4, %v127_v63  ;;  %v719_v8 = vpop.f32.mrb[9].mxu0  ;;  %v847_v9 = vpop.f32.mrb[9].mxu1  ;;  %v131_v62 = vld [vmem:[#allocation2 + $0x140] sm:$0xff] }
 0x126   :  { %1602 = vst.msk [vmem:[%s2776_s3 + $0x4] sm:$0xf] %vm1600_vm3, %v1815_v1  ;;  %v1090_v12 = vld [vmem:[#allocation2 + $0x10] sm:$0xff]  ;;  %v720_v14 = vpop.f32.mrb[10].mxu0  ;;  %v848_v15 = vpop.f32.mrb[10].mxu1  ;;  %v100_v9 = vld [vmem:[#allocation2 + $0x48] sm:$0xff] }
 0x127   :  { %v1122_v13 = vld [vmem:[#allocation2 + $0x110] sm:$0xff]  ;;  %1634 = vst.msk [vmem:[%s2776_s3 + $0x84] sm:$0xf] %vm1600_vm3, %v1847_v5  ;;  %vm1154_vm6 = vcmp.ge.f32.partialorder %v1090_v12, 0.0  ;;  %v1218_v16 = vmul.f32 0.2, %v1090_v12  ;;  %v961_v18 = vadd.f32 %v720_v14, %v96_v10  ;;  %v993_v19 = vadd.f32 %v848_v15, %v128_v11 }
 0x128   :  { %vm1186_vm7 = vcmp.ge.f32.partialorder %v1122_v13, 0.0  ;;  %v1250_v17 = vmul.f32 0.2, %v1122_v13  ;;  %1025 = vst.msk [vmem:[#allocation2 + $0x20] sm:$0xff] %vm26_vm0, %v960_v6  ;;  %1057 = vst.msk [vmem:[#allocation2 + $0x120] sm:$0xff] %vm26_vm0, %v992_v7  ;;  %v722_v20 = vpop.f32.mrb[11].mxu0 }
 0x129   :  { %v850_v21 = vpop.f32.mrb[11].mxu1  ;;  %v1282_v22 = vsel %vm1154_vm6, %v1090_v12, %v1218_v16  ;;  %v1091_v24 = vld [vmem:[#allocation2 + $0x18] sm:$0xff]  ;;  %1026 = vst.msk [vmem:[#allocation2 + $0x28] sm:$0xff] %vm26_vm0, %v961_v18  ;;  %1058 = vst.msk [vmem:[#allocation2 + $0x128] sm:$0xff] %vm26_vm0, %v993_v19  ;;  %v132_v10 = vld [vmem:[#allocation2 + $0x148] sm:$0xff] }
 0x12a   :  { %v1314_v23 = vsel %vm1186_vm7, %v1122_v13, %v1250_v17  ;;  %v1123_v25 = vld [vmem:[#allocation2 + $0x118] sm:$0xff]  ;;  %v1816_v26 = vpack.c.bf16 %v1282_v22, %v1282_v22  ;;  %vm1155_vm8 = vcmp.ge.f32.partialorder %v1091_v24, 0.0  ;;  %v1219_v28 = vmul.f32 0.2, %v1091_v24 }
 0x12b   :  { %v1848_v27 = vpack.c.bf16 %v1314_v23, %v1314_v23  ;;  %vm1187_vm9 = vcmp.ge.f32.partialorder %v1123_v25, 0.0  ;;  %v1251_v31 = vmul.f32 0.2, %v1123_v25 }
 0x12c   :  { %1603 = vst.msk [vmem:[%s2776_s3 + $0x8] sm:$0xf] %vm1600_vm3, %v1816_v26  ;;  %v1283_v32 = vsel %vm1155_vm8, %v1091_v24, %v1219_v28  ;;  %v725_v33 = vpop.f32.mrb[12].mxu0  ;;  %v853_v34 = vpop.f32.mrb[12].mxu1 }
 0x12d   :  { %1635 = vst.msk [vmem:[%s2776_s3 + $0x88] sm:$0xf] %vm1600_vm3, %v1848_v27  ;;  %v1817_v35 = vpack.c.bf16 %v1283_v32, %v1283_v32  ;;  %v1315_v36 = vsel %vm1187_vm9, %v1123_v25, %v1251_v31  ;;  %v962_v37 = vadd.f32 %v725_v33, %v97_v29  ;;  %v994_v38 = vadd.f32 %v853_v34, %v129_v30  ;;  %v727_v39 = vpop.f32.mrb[13].mxu0  ;;  %v855_v40 = vpop.f32.mrb[13].mxu1  ;;  %v101_v29 = vld [vmem:[#allocation2 + $0x50] sm:$0xff] }
 0x12e   :  { %v1849_v43 = vpack.c.bf16 %v1315_v36, %v1315_v36  ;;  %v728_v46 = vpop.f32.mrb[14].mxu0  ;;  %v856_v47 = vpop.f32.mrb[14].mxu1  ;;  %v133_v30 = vld [vmem:[#allocation2 + $0x150] sm:$0xff] }
 0x12f   :  { %v1092_v44 = vld [vmem:[#allocation2 + $0x20] sm:$0xff]  ;;  %1604 = vst.msk [vmem:[%s2776_s3 + $0xc] sm:$0xf] %vm1600_vm3, %v1817_v35  ;;  %v963_v50 = vadd.f32 %v728_v46, %v98_v41  ;;  %v995_v51 = vadd.f32 %v856_v47, %v130_v42  ;;  %v730_v52 = vpop.f32.mrb[15].mxu0  ;;  %v858_v53 = vpop.f32.mrb[15].mxu1  ;;  %v102_v41 = vld [vmem:[#allocation2 + $0x58] sm:$0xff] }
 0x130   :  { %v1124_v45 = vld [vmem:[#allocation2 + $0x120] sm:$0xff]  ;;  %vm1156_vm10 = vcmp.ge.f32.partialorder %v1092_v44, 0.0  ;;  %v1220_v48 = vmul.f32 0.2, %v1092_v44  ;;  %1027 = vst.msk [vmem:[#allocation2 + $0x30] sm:$0xff] %vm26_vm0, %v962_v37  ;;  %1059 = vst.msk [vmem:[#allocation2 + $0x130] sm:$0xff] %vm26_vm0, %v994_v38 }
 0x131   :  { %vm1188_vm11 = vcmp.ge.f32.partialorder %v1124_v45, 0.0  ;;  %v1252_v49 = vmul.f32 0.2, %v1124_v45  ;;  %1636 = vst.msk [vmem:[%s2776_s3 + $0x8c] sm:$0xf] %vm1600_vm3, %v1849_v43  ;;  %v1093_v56 = vld [vmem:[#allocation2 + $0x28] sm:$0xff] }
 0x132   :  { %v1284_v54 = vsel %vm1156_vm10, %v1092_v44, %v1220_v48  ;;  %v1125_v57 = vld [vmem:[#allocation2 + $0x128] sm:$0xff]  ;;  %vm1157_vm12 = vcmp.ge.f32.partialorder %v1093_v56, 0.0  ;;  %v1221_v60 = vmul.f32 0.2, %v1093_v56  ;;  %1028 = vst.msk [vmem:[#allocation2 + $0x38] sm:$0xff] %vm26_vm0, %v963_v50  ;;  %1060 = vst.msk [vmem:[#allocation2 + $0x138] sm:$0xff] %vm26_vm0, %v995_v51 }
 0x133   :  { %v1316_v55 = vsel %vm1188_vm11, %v1124_v45, %v1252_v49  ;;  %v1818_v58 = vpack.c.bf16 %v1284_v54, %v1284_v54  ;;  %vm1189_vm13 = vcmp.ge.f32.partialorder %v1125_v57, 0.0  ;;  %v1253_v63 = vmul.f32 0.2, %v1125_v57  ;;  %v134_v42 = vld [vmem:[#allocation2 + $0x158] sm:$0xff] }
 0x134   :  { %v1850_v59 = vpack.c.bf16 %v1316_v55, %v1316_v55  ;;  %v1285_v0 = vsel %vm1157_vm12, %v1093_v56, %v1221_v60  ;;  %v733_v1 = vpop.f32.mrb[16].mxu0  ;;  %v861_v2 = vpop.f32.mrb[16].mxu1 }
 0x135   :  { %1605 = vst.msk [vmem:[%s2776_s3 + $0x10] sm:$0xf] %vm1600_vm3, %v1818_v58  ;;  %v1819_v3 = vpack.c.bf16 %v1285_v0, %v1285_v0  ;;  %v1317_v4 = vsel %vm1189_vm13, %v1125_v57, %v1253_v63  ;;  %v964_v5 = vadd.f32 %v733_v1, %v99_v61  ;;  %v996_v6 = vadd.f32 %v861_v2, %v131_v62  ;;  %v735_v7 = vpop.f32.mrb[17].mxu0  ;;  %v863_v8 = vpop.f32.mrb[17].mxu1  ;;  %v103_v61 = vld [vmem:[#allocation2 + $0x60] sm:$0xff] }
 0x136   :  { %1637 = vst.msk [vmem:[%s2776_s3 + $0x90] sm:$0xf] %vm1600_vm3, %v1850_v59  ;;  %v1851_v11 = vpack.c.bf16 %v1317_v4, %v1317_v4  ;;  %v736_v14 = vpop.f32.mrb[18].mxu0  ;;  %v864_v15 = vpop.f32.mrb[18].mxu1  ;;  %v135_v62 = vld [vmem:[#allocation2 + $0x160] sm:$0xff] }
 0x137   :  { %v1094_v12 = vld [vmem:[#allocation2 + $0x30] sm:$0xff]  ;;  %1606 = vst.msk [vmem:[%s2776_s3 + $0x14] sm:$0xf] %vm1600_vm3, %v1819_v3  ;;  %v965_v18 = vadd.f32 %v736_v14, %v100_v9  ;;  %v997_v19 = vadd.f32 %v864_v15, %v132_v10  ;;  %v738_v20 = vpop.f32.mrb[19].mxu0  ;;  %v866_v21 = vpop.f32.mrb[19].mxu1  ;;  %v104_v9 = vld [vmem:[#allocation2 + $0x68] sm:$0xff] }
 0x138   :  { %v1126_v13 = vld [vmem:[#allocation2 + $0x130] sm:$0xff]  ;;  %vm1158_vm14 = vcmp.ge.f32.partialorder %v1094_v12, 0.0  ;;  %v1222_v16 = vmul.f32 0.2, %v1094_v12  ;;  %1029 = vst.msk [vmem:[#allocation2 + $0x40] sm:$0xff] %vm26_vm0, %v964_v5  ;;  %1061 = vst.msk [vmem:[#allocation2 + $0x140] sm:$0xff] %vm26_vm0, %v996_v6 }
 0x139   :  { %vm1190_vm15 = vcmp.ge.f32.partialorder %v1126_v13, 0.0  ;;  %v1254_v17 = vmul.f32 0.2, %v1126_v13  ;;  %1638 = vst.msk [vmem:[%s2776_s3 + $0x94] sm:$0xf] %vm1600_vm3, %v1851_v11  ;;  %v1095_v24 = vld [vmem:[#allocation2 + $0x38] sm:$0xff] }
 0x13a   :  { %v1286_v22 = vsel %vm1158_vm14, %v1094_v12, %v1222_v16  ;;  %v1127_v25 = vld [vmem:[#allocation2 + $0x138] sm:$0xff]  ;;  %vm1159_vm1 = vcmp.ge.f32.partialorder %v1095_v24, 0.0  ;;  %v1223_v28 = vmul.f32 0.2, %v1095_v24  ;;  %1030 = vst.msk [vmem:[#allocation2 + $0x48] sm:$0xff] %vm26_vm0, %v965_v18  ;;  %1062 = vst.msk [vmem:[#allocation2 + $0x148] sm:$0xff] %vm26_vm0, %v997_v19 }
 0x13b   :  { %v1318_v23 = vsel %vm1190_vm15, %v1126_v13, %v1254_v17  ;;  %v1820_v26 = vpack.c.bf16 %v1286_v22, %v1286_v22  ;;  %vm1191_vm2 = vcmp.ge.f32.partialorder %v1127_v25, 0.0  ;;  %v1255_v31 = vmul.f32 0.2, %v1127_v25  ;;  %v136_v10 = vld [vmem:[#allocation2 + $0x168] sm:$0xff] }
 0x13c   :  { %v1852_v27 = vpack.c.bf16 %v1318_v23, %v1318_v23  ;;  %v1287_v32 = vsel %vm1159_vm1, %v1095_v24, %v1223_v28  ;;  %v741_v33 = vpop.f32.mrb[20].mxu0  ;;  %v869_v34 = vpop.f32.mrb[20].mxu1 }
 0x13d   :  { %1607 = vst.msk [vmem:[%s2776_s3 + $0x18] sm:$0xf] %vm1600_vm3, %v1820_v26  ;;  %v1821_v35 = vpack.c.bf16 %v1287_v32, %v1287_v32  ;;  %v1319_v36 = vsel %vm1191_vm2, %v1127_v25, %v1255_v31  ;;  %v966_v37 = vadd.f32 %v741_v33, %v101_v29  ;;  %v998_v38 = vadd.f32 %v869_v34, %v133_v30  ;;  %v743_v39 = vpop.f32.mrb[21].mxu0  ;;  %v871_v40 = vpop.f32.mrb[21].mxu1  ;;  %v105_v29 = vld [vmem:[#allocation2 + $0x70] sm:$0xff] }
 0x13e   :  { %1639 = vst.msk [vmem:[%s2776_s3 + $0x98] sm:$0xf] %vm1600_vm3, %v1852_v27  ;;  %v1853_v43 = vpack.c.bf16 %v1319_v36, %v1319_v36  ;;  %v744_v46 = vpop.f32.mrb[22].mxu0  ;;  %v872_v47 = vpop.f32.mrb[22].mxu1  ;;  %v137_v30 = vld [vmem:[#allocation2 + $0x170] sm:$0xff] }
 0x13f   :  { %v1096_v44 = vld [vmem:[#allocation2 + $0x40] sm:$0xff]  ;;  %1608 = vst.msk [vmem:[%s2776_s3 + $0x1c] sm:$0xf] %vm1600_vm3, %v1821_v35  ;;  %v967_v50 = vadd.f32 %v744_v46, %v102_v41  ;;  %v999_v51 = vadd.f32 %v872_v47, %v134_v42  ;;  %v746_v52 = vpop.f32.mrb[23].mxu0  ;;  %v874_v53 = vpop.f32.mrb[23].mxu1  ;;  %v106_v41 = vld [vmem:[#allocation2 + $0x78] sm:$0xff] }
 0x140   :  { %v1128_v45 = vld [vmem:[#allocation2 + $0x140] sm:$0xff]  ;;  %vm1160_vm4 = vcmp.ge.f32.partialorder %v1096_v44, 0.0  ;;  %v1224_v48 = vmul.f32 0.2, %v1096_v44  ;;  %1031 = vst.msk [vmem:[#allocation2 + $0x50] sm:$0xff] %vm26_vm0, %v966_v37  ;;  %1063 = vst.msk [vmem:[#allocation2 + $0x150] sm:$0xff] %vm26_vm0, %v998_v38 }
 0x141   :  { %vm1192_vm5 = vcmp.ge.f32.partialorder %v1128_v45, 0.0  ;;  %v1256_v49 = vmul.f32 0.2, %v1128_v45  ;;  %1640 = vst.msk [vmem:[%s2776_s3 + $0x9c] sm:$0xf] %vm1600_vm3, %v1853_v43  ;;  %v1097_v56 = vld [vmem:[#allocation2 + $0x48] sm:$0xff] }
 0x142   :  { %v1288_v54 = vsel %vm1160_vm4, %v1096_v44, %v1224_v48  ;;  %v1129_v57 = vld [vmem:[#allocation2 + $0x148] sm:$0xff]  ;;  %vm1161_vm6 = vcmp.ge.f32.partialorder %v1097_v56, 0.0  ;;  %v1225_v60 = vmul.f32 0.2, %v1097_v56  ;;  %1032 = vst.msk [vmem:[#allocation2 + $0x58] sm:$0xff] %vm26_vm0, %v967_v50  ;;  %1064 = vst.msk [vmem:[#allocation2 + $0x158] sm:$0xff] %vm26_vm0, %v999_v51 }
 0x143   :  { %v1320_v55 = vsel %vm1192_vm5, %v1128_v45, %v1256_v49  ;;  %v1822_v58 = vpack.c.bf16 %v1288_v54, %v1288_v54  ;;  %vm1193_vm7 = vcmp.ge.f32.partialorder %v1129_v57, 0.0  ;;  %v1257_v63 = vmul.f32 0.2, %v1129_v57  ;;  %v138_v42 = vld [vmem:[#allocation2 + $0x178] sm:$0xff] }
 0x144   :  { %v1854_v59 = vpack.c.bf16 %v1320_v55, %v1320_v55  ;;  %v1289_v0 = vsel %vm1161_vm6, %v1097_v56, %v1225_v60  ;;  %v749_v1 = vpop.f32.mrb[24].mxu0  ;;  %v877_v2 = vpop.f32.mrb[24].mxu1 }
 0x145   :  { %1609 = vst.msk [vmem:[%s2776_s3 + $0x20] sm:$0xf] %vm1600_vm3, %v1822_v58  ;;  %v1823_v3 = vpack.c.bf16 %v1289_v0, %v1289_v0  ;;  %v1321_v4 = vsel %vm1193_vm7, %v1129_v57, %v1257_v63  ;;  %v968_v5 = vadd.f32 %v749_v1, %v103_v61  ;;  %v1000_v6 = vadd.f32 %v877_v2, %v135_v62  ;;  %v751_v7 = vpop.f32.mrb[25].mxu0  ;;  %v879_v8 = vpop.f32.mrb[25].mxu1  ;;  %v107_v61 = vld [vmem:[#allocation2 + $0x80] sm:$0xff] }
 0x146   :  { %1641 = vst.msk [vmem:[%s2776_s3 + $0xa0] sm:$0xf] %vm1600_vm3, %v1854_v59  ;;  %v1855_v11 = vpack.c.bf16 %v1321_v4, %v1321_v4  ;;  %v752_v14 = vpop.f32.mrb[26].mxu0  ;;  %v880_v15 = vpop.f32.mrb[26].mxu1  ;;  %v139_v62 = vld [vmem:[#allocation2 + $0x180] sm:$0xff] }
 0x147   :  { %v1098_v12 = vld [vmem:[#allocation2 + $0x50] sm:$0xff]  ;;  %1610 = vst.msk [vmem:[%s2776_s3 + $0x24] sm:$0xf] %vm1600_vm3, %v1823_v3  ;;  %v969_v18 = vadd.f32 %v752_v14, %v104_v9  ;;  %v1001_v19 = vadd.f32 %v880_v15, %v136_v10  ;;  %v754_v20 = vpop.f32.mrb[27].mxu0  ;;  %v882_v21 = vpop.f32.mrb[27].mxu1  ;;  %v108_v9 = vld [vmem:[#allocation2 + $0x88] sm:$0xff] }
 0x148   :  { %v1130_v13 = vld [vmem:[#allocation2 + $0x150] sm:$0xff]  ;;  %vm1162_vm8 = vcmp.ge.f32.partialorder %v1098_v12, 0.0  ;;  %v1226_v16 = vmul.f32 0.2, %v1098_v12  ;;  %1033 = vst.msk [vmem:[#allocation2 + $0x60] sm:$0xff] %vm26_vm0, %v968_v5  ;;  %1065 = vst.msk [vmem:[#allocation2 + $0x160] sm:$0xff] %vm26_vm0, %v1000_v6 }
 0x149   :  { %vm1194_vm9 = vcmp.ge.f32.partialorder %v1130_v13, 0.0  ;;  %v1258_v17 = vmul.f32 0.2, %v1130_v13  ;;  %1642 = vst.msk [vmem:[%s2776_s3 + $0xa4] sm:$0xf] %vm1600_vm3, %v1855_v11  ;;  %v1099_v24 = vld [vmem:[#allocation2 + $0x58] sm:$0xff] }
 0x14a   :  { %v1290_v22 = vsel %vm1162_vm8, %v1098_v12, %v1226_v16  ;;  %v1131_v25 = vld [vmem:[#allocation2 + $0x158] sm:$0xff]  ;;  %vm1163_vm10 = vcmp.ge.f32.partialorder %v1099_v24, 0.0  ;;  %v1227_v28 = vmul.f32 0.2, %v1099_v24  ;;  %1034 = vst.msk [vmem:[#allocation2 + $0x68] sm:$0xff] %vm26_vm0, %v969_v18  ;;  %1066 = vst.msk [vmem:[#allocation2 + $0x168] sm:$0xff] %vm26_vm0, %v1001_v19 }
 0x14b   :  { %v1322_v23 = vsel %vm1194_vm9, %v1130_v13, %v1258_v17  ;;  %v1824_v26 = vpack.c.bf16 %v1290_v22, %v1290_v22  ;;  %vm1195_vm11 = vcmp.ge.f32.partialorder %v1131_v25, 0.0  ;;  %v1259_v31 = vmul.f32 0.2, %v1131_v25  ;;  %v140_v10 = vld [vmem:[#allocation2 + $0x188] sm:$0xff] }
 0x14c   :  { %v1856_v27 = vpack.c.bf16 %v1322_v23, %v1322_v23  ;;  %v1291_v32 = vsel %vm1163_vm10, %v1099_v24, %v1227_v28  ;;  %v757_v33 = vpop.f32.mrb[28].mxu0  ;;  %v885_v34 = vpop.f32.mrb[28].mxu1 }
 0x14d   :  { %1611 = vst.msk [vmem:[%s2776_s3 + $0x28] sm:$0xf] %vm1600_vm3, %v1824_v26  ;;  %v1825_v35 = vpack.c.bf16 %v1291_v32, %v1291_v32  ;;  %v1323_v36 = vsel %vm1195_vm11, %v1131_v25, %v1259_v31  ;;  %v970_v37 = vadd.f32 %v757_v33, %v105_v29  ;;  %v1002_v38 = vadd.f32 %v885_v34, %v137_v30  ;;  %v759_v39 = vpop.f32.mrb[29].mxu0  ;;  %v887_v40 = vpop.f32.mrb[29].mxu1  ;;  %v109_v29 = vld [vmem:[#allocation2 + $0x90] sm:$0xff] }
 0x14e   :  { %1643 = vst.msk [vmem:[%s2776_s3 + $0xa8] sm:$0xf] %vm1600_vm3, %v1856_v27  ;;  %v1857_v43 = vpack.c.bf16 %v1323_v36, %v1323_v36  ;;  %v760_v46 = vpop.f32.mrb[30].mxu0  ;;  %v888_v47 = vpop.f32.mrb[30].mxu1  ;;  %v141_v30 = vld [vmem:[#allocation2 + $0x190] sm:$0xff] }
 0x14f   :  { %v1100_v44 = vld [vmem:[#allocation2 + $0x60] sm:$0xff]  ;;  %1612 = vst.msk [vmem:[%s2776_s3 + $0x2c] sm:$0xf] %vm1600_vm3, %v1825_v35  ;;  %v971_v50 = vadd.f32 %v760_v46, %v106_v41  ;;  %v1003_v51 = vadd.f32 %v888_v47, %v138_v42  ;;  %v762_v52 = vpop.f32.mrb[31].mxu0  ;;  %v890_v53 = vpop.f32.mrb[31].mxu1  ;;  %v110_v41 = vld [vmem:[#allocation2 + $0x98] sm:$0xff] }
 0x150   :  { %v1132_v45 = vld [vmem:[#allocation2 + $0x160] sm:$0xff]  ;;  %vm1164_vm12 = vcmp.ge.f32.partialorder %v1100_v44, 0.0  ;;  %v1228_v48 = vmul.f32 0.2, %v1100_v44  ;;  %1035 = vst.msk [vmem:[#allocation2 + $0x70] sm:$0xff] %vm26_vm0, %v970_v37  ;;  %1067 = vst.msk [vmem:[#allocation2 + $0x170] sm:$0xff] %vm26_vm0, %v1002_v38 }
 0x151   :  { %vm1196_vm13 = vcmp.ge.f32.partialorder %v1132_v45, 0.0  ;;  %v1260_v49 = vmul.f32 0.2, %v1132_v45  ;;  %1644 = vst.msk [vmem:[%s2776_s3 + $0xac] sm:$0xf] %vm1600_vm3, %v1857_v43  ;;  %v1101_v56 = vld [vmem:[#allocation2 + $0x68] sm:$0xff] }
 0x152   :  { %v1292_v54 = vsel %vm1164_vm12, %v1100_v44, %v1228_v48  ;;  %v1133_v57 = vld [vmem:[#allocation2 + $0x168] sm:$0xff]  ;;  %vm1165_vm14 = vcmp.ge.f32.partialorder %v1101_v56, 0.0  ;;  %v1229_v60 = vmul.f32 0.2, %v1101_v56  ;;  %1036 = vst.msk [vmem:[#allocation2 + $0x78] sm:$0xff] %vm26_vm0, %v971_v50  ;;  %1068 = vst.msk [vmem:[#allocation2 + $0x178] sm:$0xff] %vm26_vm0, %v1003_v51 }
 0x153   :  { %v1324_v55 = vsel %vm1196_vm13, %v1132_v45, %v1260_v49  ;;  %v1826_v58 = vpack.c.bf16 %v1292_v54, %v1292_v54  ;;  %vm1197_vm15 = vcmp.ge.f32.partialorder %v1133_v57, 0.0  ;;  %v1261_v63 = vmul.f32 0.2, %v1133_v57  ;;  %v142_v42 = vld [vmem:[#allocation2 + $0x198] sm:$0xff] }
 0x154   :  { %v1858_v59 = vpack.c.bf16 %v1324_v55, %v1324_v55  ;;  %v1293_v0 = vsel %vm1165_vm14, %v1101_v56, %v1229_v60  ;;  %v765_v1 = vpop.f32.mrb[32].mxu0  ;;  %v893_v2 = vpop.f32.mrb[32].mxu1 }
 0x155   :  { %1613 = vst.msk [vmem:[%s2776_s3 + $0x30] sm:$0xf] %vm1600_vm3, %v1826_v58  ;;  %v1827_v3 = vpack.c.bf16 %v1293_v0, %v1293_v0  ;;  %v1325_v4 = vsel %vm1197_vm15, %v1133_v57, %v1261_v63  ;;  %v972_v5 = vadd.f32 %v765_v1, %v107_v61  ;;  %v1004_v6 = vadd.f32 %v893_v2, %v139_v62  ;;  %v767_v7 = vpop.f32.mrb[33].mxu0  ;;  %v895_v8 = vpop.f32.mrb[33].mxu1  ;;  %v111_v61 = vld [vmem:[#allocation2 + $0xa0] sm:$0xff] }
 0x156   :  { %1645 = vst.msk [vmem:[%s2776_s3 + $0xb0] sm:$0xf] %vm1600_vm3, %v1858_v59  ;;  %v1859_v11 = vpack.c.bf16 %v1325_v4, %v1325_v4  ;;  %v768_v14 = vpop.f32.mrb[34].mxu0  ;;  %v896_v15 = vpop.f32.mrb[34].mxu1  ;;  %v143_v62 = vld [vmem:[#allocation2 + $0x1a0] sm:$0xff] }
 0x157   :  { %v1102_v12 = vld [vmem:[#allocation2 + $0x70] sm:$0xff]  ;;  %1614 = vst.msk [vmem:[%s2776_s3 + $0x34] sm:$0xf] %vm1600_vm3, %v1827_v3  ;;  %v973_v18 = vadd.f32 %v768_v14, %v108_v9  ;;  %v1005_v19 = vadd.f32 %v896_v15, %v140_v10  ;;  %v770_v20 = vpop.f32.mrb[35].mxu0  ;;  %v898_v21 = vpop.f32.mrb[35].mxu1  ;;  %v112_v9 = vld [vmem:[#allocation2 + $0xa8] sm:$0xff] }
 0x158   :  { %v1134_v13 = vld [vmem:[#allocation2 + $0x170] sm:$0xff]  ;;  %vm1166_vm1 = vcmp.ge.f32.partialorder %v1102_v12, 0.0  ;;  %v1230_v16 = vmul.f32 0.2, %v1102_v12  ;;  %1037 = vst.msk [vmem:[#allocation2 + $0x80] sm:$0xff] %vm26_vm0, %v972_v5  ;;  %1069 = vst.msk [vmem:[#allocation2 + $0x180] sm:$0xff] %vm26_vm0, %v1004_v6 }
 0x159   :  { %vm1198_vm2 = vcmp.ge.f32.partialorder %v1134_v13, 0.0  ;;  %v1262_v17 = vmul.f32 0.2, %v1134_v13  ;;  %1646 = vst.msk [vmem:[%s2776_s3 + $0xb4] sm:$0xf] %vm1600_vm3, %v1859_v11  ;;  %v1103_v24 = vld [vmem:[#allocation2 + $0x78] sm:$0xff] }
 0x15a   :  { %v1294_v22 = vsel %vm1166_vm1, %v1102_v12, %v1230_v16  ;;  %v1135_v25 = vld [vmem:[#allocation2 + $0x178] sm:$0xff]  ;;  %vm1167_vm4 = vcmp.ge.f32.partialorder %v1103_v24, 0.0  ;;  %v1231_v28 = vmul.f32 0.2, %v1103_v24  ;;  %1038 = vst.msk [vmem:[#allocation2 + $0x88] sm:$0xff] %vm26_vm0, %v973_v18  ;;  %1070 = vst.msk [vmem:[#allocation2 + $0x188] sm:$0xff] %vm26_vm0, %v1005_v19 }
 0x15b   :  { %v1326_v23 = vsel %vm1198_vm2, %v1134_v13, %v1262_v17  ;;  %v1828_v26 = vpack.c.bf16 %v1294_v22, %v1294_v22  ;;  %vm1199_vm5 = vcmp.ge.f32.partialorder %v1135_v25, 0.0  ;;  %v1263_v31 = vmul.f32 0.2, %v1135_v25  ;;  %v144_v10 = vld [vmem:[#allocation2 + $0x1a8] sm:$0xff] }
 0x15c   :  { %v1860_v27 = vpack.c.bf16 %v1326_v23, %v1326_v23  ;;  %v1295_v32 = vsel %vm1167_vm4, %v1103_v24, %v1231_v28  ;;  %v773_v33 = vpop.f32.mrb[36].mxu0  ;;  %v901_v34 = vpop.f32.mrb[36].mxu1 }
 0x15d   :  { %1615 = vst.msk [vmem:[%s2776_s3 + $0x38] sm:$0xf] %vm1600_vm3, %v1828_v26  ;;  %v1829_v35 = vpack.c.bf16 %v1295_v32, %v1295_v32  ;;  %v1327_v36 = vsel %vm1199_vm5, %v1135_v25, %v1263_v31  ;;  %v974_v37 = vadd.f32 %v773_v33, %v109_v29  ;;  %v1006_v38 = vadd.f32 %v901_v34, %v141_v30  ;;  %v775_v39 = vpop.f32.mrb[37].mxu0  ;;  %v903_v40 = vpop.f32.mrb[37].mxu1  ;;  %v113_v29 = vld [vmem:[#allocation2 + $0xb0] sm:$0xff] }
 0x15e   :  { %1647 = vst.msk [vmem:[%s2776_s3 + $0xb8] sm:$0xf] %vm1600_vm3, %v1860_v27  ;;  %v1861_v43 = vpack.c.bf16 %v1327_v36, %v1327_v36  ;;  %v776_v46 = vpop.f32.mrb[38].mxu0  ;;  %v904_v47 = vpop.f32.mrb[38].mxu1  ;;  %v145_v30 = vld [vmem:[#allocation2 + $0x1b0] sm:$0xff] }
 0x15f   :  { %v1104_v44 = vld [vmem:[#allocation2 + $0x80] sm:$0xff]  ;;  %1616 = vst.msk [vmem:[%s2776_s3 + $0x3c] sm:$0xf] %vm1600_vm3, %v1829_v35  ;;  %v975_v50 = vadd.f32 %v776_v46, %v110_v41  ;;  %v1007_v51 = vadd.f32 %v904_v47, %v142_v42  ;;  %v778_v52 = vpop.f32.mrb[39].mxu0  ;;  %v906_v53 = vpop.f32.mrb[39].mxu1  ;;  %v114_v41 = vld [vmem:[#allocation2 + $0xb8] sm:$0xff] }
 0x160   :  { %v1136_v45 = vld [vmem:[#allocation2 + $0x180] sm:$0xff]  ;;  %vm1168_vm6 = vcmp.ge.f32.partialorder %v1104_v44, 0.0  ;;  %v1232_v48 = vmul.f32 0.2, %v1104_v44  ;;  %1039 = vst.msk [vmem:[#allocation2 + $0x90] sm:$0xff] %vm26_vm0, %v974_v37  ;;  %1071 = vst.msk [vmem:[#allocation2 + $0x190] sm:$0xff] %vm26_vm0, %v1006_v38 }
 0x161   :  { %vm1200_vm7 = vcmp.ge.f32.partialorder %v1136_v45, 0.0  ;;  %v1264_v49 = vmul.f32 0.2, %v1136_v45  ;;  %1648 = vst.msk [vmem:[%s2776_s3 + $0xbc] sm:$0xf] %vm1600_vm3, %v1861_v43  ;;  %v1105_v56 = vld [vmem:[#allocation2 + $0x88] sm:$0xff] }
 0x162   :  { %v1296_v54 = vsel %vm1168_vm6, %v1104_v44, %v1232_v48  ;;  %v1137_v57 = vld [vmem:[#allocation2 + $0x188] sm:$0xff]  ;;  %vm1169_vm8 = vcmp.ge.f32.partialorder %v1105_v56, 0.0  ;;  %v1233_v60 = vmul.f32 0.2, %v1105_v56  ;;  %1040 = vst.msk [vmem:[#allocation2 + $0x98] sm:$0xff] %vm26_vm0, %v975_v50  ;;  %1072 = vst.msk [vmem:[#allocation2 + $0x198] sm:$0xff] %vm26_vm0, %v1007_v51 }
 0x163   :  { %v1328_v55 = vsel %vm1200_vm7, %v1136_v45, %v1264_v49  ;;  %v1830_v58 = vpack.c.bf16 %v1296_v54, %v1296_v54  ;;  %vm1201_vm9 = vcmp.ge.f32.partialorder %v1137_v57, 0.0  ;;  %v1265_v63 = vmul.f32 0.2, %v1137_v57  ;;  %v146_v42 = vld [vmem:[#allocation2 + $0x1b8] sm:$0xff] }
 0x164   :  { %v1862_v59 = vpack.c.bf16 %v1328_v55, %v1328_v55  ;;  %v1297_v0 = vsel %vm1169_vm8, %v1105_v56, %v1233_v60  ;;  %v781_v1 = vpop.f32.mrb[40].mxu0  ;;  %v909_v2 = vpop.f32.mrb[40].mxu1 }
 0x165   :  { %1617 = vst.msk [vmem:[%s2776_s3 + $0x40] sm:$0xf] %vm1600_vm3, %v1830_v58  ;;  %v1831_v3 = vpack.c.bf16 %v1297_v0, %v1297_v0  ;;  %v1329_v4 = vsel %vm1201_vm9, %v1137_v57, %v1265_v63  ;;  %v976_v5 = vadd.f32 %v781_v1, %v111_v61  ;;  %v1008_v6 = vadd.f32 %v909_v2, %v143_v62  ;;  %v783_v7 = vpop.f32.mrb[41].mxu0  ;;  %v911_v8 = vpop.f32.mrb[41].mxu1  ;;  %v115_v61 = vld [vmem:[#allocation2 + $0xc0] sm:$0xff] }
 0x166   :  { %1649 = vst.msk [vmem:[%s2776_s3 + $0xc0] sm:$0xf] %vm1600_vm3, %v1862_v59  ;;  %v1863_v11 = vpack.c.bf16 %v1329_v4, %v1329_v4  ;;  %v784_v14 = vpop.f32.mrb[42].mxu0  ;;  %v912_v15 = vpop.f32.mrb[42].mxu1  ;;  %v147_v62 = vld [vmem:[#allocation2 + $0x1c0] sm:$0xff] }
 0x167   :  { %v1106_v12 = vld [vmem:[#allocation2 + $0x90] sm:$0xff]  ;;  %1618 = vst.msk [vmem:[%s2776_s3 + $0x44] sm:$0xf] %vm1600_vm3, %v1831_v3  ;;  %v977_v18 = vadd.f32 %v784_v14, %v112_v9  ;;  %v1009_v19 = vadd.f32 %v912_v15, %v144_v10  ;;  %v786_v20 = vpop.f32.mrb[43].mxu0  ;;  %v914_v21 = vpop.f32.mrb[43].mxu1  ;;  %v116_v9 = vld [vmem:[#allocation2 + $0xc8] sm:$0xff] }
 0x168   :  { %v1138_v13 = vld [vmem:[#allocation2 + $0x190] sm:$0xff]  ;;  %vm1170_vm10 = vcmp.ge.f32.partialorder %v1106_v12, 0.0  ;;  %v1234_v16 = vmul.f32 0.2, %v1106_v12  ;;  %1041 = vst.msk [vmem:[#allocation2 + $0xa0] sm:$0xff] %vm26_vm0, %v976_v5  ;;  %1073 = vst.msk [vmem:[#allocation2 + $0x1a0] sm:$0xff] %vm26_vm0, %v1008_v6 }
 0x169   :  { %vm1202_vm11 = vcmp.ge.f32.partialorder %v1138_v13, 0.0  ;;  %v1266_v17 = vmul.f32 0.2, %v1138_v13  ;;  %1650 = vst.msk [vmem:[%s2776_s3 + $0xc4] sm:$0xf] %vm1600_vm3, %v1863_v11  ;;  %v1107_v24 = vld [vmem:[#allocation2 + $0x98] sm:$0xff] }
 0x16a   :  { %v1298_v22 = vsel %vm1170_vm10, %v1106_v12, %v1234_v16  ;;  %v1139_v25 = vld [vmem:[#allocation2 + $0x198] sm:$0xff]  ;;  %vm1171_vm12 = vcmp.ge.f32.partialorder %v1107_v24, 0.0  ;;  %v1235_v28 = vmul.f32 0.2, %v1107_v24  ;;  %1042 = vst.msk [vmem:[#allocation2 + $0xa8] sm:$0xff] %vm26_vm0, %v977_v18  ;;  %1074 = vst.msk [vmem:[#allocation2 + $0x1a8] sm:$0xff] %vm26_vm0, %v1009_v19 }
 0x16b   :  { %v1330_v23 = vsel %vm1202_vm11, %v1138_v13, %v1266_v17  ;;  %v1832_v26 = vpack.c.bf16 %v1298_v22, %v1298_v22  ;;  %vm1203_vm13 = vcmp.ge.f32.partialorder %v1139_v25, 0.0  ;;  %v1267_v31 = vmul.f32 0.2, %v1139_v25  ;;  %v148_v10 = vld [vmem:[#allocation2 + $0x1c8] sm:$0xff] }
 0x16c   :  { %v1864_v27 = vpack.c.bf16 %v1330_v23, %v1330_v23  ;;  %v1299_v32 = vsel %vm1171_vm12, %v1107_v24, %v1235_v28  ;;  %v789_v33 = vpop.f32.mrb[44].mxu0  ;;  %v917_v34 = vpop.f32.mrb[44].mxu1 }
 0x16d   :  { %1619 = vst.msk [vmem:[%s2776_s3 + $0x48] sm:$0xf] %vm1600_vm3, %v1832_v26  ;;  %v1833_v35 = vpack.c.bf16 %v1299_v32, %v1299_v32  ;;  %v1331_v36 = vsel %vm1203_vm13, %v1139_v25, %v1267_v31  ;;  %v978_v37 = vadd.f32 %v789_v33, %v113_v29  ;;  %v1010_v38 = vadd.f32 %v917_v34, %v145_v30  ;;  %v791_v39 = vpop.f32.mrb[45].mxu0  ;;  %v919_v40 = vpop.f32.mrb[45].mxu1  ;;  %v117_v29 = vld [vmem:[#allocation2 + $0xd0] sm:$0xff] }
 0x16e   :  { %1651 = vst.msk [vmem:[%s2776_s3 + $0xc8] sm:$0xf] %vm1600_vm3, %v1864_v27  ;;  %v1865_v43 = vpack.c.bf16 %v1331_v36, %v1331_v36  ;;  %v792_v46 = vpop.f32.mrb[46].mxu0  ;;  %v920_v47 = vpop.f32.mrb[46].mxu1  ;;  %v149_v30 = vld [vmem:[#allocation2 + $0x1d0] sm:$0xff] }
 0x16f   :  { %v1108_v44 = vld [vmem:[#allocation2 + $0xa0] sm:$0xff]  ;;  %1620 = vst.msk [vmem:[%s2776_s3 + $0x4c] sm:$0xf] %vm1600_vm3, %v1833_v35  ;;  %v979_v50 = vadd.f32 %v792_v46, %v114_v41  ;;  %v1011_v51 = vadd.f32 %v920_v47, %v146_v42  ;;  %v794_v52 = vpop.f32.mrb[47].mxu0  ;;  %v922_v53 = vpop.f32.mrb[47].mxu1  ;;  %v118_v41 = vld [vmem:[#allocation2 + $0xd8] sm:$0xff] }
 0x170   :  { %v1140_v45 = vld [vmem:[#allocation2 + $0x1a0] sm:$0xff]  ;;  %vm1172_vm14 = vcmp.ge.f32.partialorder %v1108_v44, 0.0  ;;  %v1236_v48 = vmul.f32 0.2, %v1108_v44  ;;  %1043 = vst.msk [vmem:[#allocation2 + $0xb0] sm:$0xff] %vm26_vm0, %v978_v37  ;;  %1075 = vst.msk [vmem:[#allocation2 + $0x1b0] sm:$0xff] %vm26_vm0, %v1010_v38 }
 0x171   :  { %vm1204_vm15 = vcmp.ge.f32.partialorder %v1140_v45, 0.0  ;;  %v1268_v49 = vmul.f32 0.2, %v1140_v45  ;;  %1652 = vst.msk [vmem:[%s2776_s3 + $0xcc] sm:$0xf] %vm1600_vm3, %v1865_v43  ;;  %v1109_v56 = vld [vmem:[#allocation2 + $0xa8] sm:$0xff] }
 0x172   :  { %v1300_v54 = vsel %vm1172_vm14, %v1108_v44, %v1236_v48  ;;  %v1141_v57 = vld [vmem:[#allocation2 + $0x1a8] sm:$0xff]  ;;  %vm1173_vm1 = vcmp.ge.f32.partialorder %v1109_v56, 0.0  ;;  %v1237_v60 = vmul.f32 0.2, %v1109_v56  ;;  %1044 = vst.msk [vmem:[#allocation2 + $0xb8] sm:$0xff] %vm26_vm0, %v979_v50  ;;  %1076 = vst.msk [vmem:[#allocation2 + $0x1b8] sm:$0xff] %vm26_vm0, %v1011_v51 }
 0x173   :  { %v1332_v55 = vsel %vm1204_vm15, %v1140_v45, %v1268_v49  ;;  %v1834_v58 = vpack.c.bf16 %v1300_v54, %v1300_v54  ;;  %vm1205_vm2 = vcmp.ge.f32.partialorder %v1141_v57, 0.0  ;;  %v1269_v63 = vmul.f32 0.2, %v1141_v57  ;;  %v150_v42 = vld [vmem:[#allocation2 + $0x1d8] sm:$0xff] }
 0x174   :  { %v1866_v59 = vpack.c.bf16 %v1332_v55, %v1332_v55  ;;  %v1301_v0 = vsel %vm1173_vm1, %v1109_v56, %v1237_v60  ;;  %v797_v1 = vpop.f32.mrb[48].mxu0  ;;  %v925_v2 = vpop.f32.mrb[48].mxu1 }
 0x175   :  { %1621 = vst.msk [vmem:[%s2776_s3 + $0x50] sm:$0xf] %vm1600_vm3, %v1834_v58  ;;  %v1835_v3 = vpack.c.bf16 %v1301_v0, %v1301_v0  ;;  %v1333_v4 = vsel %vm1205_vm2, %v1141_v57, %v1269_v63  ;;  %v980_v5 = vadd.f32 %v797_v1, %v115_v61  ;;  %v1012_v6 = vadd.f32 %v925_v2, %v147_v62  ;;  %v799_v7 = vpop.f32.mrb[49].mxu0  ;;  %v927_v8 = vpop.f32.mrb[49].mxu1  ;;  %v119_v61 = vld [vmem:[#allocation2 + $0xe0] sm:$0xff] }
 0x176   :  { %1653 = vst.msk [vmem:[%s2776_s3 + $0xd0] sm:$0xf] %vm1600_vm3, %v1866_v59  ;;  %v1867_v11 = vpack.c.bf16 %v1333_v4, %v1333_v4  ;;  %v800_v14 = vpop.f32.mrb[50].mxu0  ;;  %v928_v15 = vpop.f32.mrb[50].mxu1  ;;  %v151_v62 = vld [vmem:[#allocation2 + $0x1e0] sm:$0xff] }
 0x177   :  { %v1110_v12 = vld [vmem:[#allocation2 + $0xb0] sm:$0xff]  ;;  %1622 = vst.msk [vmem:[%s2776_s3 + $0x54] sm:$0xf] %vm1600_vm3, %v1835_v3  ;;  %v981_v18 = vadd.f32 %v800_v14, %v116_v9  ;;  %v1013_v19 = vadd.f32 %v928_v15, %v148_v10  ;;  %v802_v20 = vpop.f32.mrb[51].mxu0  ;;  %v930_v21 = vpop.f32.mrb[51].mxu1  ;;  %v120_v9 = vld [vmem:[#allocation2 + $0xe8] sm:$0xff] }
 0x178   :  { %v1142_v13 = vld [vmem:[#allocation2 + $0x1b0] sm:$0xff]  ;;  %vm1174_vm4 = vcmp.ge.f32.partialorder %v1110_v12, 0.0  ;;  %v1238_v16 = vmul.f32 0.2, %v1110_v12  ;;  %1045 = vst.msk [vmem:[#allocation2 + $0xc0] sm:$0xff] %vm26_vm0, %v980_v5  ;;  %1077 = vst.msk [vmem:[#allocation2 + $0x1c0] sm:$0xff] %vm26_vm0, %v1012_v6 }
 0x179   :  { %vm1206_vm5 = vcmp.ge.f32.partialorder %v1142_v13, 0.0  ;;  %v1270_v17 = vmul.f32 0.2, %v1142_v13  ;;  %1654 = vst.msk [vmem:[%s2776_s3 + $0xd4] sm:$0xf] %vm1600_vm3, %v1867_v11  ;;  %v1111_v24 = vld [vmem:[#allocation2 + $0xb8] sm:$0xff] }
 0x17a   :  { %v1302_v22 = vsel %vm1174_vm4, %v1110_v12, %v1238_v16  ;;  %v1143_v25 = vld [vmem:[#allocation2 + $0x1b8] sm:$0xff]  ;;  %vm1175_vm6 = vcmp.ge.f32.partialorder %v1111_v24, 0.0  ;;  %v1239_v28 = vmul.f32 0.2, %v1111_v24  ;;  %1046 = vst.msk [vmem:[#allocation2 + $0xc8] sm:$0xff] %vm26_vm0, %v981_v18  ;;  %1078 = vst.msk [vmem:[#allocation2 + $0x1c8] sm:$0xff] %vm26_vm0, %v1013_v19 }
 0x17b   :  { %v1334_v23 = vsel %vm1206_vm5, %v1142_v13, %v1270_v17  ;;  %v1836_v26 = vpack.c.bf16 %v1302_v22, %v1302_v22  ;;  %vm1207_vm7 = vcmp.ge.f32.partialorder %v1143_v25, 0.0  ;;  %v1271_v31 = vmul.f32 0.2, %v1143_v25  ;;  %v152_v10 = vld [vmem:[#allocation2 + $0x1e8] sm:$0xff] }
 0x17c   :  { %v1868_v27 = vpack.c.bf16 %v1334_v23, %v1334_v23  ;;  %v1303_v32 = vsel %vm1175_vm6, %v1111_v24, %v1239_v28  ;;  %v805_v33 = vpop.f32.mrb[52].mxu0  ;;  %v933_v34 = vpop.f32.mrb[52].mxu1 }
 0x17d   :  { %1623 = vst.msk [vmem:[%s2776_s3 + $0x58] sm:$0xf] %vm1600_vm3, %v1836_v26  ;;  %v1837_v35 = vpack.c.bf16 %v1303_v32, %v1303_v32  ;;  %v1335_v36 = vsel %vm1207_vm7, %v1143_v25, %v1271_v31  ;;  %v982_v37 = vadd.f32 %v805_v33, %v117_v29  ;;  %v1014_v38 = vadd.f32 %v933_v34, %v149_v30  ;;  %v807_v39 = vpop.f32.mrb[53].mxu0  ;;  %v935_v40 = vpop.f32.mrb[53].mxu1  ;;  %v121_v29 = vld [vmem:[#allocation2 + $0xf0] sm:$0xff] }
 0x17e   :  { %1655 = vst.msk [vmem:[%s2776_s3 + $0xd8] sm:$0xf] %vm1600_vm3, %v1868_v27  ;;  %v1869_v43 = vpack.c.bf16 %v1335_v36, %v1335_v36  ;;  %v808_v46 = vpop.f32.mrb[54].mxu0  ;;  %v936_v47 = vpop.f32.mrb[54].mxu1  ;;  %v153_v30 = vld [vmem:[#allocation2 + $0x1f0] sm:$0xff] }
 0x17f   :  { %v1112_v44 = vld [vmem:[#allocation2 + $0xc0] sm:$0xff]  ;;  %1624 = vst.msk [vmem:[%s2776_s3 + $0x5c] sm:$0xf] %vm1600_vm3, %v1837_v35  ;;  %v983_v50 = vadd.f32 %v808_v46, %v118_v41  ;;  %v1015_v51 = vadd.f32 %v936_v47, %v150_v42  ;;  %v810_v52 = vpop.f32.mrb[55].mxu0  ;;  %v938_v53 = vpop.f32.mrb[55].mxu1  ;;  %v122_v41 = vld [vmem:[#allocation2 + $0xf8] sm:$0xff] }
 0x180   :  { %v1144_v45 = vld [vmem:[#allocation2 + $0x1c0] sm:$0xff]  ;;  %vm1176_vm8 = vcmp.ge.f32.partialorder %v1112_v44, 0.0  ;;  %v1240_v48 = vmul.f32 0.2, %v1112_v44  ;;  %1047 = vst.msk [vmem:[#allocation2 + $0xd0] sm:$0xff] %vm26_vm0, %v982_v37  ;;  %1079 = vst.msk [vmem:[#allocation2 + $0x1d0] sm:$0xff] %vm26_vm0, %v1014_v38 }
 0x181   :  { %vm1208_vm9 = vcmp.ge.f32.partialorder %v1144_v45, 0.0  ;;  %v1272_v49 = vmul.f32 0.2, %v1144_v45  ;;  %1656 = vst.msk [vmem:[%s2776_s3 + $0xdc] sm:$0xf] %vm1600_vm3, %v1869_v43  ;;  %v1113_v56 = vld [vmem:[#allocation2 + $0xc8] sm:$0xff] }
 0x182   :  { %v1304_v54 = vsel %vm1176_vm8, %v1112_v44, %v1240_v48  ;;  %v1145_v57 = vld [vmem:[#allocation2 + $0x1c8] sm:$0xff]  ;;  %vm1177_vm10 = vcmp.ge.f32.partialorder %v1113_v56, 0.0  ;;  %v1241_v60 = vmul.f32 0.2, %v1113_v56  ;;  %1048 = vst.msk [vmem:[#allocation2 + $0xd8] sm:$0xff] %vm26_vm0, %v983_v50  ;;  %1080 = vst.msk [vmem:[#allocation2 + $0x1d8] sm:$0xff] %vm26_vm0, %v1015_v51 }
 0x183   :  { %v1336_v55 = vsel %vm1208_vm9, %v1144_v45, %v1272_v49  ;;  %v1838_v58 = vpack.c.bf16 %v1304_v54, %v1304_v54  ;;  %vm1209_vm11 = vcmp.ge.f32.partialorder %v1145_v57, 0.0  ;;  %v1273_v63 = vmul.f32 0.2, %v1145_v57  ;;  %v154_v42 = vld [vmem:[#allocation2 + $0x1f8] sm:$0xff] }
 0x184   :  { %v1870_v59 = vpack.c.bf16 %v1336_v55, %v1336_v55  ;;  %v1305_v0 = vsel %vm1177_vm10, %v1113_v56, %v1241_v60  ;;  %v813_v1 = vpop.f32.mrb[56].mxu0  ;;  %v941_v2 = vpop.f32.mrb[56].mxu1 }
 0x185   :  { %1625 = vst.msk [vmem:[%s2776_s3 + $0x60] sm:$0xf] %vm1600_vm3, %v1838_v58  ;;  %v1839_v3 = vpack.c.bf16 %v1305_v0, %v1305_v0  ;;  %v1337_v4 = vsel %vm1209_vm11, %v1145_v57, %v1273_v63  ;;  %v984_v5 = vadd.f32 %v813_v1, %v119_v61  ;;  %v1016_v6 = vadd.f32 %v941_v2, %v151_v62  ;;  %v815_v7 = vpop.f32.mrb[57].mxu0  ;;  %v943_v8 = vpop.f32.mrb[57].mxu1 }
 0x186   :  { %1657 = vst.msk [vmem:[%s2776_s3 + $0xe0] sm:$0xf] %vm1600_vm3, %v1870_v59  ;;  %v1871_v11 = vpack.c.bf16 %v1337_v4, %v1337_v4  ;;  %v816_v14 = vpop.f32.mrb[58].mxu0  ;;  %v944_v15 = vpop.f32.mrb[58].mxu1 }
 0x187   :  { %v1114_v12 = vld [vmem:[#allocation2 + $0xd0] sm:$0xff]  ;;  %1626 = vst.msk [vmem:[%s2776_s3 + $0x64] sm:$0xf] %vm1600_vm3, %v1839_v3  ;;  %v985_v18 = vadd.f32 %v816_v14, %v120_v9  ;;  %v1017_v19 = vadd.f32 %v944_v15, %v152_v10  ;;  %v818_v20 = vpop.f32.mrb[59].mxu0  ;;  %v946_v21 = vpop.f32.mrb[59].mxu1 }
 0x188   :  { %v1146_v13 = vld [vmem:[#allocation2 + $0x1d0] sm:$0xff]  ;;  %vm1178_vm12 = vcmp.ge.f32.partialorder %v1114_v12, 0.0  ;;  %v1242_v16 = vmul.f32 0.2, %v1114_v12  ;;  %1049 = vst.msk [vmem:[#allocation2 + $0xe0] sm:$0xff] %vm26_vm0, %v984_v5  ;;  %1081 = vst.msk [vmem:[#allocation2 + $0x1e0] sm:$0xff] %vm26_vm0, %v1016_v6 }
 0x189   :  { %vm1210_vm13 = vcmp.ge.f32.partialorder %v1146_v13, 0.0  ;;  %v1274_v17 = vmul.f32 0.2, %v1146_v13  ;;  %1658 = vst.msk [vmem:[%s2776_s3 + $0xe4] sm:$0xf] %vm1600_vm3, %v1871_v11  ;;  %v1115_v24 = vld [vmem:[#allocation2 + $0xd8] sm:$0xff] }
 0x18a   :  { %v1306_v22 = vsel %vm1178_vm12, %v1114_v12, %v1242_v16  ;;  %v1147_v25 = vld [vmem:[#allocation2 + $0x1d8] sm:$0xff]  ;;  %vm1179_vm14 = vcmp.ge.f32.partialorder %v1115_v24, 0.0  ;;  %v1243_v28 = vmul.f32 0.2, %v1115_v24  ;;  %1050 = vst.msk [vmem:[#allocation2 + $0xe8] sm:$0xff] %vm26_vm0, %v985_v18  ;;  %1082 = vst.msk [vmem:[#allocation2 + $0x1e8] sm:$0xff] %vm26_vm0, %v1017_v19 }
 0x18b   :  { %v1338_v23 = vsel %vm1210_vm13, %v1146_v13, %v1274_v17  ;;  %v1840_v26 = vpack.c.bf16 %v1306_v22, %v1306_v22  ;;  %vm1211_vm15 = vcmp.ge.f32.partialorder %v1147_v25, 0.0  ;;  %v1275_v31 = vmul.f32 0.2, %v1147_v25 }
 0x18c   :  { %v1872_v27 = vpack.c.bf16 %v1338_v23, %v1338_v23  ;;  %v1307_v32 = vsel %vm1179_vm14, %v1115_v24, %v1243_v28  ;;  %v821_v33 = vpop.f32.mrb[60].mxu0  ;;  %v949_v34 = vpop.f32.mrb[60].mxu1 }
 0x18d   :  { %1627 = vst.msk [vmem:[%s2776_s3 + $0x68] sm:$0xf] %vm1600_vm3, %v1840_v26  ;;  %v1841_v35 = vpack.c.bf16 %v1307_v32, %v1307_v32  ;;  %v1339_v36 = vsel %vm1211_vm15, %v1147_v25, %v1275_v31  ;;  %v986_v37 = vadd.f32 %v821_v33, %v121_v29  ;;  %v1018_v38 = vadd.f32 %v949_v34, %v153_v30  ;;  %v823_v39 = vpop.f32.mrb[61].mxu0  ;;  %v951_v40 = vpop.f32.mrb[61].mxu1 }
 0x18e   :  { %1659 = vst.msk [vmem:[%s2776_s3 + $0xe8] sm:$0xf] %vm1600_vm3, %v1872_v27  ;;  %v1873_v43 = vpack.c.bf16 %v1339_v36, %v1339_v36  ;;  %v824_v46 = vpop.f32.mrb[62].mxu0  ;;  %v952_v47 = vpop.f32.mrb[62].mxu1 }
 0x18f   :  { %v1116_v44 = vld [vmem:[#allocation2 + $0xe0] sm:$0xff]  ;;  %1628 = vst.msk [vmem:[%s2776_s3 + $0x6c] sm:$0xf] %vm1600_vm3, %v1841_v35  ;;  %v987_v50 = vadd.f32 %v824_v46, %v122_v41  ;;  %v1019_v51 = vadd.f32 %v952_v47, %v154_v42  ;;  %v826_v52 = vpop.f32.mrb[63].mxu0  ;;  %v954_v53 = vpop.f32.mrb[63].mxu1 }
 0x190   :  { %v1148_v45 = vld [vmem:[#allocation2 + $0x1e0] sm:$0xff]  ;;  %vm1180_vm1 = vcmp.ge.f32.partialorder %v1116_v44, 0.0  ;;  %v1244_v48 = vmul.f32 0.2, %v1116_v44  ;;  %1051 = vst.msk [vmem:[#allocation2 + $0xf0] sm:$0xff] %vm26_vm0, %v986_v37  ;;  %1083 = vst.msk [vmem:[#allocation2 + $0x1f0] sm:$0xff] %vm26_vm0, %v1018_v38 }
 0x191   :  { %vm1212_vm2 = vcmp.ge.f32.partialorder %v1148_v45, 0.0  ;;  %v1276_v49 = vmul.f32 0.2, %v1148_v45  ;;  %1660 = vst.msk [vmem:[%s2776_s3 + $0xec] sm:$0xf] %vm1600_vm3, %v1873_v43  ;;  %v1117_v56 = vld [vmem:[#allocation2 + $0xe8] sm:$0xff] }
 0x192   :  { %v1308_v54 = vsel %vm1180_vm1, %v1116_v44, %v1244_v48  ;;  %v1149_v57 = vld [vmem:[#allocation2 + $0x1e8] sm:$0xff]  ;;  %vm1181_vm4 = vcmp.ge.f32.partialorder %v1117_v56, 0.0  ;;  %v1245_v60 = vmul.f32 0.2, %v1117_v56  ;;  %1052 = vst.msk [vmem:[#allocation2 + $0xf8] sm:$0xff] %vm26_vm0, %v987_v50  ;;  %1084 = vst.msk [vmem:[#allocation2 + $0x1f8] sm:$0xff] %vm26_vm0, %v1019_v51 }
 0x193   :  { %v1340_v55 = vsel %vm1212_vm2, %v1148_v45, %v1276_v49  ;;  %v1842_v58 = vpack.c.bf16 %v1308_v54, %v1308_v54  ;;  %vm1213_vm5 = vcmp.ge.f32.partialorder %v1149_v57, 0.0  ;;  %v1277_v61 = vmul.f32 0.2, %v1149_v57 }
 0x194   :  { %v1874_v59 = vpack.c.bf16 %v1340_v55, %v1340_v55  ;;  %v1309_v62 = vsel %vm1181_vm4, %v1117_v56, %v1245_v60 }
 0x195   :  { %1629 = vst.msk [vmem:[%s2776_s3 + $0x70] sm:$0xf] %vm1600_vm3, %v1842_v58  ;;  %v1843_v63 = vpack.c.bf16 %v1309_v62, %v1309_v62  ;;  %v1341_v0 = vsel %vm1213_vm5, %v1149_v57, %v1277_v61 }
 0x196   :  { %1661 = vst.msk [vmem:[%s2776_s3 + $0xf0] sm:$0xf] %vm1600_vm3, %v1874_v59  ;;  %v1875_v1 = vpack.c.bf16 %v1341_v0, %v1341_v0 }
 0x197   :  { %v1118_v2 = vld [vmem:[#allocation2 + $0xf0] sm:$0xff]  ;;  %1630 = vst.msk [vmem:[%s2776_s3 + $0x74] sm:$0xf] %vm1600_vm3, %v1843_v63 }
 0x198   :  { %v1150_v3 = vld [vmem:[#allocation2 + $0x1f0] sm:$0xff]  ;;  %vm1182_vm0 = vcmp.ge.f32.partialorder %v1118_v2, 0.0  ;;  %v1246_v4 = vmul.f32 0.2, %v1118_v2  ;;  %1662 = vst.msk [vmem:[%s2776_s3 + $0xf4] sm:$0xf] %vm1600_vm3, %v1875_v1 }
 0x199   :  { %vm1214_vm6 = vcmp.ge.f32.partialorder %v1150_v3, 0.0  ;;  %v1278_v5 = vmul.f32 0.2, %v1150_v3  ;;  %v1119_v8 = vld [vmem:[#allocation2 + $0xf8] sm:$0xff] }
 0x19a   :  { %v1310_v6 = vsel %vm1182_vm0, %v1118_v2, %v1246_v4  ;;  %v1151_v9 = vld [vmem:[#allocation2 + $0x1f8] sm:$0xff]  ;;  %vm1183_vm7 = vcmp.ge.f32.partialorder %v1119_v8, 0.0  ;;  %v1247_v12 = vmul.f32 0.2, %v1119_v8 }
 0x19b   :  { %v1342_v7 = vsel %vm1214_vm6, %v1150_v3, %v1278_v5  ;;  %v1844_v10 = vpack.c.bf16 %v1310_v6, %v1310_v6  ;;  %vm1215_vm8 = vcmp.ge.f32.partialorder %v1151_v9, 0.0  ;;  %v1279_v13 = vmul.f32 0.2, %v1151_v9 }
 0x19c   :  { %v1876_v11 = vpack.c.bf16 %v1342_v7, %v1342_v7  ;;  %v1311_v14 = vsel %vm1183_vm7, %v1119_v8, %v1247_v12 }
 0x19d   :  { %1631 = vst.msk [vmem:[%s2776_s3 + $0x78] sm:$0xf] %vm1600_vm3, %v1844_v10  ;;  %v1845_v15 = vpack.c.bf16 %v1311_v14, %v1311_v14  ;;  %v1343_v16 = vsel %vm1215_vm8, %v1151_v9, %v1279_v13 }
 0x19e   :  { %1663 = vst.msk [vmem:[%s2776_s3 + $0xf8] sm:$0xf] %vm1600_vm3, %v1876_v11  ;;  %v1877_v17 = vpack.c.bf16 %v1343_v16, %v1343_v16 }
 0x19f   :  { %1632 = vst.msk [vmem:[%s2776_s3 + $0x7c] sm:$0xf] %vm1600_vm3, %v1845_v15 }
 0x1a0   :  { %1664 = vst.msk [vmem:[%s2776_s3 + $0xfc] sm:$0xf] %vm1600_vm3, %v1877_v17 }

// kernel: discriminator_forward.7
= control target key start
LH: loop header
LB: loop body
LE: loop exit
PB: predicated region body
PF: predicated region fallthrough
CT: control target
= control target key end

     0   :  { %vm26_vm0 = vcmask 523264   ;;  %vm865_vm2 = vcmask 519168   ;;  %s1502_s1 = inlined_call_operand.vmem [shape: bf16[512,64], index: 1, kind: input, shape index: {}]   ;;  %s1503_s0 = inlined_call_operand.vmem [shape: bf16[128,512], index: 0, kind: input, shape index: {}]   ;;  %s1504_s2 = inlined_call_operand.vmem [shape: f32[1,64], index: 2, kind: input, shape index: {}]   ;;  %s1505_s3 = inlined_call_operand.vmem [shape: bf16[128,64], index: 3, kind: output, shape index: {}]  }
   0x1   :  { %v1111_v0 = vld [vmem:[%s1502_s1 + $0x40] sm:$0xff]   ;;  %v1115_v4 = vld [vmem:[%s1502_s1 + $0x48] sm:$0xff]   ;;  %v1119_v8 = vld [vmem:[%s1502_s1 + $0x50] sm:$0xff]  }
   0x2   :  { %v1112_v1 = vld [vmem:[%s1502_s1 + $0xc0] sm:$0xff]   ;;  %983 = vmatprep.subr.bf16.mxu0 %v1111_v0  ;;  %v1116_v5 = vld [vmem:[%s1502_s1 + $0xc8] sm:$0xff]   ;;  %v1120_v9 = vld [vmem:[%s1502_s1 + $0xd0] sm:$0xff]  }
   0x3   :  { %v1113_v2 = vld [vmem:[%s1502_s1] sm:$0xff]   ;;  %1047 = vmatprep.subr.bf16.mxu1 %v1112_v1  ;;  %v1117_v6 = vld [vmem:[%s1502_s1 + $0x8] sm:$0xff]   ;;  %v1121_v10 = vld [vmem:[%s1502_s1 + $0x10] sm:$0xff]  }
   0x4   :  { %v1114_v3 = vld [vmem:[%s1502_s1 + $0x80] sm:$0xff]   ;;  %984 = vmatpush3.bf16.msra.mxu0 %v1113_v2  ;;  %v1118_v7 = vld [vmem:[%s1502_s1 + $0x88] sm:$0xff]   ;;  %v1122_v11 = vld [vmem:[%s1502_s1 + $0x90] sm:$0xff]  }
   0x5   :  { %1048 = vmatpush3.bf16.msra.mxu1 %v1114_v3  ;;  %985 = vmatprep.subr.bf16.mxu0 %v1115_v4  ;;  %v1123_v12 = vld [vmem:[%s1502_s1 + $0x58] sm:$0xff]   ;;  %v1127_v16 = vld [vmem:[%s1502_s1 + $0x60] sm:$0xff]   ;;  %v1131_v20 = vld [vmem:[%s1502_s1 + $0x68] sm:$0xff]  }
   0x6   :  { %1049 = vmatprep.subr.bf16.mxu1 %v1116_v5  ;;  %v1124_v13 = vld [vmem:[%s1502_s1 + $0xd8] sm:$0xff]   ;;  %v1128_v17 = vld [vmem:[%s1502_s1 + $0xe0] sm:$0xff]   ;;  %v1132_v21 = vld [vmem:[%s1502_s1 + $0xe8] sm:$0xff]  }
   0x7   :  { %v1125_v14 = vld [vmem:[%s1502_s1 + $0x18] sm:$0xff]   ;;  %v1129_v18 = vld [vmem:[%s1502_s1 + $0x20] sm:$0xff]   ;;  %v1133_v22 = vld [vmem:[%s1502_s1 + $0x28] sm:$0xff]  }
   0x8   :  { %986 = vmatpush3.bf16.msra.mxu0 %v1117_v6  ;;  %v1126_v15 = vld [vmem:[%s1502_s1 + $0x98] sm:$0xff]   ;;  %v1130_v19 = vld [vmem:[%s1502_s1 + $0xa0] sm:$0xff]   ;;  %v1134_v23 = vld [vmem:[%s1502_s1 + $0xa8] sm:$0xff]  }
   0x9   :  { %1050 = vmatpush3.bf16.msra.mxu1 %v1118_v7  ;;  %987 = vmatprep.subr.bf16.mxu0 %v1119_v8  ;;  %v1135_v24 = vld [vmem:[%s1502_s1 + $0x70] sm:$0xff]   ;;  %v1139_v28 = vld [vmem:[%s1502_s1 + $0x78] sm:$0xff]   ;;  %v886_v0 = vld [vmem:[%s1504_s2] ss:$0 sm:$0xff] }
   0xa   :  { %1051 = vmatprep.subr.bf16.mxu1 %v1120_v9  ;;  %v1136_v25 = vld [vmem:[%s1502_s1 + $0xf0] sm:$0xff]   ;;  %v1140_v29 = vld [vmem:[%s1502_s1 + $0xf8] sm:$0xff]   ;;  %27 = vst.msk [vmem:[#allocation2] sm:$0xff] %vm26_vm0, %v886_v0  ;;  %28 = vst.msk [vmem:[#allocation2 + $0x8] sm:$0xff] %vm26_vm0, %v886_v0 }
   0xb   :  { %v1137_v26 = vld [vmem:[%s1502_s1 + $0x30] sm:$0xff]   ;;  %v1141_v30 = vld [vmem:[%s1502_s1 + $0x38] sm:$0xff]   ;;  %29 = vst.msk [vmem:[#allocation2 + $0x10] sm:$0xff] %vm26_vm0, %v886_v0  ;;  %30 = vst.msk [vmem:[#allocation2 + $0x18] sm:$0xff] %vm26_vm0, %v886_v0 }
   0xc   :  { %988 = vmatpush3.bf16.msra.mxu0 %v1121_v10  ;;  %v1138_v27 = vld [vmem:[%s1502_s1 + $0xb0] sm:$0xff]   ;;  %v1142_v31 = vld [vmem:[%s1502_s1 + $0xb8] sm:$0xff]   ;;  %31 = vst.msk [vmem:[#allocation2 + $0x20] sm:$0xff] %vm26_vm0, %v886_v0  ;;  %32 = vst.msk [vmem:[#allocation2 + $0x28] sm:$0xff] %vm26_vm0, %v886_v0 }
   0xd   :  { %1052 = vmatpush3.bf16.msra.mxu1 %v1122_v11  ;;  %989 = vmatprep.subr.bf16.mxu0 %v1123_v12  ;;  %v1143_v32 = vld [vmem:[%s1503_s0] ss:$16 sps:$4 sm:$0xff]   ;;  %v1145_v33 = vld [vmem:[%s1503_s0 + $0x4] ss:$16 sps:$4 sm:$0xff]   ;;  %v1146_v34 = vld [vmem:[%s1503_s0 + $0x8] ss:$16 sps:$4 sm:$0xff]  }
   0xe   :  { %1053 = vmatprep.subr.bf16.mxu1 %v1124_v13  ;;  %v1148_v35 = vld [vmem:[%s1503_s0 + $0xc] ss:$16 sps:$4 sm:$0xff]   ;;  %539 = vmatprep.mubr.bf16.mxu0 %v1145_v33  ;;  %v1149_v36 = vld [vmem:[%s1503_s0 + $0x24] ss:$16 sps:$4 sm:$0xff]   ;;  %v1153_v38 = vld [vmem:[%s1503_s0 + $0x20] ss:$16 sps:$4 sm:$0xff]  }
   0xf   :  { %636 = vmatprep.mubr.bf16.mxu1 %v1148_v35  ;;  %v1151_v37 = vld [vmem:[%s1503_s0 + $0x2c] ss:$16 sps:$4 sm:$0xff]   ;;  %v1154_v39 = vld [vmem:[%s1503_s0 + $0x28] ss:$16 sps:$4 sm:$0xff]   ;;  %v1155_v40 = vld [vmem:[%s1503_s0 + $0x44] ss:$16 sps:$4 sm:$0xff]  }
  0x10   :  { %990 = vmatpush3.bf16.msra.mxu0 %v1125_v14  ;;  %v1157_v41 = vld [vmem:[%s1503_s0 + $0x4c] ss:$16 sps:$4 sm:$0xff]   ;;  %v1159_v42 = vld [vmem:[%s1503_s0 + $0x40] ss:$16 sps:$4 sm:$0xff]   ;;  %v1160_v43 = vld [vmem:[%s1503_s0 + $0x48] ss:$16 sps:$4 sm:$0xff]  }
  0x11   :  { %1054 = vmatpush3.bf16.msra.mxu1 %v1126_v15  ;;  %991 = vmatprep.subr.bf16.mxu0 %v1127_v16  ;;  %v1161_v44 = vld [vmem:[%s1503_s0 + $0x64] ss:$16 sps:$4 sm:$0xff]   ;;  %v1163_v45 = vld [vmem:[%s1503_s0 + $0x6c] ss:$16 sps:$4 sm:$0xff]   ;;  %v1165_v46 = vld [vmem:[%s1503_s0 + $0x60] ss:$16 sps:$4 sm:$0xff]  }
  0x12   :  { %1055 = vmatprep.subr.bf16.mxu1 %v1128_v17  ;;  %v1166_v47 = vld [vmem:[%s1503_s0 + $0x68] ss:$16 sps:$4 sm:$0xff]   ;;  %v1167_v48 = vld [vmem:[%s1503_s0 + $0x84] ss:$16 sps:$4 sm:$0xff]   ;;  %v1169_v49 = vld [vmem:[%s1503_s0 + $0x8c] ss:$16 sps:$4 sm:$0xff]  }
  0x13   :  { %v1171_v50 = vld [vmem:[%s1503_s0 + $0x80] ss:$16 sps:$4 sm:$0xff]   ;;  %v1172_v51 = vld [vmem:[%s1503_s0 + $0x88] ss:$16 sps:$4 sm:$0xff]   ;;  %v1173_v52 = vld [vmem:[%s1503_s0 + $0xa4] ss:$16 sps:$4 sm:$0xff]  }
  0x14   :  { %992 = vmatpush3.bf16.msra.mxu0 %v1129_v18  ;;  %v1175_v53 = vld [vmem:[%s1503_s0 + $0xac] ss:$16 sps:$4 sm:$0xff]   ;;  %v1177_v54 = vld [vmem:[%s1503_s0 + $0xa0] ss:$16 sps:$4 sm:$0xff]   ;;  %v1178_v55 = vld [vmem:[%s1503_s0 + $0xa8] ss:$16 sps:$4 sm:$0xff]  }
  0x15   :  { %1056 = vmatpush3.bf16.msra.mxu1 %v1130_v19  ;;  %993 = vmatprep.subr.bf16.mxu0 %v1131_v20  ;;  %v1179_v56 = vld [vmem:[%s1503_s0 + $0xc4] ss:$16 sps:$4 sm:$0xff]   ;;  %v1181_v57 = vld [vmem:[%s1503_s0 + $0xcc] ss:$16 sps:$4 sm:$0xff]   ;;  %v1183_v58 = vld [vmem:[%s1503_s0 + $0xc0] ss:$16 sps:$4 sm:$0xff]  }
  0x16   :  { %1057 = vmatprep.subr.bf16.mxu1 %v1132_v21  ;;  %v1184_v59 = vld [vmem:[%s1503_s0 + $0xc8] ss:$16 sps:$4 sm:$0xff]   ;;  %v1185_v60 = vld [vmem:[%s1503_s0 + $0xe4] ss:$16 sps:$4 sm:$0xff]   ;;  %v1187_v61 = vld [vmem:[%s1503_s0 + $0xec] ss:$16 sps:$4 sm:$0xff]  }
  0x17   :  { %v1189_v62 = vld [vmem:[%s1503_s0 + $0xe0] ss:$16 sps:$4 sm:$0xff]   ;;  %v1190_v63 = vld [vmem:[%s1503_s0 + $0xe8] ss:$16 sps:$4 sm:$0xff]   ;;  %33 = vst.msk [vmem:[#allocation2 + $0x30] sm:$0xff] %vm26_vm0, %v886_v0  ;;  %34 = vst.msk [vmem:[#allocation2 + $0x38] sm:$0xff] %vm26_vm0, %v886_v0 }
  0x18   :  { %994 = vmatpush3.bf16.msra.mxu0 %v1133_v22  ;;  %35 = vst.msk [vmem:[#allocation2 + $0x40] sm:$0xff] %vm26_vm0, %v886_v0  ;;  %36 = vst.msk [vmem:[#allocation2 + $0x48] sm:$0xff] %vm26_vm0, %v886_v0  ;;  %v43_v10 = vld [vmem:[#allocation2] sm:$0xff]  ;;  %v44_v15 = vld [vmem:[#allocation2 + $0x8] sm:$0xff] }
  0x19   :  { %1058 = vmatpush3.bf16.msra.mxu1 %v1134_v23  ;;  %995 = vmatprep.subr.bf16.mxu0 %v1135_v24  ;;  %37 = vst.msk [vmem:[#allocation2 + $0x50] sm:$0xff] %vm26_vm0, %v886_v0  ;;  %38 = vst.msk [vmem:[#allocation2 + $0x58] sm:$0xff] %vm26_vm0, %v886_v0  ;;  %v46_v33 = vld [vmem:[#allocation2 + $0x18] sm:$0xff] }
  0x1a   :  { %1059 = vmatprep.subr.bf16.mxu1 %v1136_v25  ;;  %39 = vst.msk [vmem:[#allocation2 + $0x60] sm:$0xff] %vm26_vm0, %v886_v0  ;;  %40 = vst.msk [vmem:[#allocation2 + $0x68] sm:$0xff] %vm26_vm0, %v886_v0 }
  0x1b   :  { %41 = vst.msk [vmem:[#allocation2 + $0x70] sm:$0xff] %vm26_vm0, %v886_v0  ;;  %42 = vst.msk [vmem:[#allocation2 + $0x78] sm:$0xff] %vm26_vm0, %v886_v0 }
  0x1c   :  { %996 = vmatpush3.bf16.msra.mxu0 %v1137_v26 }
  0x1d   :  { %1060 = vmatpush3.bf16.msra.mxu1 %v1138_v27  ;;  %997 = vmatprep.subr.bf16.mxu0 %v1139_v28  ;;  %v45_v28 = vld [vmem:[#allocation2 + $0x10] sm:$0xff] }
  0x1e   :  { %1061 = vmatprep.subr.bf16.mxu1 %v1140_v29 }
  0x20   :  { %998 = vmatpush3.bf16.msra.mxu0 %v1141_v30 }
  0x21   :  { %1062 = vmatpush3.bf16.msra.mxu1 %v1142_v31 }
  0x23   :  { %540 = vmatmul.mubr.bf16.vlgmr.msra.gmra.mrb[0].mxu0 %v1143_v32 }
  0x24   :  { %637 = vmatmul.mubr.bf16.vlgmr.msra.gmra.mrb[0].mxu1 %v1146_v34  ;;  %547 = vmatprep.mubr.bf16.mxu0 %v1149_v36 }
  0x25   :  { %644 = vmatprep.mubr.bf16.mxu1 %v1151_v37 }
  0x2b   :  { %548 = vmatmul.mubr.bf16.gmra.mrb[4].mxu0 %v1153_v38 }
  0x2c   :  { %645 = vmatmul.mubr.bf16.gmra.mrb[4].mxu1 %v1154_v39  ;;  %555 = vmatprep.mubr.bf16.mxu0 %v1155_v40 }
  0x2d   :  { %652 = vmatprep.mubr.bf16.mxu1 %v1157_v41 }
  0x33   :  { %556 = vmatmul.mubr.bf16.gmra.mrb[8].mxu0 %v1159_v42 }
  0x34   :  { %653 = vmatmul.mubr.bf16.gmra.mrb[8].mxu1 %v1160_v43  ;;  %563 = vmatprep.mubr.bf16.mxu0 %v1161_v44 }
  0x35   :  { %660 = vmatprep.mubr.bf16.mxu1 %v1163_v45 }
  0x3b   :  { %564 = vmatmul.mubr.bf16.gmra.mrb[12].mxu0 %v1165_v46 }
  0x3c   :  { %661 = vmatmul.mubr.bf16.gmra.mrb[12].mxu1 %v1166_v47  ;;  %571 = vmatprep.mubr.bf16.mxu0 %v1167_v48 }
  0x3d   :  { %668 = vmatprep.mubr.bf16.mxu1 %v1169_v49 }
  0x43   :  { %572 = vmatmul.mubr.bf16.gmra.mrb[16].mxu0 %v1171_v50 }
  0x44   :  { %669 = vmatmul.mubr.bf16.gmra.mrb[16].mxu1 %v1172_v51  ;;  %579 = vmatprep.mubr.bf16.mxu0 %v1173_v52  ;;  %v47_v52 = vld [vmem:[#allocation2 + $0x20] sm:$0xff] }
  0x45   :  { %676 = vmatprep.mubr.bf16.mxu1 %v1175_v53 }
  0x4b   :  { %580 = vmatmul.mubr.bf16.gmra.mrb[20].mxu0 %v1177_v54 }
  0x4c   :  { %677 = vmatmul.mubr.bf16.gmra.mrb[20].mxu1 %v1178_v55  ;;  %587 = vmatprep.mubr.bf16.mxu0 %v1179_v56 }
  0x4d   :  { %684 = vmatprep.mubr.bf16.mxu1 %v1181_v57 }
  0x53   :  { %588 = vmatmul.mubr.bf16.gmra.mrb[24].mxu0 %v1183_v58 }
  0x54   :  { %685 = vmatmul.mubr.bf16.gmra.mrb[24].mxu1 %v1184_v59  ;;  %595 = vmatprep.mubr.bf16.mxu0 %v1185_v60  ;;  %v48_v59 = vld [vmem:[#allocation2 + $0x28] sm:$0xff] }
  0x55   :  { %692 = vmatprep.mubr.bf16.mxu1 %v1187_v61 }
  0x5b   :  { %596 = vmatmul.mubr.bf16.gmra.mrb[28].mxu0 %v1189_v62 }
  0x5c   :  { %693 = vmatmul.mubr.bf16.gmra.mrb[28].mxu1 %v1190_v63 }
  0xf6   :  { %v999_v1 = vpop.f32.mrb[0].mxu0 }
  0xf7   :  { %v1063_v2 = vpop.f32.mrb[0].mxu1  ;;  %v1000_v3 = vpop.f32.mrb[1].mxu0 }
  0xf8   :  { %v1001_v4 = vadd.f32 %v1000_v3, %v999_v1  ;;  %v1064_v5 = vpop.f32.mrb[1].mxu1  ;;  %v1002_v6 = vpop.f32.mrb[2].mxu0 }
  0xf9   :  { %v1065_v7 = vadd.f32 %v1064_v5, %v1063_v2  ;;  %v1066_v8 = vpop.f32.mrb[2].mxu1  ;;  %v1003_v9 = vpop.f32.mrb[3].mxu0 }
  0xfa   :  { %v1004_v11 = vadd.f32 %v1003_v9, %v1002_v6  ;;  %v1067_v12 = vpop.f32.mrb[3].mxu1 }
  0xfb   :  { %v639_v13 = vadd.f32 %v1065_v7, %v1001_v4  ;;  %v1068_v14 = vadd.f32 %v1067_v12, %v1066_v8 }
  0xfd   :  { %v701_v16 = vadd.f32 %v639_v13, %v43_v10  ;;  %v642_v17 = vadd.f32 %v1068_v14, %v1004_v11  ;;  %v49_v14 = vld [vmem:[#allocation2 + $0x30] sm:$0xff] }
  0xfe   :  { %v1005_v18 = vpop.f32.mrb[4].mxu0 }
  0xff   :  { %718 = vst.msk [vmem:[#allocation2] sm:$0xff] %vm26_vm0, %v701_v16  ;;  %v702_v19 = vadd.f32 %v642_v17, %v44_v15  ;;  %v1069_v20 = vpop.f32.mrb[4].mxu1  ;;  %v1006_v21 = vpop.f32.mrb[5].mxu0 }
 0x100   :  { %v1007_v22 = vadd.f32 %v1006_v21, %v1005_v18  ;;  %v1070_v23 = vpop.f32.mrb[5].mxu1  ;;  %v1008_v24 = vpop.f32.mrb[6].mxu0  ;;  %v50_v21 = vld [vmem:[#allocation2 + $0x38] sm:$0xff] }
 0x101   :  { %719 = vst.msk [vmem:[#allocation2 + $0x8] sm:$0xff] %vm26_vm0, %v702_v19  ;;  %v1071_v25 = vadd.f32 %v1070_v23, %v1069_v20  ;;  %v1072_v26 = vpop.f32.mrb[6].mxu1  ;;  %v1009_v27 = vpop.f32.mrb[7].mxu0 }
 0x102   :  { %v1010_v29 = vadd.f32 %v1009_v27, %v1008_v24  ;;  %v1073_v30 = vpop.f32.mrb[7].mxu1 }
 0x103   :  { %v647_v31 = vadd.f32 %v1071_v25, %v1007_v22  ;;  %v1074_v32 = vadd.f32 %v1073_v30, %v1072_v26 }
 0x105   :  { %v703_v34 = vadd.f32 %v647_v31, %v45_v28  ;;  %v650_v35 = vadd.f32 %v1074_v32, %v1010_v29 }
 0x106   :  { %v737_v36 = vld [vmem:[#allocation2] sm:$0xff]  ;;  %v1011_v37 = vpop.f32.mrb[8].mxu0 }
 0x107   :  { %vm753_vm1 = vcmp.ge.f32.partialorder %v737_v36, 0.0  ;;  %v769_v38 = vmul.f32 0.2, %v737_v36  ;;  %720 = vst.msk [vmem:[#allocation2 + $0x10] sm:$0xff] %vm26_vm0, %v703_v34  ;;  %v704_v39 = vadd.f32 %v650_v35, %v46_v33  ;;  %v1075_v40 = vpop.f32.mrb[8].mxu1  ;;  %v1012_v41 = vpop.f32.mrb[9].mxu0 }
 0x108   :  { %v738_v42 = vld [vmem:[#allocation2 + $0x8] sm:$0xff]  ;;  %v1013_v43 = vadd.f32 %v1012_v41, %v1011_v37  ;;  %v1076_v44 = vpop.f32.mrb[9].mxu1  ;;  %v1014_v45 = vpop.f32.mrb[10].mxu0 }
 0x109   :  { %v785_v46 = vsel %vm753_vm1, %v737_v36, %v769_v38  ;;  %vm754_vm3 = vcmp.ge.f32.partialorder %v738_v42, 0.0  ;;  %v770_v47 = vmul.f32 0.2, %v738_v42  ;;  %721 = vst.msk [vmem:[#allocation2 + $0x18] sm:$0xff] %vm26_vm0, %v704_v39  ;;  %v1077_v48 = vadd.f32 %v1076_v44, %v1075_v40  ;;  %v1078_v49 = vpop.f32.mrb[10].mxu1  ;;  %v1015_v50 = vpop.f32.mrb[11].mxu0 }
 0x10a   :  { %v967_v51 = vpack.c.bf16 %v785_v46, %v785_v46  ;;  %v1016_v53 = vadd.f32 %v1015_v50, %v1014_v45  ;;  %v1079_v54 = vpop.f32.mrb[11].mxu1  ;;  %v51_v40 = vld [vmem:[#allocation2 + $0x40] sm:$0xff] }
 0x10b   :  { %v786_v55 = vsel %vm754_vm3, %v738_v42, %v770_v47  ;;  %v655_v56 = vadd.f32 %v1077_v48, %v1013_v43  ;;  %v1080_v57 = vadd.f32 %v1079_v54, %v1078_v49  ;;  %v52_v47 = vld [vmem:[#allocation2 + $0x48] sm:$0xff] }
 0x10c   :  { %866 = vst.msk [vmem:[%s1505_s3] sm:$0xf] %vm865_vm2, %v967_v51  ;;  %v968_v58 = vpack.c.bf16 %v786_v55, %v786_v55 }
 0x10d   :  { %v705_v60 = vadd.f32 %v655_v56, %v47_v52  ;;  %v658_v61 = vadd.f32 %v1080_v57, %v1016_v53 }
 0x10e   :  { %867 = vst.msk [vmem:[%s1505_s3 + $0x4] sm:$0xf] %vm865_vm2, %v968_v58  ;;  %v739_v62 = vld [vmem:[#allocation2 + $0x10] sm:$0xff]  ;;  %v1017_v63 = vpop.f32.mrb[12].mxu0 }
 0x10f   :  { %vm755_vm4 = vcmp.ge.f32.partialorder %v739_v62, 0.0  ;;  %v771_v0 = vmul.f32 0.2, %v739_v62  ;;  %722 = vst.msk [vmem:[#allocation2 + $0x20] sm:$0xff] %vm26_vm0, %v705_v60  ;;  %v706_v1 = vadd.f32 %v658_v61, %v48_v59  ;;  %v1081_v2 = vpop.f32.mrb[12].mxu1  ;;  %v1018_v3 = vpop.f32.mrb[13].mxu0 }
 0x110   :  { %v740_v4 = vld [vmem:[#allocation2 + $0x18] sm:$0xff]  ;;  %v1019_v5 = vadd.f32 %v1018_v3, %v1017_v63  ;;  %v1082_v6 = vpop.f32.mrb[13].mxu1  ;;  %v1020_v7 = vpop.f32.mrb[14].mxu0 }
 0x111   :  { %v787_v8 = vsel %vm755_vm4, %v739_v62, %v771_v0  ;;  %vm756_vm5 = vcmp.ge.f32.partialorder %v740_v4, 0.0  ;;  %v772_v9 = vmul.f32 0.2, %v740_v4  ;;  %723 = vst.msk [vmem:[#allocation2 + $0x28] sm:$0xff] %vm26_vm0, %v706_v1  ;;  %v1083_v10 = vadd.f32 %v1082_v6, %v1081_v2  ;;  %v1084_v11 = vpop.f32.mrb[14].mxu1  ;;  %v1021_v12 = vpop.f32.mrb[15].mxu0 }
 0x112   :  { %v969_v13 = vpack.c.bf16 %v787_v8, %v787_v8  ;;  %v1022_v15 = vadd.f32 %v1021_v12, %v1020_v7  ;;  %v1085_v16 = vpop.f32.mrb[15].mxu1  ;;  %v53_v2 = vld [vmem:[#allocation2 + $0x50] sm:$0xff] }
 0x113   :  { %v788_v17 = vsel %vm756_vm5, %v740_v4, %v772_v9  ;;  %v663_v18 = vadd.f32 %v1083_v10, %v1019_v5  ;;  %v1086_v19 = vadd.f32 %v1085_v16, %v1084_v11  ;;  %v54_v9 = vld [vmem:[#allocation2 + $0x58] sm:$0xff] }
 0x114   :  { %868 = vst.msk [vmem:[%s1505_s3 + $0x8] sm:$0xf] %vm865_vm2, %v969_v13  ;;  %v970_v20 = vpack.c.bf16 %v788_v17, %v788_v17 }
 0x115   :  { %v707_v22 = vadd.f32 %v663_v18, %v49_v14  ;;  %v666_v23 = vadd.f32 %v1086_v19, %v1022_v15 }
 0x116   :  { %869 = vst.msk [vmem:[%s1505_s3 + $0xc] sm:$0xf] %vm865_vm2, %v970_v20  ;;  %v741_v24 = vld [vmem:[#allocation2 + $0x20] sm:$0xff]  ;;  %v1023_v25 = vpop.f32.mrb[16].mxu0 }
 0x117   :  { %vm757_vm6 = vcmp.ge.f32.partialorder %v741_v24, 0.0  ;;  %v773_v26 = vmul.f32 0.2, %v741_v24  ;;  %724 = vst.msk [vmem:[#allocation2 + $0x30] sm:$0xff] %vm26_vm0, %v707_v22  ;;  %v708_v27 = vadd.f32 %v666_v23, %v50_v21  ;;  %v1087_v28 = vpop.f32.mrb[16].mxu1  ;;  %v1024_v29 = vpop.f32.mrb[17].mxu0 }
 0x118   :  { %v742_v30 = vld [vmem:[#allocation2 + $0x28] sm:$0xff]  ;;  %v1025_v31 = vadd.f32 %v1024_v29, %v1023_v25  ;;  %v1088_v32 = vpop.f32.mrb[17].mxu1  ;;  %v1026_v33 = vpop.f32.mrb[18].mxu0 }
 0x119   :  { %v789_v34 = vsel %vm757_vm6, %v741_v24, %v773_v26  ;;  %vm758_vm7 = vcmp.ge.f32.partialorder %v742_v30, 0.0  ;;  %v774_v35 = vmul.f32 0.2, %v742_v30  ;;  %725 = vst.msk [vmem:[#allocation2 + $0x38] sm:$0xff] %vm26_vm0, %v708_v27  ;;  %v1089_v36 = vadd.f32 %v1088_v32, %v1087_v28  ;;  %v1090_v37 = vpop.f32.mrb[18].mxu1  ;;  %v1027_v38 = vpop.f32.mrb[19].mxu0 }
 0x11a   :  { %v971_v39 = vpack.c.bf16 %v789_v34, %v789_v34  ;;  %v1028_v41 = vadd.f32 %v1027_v38, %v1026_v33  ;;  %v1091_v42 = vpop.f32.mrb[19].mxu1  ;;  %v55_v28 = vld [vmem:[#allocation2 + $0x60] sm:$0xff] }
 0x11b   :  { %v790_v43 = vsel %vm758_vm7, %v742_v30, %v774_v35  ;;  %v671_v44 = vadd.f32 %v1089_v36, %v1025_v31  ;;  %v1092_v45 = vadd.f32 %v1091_v42, %v1090_v37  ;;  %v56_v35 = vld [vmem:[#allocation2 + $0x68] sm:$0xff] }
 0x11c   :  { %870 = vst.msk [vmem:[%s1505_s3 + $0x10] sm:$0xf] %vm865_vm2, %v971_v39  ;;  %v972_v46 = vpack.c.bf16 %v790_v43, %v790_v43 }
 0x11d   :  { %v709_v48 = vadd.f32 %v671_v44, %v51_v40  ;;  %v674_v49 = vadd.f32 %v1092_v45, %v1028_v41 }
 0x11e   :  { %871 = vst.msk [vmem:[%s1505_s3 + $0x14] sm:$0xf] %vm865_vm2, %v972_v46  ;;  %v743_v50 = vld [vmem:[#allocation2 + $0x30] sm:$0xff]  ;;  %v1029_v51 = vpop.f32.mrb[20].mxu0 }
 0x11f   :  { %vm759_vm8 = vcmp.ge.f32.partialorder %v743_v50, 0.0  ;;  %v775_v52 = vmul.f32 0.2, %v743_v50  ;;  %726 = vst.msk [vmem:[#allocation2 + $0x40] sm:$0xff] %vm26_vm0, %v709_v48  ;;  %v710_v53 = vadd.f32 %v674_v49, %v52_v47  ;;  %v1093_v54 = vpop.f32.mrb[20].mxu1  ;;  %v1030_v55 = vpop.f32.mrb[21].mxu0 }
 0x120   :  { %v744_v56 = vld [vmem:[#allocation2 + $0x38] sm:$0xff]  ;;  %v1031_v57 = vadd.f32 %v1030_v55, %v1029_v51  ;;  %v1094_v58 = vpop.f32.mrb[21].mxu1  ;;  %v1032_v59 = vpop.f32.mrb[22].mxu0 }
 0x121   :  { %v791_v60 = vsel %vm759_vm8, %v743_v50, %v775_v52  ;;  %vm760_vm9 = vcmp.ge.f32.partialorder %v744_v56, 0.0  ;;  %v776_v61 = vmul.f32 0.2, %v744_v56  ;;  %727 = vst.msk [vmem:[#allocation2 + $0x48] sm:$0xff] %vm26_vm0, %v710_v53  ;;  %v1095_v62 = vadd.f32 %v1094_v58, %v1093_v54  ;;  %v1096_v63 = vpop.f32.mrb[22].mxu1  ;;  %v1033_v0 = vpop.f32.mrb[23].mxu0 }
 0x122   :  { %v973_v1 = vpack.c.bf16 %v791_v60, %v791_v60  ;;  %v1034_v3 = vadd.f32 %v1033_v0, %v1032_v59  ;;  %v1097_v4 = vpop.f32.mrb[23].mxu1  ;;  %v57_v54 = vld [vmem:[#allocation2 + $0x70] sm:$0xff] }
 0x123   :  { %v792_v5 = vsel %vm760_vm9, %v744_v56, %v776_v61  ;;  %v679_v6 = vadd.f32 %v1095_v62, %v1031_v57  ;;  %v1098_v7 = vadd.f32 %v1097_v4, %v1096_v63  ;;  %v58_v61 = vld [vmem:[#allocation2 + $0x78] sm:$0xff] }
 0x124   :  { %872 = vst.msk [vmem:[%s1505_s3 + $0x18] sm:$0xf] %vm865_vm2, %v973_v1  ;;  %v974_v8 = vpack.c.bf16 %v792_v5, %v792_v5 }
 0x125   :  { %v711_v10 = vadd.f32 %v679_v6, %v53_v2  ;;  %v682_v11 = vadd.f32 %v1098_v7, %v1034_v3 }
 0x126   :  { %873 = vst.msk [vmem:[%s1505_s3 + $0x1c] sm:$0xf] %vm865_vm2, %v974_v8  ;;  %v745_v12 = vld [vmem:[#allocation2 + $0x40] sm:$0xff]  ;;  %v1035_v13 = vpop.f32.mrb[24].mxu0 }
 0x127   :  { %vm761_vm10 = vcmp.ge.f32.partialorder %v745_v12, 0.0  ;;  %v777_v14 = vmul.f32 0.2, %v745_v12  ;;  %728 = vst.msk [vmem:[#allocation2 + $0x50] sm:$0xff] %vm26_vm0, %v711_v10  ;;  %v712_v15 = vadd.f32 %v682_v11, %v54_v9  ;;  %v1099_v16 = vpop.f32.mrb[24].mxu1  ;;  %v1036_v17 = vpop.f32.mrb[25].mxu0 }
 0x128   :  { %v746_v18 = vld [vmem:[#allocation2 + $0x48] sm:$0xff]  ;;  %v1037_v19 = vadd.f32 %v1036_v17, %v1035_v13  ;;  %v1100_v20 = vpop.f32.mrb[25].mxu1  ;;  %v1038_v21 = vpop.f32.mrb[26].mxu0 }
 0x129   :  { %v793_v22 = vsel %vm761_vm10, %v745_v12, %v777_v14  ;;  %vm762_vm11 = vcmp.ge.f32.partialorder %v746_v18, 0.0  ;;  %v778_v23 = vmul.f32 0.2, %v746_v18  ;;  %729 = vst.msk [vmem:[#allocation2 + $0x58] sm:$0xff] %vm26_vm0, %v712_v15  ;;  %v1101_v24 = vadd.f32 %v1100_v20, %v1099_v16  ;;  %v1102_v25 = vpop.f32.mrb[26].mxu1  ;;  %v1039_v26 = vpop.f32.mrb[27].mxu0 }
 0x12a   :  { %v975_v27 = vpack.c.bf16 %v793_v22, %v793_v22  ;;  %v1040_v29 = vadd.f32 %v1039_v26, %v1038_v21  ;;  %v1103_v30 = vpop.f32.mrb[27].mxu1 }
 0x12b   :  { %v794_v31 = vsel %vm762_vm11, %v746_v18, %v778_v23  ;;  %v687_v32 = vadd.f32 %v1101_v24, %v1037_v19  ;;  %v1104_v33 = vadd.f32 %v1103_v30, %v1102_v25 }
 0x12c   :  { %874 = vst.msk [vmem:[%s1505_s3 + $0x20] sm:$0xf] %vm865_vm2, %v975_v27  ;;  %v976_v34 = vpack.c.bf16 %v794_v31, %v794_v31 }
 0x12d   :  { %v713_v36 = vadd.f32 %v687_v32, %v55_v28  ;;  %v690_v37 = vadd.f32 %v1104_v33, %v1040_v29 }
 0x12e   :  { %875 = vst.msk [vmem:[%s1505_s3 + $0x24] sm:$0xf] %vm865_vm2, %v976_v34  ;;  %v747_v38 = vld [vmem:[#allocation2 + $0x50] sm:$0xff]  ;;  %v1041_v39 = vpop.f32.mrb[28].mxu0 }
 0x12f   :  { %vm763_vm12 = vcmp.ge.f32.partialorder %v747_v38, 0.0  ;;  %v779_v40 = vmul.f32 0.2, %v747_v38  ;;  %730 = vst.msk [vmem:[#allocation2 + $0x60] sm:$0xff] %vm26_vm0, %v713_v36  ;;  %v714_v41 = vadd.f32 %v690_v37, %v56_v35  ;;  %v1105_v42 = vpop.f32.mrb[28].mxu1  ;;  %v1042_v43 = vpop.f32.mrb[29].mxu0 }
 0x130   :  { %v748_v44 = vld [vmem:[#allocation2 + $0x58] sm:$0xff]  ;;  %v1043_v45 = vadd.f32 %v1042_v43, %v1041_v39  ;;  %v1106_v46 = vpop.f32.mrb[29].mxu1  ;;  %v1044_v47 = vpop.f32.mrb[30].mxu0 }
 0x131   :  { %v795_v48 = vsel %vm763_vm12, %v747_v38, %v779_v40  ;;  %vm764_vm13 = vcmp.ge.f32.partialorder %v748_v44, 0.0  ;;  %v780_v49 = vmul.f32 0.2, %v748_v44  ;;  %731 = vst.msk [vmem:[#allocation2 + $0x68] sm:$0xff] %vm26_vm0, %v714_v41  ;;  %v1107_v50 = vadd.f32 %v1106_v46, %v1105_v42  ;;  %v1108_v51 = vpop.f32.mrb[30].mxu1  ;;  %v1045_v52 = vpop.f32.mrb[31].mxu0 }
 0x132   :  { %v977_v53 = vpack.c.bf16 %v795_v48, %v795_v48  ;;  %v1046_v55 = vadd.f32 %v1045_v52, %v1044_v47  ;;  %v1109_v56 = vpop.f32.mrb[31].mxu1 }
 0x133   :  { %v796_v57 = vsel %vm764_vm13, %v748_v44, %v780_v49  ;;  %v695_v58 = vadd.f32 %v1107_v50, %v1043_v45  ;;  %v1110_v59 = vadd.f32 %v1109_v56, %v1108_v51 }
 0x134   :  { %876 = vst.msk [vmem:[%s1505_s3 + $0x28] sm:$0xf] %vm865_vm2, %v977_v53  ;;  %v978_v60 = vpack.c.bf16 %v796_v57, %v796_v57 }
 0x135   :  { %v715_v62 = vadd.f32 %v695_v58, %v57_v54  ;;  %v698_v63 = vadd.f32 %v1110_v59, %v1046_v55 }
 0x136   :  { %877 = vst.msk [vmem:[%s1505_s3 + $0x2c] sm:$0xf] %vm865_vm2, %v978_v60  ;;  %v749_v0 = vld [vmem:[#allocation2 + $0x60] sm:$0xff] }
 0x137   :  { %vm765_vm14 = vcmp.ge.f32.partialorder %v749_v0, 0.0  ;;  %v781_v1 = vmul.f32 0.2, %v749_v0  ;;  %732 = vst.msk [vmem:[#allocation2 + $0x70] sm:$0xff] %vm26_vm0, %v715_v62  ;;  %v716_v2 = vadd.f32 %v698_v63, %v58_v61 }
 0x138   :  { %v750_v3 = vld [vmem:[#allocation2 + $0x68] sm:$0xff] }
 0x139   :  { %v797_v4 = vsel %vm765_vm14, %v749_v0, %v781_v1  ;;  %vm766_vm15 = vcmp.ge.f32.partialorder %v750_v3, 0.0  ;;  %v782_v5 = vmul.f32 0.2, %v750_v3  ;;  %733 = vst.msk [vmem:[#allocation2 + $0x78] sm:$0xff] %vm26_vm0, %v716_v2 }
 0x13a   :  { %v979_v6 = vpack.c.bf16 %v797_v4, %v797_v4 }
 0x13b   :  { %v798_v7 = vsel %vm766_vm15, %v750_v3, %v782_v5 }
 0x13c   :  { %878 = vst.msk [vmem:[%s1505_s3 + $0x30] sm:$0xf] %vm865_vm2, %v979_v6  ;;  %v980_v8 = vpack.c.bf16 %v798_v7, %v798_v7 }
 0x13e   :  { %879 = vst.msk [vmem:[%s1505_s3 + $0x34] sm:$0xf] %vm865_vm2, %v980_v8  ;;  %v751_v9 = vld [vmem:[#allocation2 + $0x70] sm:$0xff] }
 0x13f   :  { %vm767_vm1 = vcmp.ge.f32.partialorder %v751_v9, 0.0  ;;  %v783_v10 = vmul.f32 0.2, %v751_v9 }
 0x140   :  { %v752_v11 = vld [vmem:[#allocation2 + $0x78] sm:$0xff] }
 0x141   :  { %v799_v12 = vsel %vm767_vm1, %v751_v9, %v783_v10  ;;  %vm768_vm3 = vcmp.ge.f32.partialorder %v752_v11, 0.0  ;;  %v784_v13 = vmul.f32 0.2, %v752_v11 }
 0x142   :  { %v981_v14 = vpack.c.bf16 %v799_v12, %v799_v12 }
 0x143   :  { %v800_v15 = vsel %vm768_vm3, %v752_v11, %v784_v13 }
 0x144   :  { %880 = vst.msk [vmem:[%s1505_s3 + $0x38] sm:$0xf] %vm865_vm2, %v981_v14  ;;  %v982_v16 = vpack.c.bf16 %v800_v15, %v800_v15 }
 0x146   :  { %881 = vst.msk [vmem:[%s1505_s3 + $0x3c] sm:$0xf] %vm865_vm2, %v982_v16 }

// kernel: discriminator_forward.8
= control target key start
LH: loop header
LB: loop body
LE: loop exit
PB: predicated region body
PF: predicated region fallthrough
CT: control target
= control target key end

     0   :  { %s1434_s1 = inlined_call_operand.vmem [shape: bf16[1024,128], index: 1, kind: input, shape index: {}]   ;;  %s1435_s0 = inlined_call_operand.vmem [shape: bf16[32,1024], index: 0, kind: input, shape index: {}]   ;;  %s1436_s2 = inlined_call_operand.vmem [shape: f32[1,128], index: 2, kind: input, shape index: {}]   ;;  %s1437_s3 = inlined_call_operand.vmem [shape: bf16[32,128], index: 3, kind: output, shape index: {}]  }
   0x1   :  { %v1101_v0 = vld [vmem:[%s1434_s1 + $0x40] sm:$0xff]   ;;  %v1105_v4 = vld [vmem:[%s1434_s1 + $0x48] sm:$0xff]   ;;  %v1109_v8 = vld [vmem:[%s1434_s1 + $0x50] sm:$0xff]  }
   0x2   :  { %v1102_v1 = vld [vmem:[%s1434_s1 + $0xc0] sm:$0xff]   ;;  %989 = vmatprep.subr.bf16.mxu0 %v1101_v0  ;;  %v1106_v5 = vld [vmem:[%s1434_s1 + $0xc8] sm:$0xff]   ;;  %v1110_v9 = vld [vmem:[%s1434_s1 + $0xd0] sm:$0xff]  }
   0x3   :  { %v1103_v2 = vld [vmem:[%s1434_s1] sm:$0xff]   ;;  %1017 = vmatprep.subr.bf16.mxu1 %v1102_v1  ;;  %v1107_v6 = vld [vmem:[%s1434_s1 + $0x8] sm:$0xff]   ;;  %v1111_v10 = vld [vmem:[%s1434_s1 + $0x10] sm:$0xff]  }
   0x4   :  { %v1104_v3 = vld [vmem:[%s1434_s1 + $0x80] sm:$0xff]   ;;  %990 = vmatpush3.bf16.msra.mxu0 %v1103_v2  ;;  %v1108_v7 = vld [vmem:[%s1434_s1 + $0x88] sm:$0xff]   ;;  %v1112_v11 = vld [vmem:[%s1434_s1 + $0x90] sm:$0xff]  }
   0x5   :  { %1018 = vmatpush3.bf16.msra.mxu1 %v1104_v3  ;;  %991 = vmatprep.subr.bf16.mxu0 %v1105_v4  ;;  %v1113_v12 = vld [vmem:[%s1434_s1 + $0x58] sm:$0xff]   ;;  %v1117_v16 = vld [vmem:[%s1434_s1 + $0x60] sm:$0xff]   ;;  %v1121_v20 = vld [vmem:[%s1434_s1 + $0x68] sm:$0xff]  }
   0x6   :  { %1019 = vmatprep.subr.bf16.mxu1 %v1106_v5  ;;  %v1114_v13 = vld [vmem:[%s1434_s1 + $0xd8] sm:$0xff]   ;;  %v1118_v17 = vld [vmem:[%s1434_s1 + $0xe0] sm:$0xff]   ;;  %v1122_v21 = vld [vmem:[%s1434_s1 + $0xe8] sm:$0xff]  }
   0x7   :  { %v1115_v14 = vld [vmem:[%s1434_s1 + $0x18] sm:$0xff]   ;;  %v1119_v18 = vld [vmem:[%s1434_s1 + $0x20] sm:$0xff]   ;;  %v1123_v22 = vld [vmem:[%s1434_s1 + $0x28] sm:$0xff]  }
   0x8   :  { %992 = vmatpush3.bf16.msra.mxu0 %v1107_v6  ;;  %v1116_v15 = vld [vmem:[%s1434_s1 + $0x98] sm:$0xff]   ;;  %v1120_v19 = vld [vmem:[%s1434_s1 + $0xa0] sm:$0xff]   ;;  %v1124_v23 = vld [vmem:[%s1434_s1 + $0xa8] sm:$0xff]  }
   0x9   :  { %1020 = vmatpush3.bf16.msra.mxu1 %v1108_v7  ;;  %993 = vmatprep.subr.bf16.mxu0 %v1109_v8  ;;  %v1125_v24 = vld [vmem:[%s1434_s1 + $0x70] sm:$0xff]   ;;  %v1129_v28 = vld [vmem:[%s1434_s1 + $0x78] sm:$0xff]   ;;  %v34_v32 = vld [vmem:[%s1435_s0] sm:$0xff] }
   0xa   :  { %1021 = vmatprep.subr.bf16.mxu1 %v1110_v9  ;;  %v1126_v25 = vld [vmem:[%s1434_s1 + $0xf0] sm:$0xff]   ;;  %v1130_v29 = vld [vmem:[%s1434_s1 + $0xf8] sm:$0xff]   ;;  %v38_v33 = vld [vmem:[%s1435_s0 + $0x20] sm:$0xff] }
   0xb   :  { %v1127_v26 = vld [vmem:[%s1434_s1 + $0x30] sm:$0xff]   ;;  %v1131_v30 = vld [vmem:[%s1434_s1 + $0x38] sm:$0xff]   ;;  %v35_v34 = vld [vmem:[%s1435_s0 + $0x8] sm:$0xff]  ;;  %v890_v35 = vcombine.low %v34_v32, %v38_v33  ;;  %v891_v36 = vcombine.high %v34_v32, %v38_v33 }
   0xc   :  { %994 = vmatpush3.bf16.msra.mxu0 %v1111_v10  ;;  %v1128_v27 = vld [vmem:[%s1434_s1 + $0xb0] sm:$0xff]   ;;  %v1132_v31 = vld [vmem:[%s1434_s1 + $0xb8] sm:$0xff]   ;;  %v39_v37 = vld [vmem:[%s1435_s0 + $0x28] sm:$0xff] }
   0xd   :  { %1022 = vmatpush3.bf16.msra.mxu1 %v1112_v11  ;;  %995 = vmatprep.subr.bf16.mxu0 %v1113_v12  ;;  %v892_v38 = vcombine.low %v35_v34, %v39_v37  ;;  %v893_v39 = vcombine.high %v35_v34, %v39_v37  ;;  %v1133_v40 = vld [vmem:[%s1434_s1 + $0x140] sm:$0xff]   ;;  %v1137_v44 = vld [vmem:[%s1434_s1 + $0x148] sm:$0xff]   ;;  %v1141_v48 = vld [vmem:[%s1434_s1 + $0x150] sm:$0xff]  }
   0xe   :  { %1023 = vmatprep.subr.bf16.mxu1 %v1114_v13  ;;  %674 = vmatprep.mubr.bf16.mxu0 %v891_v36  ;;  %v1134_v41 = vld [vmem:[%s1434_s1 + $0x1c0] sm:$0xff]   ;;  %v1138_v45 = vld [vmem:[%s1434_s1 + $0x1c8] sm:$0xff]   ;;  %v1142_v49 = vld [vmem:[%s1434_s1 + $0x1d0] sm:$0xff]  }
   0xf   :  { %723 = vmatprep.mubr.bf16.mxu1 %v893_v39  ;;  %v1135_v42 = vld [vmem:[%s1434_s1 + $0x100] sm:$0xff]   ;;  %v1139_v46 = vld [vmem:[%s1434_s1 + $0x108] sm:$0xff]   ;;  %v1143_v50 = vld [vmem:[%s1434_s1 + $0x110] sm:$0xff]  }
  0x10   :  { %996 = vmatpush3.bf16.msra.mxu0 %v1115_v14  ;;  %v1136_v43 = vld [vmem:[%s1434_s1 + $0x180] sm:$0xff]   ;;  %v1140_v47 = vld [vmem:[%s1434_s1 + $0x188] sm:$0xff]   ;;  %v1144_v51 = vld [vmem:[%s1434_s1 + $0x190] sm:$0xff]  }
  0x11   :  { %1024 = vmatpush3.bf16.msra.mxu1 %v1116_v15  ;;  %997 = vmatprep.subr.bf16.mxu0 %v1117_v16  ;;  %v1145_v52 = vld [vmem:[%s1434_s1 + $0x158] sm:$0xff]   ;;  %v1149_v56 = vld [vmem:[%s1434_s1 + $0x160] sm:$0xff]   ;;  %v43_v63 = vld [vmem:[%s1435_s0 + $0x48] sm:$0xff] }
  0x12   :  { %1025 = vmatprep.subr.bf16.mxu1 %v1118_v17  ;;  %v1146_v53 = vld [vmem:[%s1434_s1 + $0x1d8] sm:$0xff]   ;;  %v1150_v57 = vld [vmem:[%s1434_s1 + $0x1e0] sm:$0xff]   ;;  %v47_v0 = vld [vmem:[%s1435_s0 + $0x68] sm:$0xff] }
  0x13   :  { %v1147_v54 = vld [vmem:[%s1434_s1 + $0x118] sm:$0xff]   ;;  %v1151_v58 = vld [vmem:[%s1434_s1 + $0x120] sm:$0xff]   ;;  %v901_v2 = vcombine.high %v43_v63, %v47_v0  ;;  %v1153_v3 = vld [vmem:[%s1434_s1 + $0x168] sm:$0xff]   ;;  %v900_v4 = vcombine.low %v43_v63, %v47_v0 }
  0x14   :  { %998 = vmatpush3.bf16.msra.mxu0 %v1119_v18  ;;  %v1148_v55 = vld [vmem:[%s1434_s1 + $0x198] sm:$0xff]   ;;  %v1152_v59 = vld [vmem:[%s1434_s1 + $0x1a0] sm:$0xff]   ;;  %v1154_v5 = vld [vmem:[%s1434_s1 + $0x1e8] sm:$0xff]  }
  0x15   :  { %1026 = vmatpush3.bf16.msra.mxu1 %v1120_v19  ;;  %999 = vmatprep.subr.bf16.mxu0 %v1121_v20  ;;  %v42_v60 = vld [vmem:[%s1435_s0 + $0x40] sm:$0xff]  ;;  %v1155_v6 = vld [vmem:[%s1434_s1 + $0x128] sm:$0xff]   ;;  %v1157_v8 = vld [vmem:[%s1434_s1 + $0x170] sm:$0xff]  }
  0x16   :  { %1027 = vmatprep.subr.bf16.mxu1 %v1122_v21  ;;  %v46_v61 = vld [vmem:[%s1435_s0 + $0x60] sm:$0xff]  ;;  %v1156_v7 = vld [vmem:[%s1434_s1 + $0x1a8] sm:$0xff]   ;;  %v1158_v9 = vld [vmem:[%s1434_s1 + $0x1f0] sm:$0xff]  }
  0x17   :  { %v899_v62 = vcombine.high %v42_v60, %v46_v61  ;;  %v898_v1 = vcombine.low %v42_v60, %v46_v61  ;;  %v1159_v10 = vld [vmem:[%s1434_s1 + $0x130] sm:$0xff]   ;;  %v1161_v12 = vld [vmem:[%s1434_s1 + $0x178] sm:$0xff]  }
  0x18   :  { %1000 = vmatpush3.bf16.msra.mxu0 %v1123_v22  ;;  %v1160_v11 = vld [vmem:[%s1434_s1 + $0x1b0] sm:$0xff]   ;;  %v1162_v13 = vld [vmem:[%s1434_s1 + $0x1f8] sm:$0xff]  }
  0x19   :  { %1028 = vmatpush3.bf16.msra.mxu1 %v1124_v23  ;;  %1001 = vmatprep.subr.bf16.mxu0 %v1125_v24  ;;  %v1163_v14 = vld [vmem:[%s1434_s1 + $0x138] sm:$0xff]   ;;  %v36_v16 = vld [vmem:[%s1435_s0 + $0x10] sm:$0xff] }
  0x1a   :  { %1029 = vmatprep.subr.bf16.mxu1 %v1126_v25  ;;  %v1164_v15 = vld [vmem:[%s1434_s1 + $0x1b8] sm:$0xff]   ;;  %v40_v17 = vld [vmem:[%s1435_s0 + $0x30] sm:$0xff] }
  0x1b   :  { %v37_v18 = vld [vmem:[%s1435_s0 + $0x18] sm:$0xff]  ;;  %v894_v20 = vcombine.low %v36_v16, %v40_v17  ;;  %v895_v21 = vcombine.high %v36_v16, %v40_v17  ;;  %v44_v24 = vld [vmem:[%s1435_s0 + $0x50] sm:$0xff] }
  0x1c   :  { %1002 = vmatpush3.bf16.msra.mxu0 %v1127_v26  ;;  %v41_v19 = vld [vmem:[%s1435_s0 + $0x38] sm:$0xff]  ;;  %v48_v25 = vld [vmem:[%s1435_s0 + $0x70] sm:$0xff] }
  0x1d   :  { %1030 = vmatpush3.bf16.msra.mxu1 %v1128_v27  ;;  %1003 = vmatprep.subr.bf16.mxu0 %v1129_v28  ;;  %v896_v22 = vcombine.low %v37_v18, %v41_v19  ;;  %v897_v23 = vcombine.high %v37_v18, %v41_v19  ;;  %v45_v26 = vld [vmem:[%s1435_s0 + $0x58] sm:$0xff]  ;;  %v903_v27 = vcombine.high %v44_v24, %v48_v25 }
  0x1e   :  { %1031 = vmatprep.subr.bf16.mxu1 %v1130_v29  ;;  %v49_v28 = vld [vmem:[%s1435_s0 + $0x78] sm:$0xff] }
  0x1f   :  { %v905_v29 = vcombine.high %v45_v26, %v49_v28 }
  0x20   :  { %1004 = vmatpush3.bf16.msra.mxu0 %v1131_v30  ;;  %v902_v30 = vcombine.low %v44_v24, %v48_v25 }
  0x21   :  { %1032 = vmatpush3.bf16.msra.mxu1 %v1132_v31  ;;  %1045 = vmatprep.subr.bf16.mxu0 %v1133_v40  ;;  %v904_v31 = vcombine.low %v45_v26, %v49_v28 }
  0x22   :  { %1073 = vmatprep.subr.bf16.mxu1 %v1134_v41 }
  0x23   :  { %675 = vmatmul.mubr.bf16.vlgmr.msra.gmra.mrb[0].mxu0 %v890_v35 }
  0x24   :  { %724 = vmatmul.mubr.bf16.vlgmr.msra.gmra.mrb[0].mxu1 %v892_v38  ;;  %1046 = vmatpush3.bf16.msra.mxu0 %v1135_v42 }
  0x25   :  { %1074 = vmatpush3.bf16.msra.mxu1 %v1136_v43  ;;  %1047 = vmatprep.subr.bf16.mxu0 %v1137_v44 }
  0x26   :  { %1075 = vmatprep.subr.bf16.mxu1 %v1138_v45  ;;  %682 = vmatprep.mubr.bf16.mxu0 %v899_v62 }
  0x27   :  { %731 = vmatprep.mubr.bf16.mxu1 %v901_v2 }
  0x28   :  { %1048 = vmatpush3.bf16.msra.mxu0 %v1139_v46 }
  0x29   :  { %1076 = vmatpush3.bf16.msra.mxu1 %v1140_v47  ;;  %1049 = vmatprep.subr.bf16.mxu0 %v1141_v48 }
  0x2a   :  { %1077 = vmatprep.subr.bf16.mxu1 %v1142_v49 }
  0x2b   :  { %683 = vmatmul.mubr.bf16.gmra.mrb[4].mxu0 %v898_v1 }
  0x2c   :  { %1050 = vmatpush3.bf16.msra.mxu0 %v1143_v50  ;;  %732 = vmatmul.mubr.bf16.gmra.mrb[4].mxu1 %v900_v4 }
  0x2d   :  { %1078 = vmatpush3.bf16.msra.mxu1 %v1144_v51  ;;  %1051 = vmatprep.subr.bf16.mxu0 %v1145_v52 }
  0x2e   :  { %1079 = vmatprep.subr.bf16.mxu1 %v1146_v53  ;;  %772 = vmatprep.mubr.bf16.mxu0 %v895_v21 }
  0x2f   :  { %821 = vmatprep.mubr.bf16.mxu1 %v897_v23 }
  0x30   :  { %1052 = vmatpush3.bf16.msra.mxu0 %v1147_v54 }
  0x31   :  { %1080 = vmatpush3.bf16.msra.mxu1 %v1148_v55  ;;  %1053 = vmatprep.subr.bf16.mxu0 %v1149_v56 }
  0x32   :  { %1081 = vmatprep.subr.bf16.mxu1 %v1150_v57 }
  0x34   :  { %1054 = vmatpush3.bf16.msra.mxu0 %v1151_v58 }
  0x35   :  { %1082 = vmatpush3.bf16.msra.mxu1 %v1152_v59  ;;  %1055 = vmatprep.subr.bf16.mxu0 %v1153_v3 }
  0x36   :  { %1083 = vmatprep.subr.bf16.mxu1 %v1154_v5 }
  0x38   :  { %1056 = vmatpush3.bf16.msra.mxu0 %v1155_v6 }
  0x39   :  { %1084 = vmatpush3.bf16.msra.mxu1 %v1156_v7  ;;  %1057 = vmatprep.subr.bf16.mxu0 %v1157_v8 }
  0x3a   :  { %1085 = vmatprep.subr.bf16.mxu1 %v1158_v9  ;;  %v889_v9 = vld [vmem:[%s1436_s2] ss:$0 sm:$0xff] }
  0x3c   :  { %1058 = vmatpush3.bf16.msra.mxu0 %v1159_v10 }
  0x3d   :  { %1086 = vmatpush3.bf16.msra.mxu1 %v1160_v11  ;;  %1059 = vmatprep.subr.bf16.mxu0 %v1161_v12 }
  0x3e   :  { %1087 = vmatprep.subr.bf16.mxu1 %v1162_v13 }
  0x40   :  { %1060 = vmatpush3.bf16.msra.mxu0 %v1163_v14 }
  0x41   :  { %1088 = vmatpush3.bf16.msra.mxu1 %v1164_v15 }
  0x43   :  { %773 = vmatmul.mubr.bf16.vlgmr.msra.gmra.mrb[8].mxu0 %v894_v20 }
  0x44   :  { %822 = vmatmul.mubr.bf16.vlgmr.msra.gmra.mrb[8].mxu1 %v896_v22  ;;  %780 = vmatprep.mubr.bf16.mxu0 %v903_v27 }
  0x45   :  { %829 = vmatprep.mubr.bf16.mxu1 %v905_v29 }
  0x4b   :  { %781 = vmatmul.mubr.bf16.gmra.mrb[12].mxu0 %v902_v30 }
  0x4c   :  { %830 = vmatmul.mubr.bf16.gmra.mrb[12].mxu1 %v904_v31 }
  0xf6   :  { %v1005_v32 = vpop.f32.mrb[0].mxu0 }
  0xf7   :  { %v1033_v33 = vpop.f32.mrb[0].mxu1  ;;  %v1006_v34 = vpop.f32.mrb[1].mxu0 }
  0xf8   :  { %v1007_v35 = vadd.f32 %v1006_v34, %v1005_v32  ;;  %v1034_v36 = vpop.f32.mrb[1].mxu1  ;;  %v1008_v37 = vpop.f32.mrb[2].mxu0 }
  0xf9   :  { %v1035_v38 = vadd.f32 %v1034_v36, %v1033_v33  ;;  %v1036_v39 = vpop.f32.mrb[2].mxu1  ;;  %v1009_v40 = vpop.f32.mrb[3].mxu0 }
  0xfa   :  { %v1010_v41 = vadd.f32 %v1009_v40, %v1008_v37  ;;  %v1037_v42 = vpop.f32.mrb[3].mxu1 }
  0xfb   :  { %v726_v43 = vadd.f32 %v1035_v38, %v1007_v35  ;;  %v1038_v44 = vadd.f32 %v1037_v42, %v1036_v39 }
  0xfd   :  { %v729_v45 = vadd.f32 %v1038_v44, %v1010_v41 }
  0xfe   :  { %v1011_v46 = vpop.f32.mrb[4].mxu0 }
  0xff   :  { %v1039_v47 = vpop.f32.mrb[4].mxu1  ;;  %v1012_v48 = vpop.f32.mrb[5].mxu0 }
 0x100   :  { %v1013_v49 = vadd.f32 %v1012_v48, %v1011_v46  ;;  %v1040_v50 = vpop.f32.mrb[5].mxu1  ;;  %v1014_v51 = vpop.f32.mrb[6].mxu0 }
 0x101   :  { %v1041_v52 = vadd.f32 %v1040_v50, %v1039_v47  ;;  %v1042_v53 = vpop.f32.mrb[6].mxu1  ;;  %v1015_v54 = vpop.f32.mrb[7].mxu0 }
 0x102   :  { %v1016_v55 = vadd.f32 %v1015_v54, %v1014_v51  ;;  %v1043_v56 = vpop.f32.mrb[7].mxu1 }
 0x103   :  { %v734_v57 = vadd.f32 %v1041_v52, %v1013_v49  ;;  %v1044_v58 = vadd.f32 %v1043_v56, %v1042_v53 }
 0x105   :  { %v737_v59 = vadd.f32 %v1044_v58, %v1016_v55 }
 0x116   :  { %v1061_v60 = vpop.f32.mrb[8].mxu0 }
 0x117   :  { %v1089_v61 = vpop.f32.mrb[8].mxu1  ;;  %v1062_v62 = vpop.f32.mrb[9].mxu0 }
 0x118   :  { %v1090_v63 = vpop.f32.mrb[9].mxu1  ;;  %v1063_v0 = vadd.f32 %v1062_v62, %v1061_v60  ;;  %v1064_v2 = vpop.f32.mrb[10].mxu0 }
 0x119   :  { %v1091_v1 = vadd.f32 %v1090_v63, %v1089_v61  ;;  %v1092_v3 = vpop.f32.mrb[10].mxu1  ;;  %v1065_v4 = vpop.f32.mrb[11].mxu0 }
 0x11a   :  { %v1093_v5 = vpop.f32.mrb[11].mxu1  ;;  %v775_v6 = vadd.f32 %v1063_v0, %v726_v43  ;;  %v1066_v7 = vadd.f32 %v1065_v4, %v1064_v2 }
 0x11b   :  { %v1094_v8 = vadd.f32 %v1093_v5, %v1092_v3 }
 0x11c   :  { %v824_v10 = vadd.f32 %v1091_v1, %v775_v6  ;;  %v778_v11 = vadd.f32 %v1066_v7, %v729_v45 }
 0x11e   :  { %v838_v12 = vadd.f32 %v889_v9, %v824_v10  ;;  %v827_v13 = vadd.f32 %v1094_v8, %v778_v11  ;;  %v1067_v14 = vpop.f32.mrb[12].mxu0 }
 0x11f   :  { %v1095_v15 = vpop.f32.mrb[12].mxu1  ;;  %v1068_v16 = vpop.f32.mrb[13].mxu0 }
 0x120   :  { %v1096_v17 = vpop.f32.mrb[13].mxu1  ;;  %v857_v18 = vmul.f32 0.2, %v838_v12  ;;  %v839_v19 = vadd.f32 %v889_v9, %v827_v13  ;;  %v1069_v20 = vadd.f32 %v1068_v16, %v1067_v14  ;;  %v1070_v21 = vpop.f32.mrb[14].mxu0  ;;  %vm853_vm0 = vcmp.ge.f32.partialorder %v838_v12, 0.0 }
 0x121   :  { %v1098_v22 = vpop.f32.mrb[14].mxu1  ;;  %v1097_v23 = vadd.f32 %v1096_v17, %v1095_v15  ;;  %v1071_v24 = vpop.f32.mrb[15].mxu0 }
 0x122   :  { %v1099_v25 = vpop.f32.mrb[15].mxu1  ;;  %vm854_vm1 = vcmp.ge.f32.partialorder %v839_v19, 0.0  ;;  %v858_v26 = vmul.f32 0.2, %v839_v19  ;;  %v783_v27 = vadd.f32 %v1069_v20, %v734_v57  ;;  %v1072_v28 = vadd.f32 %v1071_v24, %v1070_v21 }
 0x123   :  { %v1100_v29 = vadd.f32 %v1099_v25, %v1098_v22  ;;  %v861_v30 = vsel %vm853_vm0, %v838_v12, %v857_v18 }
 0x124   :  { %v862_v31 = vsel %vm854_vm1, %v839_v19, %v858_v26  ;;  %v832_v32 = vadd.f32 %v1097_v23, %v783_v27  ;;  %v786_v34 = vadd.f32 %v1072_v28, %v737_v59 }
 0x125   :  { %v981_v33 = vpack.c.bf16 %v862_v31, %v861_v30 }
 0x126   :  { %v840_v35 = vadd.f32 %v889_v9, %v832_v32  ;;  %v835_v36 = vadd.f32 %v1100_v29, %v786_v34 }
 0x127   :  { %982 = vst [vmem:[%s1437_s3] sm:$0xff] %v981_v33  }
 0x128   :  { %v859_v37 = vmul.f32 0.2, %v840_v35  ;;  %v841_v38 = vadd.f32 %v889_v9, %v835_v36  ;;  %vm855_vm2 = vcmp.ge.f32.partialorder %v840_v35, 0.0 }
 0x12a   :  { %vm856_vm3 = vcmp.ge.f32.partialorder %v841_v38, 0.0  ;;  %v860_v39 = vmul.f32 0.2, %v841_v38  ;;  %v863_v40 = vsel %vm855_vm2, %v840_v35, %v859_v37 }
 0x12c   :  { %v864_v41 = vsel %vm856_vm3, %v841_v38, %v860_v39 }
 0x12d   :  { %v986_v42 = vpack.c.bf16 %v864_v41, %v863_v40 }
 0x12f   :  { %988 = vst [vmem:[%s1437_s3 + $0x8] sm:$0xff] %v986_v42  }

// kernel: discriminator_forward.9
= control target key start
LH: loop header
LB: loop body
LE: loop exit
PB: predicated region body
PF: predicated region fallthrough
CT: control target
= control target key end

     0   :  { %v1948_v22 = vmov 1966171168   ;;  %v292_v24 = vlaneseq  ;;  %s2399_s1 = inlined_call_operand.vmem [shape: bf16[2048,128], index: 1, kind: input, shape index: {}]   ;;  %s2400_s0 = inlined_call_operand.vmem [shape: bf16[2,2048], index: 0, kind: input, shape index: {}]   ;;  %s2401_s2 = inlined_call_operand.vmem [shape: f32[1,128], index: 2, kind: input, shape index: {}]   ;;  %s2402_s3 = inlined_call_operand.vmem [shape: f32[2,128], index: 3, kind: output, shape index: {}]  }
   0x1   :  { %v1814_v0 = vld [vmem:[%s2399_s1 + $0x40] sm:$0xff]   ;;  %v1818_v4 = vld [vmem:[%s2399_s1 + $0x48] sm:$0xff]   ;;  %v1822_v8 = vld [vmem:[%s2399_s1 + $0x50] sm:$0xff]   ;;  %v290_v23 = vunpack.c.l.s4 %v1948_v22 }
   0x2   :  { %v1815_v1 = vld [vmem:[%s2399_s1 + $0xc0] sm:$0xff]   ;;  %1637 = vmatprep.subr.bf16.mxu0 %v1814_v0  ;;  %v1819_v5 = vld [vmem:[%s2399_s1 + $0xc8] sm:$0xff]   ;;  %v1823_v9 = vld [vmem:[%s2399_s1 + $0xd0] sm:$0xff]   ;;  %v293_v30 = vshrl.u32 %v292_v24, 7 }
   0x3   :  { %v1816_v2 = vld [vmem:[%s2399_s1] sm:$0xff]   ;;  %1659 = vmatprep.subr.bf16.mxu1 %v1815_v1  ;;  %v1820_v6 = vld [vmem:[%s2399_s1 + $0x8] sm:$0xff]   ;;  %v1824_v10 = vld [vmem:[%s2399_s1 + $0x10] sm:$0xff]   ;;  %v291_v29 = vunpack.c.0.s8 %v290_v23 }
   0x4   :  { %v1817_v3 = vld [vmem:[%s2399_s1 + $0x80] sm:$0xff]   ;;  %1638 = vmatpush3.bf16.msra.mxu0 %v1816_v2  ;;  %v1821_v7 = vld [vmem:[%s2399_s1 + $0x88] sm:$0xff]   ;;  %v1825_v11 = vld [vmem:[%s2399_s1 + $0x90] sm:$0xff]  }
   0x5   :  { %1660 = vmatpush3.bf16.msra.mxu1 %v1817_v3  ;;  %1639 = vmatprep.subr.bf16.mxu0 %v1818_v4  ;;  %v1826_v12 = vld [vmem:[%s2399_s1 + $0x58] sm:$0xff]   ;;  %v1830_v16 = vld [vmem:[%s2399_s1 + $0x60] sm:$0xff]   ;;  %v1834_v20 = vld [vmem:[%s2399_s1 + $0x68] sm:$0xff]   ;;  %v2059_v35 = vsub.s32 %v291_v29, %v293_v30 }
   0x6   :  { %1661 = vmatprep.subr.bf16.mxu1 %v1819_v5  ;;  %v1827_v13 = vld [vmem:[%s2399_s1 + $0xd8] sm:$0xff]   ;;  %v1831_v17 = vld [vmem:[%s2399_s1 + $0xe0] sm:$0xff]   ;;  %v1835_v21 = vld [vmem:[%s2399_s1 + $0xe8] sm:$0xff]  }
   0x7   :  { %v1828_v14 = vld [vmem:[%s2399_s1 + $0x18] sm:$0xff]   ;;  %v1832_v18 = vld [vmem:[%s2399_s1 + $0x20] sm:$0xff]   ;;  %v1836_v25 = vld [vmem:[%s2399_s1 + $0x28] sm:$0xff]  }
   0x8   :  { %1640 = vmatpush3.bf16.msra.mxu0 %v1820_v6  ;;  %v1829_v15 = vld [vmem:[%s2399_s1 + $0x98] sm:$0xff]   ;;  %v1833_v19 = vld [vmem:[%s2399_s1 + $0xa0] sm:$0xff]   ;;  %v1837_v26 = vld [vmem:[%s2399_s1 + $0xa8] sm:$0xff]  }
   0x9   :  { %1662 = vmatpush3.bf16.msra.mxu1 %v1821_v7  ;;  %1641 = vmatprep.subr.bf16.mxu0 %v1822_v8  ;;  %v1838_v27 = vld [vmem:[%s2399_s1 + $0x70] sm:$0xff]   ;;  %v1842_v33 = vld [vmem:[%s2399_s1 + $0x78] sm:$0xff]   ;;  %v28_v38 = vld [vmem:[%s2400_s0] sm:$0xff] }
   0xa   :  { %1663 = vmatprep.subr.bf16.mxu1 %v1823_v9  ;;  %v1839_v28 = vld [vmem:[%s2399_s1 + $0xf0] sm:$0xff]   ;;  %v1843_v34 = vld [vmem:[%s2399_s1 + $0xf8] sm:$0xff]   ;;  %v288_v39 = vcombine.high %v28_v38, %v28_v38  ;;  %v295_v40 = vrot.slane %v28_v38, %v2059_v35  ;;  %v1848_v41 = vld [vmem:[%s2399_s1 + $0x140] sm:$0xff]  }
   0xb   :  { %v1840_v31 = vld [vmem:[%s2399_s1 + $0x30] sm:$0xff]   ;;  %v1844_v36 = vld [vmem:[%s2399_s1 + $0x38] sm:$0xff]   ;;  %v1849_v42 = vld [vmem:[%s2399_s1 + $0x1c0] sm:$0xff]  }
   0xc   :  { %1642 = vmatpush3.bf16.msra.mxu0 %v1824_v10  ;;  %v1841_v32 = vld [vmem:[%s2399_s1 + $0xb0] sm:$0xff]   ;;  %v1845_v37 = vld [vmem:[%s2399_s1 + $0xb8] sm:$0xff]   ;;  %v303_v43 = vcombine.high %v295_v40, %v295_v40  ;;  %v311_v44 = vrot.slane %v295_v40, %v2059_v35  ;;  %v2079_v45 = vrot.slane %v288_v39, %v2059_v35  ;;  %v1850_v47 = vld [vmem:[%s2399_s1 + $0x100] sm:$0xff]  }
   0xd   :  { %1664 = vmatpush3.bf16.msra.mxu1 %v1825_v11  ;;  %1643 = vmatprep.subr.bf16.mxu0 %v1826_v12  ;;  %v1852_v50 = vld [vmem:[%s2399_s1 + $0x148] sm:$0xff]   ;;  %v1851_v52 = vld [vmem:[%s2399_s1 + $0x180] sm:$0xff]   ;;  %v1856_v57 = vld [vmem:[%s2399_s1 + $0x150] sm:$0xff]  }
   0xe   :  { %1665 = vmatprep.subr.bf16.mxu1 %v1827_v13  ;;  %v325_v46 = vrot.slane %v303_v43, %v2059_v35  ;;  %v304_v48 = vcombine.high %v2079_v45, %v2079_v45  ;;  %v333_v49 = vcombine.high %v311_v44, %v311_v44  ;;  %v1853_v54 = vld [vmem:[%s2399_s1 + $0x1c8] sm:$0xff]   ;;  %v1857_v59 = vld [vmem:[%s2399_s1 + $0x1d0] sm:$0xff]   ;;  %v1860_v61 = vld [vmem:[%s2399_s1 + $0x158] sm:$0xff]  }
   0xf   :  { %v1854_v55 = vld [vmem:[%s2399_s1 + $0x108] sm:$0xff]   ;;  %v1858_v60 = vld [vmem:[%s2399_s1 + $0x110] sm:$0xff]   ;;  %v1861_v63 = vld [vmem:[%s2399_s1 + $0x1d8] sm:$0xff]  }
  0x10   :  { %1644 = vmatpush3.bf16.msra.mxu0 %v1828_v14  ;;  %1202 = vmatprep.mubr.bf16.mxu0 %v325_v46  ;;  %v335_v51 = vcombine.high %v325_v46, %v325_v46  ;;  %v332_v53 = vrot.slane %v304_v48, %v2059_v35  ;;  %v1855_v58 = vld [vmem:[%s2399_s1 + $0x188] sm:$0xff]   ;;  %v1859_v62 = vld [vmem:[%s2399_s1 + $0x190] sm:$0xff]   ;;  %v1862_v0 = vld [vmem:[%s2399_s1 + $0x118] sm:$0xff]  }
  0x11   :  { %1666 = vmatpush3.bf16.msra.mxu1 %v1829_v15  ;;  %1645 = vmatprep.subr.bf16.mxu0 %v1830_v16  ;;  %v1864_v1 = vld [vmem:[%s2399_s1 + $0x160] sm:$0xff]   ;;  %v1863_v2 = vld [vmem:[%s2399_s1 + $0x198] sm:$0xff]   ;;  %v2139_v5 = vld [vmem:[%s2400_s0 + $0x8] sm:$0xff] }
  0x12   :  { %1667 = vmatprep.subr.bf16.mxu1 %v1831_v17  ;;  %1242 = vmatprep.mubr.bf16.mxu1 %v335_v51  ;;  %v336_v56 = vcombine.high %v332_v53, %v332_v53  ;;  %v1865_v3 = vld [vmem:[%s2399_s1 + $0x1e0] sm:$0xff]   ;;  %v1868_v6 = vld [vmem:[%s2399_s1 + $0x168] sm:$0xff]   ;;  %v1872_v10 = vld [vmem:[%s2399_s1 + $0x170] sm:$0xff]   ;;  %v2161_v12 = vrot.slane %v2139_v5, %v2059_v35  ;;  %v337_v46 = vcombine.high %v2139_v5, %v2139_v5 }
  0x13   :  { %v1866_v4 = vld [vmem:[%s2399_s1 + $0x120] sm:$0xff]   ;;  %v1869_v8 = vld [vmem:[%s2399_s1 + $0x1e8] sm:$0xff]   ;;  %v1873_v13 = vld [vmem:[%s2399_s1 + $0x1f0] sm:$0xff]  }
  0x14   :  { %1646 = vmatpush3.bf16.msra.mxu0 %v1832_v18  ;;  %v1867_v7 = vld [vmem:[%s2399_s1 + $0x1a0] sm:$0xff]   ;;  %v1870_v9 = vld [vmem:[%s2399_s1 + $0x128] sm:$0xff]   ;;  %v1874_v14 = vld [vmem:[%s2399_s1 + $0x130] sm:$0xff]   ;;  %v352_v17 = vcombine.high %v2161_v12, %v2161_v12 }
  0x15   :  { %1668 = vmatpush3.bf16.msra.mxu1 %v1833_v19  ;;  %1647 = vmatprep.subr.bf16.mxu0 %v1834_v20  ;;  %v1871_v11 = vld [vmem:[%s2399_s1 + $0x1a8] sm:$0xff]   ;;  %v1876_v15 = vld [vmem:[%s2399_s1 + $0x178] sm:$0xff]   ;;  %v1875_v16 = vld [vmem:[%s2399_s1 + $0x1b0] sm:$0xff]   ;;  %v318_v20 = vrot.slane %v2079_v45, %v2059_v35 }
  0x16   :  { %1669 = vmatprep.subr.bf16.mxu1 %v1835_v21  ;;  %v1877_v18 = vld [vmem:[%s2399_s1 + $0x1f8] sm:$0xff]   ;;  %v1880_v21 = vld [vmem:[%s2399_s1 + $0x240] sm:$0xff]   ;;  %v374_v23 = vrot.slane %v352_v17, %v2059_v35  ;;  %v1885_v30 = vld [vmem:[%s2399_s1 + $0x2c8] sm:$0xff]  }
  0x17   :  { %v1878_v19 = vld [vmem:[%s2399_s1 + $0x138] sm:$0xff]   ;;  %v1881_v24 = vld [vmem:[%s2399_s1 + $0x2c0] sm:$0xff]   ;;  %v1891_v38 = vld [vmem:[%s2399_s1 + $0x290] sm:$0xff]  }
  0x18   :  { %1648 = vmatpush3.bf16.msra.mxu0 %v1836_v25  ;;  %v1879_v22 = vld [vmem:[%s2399_s1 + $0x1b8] sm:$0xff]   ;;  %v1882_v25 = vld [vmem:[%s2399_s1 + $0x200] sm:$0xff]   ;;  %v384_v29 = vcombine.high %v374_v23, %v374_v23  ;;  %v1900_v45 = vld [vmem:[%s2399_s1 + $0x268] sm:$0xff]  }
  0x19   :  { %1670 = vmatpush3.bf16.msra.mxu1 %v1837_v26  ;;  %1649 = vmatprep.subr.bf16.mxu0 %v1838_v27  ;;  %v334_v26 = vcombine.high %v318_v20, %v318_v20  ;;  %v1884_v27 = vld [vmem:[%s2399_s1 + $0x248] sm:$0xff]   ;;  %v1893_v39 = vld [vmem:[%s2399_s1 + $0x2d8] sm:$0xff]   ;;  %v1897_v43 = vld [vmem:[%s2399_s1 + $0x2e0] sm:$0xff]  }
  0x1a   :  { %1671 = vmatprep.subr.bf16.mxu1 %v1839_v28  ;;  %v1883_v28 = vld [vmem:[%s2399_s1 + $0x280] sm:$0xff]   ;;  %v1894_v40 = vld [vmem:[%s2399_s1 + $0x218] sm:$0xff]   ;;  %v1901_v48 = vld [vmem:[%s2399_s1 + $0x2e8] sm:$0xff]  }
  0x1b   :  { %v1903_v51 = vld [vmem:[%s2399_s1 + $0x2a8] sm:$0xff]   ;;  %v1927_v17 = vld [vmem:[%s2399_s1 + $0x398] sm:$0xff]  }
  0x1c   :  { %1650 = vmatpush3.bf16.msra.mxu0 %v1840_v31  ;;  %v1886_v31 = vld [vmem:[%s2399_s1 + $0x208] sm:$0xff]  }
  0x1d   :  { %1672 = vmatpush3.bf16.msra.mxu1 %v1841_v32  ;;  %1651 = vmatprep.subr.bf16.mxu0 %v1842_v33  ;;  %v1888_v32 = vld [vmem:[%s2399_s1 + $0x250] sm:$0xff]   ;;  %v1887_v33 = vld [vmem:[%s2399_s1 + $0x288] sm:$0xff]  }
  0x1e   :  { %1673 = vmatprep.subr.bf16.mxu1 %v1843_v34  ;;  %v1889_v34 = vld [vmem:[%s2399_s1 + $0x2d0] sm:$0xff]  }
  0x20   :  { %1652 = vmatpush3.bf16.msra.mxu0 %v1844_v36  ;;  %v1890_v36 = vld [vmem:[%s2399_s1 + $0x210] sm:$0xff]  }
  0x21   :  { %1674 = vmatpush3.bf16.msra.mxu1 %v1845_v37  ;;  %1681 = vmatprep.subr.bf16.mxu0 %v1848_v41  ;;  %v1892_v37 = vld [vmem:[%s2399_s1 + $0x258] sm:$0xff]   ;;  %v1896_v41 = vld [vmem:[%s2399_s1 + $0x260] sm:$0xff]  }
  0x22   :  { %1703 = vmatprep.subr.bf16.mxu1 %v1849_v42  ;;  %v1895_v42 = vld [vmem:[%s2399_s1 + $0x298] sm:$0xff]  }
  0x23   :  { %1203 = vmatmul.mubr.bf16.vlgmr.msra.gmra.mrb[0].mxu0 %v311_v44  ;;  %v1898_v44 = vld [vmem:[%s2399_s1 + $0x220] sm:$0xff]  }
  0x24   :  { %1682 = vmatpush3.bf16.msra.mxu0 %v1850_v47  ;;  %1243 = vmatmul.mubr.bf16.vlgmr.msra.gmra.mrb[0].mxu1 %v333_v49  ;;  %v1899_v47 = vld [vmem:[%s2399_s1 + $0x2a0] sm:$0xff]   ;;  %v1902_v49 = vld [vmem:[%s2399_s1 + $0x228] sm:$0xff]  }
  0x25   :  { %1683 = vmatprep.subr.bf16.mxu0 %v1852_v50  ;;  %1704 = vmatpush3.bf16.msra.mxu1 %v1851_v52  ;;  %v1904_v50 = vld [vmem:[%s2399_s1 + $0x270] sm:$0xff]   ;;  %v2267_v52 = vrot.slane %v337_v46, %v2059_v35 }
  0x26   :  { %1282 = vmatprep.mubr.bf16.mxu0 %v332_v53  ;;  %1705 = vmatprep.subr.bf16.mxu1 %v1853_v54  ;;  %v1905_v53 = vld [vmem:[%s2399_s1 + $0x2f0] sm:$0xff]  }
  0x27   :  { %1322 = vmatprep.mubr.bf16.mxu1 %v336_v56  ;;  %v1906_v54 = vld [vmem:[%s2399_s1 + $0x230] sm:$0xff]  }
  0x28   :  { %1684 = vmatpush3.bf16.msra.mxu0 %v1854_v55  ;;  %v1908_v55 = vld [vmem:[%s2399_s1 + $0x278] sm:$0xff]   ;;  %v1907_v56 = vld [vmem:[%s2399_s1 + $0x2b0] sm:$0xff]  }
  0x29   :  { %1685 = vmatprep.subr.bf16.mxu0 %v1856_v57  ;;  %1706 = vmatpush3.bf16.msra.mxu1 %v1855_v58  ;;  %v353_v57 = vcombine.high %v2267_v52, %v2267_v52  ;;  %v1909_v58 = vld [vmem:[%s2399_s1 + $0x2f8] sm:$0xff]  }
  0x2a   :  { %1707 = vmatprep.subr.bf16.mxu1 %v1857_v59  ;;  %v1910_v59 = vld [vmem:[%s2399_s1 + $0x238] sm:$0xff]  }
  0x2c   :  { %1686 = vmatpush3.bf16.msra.mxu0 %v1858_v60  ;;  %v360_v60 = vrot.slane %v2161_v12, %v2059_v35  ;;  %v1924_v12 = vld [vmem:[%s2399_s1 + $0x358] sm:$0xff]  }
  0x2d   :  { %1687 = vmatprep.subr.bf16.mxu0 %v1860_v61  ;;  %1708 = vmatpush3.bf16.msra.mxu1 %v1859_v62  ;;  %v1912_v61 = vld [vmem:[%s2399_s1 + $0x340] sm:$0xff]   ;;  %v1911_v62 = vld [vmem:[%s2399_s1 + $0x2b8] sm:$0xff]  }
  0x2e   :  { %1709 = vmatprep.subr.bf16.mxu1 %v1861_v63  ;;  %v381_v63 = vrot.slane %v353_v57, %v2059_v35 }
  0x30   :  { %1688 = vmatpush3.bf16.msra.mxu0 %v1862_v0  ;;  %v1913_v0 = vld [vmem:[%s2399_s1 + $0x3c0] sm:$0xff]   ;;  %v385_v5 = vcombine.high %v381_v63, %v381_v63 }
  0x31   :  { %1689 = vmatprep.subr.bf16.mxu0 %v1864_v1  ;;  %1710 = vmatpush3.bf16.msra.mxu1 %v1863_v2  ;;  %v1914_v1 = vld [vmem:[%s2399_s1 + $0x300] sm:$0xff]   ;;  %v382_v2 = vcombine.high %v360_v60, %v360_v60 }
  0x32   :  { %1711 = vmatprep.subr.bf16.mxu1 %v1865_v3  ;;  %v1916_v3 = vld [vmem:[%s2399_s1 + $0x348] sm:$0xff]  }
  0x34   :  { %1690 = vmatpush3.bf16.msra.mxu0 %v1866_v4  ;;  %v1915_v4 = vld [vmem:[%s2399_s1 + $0x380] sm:$0xff]  }
  0x35   :  { %1691 = vmatprep.subr.bf16.mxu0 %v1868_v6  ;;  %1712 = vmatpush3.bf16.msra.mxu1 %v1867_v7  ;;  %v1917_v6 = vld [vmem:[%s2399_s1 + $0x3c8] sm:$0xff]  }
  0x36   :  { %1713 = vmatprep.subr.bf16.mxu1 %v1869_v8  ;;  %v1918_v7 = vld [vmem:[%s2399_s1 + $0x308] sm:$0xff]   ;;  %v1920_v8 = vld [vmem:[%s2399_s1 + $0x350] sm:$0xff]  }
  0x38   :  { %1692 = vmatpush3.bf16.msra.mxu0 %v1870_v9  ;;  %v1919_v9 = vld [vmem:[%s2399_s1 + $0x388] sm:$0xff]  }
  0x39   :  { %1693 = vmatprep.subr.bf16.mxu0 %v1872_v10  ;;  %1714 = vmatpush3.bf16.msra.mxu1 %v1871_v11  ;;  %v1921_v10 = vld [vmem:[%s2399_s1 + $0x3d0] sm:$0xff]  }
  0x3a   :  { %1715 = vmatprep.subr.bf16.mxu1 %v1873_v13  ;;  %v1922_v11 = vld [vmem:[%s2399_s1 + $0x310] sm:$0xff]  }
  0x3b   :  { %v1923_v13 = vld [vmem:[%s2399_s1 + $0x390] sm:$0xff]  }
  0x3c   :  { %1694 = vmatpush3.bf16.msra.mxu0 %v1874_v14  ;;  %v1925_v14 = vld [vmem:[%s2399_s1 + $0x3d8] sm:$0xff]  }
  0x3d   :  { %1695 = vmatprep.subr.bf16.mxu0 %v1876_v15  ;;  %1716 = vmatpush3.bf16.msra.mxu1 %v1875_v16  ;;  %v1926_v15 = vld [vmem:[%s2399_s1 + $0x318] sm:$0xff]   ;;  %v1928_v16 = vld [vmem:[%s2399_s1 + $0x360] sm:$0xff]  }
  0x3e   :  { %1717 = vmatprep.subr.bf16.mxu1 %v1877_v18  ;;  %v1929_v18 = vld [vmem:[%s2399_s1 + $0x3e0] sm:$0xff]  }
  0x40   :  { %1696 = vmatpush3.bf16.msra.mxu0 %v1878_v19  ;;  %v1930_v19 = vld [vmem:[%s2399_s1 + $0x320] sm:$0xff]  }
  0x41   :  { %1725 = vmatprep.subr.bf16.mxu0 %v1880_v21  ;;  %1718 = vmatpush3.bf16.msra.mxu1 %v1879_v22  ;;  %v1931_v21 = vld [vmem:[%s2399_s1 + $0x3a0] sm:$0xff]   ;;  %v1933_v22 = vld [vmem:[%s2399_s1 + $0x3e8] sm:$0xff]  }
  0x42   :  { %1747 = vmatprep.subr.bf16.mxu1 %v1881_v24  ;;  %v1936_v24 = vld [vmem:[%s2399_s1 + $0x370] sm:$0xff]  }
  0x43   :  { %1283 = vmatmul.mubr.bf16.vlgmr.msra.gmra.mrb[4].mxu0 %v318_v20  ;;  %v1932_v20 = vld [vmem:[%s2399_s1 + $0x368] sm:$0xff]  }
  0x44   :  { %1726 = vmatpush3.bf16.msra.mxu0 %v1882_v25  ;;  %1362 = vmatprep.mubr.bf16.mxu0 %v374_v23  ;;  %v1934_v23 = vld [vmem:[%s2399_s1 + $0x328] sm:$0xff]  }
  0x45   :  { %1323 = vmatmul.mubr.bf16.vlgmr.msra.gmra.mrb[4].mxu1 %v334_v26  ;;  %1727 = vmatprep.subr.bf16.mxu0 %v1884_v27  ;;  %v1935_v25 = vld [vmem:[%s2399_s1 + $0x3a8] sm:$0xff]   ;;  %v1937_v26 = vld [vmem:[%s2399_s1 + $0x3f0] sm:$0xff]  }
  0x46   :  { %1748 = vmatpush3.bf16.msra.mxu1 %v1883_v28  ;;  %1402 = vmatprep.mubr.bf16.mxu1 %v384_v29  ;;  %v1938_v27 = vld [vmem:[%s2399_s1 + $0x330] sm:$0xff]   ;;  %v1940_v28 = vld [vmem:[%s2399_s1 + $0x378] sm:$0xff]  }
  0x47   :  { %1749 = vmatprep.subr.bf16.mxu1 %v1885_v30  ;;  %v1939_v29 = vld [vmem:[%s2399_s1 + $0x3b0] sm:$0xff]   ;;  %v1941_v30 = vld [vmem:[%s2399_s1 + $0x3f8] sm:$0xff]  }
  0x48   :  { %1728 = vmatpush3.bf16.msra.mxu0 %v1886_v31  ;;  %v1942_v31 = vld [vmem:[%s2399_s1 + $0x338] sm:$0xff]  }
  0x49   :  { %1729 = vmatprep.subr.bf16.mxu0 %v1888_v32  ;;  %v367_v32 = vrot.slane %v2267_v52, %v2059_v35 }
  0x4a   :  { %1750 = vmatpush3.bf16.msra.mxu1 %v1887_v33  ;;  %v1943_v33 = vld [vmem:[%s2399_s1 + $0x3b8] sm:$0xff]  }
  0x4b   :  { %1751 = vmatprep.subr.bf16.mxu1 %v1889_v34  ;;  %v383_v34 = vcombine.high %v367_v32, %v367_v32 }
  0x4c   :  { %1730 = vmatpush3.bf16.msra.mxu0 %v1890_v36  ;;  %v1507_v36 = vld [vmem:[%s2401_s2] ss:$0 sm:$0xff] }
  0x4d   :  { %1731 = vmatprep.subr.bf16.mxu0 %v1892_v37  ;;  %26 = vst [vmem:[#allocation2] sm:$0x3] %v1507_v36 }
  0x4e   :  { %1752 = vmatpush3.bf16.msra.mxu1 %v1891_v38 }
  0x4f   :  { %1753 = vmatprep.subr.bf16.mxu1 %v1893_v39 }
  0x50   :  { %1732 = vmatpush3.bf16.msra.mxu0 %v1894_v40 }
  0x51   :  { %1733 = vmatprep.subr.bf16.mxu0 %v1896_v41 }
  0x52   :  { %1754 = vmatpush3.bf16.msra.mxu1 %v1895_v42 }
  0x53   :  { %1755 = vmatprep.subr.bf16.mxu1 %v1897_v43 }
  0x54   :  { %1734 = vmatpush3.bf16.msra.mxu0 %v1898_v44 }
  0x55   :  { %1735 = vmatprep.subr.bf16.mxu0 %v1900_v45 }
  0x56   :  { %1756 = vmatpush3.bf16.msra.mxu1 %v1899_v47 }
  0x57   :  { %1757 = vmatprep.subr.bf16.mxu1 %v1901_v48 }
  0x58   :  { %1736 = vmatpush3.bf16.msra.mxu0 %v1902_v49 }
  0x59   :  { %1737 = vmatprep.subr.bf16.mxu0 %v1904_v50 }
  0x5a   :  { %1758 = vmatpush3.bf16.msra.mxu1 %v1903_v51 }
  0x5b   :  { %1759 = vmatprep.subr.bf16.mxu1 %v1905_v53 }
  0x5c   :  { %1738 = vmatpush3.bf16.msra.mxu0 %v1906_v54 }
  0x5d   :  { %1739 = vmatprep.subr.bf16.mxu0 %v1908_v55 }
  0x5e   :  { %1760 = vmatpush3.bf16.msra.mxu1 %v1907_v56 }
  0x5f   :  { %1761 = vmatprep.subr.bf16.mxu1 %v1909_v58 }
  0x60   :  { %1740 = vmatpush3.bf16.msra.mxu0 %v1910_v59 }
  0x61   :  { %1769 = vmatprep.subr.bf16.mxu0 %v1912_v61 }
  0x62   :  { %1762 = vmatpush3.bf16.msra.mxu1 %v1911_v62 }
  0x63   :  { %1363 = vmatmul.mubr.bf16.vlgmr.msra.gmra.mrb[8].mxu0 %v360_v60  ;;  %1791 = vmatprep.subr.bf16.mxu1 %v1913_v0 }
  0x64   :  { %1770 = vmatpush3.bf16.msra.mxu0 %v1914_v1  ;;  %1442 = vmatprep.mubr.bf16.mxu0 %v381_v63 }
  0x65   :  { %1403 = vmatmul.mubr.bf16.vlgmr.msra.gmra.mrb[8].mxu1 %v382_v2  ;;  %1771 = vmatprep.subr.bf16.mxu0 %v1916_v3 }
  0x66   :  { %1792 = vmatpush3.bf16.msra.mxu1 %v1915_v4  ;;  %1482 = vmatprep.mubr.bf16.mxu1 %v385_v5 }
  0x67   :  { %1793 = vmatprep.subr.bf16.mxu1 %v1917_v6 }
  0x68   :  { %1772 = vmatpush3.bf16.msra.mxu0 %v1918_v7 }
  0x69   :  { %1773 = vmatprep.subr.bf16.mxu0 %v1920_v8 }
  0x6a   :  { %1794 = vmatpush3.bf16.msra.mxu1 %v1919_v9 }
  0x6b   :  { %1795 = vmatprep.subr.bf16.mxu1 %v1921_v10 }
  0x6c   :  { %1774 = vmatpush3.bf16.msra.mxu0 %v1922_v11 }
  0x6d   :  { %1775 = vmatprep.subr.bf16.mxu0 %v1924_v12 }
  0x6e   :  { %1796 = vmatpush3.bf16.msra.mxu1 %v1923_v13 }
  0x6f   :  { %1797 = vmatprep.subr.bf16.mxu1 %v1925_v14 }
  0x70   :  { %1776 = vmatpush3.bf16.msra.mxu0 %v1926_v15 }
  0x71   :  { %1777 = vmatprep.subr.bf16.mxu0 %v1928_v16 }
  0x72   :  { %1798 = vmatpush3.bf16.msra.mxu1 %v1927_v17  ;;  %v27_v17 = vld [vmem:[#allocation2] sm:$0x3] }
  0x73   :  { %1799 = vmatprep.subr.bf16.mxu1 %v1929_v18 }
  0x74   :  { %1778 = vmatpush3.bf16.msra.mxu0 %v1930_v19 }
  0x75   :  { %1779 = vmatprep.subr.bf16.mxu0 %v1932_v20 }
  0x76   :  { %1800 = vmatpush3.bf16.msra.mxu1 %v1931_v21 }
  0x77   :  { %1801 = vmatprep.subr.bf16.mxu1 %v1933_v22 }
  0x78   :  { %1780 = vmatpush3.bf16.msra.mxu0 %v1934_v23 }
  0x79   :  { %1781 = vmatprep.subr.bf16.mxu0 %v1936_v24 }
  0x7a   :  { %1802 = vmatpush3.bf16.msra.mxu1 %v1935_v25 }
  0x7b   :  { %1803 = vmatprep.subr.bf16.mxu1 %v1937_v26 }
  0x7c   :  { %1782 = vmatpush3.bf16.msra.mxu0 %v1938_v27 }
  0x7d   :  { %1783 = vmatprep.subr.bf16.mxu0 %v1940_v28 }
  0x7e   :  { %1804 = vmatpush3.bf16.msra.mxu1 %v1939_v29 }
  0x7f   :  { %1805 = vmatprep.subr.bf16.mxu1 %v1941_v30 }
  0x80   :  { %1784 = vmatpush3.bf16.msra.mxu0 %v1942_v31 }
  0x82   :  { %1806 = vmatpush3.bf16.msra.mxu1 %v1943_v33 }
  0x83   :  { %1443 = vmatmul.mubr.bf16.vlgmr.msra.gmra.mrb[12].mxu0 %v367_v32 }
  0x85   :  { %1483 = vmatmul.mubr.bf16.vlgmr.msra.gmra.mrb[12].mxu1 %v383_v34 }
  0xf6   :  { %v1653_v37 = vpop.f32.mrb[0].mxu0 }
  0xf7   :  { %v1654_v38 = vpop.f32.mrb[1].mxu0  ;;  %v1675_v39 = vpop.f32.mrb[0].mxu1 }
  0xf8   :  { %v1655_v35 = vadd.f32 %v1654_v38, %v1653_v37  ;;  %v1656_v40 = vpop.f32.mrb[2].mxu0  ;;  %v1676_v41 = vpop.f32.mrb[1].mxu1 }
  0xf9   :  { %v1657_v42 = vpop.f32.mrb[3].mxu0  ;;  %v1677_v43 = vadd.f32 %v1676_v41, %v1675_v39  ;;  %v1678_v44 = vpop.f32.mrb[2].mxu1 }
  0xfa   :  { %v1679_v45 = vpop.f32.mrb[3].mxu1 }
  0xfb   :  { %v1245_v46 = vadd.f32 %v1677_v43, %v1655_v35 }
 0x116   :  { %v1697_v47 = vpop.f32.mrb[4].mxu0 }
 0x117   :  { %v1698_v48 = vpop.f32.mrb[5].mxu0 }
 0x118   :  { %v1719_v49 = vpop.f32.mrb[4].mxu1  ;;  %v1699_v50 = vadd.f32 %v1698_v48, %v1697_v47  ;;  %v1700_v51 = vpop.f32.mrb[6].mxu0 }
 0x119   :  { %v1720_v52 = vpop.f32.mrb[5].mxu1  ;;  %v1701_v53 = vpop.f32.mrb[7].mxu0 }
 0x11a   :  { %v1285_v54 = vadd.f32 %v1699_v50, %v1245_v46  ;;  %v1721_v55 = vadd.f32 %v1720_v52, %v1719_v49  ;;  %v1722_v56 = vpop.f32.mrb[6].mxu1 }
 0x11b   :  { %v1723_v57 = vpop.f32.mrb[7].mxu1 }
 0x11c   :  { %v1325_v58 = vadd.f32 %v1721_v55, %v1285_v54 }
 0x136   :  { %v1741_v59 = vpop.f32.mrb[8].mxu0 }
 0x137   :  { %v1742_v60 = vpop.f32.mrb[9].mxu0 }
 0x138   :  { %v1763_v61 = vpop.f32.mrb[8].mxu1  ;;  %v1743_v62 = vadd.f32 %v1742_v60, %v1741_v59  ;;  %v1744_v63 = vpop.f32.mrb[10].mxu0 }
 0x139   :  { %v1764_v0 = vpop.f32.mrb[9].mxu1  ;;  %v1745_v1 = vpop.f32.mrb[11].mxu0 }
 0x13a   :  { %v1365_v2 = vadd.f32 %v1743_v62, %v1325_v58  ;;  %v1765_v3 = vadd.f32 %v1764_v0, %v1763_v61  ;;  %v1766_v4 = vpop.f32.mrb[10].mxu1 }
 0x13b   :  { %v1767_v5 = vpop.f32.mrb[11].mxu1 }
 0x13c   :  { %v1405_v6 = vadd.f32 %v1765_v3, %v1365_v2 }
 0x156   :  { %v1785_v7 = vpop.f32.mrb[12].mxu0 }
 0x157   :  { %v1786_v8 = vpop.f32.mrb[13].mxu0 }
 0x158   :  { %v1807_v9 = vpop.f32.mrb[12].mxu1  ;;  %v1787_v10 = vadd.f32 %v1786_v8, %v1785_v7  ;;  %v1788_v11 = vpop.f32.mrb[14].mxu0 }
 0x159   :  { %v1808_v12 = vpop.f32.mrb[13].mxu1  ;;  %v1789_v13 = vpop.f32.mrb[15].mxu0 }
 0x15a   :  { %v1445_v14 = vadd.f32 %v1787_v10, %v1405_v6  ;;  %v1809_v15 = vadd.f32 %v1808_v12, %v1807_v9  ;;  %v1810_v16 = vpop.f32.mrb[14].mxu1 }
 0x15b   :  { %v1811_v18 = vpop.f32.mrb[15].mxu1 }
 0x15c   :  { %v1485_v19 = vadd.f32 %v1809_v15, %v1445_v14 }
 0x15e   :  { %v1490_v20 = vadd.f32 %v1485_v19, %v27_v17 }
 0x160   :  { %1491 = vst [vmem:[#allocation2] sm:$0x3] %v1490_v20 }
 0x167   :  { %v1495_v21 = vld [vmem:[#allocation2] sm:$0x3] }
 0x168   :  { %v1636_v22 = vmul.f32 -1.442695, %v1495_v21 }
 0x16a   :  { %1944 = vpow2.f32 %v1636_v22 }
 0x174   :  { %v1945_v23 = vpop.eup %1944 }
 0x175   :  { %v1499_v24 = vadd.f32 1.0, %v1945_v23 }
 0x177   :  { %1946 = vrcp.f32 %v1499_v24 }
 0x181   :  { %v1947_v25 = vpop.eup %1946 }
 0x182   :  { %1502 = vst [vmem:[%s2402_s3] sm:$0x3] %v1947_v25 }

</bundles_post_ra>
